<compile_context>
chip_gen: v7x
topology: tpu7x:2x2x1
jax: 0.10.0
libtpu: 0.0.40
codegen_flags: <defaults>
</compile_context>

<pallas_src>
import functools

import jax
import jax.numpy as jnp
from jax import lax
from jax.experimental import pallas as pl
from jax.experimental.pallas import tpu as pltpu

_EPS = 1e-5      # nn.BatchNorm2d default eps
_LANE = 128      # channels padded to a multiple of the lane width


# ---------------------------------------------------------------------------
# small helpers
# ---------------------------------------------------------------------------
def _round_up(x, m):
    return (x + m - 1) // m * m


def _fold_bn(bnp):
    """Eval-mode BatchNorm -> per-channel (scale, bias)."""
    gamma, beta, mean, var = bnp
    scale = gamma * lax.rsqrt(var + _EPS)
    bias = beta - mean * scale
    return scale, bias


def _prep_weight(w_oihw, scale, cinp, coutp, extra_scale=1.0):
    """(O, I, kh, kw) conv weight -> (kh*kw, cinp, coutp) bf16, BN scale folded."""
    o, i, kh, kw = w_oihw.shape
    w = jnp.transpose(w_oihw, (2, 3, 1, 0)).reshape(kh * kw, i, o)
    w = w * (scale * extra_scale)[None, None, :]
    w = jnp.pad(w, ((0, 0), (0, cinp - i), (0, coutp - o)))
    return w.astype(jnp.bfloat16)


def _prep_bias(bias, coutp):
    return jnp.pad(bias, (0, coutp - bias.shape[0])).reshape(1, coutp).astype(jnp.float32)


# ---------------------------------------------------------------------------
# fused BasicBlock kernel (one grid step == one image)
# ---------------------------------------------------------------------------
def _basic_block_kernel(x_ref, w1_ref, b1_ref, w2_ref, b2_ref, wd_ref, bd_ref,
                        out_ref, scr_ref, *,
                        taps1, tapsd, H1, W1, W2p, identity_res, ident_tap):
    """x_ref: (1, P, Lflat, cinp) bf16 flat parity planes of the padded image.
    scr_ref: ((H1+4)*W2p, coutp) bf16 flat, halo-padded conv1 output.
    taps*: static (plane_index, flat_base_offset) per conv tap.
    """
    coutp = out_ref.shape[-1]
    M = H1 * W2p                               # one matmul row per (row, padded col)

    def conv(w_ref, taps):
        acc = jnp.zeros((M, coutp), jnp.float32)
        for t, (p, base) in enumerate(taps):
            patch = x_ref[0, p, pl.ds(base, M), :]          # (M, cinp) bf16
            acc = acc + jnp.dot(patch, w_ref[t],
                                preferred_element_type=jnp.float32)
        return acc

    # ---- conv1 + bn1 + relu -> VMEM scratch (flat, halo rows/cols zero) ----
    y1 = jnp.maximum(conv(w1_ref, taps1) + b1_ref[0], 0.0)
    col = lax.broadcasted_iota(jnp.int32, (M, 1), 0) % W2p
    y1 = jnp.where(col < W1, y1, 0.0).astype(scr_ref.dtype)  # zero wrap/junk cols
    zeros2 = jnp.zeros((2 * W2p, coutp), scr_ref.dtype)
    scr_ref[pl.ds(0, 2 * W2p), :] = zeros2                    # top halo rows
    scr_ref[pl.ds((2 + H1) * W2p, 2 * W2p), :] = zeros2       # bottom halo rows
    scr_ref[pl.ds(2 * W2p, M), :] = y1                        # rows [2, 2+H1)

    # ---- residual / downsample branch (kept in registers/VMEM, no HBM) ----
    if identity_res:
        p, base = ident_tap
        res = x_ref[0, p, pl.ds(base, M), :].astype(jnp.float32)
    else:
        res = conv(wd_ref, tapsd) + bd_ref[0]

    # ---- conv2 + bn2 + residual add + relu ----
    acc = res
    for t in range(9):
        ky, kx = t // 3, t % 3
        base = (ky + 1) * W2p + (kx - 1)        # >= W2p-1, always non-negative
        acc = acc + jnp.dot(scr_ref[pl.ds(base, M), :], w2_ref[t],
                            preferred_element_type=jnp.float32)
    acc = jnp.maximum(acc + b2_ref[0], 0.0)
    out_ref[0] = acc.reshape(H1, W2p, coutp)[:, :W1, :].astype(out_ref.dtype)


# ---------------------------------------------------------------------------
# BasicBlock forward (Pallas)
# ---------------------------------------------------------------------------
def basic_block_forward(x_nchw, params, *, out_dtype=jnp.float32):
    """Pallas implementation of BasicBlock.forward (eval-mode BatchNorm)."""
    stride = int(params["stride"])
    x = jnp.transpose(x_nchw, (0, 2, 3, 1))                   # NCHW -> NHWC
    N, H, W, cin = x.shape
    cout = params["w1"].shape[0]
    cinp = _round_up(cin, _LANE)
    coutp = _round_up(cout, _LANE)
    has_downsample = (stride != 1) or (cin != cout)

    if stride == 1:
        H1, W1 = H, W
        W2p = _round_up(W1 + 2, 8)                            # padded flat width
        Hpad = H1 + 3
        xp = jnp.pad(x, ((0, 0), (1, Hpad - H - 1), (1, W2p - W - 1),
                         (0, cinp - cin)))
        planes = xp.astype(jnp.bfloat16).reshape(N, 1, Hpad * W2p, cinp)
        n_planes, Lflat = 1, Hpad * W2p
        taps1 = tuple((0, ky * W2p + kx) for ky in range(3) for kx in range(3))
        tapsd = ((0, W2p + 1),)                               # 1x1 conv tap
        ident_tap = (0, W2p + 1)
    else:
        assert stride == 2, "only stride 1 or 2 supported"
        assert H % 2 == 0 and W % 2 == 0, \
            "stride-2 BasicBlock needs even spatial dims (AvgPool downsample)"
        H1, W1 = H // 2, W // 2
        W2p = _round_up(W1 + 2, 8)
        Hp2 = H1 + 2
        Hpad, Wpad = 2 * Hp2, 2 * W2p
        xp = jnp.pad(x, ((0, 0), (1, Hpad - H - 1), (1, Wpad - W - 1),
                         (0, cinp - cin)))
        # de-interleave rows/cols into 4 parity planes: every stride-2 tap
        # becomes a contiguous flat-shift slice (exact flops, exact output width)
        planes = xp.astype(jnp.bfloat16).reshape(N, Hp2, 2, W2p, 2, cinp)
        planes = planes.transpose(0, 2, 4, 1, 3, 5).reshape(N, 4, Hp2 * W2p, cinp)
        n_planes, Lflat = 4, Hp2 * W2p
        taps1 = tuple(((ky % 2) * 2 + (kx % 2), (ky // 2) * W2p + (kx // 2))
                      for ky in range(3) for kx in range(3))
        tapsd = tuple((((1 + dy) % 2) * 2 + ((1 + dx) % 2),
                       ((1 + dy) // 2) * W2p + ((1 + dx) // 2))
                      for dy in range(2) for dx in range(2))
        ident_tap = None

    # ---- weights with BN scale folded in (bf16), per-channel f32 bias ----
    s1, b1 = _fold_bn(params["bn1"])
    s2, b2 = _fold_bn(params["bn2"])
    w1t = _prep_weight(params["w1"], s1, cinp, coutp)
    w2t = _prep_weight(params["w2"], s2, coutp, coutp)
    b1v = _prep_bias(b1, coutp)
    b2v = _prep_bias(b2, coutp)

    identity_res = not has_downsample
    if has_downsample:
        sd, bd = _fold_bn(params["bnd"])
        if stride == 2:
            # AvgPool2d(2,2) + 1x1 conv == 2x2 stride-2 conv with weights wd/4
            wd22 = jnp.tile(params["wd"], (1, 1, 2, 2))
            wdt = _prep_weight(wd22, sd, cinp, coutp, extra_scale=0.25)
        else:
            wdt = _prep_weight(params["wd"], sd, cinp, coutp)
        bdv = _prep_bias(bd, coutp)
    else:
        wdt = jnp.zeros((1, cinp, coutp), jnp.bfloat16)       # unused dummy
        bdv = jnp.zeros((1, coutp), jnp.float32)

    scr_rows = (H1 + 4) * W2p
    M = H1 * W2p
    kern = functools.partial(
        _basic_block_kernel, taps1=taps1, tapsd=tapsd, H1=H1, W1=W1, W2p=W2p,
        identity_res=identity_res, ident_tap=ident_tap)

    out_bytes = jnp.dtype(out_dtype).itemsize
    n_taps_d = 0 if identity_res else len(tapsd)
    flops = 2 * N * M * coutp * (len(taps1) * cinp + 9 * coutp + n_taps_d * cinp)
    bytes_accessed = int(planes.size * 2 + (w1t.size + w2t.size + wdt.size) * 2
                         + N * H1 * W1 * coutp * out_bytes)

    # rough VMEM footprint: double-buffered blocks + scratch + f32 accumulators
    vmem_bytes = (2 * n_planes * Lflat * cinp * 2
                  + 2 * (w1t.size + w2t.size + wdt.size) * 2
                  + 2 * H1 * W1 * coutp * out_bytes
                  + scr_rows * coutp * 2
                  + 3 * M * coutp * 4)
    vmem_limit = int(min(100 * 1024 * 1024, max(32 * 1024 * 1024, 2 * vmem_bytes)))

    out = pl.pallas_call(
        kern,
        out_shape=jax.ShapeDtypeStruct((N, H1, W1, coutp), out_dtype),
        grid=(N,),
        in_specs=[
            pl.BlockSpec((1, n_planes, Lflat, cinp), lambda n: (n, 0, 0, 0)),
            pl.BlockSpec((9, cinp, coutp), lambda n: (0, 0, 0)),
            pl.BlockSpec((1, coutp), lambda n: (0, 0)),
            pl.BlockSpec((9, coutp, coutp), lambda n: (0, 0, 0)),
            pl.BlockSpec((1, coutp), lambda n: (0, 0)),
            pl.BlockSpec((wdt.shape[0], cinp, coutp), lambda n: (0, 0, 0)),
            pl.BlockSpec((1, coutp), lambda n: (0, 0)),
        ],
        out_specs=pl.BlockSpec((1, H1, W1, coutp), lambda n: (n, 0, 0, 0)),
        scratch_shapes=[pltpu.VMEM((scr_rows, coutp), jnp.bfloat16)],
        compiler_params=pltpu.CompilerParams(
            dimension_semantics=("parallel",),       # batch -> v7x TC sharding
            vmem_limit_bytes=vmem_limit),
        cost_estimate=pl.CostEstimate(flops=flops, transcendentals=0,
                                      bytes_accessed=bytes_accessed),
    )(planes, w1t, b1v, w2t, b2v, wdt, bdv)

    y = out[:, :, :, :cout]
    return jnp.transpose(y, (0, 3, 1, 2))                     # NHWC -> NCHW


# ---------------------------------------------------------------------------
# Parameters (deterministic, PyTorch-style shapes)
# ---------------------------------------------------------------------------
def init_basic_block_params(key, in_channels, out_channels, stride=1):
    ks = jax.random.split(key, 6)

    def conv_w(k, cout, cin, kh, kw):          # PyTorch layout (O, I, kh, kw)
        fan_in = cin * kh * kw
        bound = 1.0 / (fan_in ** 0.5)
        return jax.random.uniform(k, (cout, cin, kh, kw), jnp.float32, -bound, bound)

    def bn_p(k, c):                            # (gamma, beta, running_mean, running_var)
        k1, k2, k3, k4 = jax.random.split(k, 4)
        return (jax.random.uniform(k1, (c,), jnp.float32, 0.5, 1.5),
                0.1 * jax.random.normal(k2, (c,), jnp.float32),
                0.1 * jax.random.normal(k3, (c,), jnp.float32),
                jax.random.uniform(k4, (c,), jnp.float32, 0.5, 1.5))

    p = {
        "w1": conv_w(ks[0], out_channels, in_channels, 3, 3),
        "bn1": bn_p(ks[1], out_channels),
        "w2": conv_w(ks[2], out_channels, out_channels, 3, 3),
        "bn2": bn_p(ks[3], out_channels),
        "stride": stride,
    }
    if stride != 1 or in_channels != out_channels:
        p["wd"] = conv_w(ks[4], out_channels, in_channels, 1, 1)
        p["bnd"] = bn_p(ks[5], out_channels)
    return p


# ---------------------------------------------------------------------------
# pure-JAX reference (XLA convs, bf16 matmul precision like the kernel)
# ---------------------------------------------------------------------------
def basic_block_reference(x_nchw, params):
    stride = params["stride"]

    def conv(x, w, s, pad):
        return lax.conv_general_dilated(
            x.astype(jnp.bfloat16), w.astype(jnp.bfloat16), (s, s),
            ((pad, pad), (pad, pad)),
            dimension_numbers=("NCHW", "OIHW", "NCHW"),
            preferred_element_type=jnp.float32)

    def bn(x, bnp):
        gamma, beta, mean, var = bnp
        s = gamma / jnp.sqrt(var + _EPS)
        return x * s[None, :, None, None] + (beta - mean * s)[None, :, None, None]

    x = x_nchw.astype(jnp.float32)
    out = jnp.maximum(bn(conv(x, params["w1"], stride, 1), params["bn1"]), 0.0)
    out = bn(conv(out, params["w2"], 1, 1), params["bn2"])
    cout, cin = params["w1"].shape[0], params["w1"].shape[1]
    if stride != 1 or cin != cout:
        if stride == 2:
            N, C, H, W = x.shape
            xp = x[:, :, :(H // 2) * 2, :(W // 2) * 2]
            xp = xp.reshape(N, C, H // 2, 2, W // 2, 2).mean(axis=(3, 5))
            residual = bn(conv(xp, params["wd"], 1, 0), params["bnd"])
        else:
            residual = bn(conv(x, params["wd"], stride, 0), params["bnd"])
    else:
        residual = x
    return jnp.maximum(out + residual, 0.0)


if __name__ == "__main__":
    key = jax.random.PRNGKey(0)
    kx, kp1, kp2, kp3 = jax.random.split(key, 4)
    x = jax.random.normal(kx, (2, 4, 16, 16), jnp.float32)    # NCHW, like PyTorch

    # Case 1: stride=1, in != out  -> 1x1 conv + BN downsample branch
    p1 = init_basic_block_params(kp1, in_channels=4, out_channels=8, stride=1)
    y1 = jax.block_until_ready(basic_block_forward(x, p1))
    r1 = basic_block_reference(x, p1)
    assert y1.shape == (2, 8, 16, 16)
    assert jnp.allclose(y1, r1, rtol=3e-2, atol=3e-2), float(jnp.max(jnp.abs(y1 - r1)))

    # Case 2: stride=2 -> AvgPool2d + 1x1 conv + BN downsample branch
    p2 = init_basic_block_params(kp2, in_channels=4, out_channels=8, stride=2)
    y2 = jax.block_until_ready(basic_block_forward(x, p2))
    r2 = basic_block_reference(x, p2)
    assert y2.shape == (2, 8, 8, 8)
    assert jnp.allclose(y2, r2, rtol=3e-2, atol=3e-2), float(jnp.max(jnp.abs(y2 - r2)))

    # Case 3: stride=1, in == out -> identity residual (no downsample)
    x3 = jax.random.normal(kx, (2, 8, 16, 16), jnp.float32)
    p3 = init_basic_block_params(kp3, in_channels=8, out_channels=8, stride=1)
    y3 = jax.block_until_ready(basic_block_forward(x3, p3))
    r3 = basic_block_reference(x3, p3)
    assert y3.shape == (2, 8, 16, 16)
    assert jnp.allclose(y3, r3, rtol=3e-2, atol=3e-2), float(jnp.max(jnp.abs(y3 - r3)))

    print("KERNEL_OK")
</pallas_src>

<mosaic_0001>
module attributes {stable_mosaic.version = 11 : i64} {
  func.func @_basic_block_kernel(%arg0: i32, %arg1: memref<1x1x456x128xbf16, #tpu.memory_space<vmem>>, %arg2: memref<9x128x128xbf16, #tpu.memory_space<vmem>>, %arg3: memref<1x128xf32, #tpu.memory_space<vmem>>, %arg4: memref<9x128x128xbf16, #tpu.memory_space<vmem>>, %arg5: memref<1x128xf32, #tpu.memory_space<vmem>>, %arg6: memref<1x128x128xbf16, #tpu.memory_space<vmem>>, %arg7: memref<1x128xf32, #tpu.memory_space<vmem>>, %arg8: memref<1x16x16x128xf32, #tpu.memory_space<vmem>>, %arg9: memref<480x128xbf16, #tpu.memory_space<vmem>>) attributes {dimension_semantics = [#tpu.dimension_semantics<parallel>], iteration_bounds = array<i64: 2>, scalar_prefetch = 0 : i64, scratch_operands = 1 : i64, tpu.core_type = #tpu.core_type<tc>, window_params = [{transform_indices = @transform_0, window_bounds = array<i64: 1, 1, 456, 128>}, {pipeline_mode = #tpu.pipeline_mode<synchronous>, transform_indices = @transform_1, window_bounds = array<i64: 9, 128, 128>}, {pipeline_mode = #tpu.pipeline_mode<synchronous>, transform_indices = @transform_2, window_bounds = array<i64: 1, 128>}, {pipeline_mode = #tpu.pipeline_mode<synchronous>, transform_indices = @transform_3, window_bounds = array<i64: 9, 128, 128>}, {pipeline_mode = #tpu.pipeline_mode<synchronous>, transform_indices = @transform_4, window_bounds = array<i64: 1, 128>}, {pipeline_mode = #tpu.pipeline_mode<synchronous>, transform_indices = @transform_5, window_bounds = array<i64: 1, 128, 128>}, {pipeline_mode = #tpu.pipeline_mode<synchronous>, transform_indices = @transform_6, window_bounds = array<i64: 1, 128>}, {transform_indices = @transform_7, window_bounds = array<i64: 1, 16, 16, 128>}]} {
    %cst = arith.constant 0.000000e+00 : f32
    %0 = vector.broadcast %cst : f32 to vector<384x128xf32>
    %c0 = arith.constant 0 : index
    %c0_0 = arith.constant 0 : index
    %c0_1 = arith.constant 0 : index
    %c0_2 = arith.constant 0 : index
    %1 = vector.load %arg1[%c0, %c0_0, %c0_1, %c0_2] : memref<1x1x456x128xbf16, #tpu.memory_space<vmem>>, vector<1x1x384x128xbf16>
    %2 = vector.shape_cast %1 : vector<1x1x384x128xbf16> to vector<384x128xbf16>
    %c0_3 = arith.constant 0 : index
    %c0_4 = arith.constant 0 : index
    %c0_5 = arith.constant 0 : index
    %3 = vector.load %arg2[%c0_3, %c0_4, %c0_5] : memref<9x128x128xbf16, #tpu.memory_space<vmem>>, vector<1x128x128xbf16>
    %4 = vector.shape_cast %3 : vector<1x128x128xbf16> to vector<128x128xbf16>
    %cst_6 = arith.constant dense<0.000000e+00> : vector<384x128xf32>
    %5 = tpu.matmul %2, %4, %cst_6 {dimension_numbers = #tpu.dot_dimension_numbers<[1], [0], [0], [1], [0, 0, 1, 1], [], []>} : vector<384x128xbf16>, vector<128x128xbf16>, vector<384x128xf32> -> vector<384x128xf32>
    %6 = arith.addf %0, %5 : vector<384x128xf32>
    %c0_7 = arith.constant 0 : index
    %c0_8 = arith.constant 0 : index
    %c1 = arith.constant 1 : index
    %c0_9 = arith.constant 0 : index
    %7 = vector.load %arg1[%c0_7, %c0_8, %c1, %c0_9] : memref<1x1x456x128xbf16, #tpu.memory_space<vmem>>, vector<1x1x384x128xbf16>
    %8 = vector.shape_cast %7 : vector<1x1x384x128xbf16> to vector<384x128xbf16>
    %c1_10 = arith.constant 1 : index
    %c0_11 = arith.constant 0 : index
    %c0_12 = arith.constant 0 : index
    %9 = vector.load %arg2[%c1_10, %c0_11, %c0_12] : memref<9x128x128xbf16, #tpu.memory_space<vmem>>, vector<1x128x128xbf16>
    %10 = vector.shape_cast %9 : vector<1x128x128xbf16> to vector<128x128xbf16>
    %cst_13 = arith.constant dense<0.000000e+00> : vector<384x128xf32>
    %11 = tpu.matmul %8, %10, %cst_13 {dimension_numbers = #tpu.dot_dimension_numbers<[1], [0], [0], [1], [0, 0, 1, 1], [], []>} : vector<384x128xbf16>, vector<128x128xbf16>, vector<384x128xf32> -> vector<384x128xf32>
    %12 = arith.addf %6, %11 : vector<384x128xf32>
    %c0_14 = arith.constant 0 : index
    %c0_15 = arith.constant 0 : index
    %c2 = arith.constant 2 : index
    %c0_16 = arith.constant 0 : index
    %13 = vector.load %arg1[%c0_14, %c0_15, %c2, %c0_16] : memref<1x1x456x128xbf16, #tpu.memory_space<vmem>>, vector<1x1x384x128xbf16>
    %14 = vector.shape_cast %13 : vector<1x1x384x128xbf16> to vector<384x128xbf16>
    %c2_17 = arith.constant 2 : index
    %c0_18 = arith.constant 0 : index
    %c0_19 = arith.constant 0 : index
    %15 = vector.load %arg2[%c2_17, %c0_18, %c0_19] : memref<9x128x128xbf16, #tpu.memory_space<vmem>>, vector<1x128x128xbf16>
    %16 = vector.shape_cast %15 : vector<1x128x128xbf16> to vector<128x128xbf16>
    %cst_20 = arith.constant dense<0.000000e+00> : vector<384x128xf32>
    %17 = tpu.matmul %14, %16, %cst_20 {dimension_numbers = #tpu.dot_dimension_numbers<[1], [0], [0], [1], [0, 0, 1, 1], [], []>} : vector<384x128xbf16>, vector<128x128xbf16>, vector<384x128xf32> -> vector<384x128xf32>
    %18 = arith.addf %12, %17 : vector<384x128xf32>
    %c0_21 = arith.constant 0 : index
    %c0_22 = arith.constant 0 : index
    %c24 = arith.constant 24 : index
    %c0_23 = arith.constant 0 : index
    %19 = vector.load %arg1[%c0_21, %c0_22, %c24, %c0_23] : memref<1x1x456x128xbf16, #tpu.memory_space<vmem>>, vector<1x1x384x128xbf16>
    %20 = vector.shape_cast %19 : vector<1x1x384x128xbf16> to vector<384x128xbf16>
    %c3 = arith.constant 3 : index
    %c0_24 = arith.constant 0 : index
    %c0_25 = arith.constant 0 : index
    %21 = vector.load %arg2[%c3, %c0_24, %c0_25] : memref<9x128x128xbf16, #tpu.memory_space<vmem>>, vector<1x128x128xbf16>
    %22 = vector.shape_cast %21 : vector<1x128x128xbf16> to vector<128x128xbf16>
    %cst_26 = arith.constant dense<0.000000e+00> : vector<384x128xf32>
    %23 = tpu.matmul %20, %22, %cst_26 {dimension_numbers = #tpu.dot_dimension_numbers<[1], [0], [0], [1], [0, 0, 1, 1], [], []>} : vector<384x128xbf16>, vector<128x128xbf16>, vector<384x128xf32> -> vector<384x128xf32>
    %24 = arith.addf %18, %23 : vector<384x128xf32>
    %c0_27 = arith.constant 0 : index
    %c0_28 = arith.constant 0 : index
    %c25 = arith.constant 25 : index
    %c0_29 = arith.constant 0 : index
    %25 = vector.load %arg1[%c0_27, %c0_28, %c25, %c0_29] : memref<1x1x456x128xbf16, #tpu.memory_space<vmem>>, vector<1x1x384x128xbf16>
    %26 = vector.shape_cast %25 : vector<1x1x384x128xbf16> to vector<384x128xbf16>
    %c4 = arith.constant 4 : index
    %c0_30 = arith.constant 0 : index
    %c0_31 = arith.constant 0 : index
    %27 = vector.load %arg2[%c4, %c0_30, %c0_31] : memref<9x128x128xbf16, #tpu.memory_space<vmem>>, vector<1x128x128xbf16>
    %28 = vector.shape_cast %27 : vector<1x128x128xbf16> to vector<128x128xbf16>
    %cst_32 = arith.constant dense<0.000000e+00> : vector<384x128xf32>
    %29 = tpu.matmul %26, %28, %cst_32 {dimension_numbers = #tpu.dot_dimension_numbers<[1], [0], [0], [1], [0, 0, 1, 1], [], []>} : vector<384x128xbf16>, vector<128x128xbf16>, vector<384x128xf32> -> vector<384x128xf32>
    %30 = arith.addf %24, %29 : vector<384x128xf32>
    %c0_33 = arith.constant 0 : index
    %c0_34 = arith.constant 0 : index
    %c26 = arith.constant 26 : index
    %c0_35 = arith.constant 0 : index
    %31 = vector.load %arg1[%c0_33, %c0_34, %c26, %c0_35] : memref<1x1x456x128xbf16, #tpu.memory_space<vmem>>, vector<1x1x384x128xbf16>
    %32 = vector.shape_cast %31 : vector<1x1x384x128xbf16> to vector<384x128xbf16>
    %c5 = arith.constant 5 : index
    %c0_36 = arith.constant 0 : index
    %c0_37 = arith.constant 0 : index
    %33 = vector.load %arg2[%c5, %c0_36, %c0_37] : memref<9x128x128xbf16, #tpu.memory_space<vmem>>, vector<1x128x128xbf16>
    %34 = vector.shape_cast %33 : vector<1x128x128xbf16> to vector<128x128xbf16>
    %cst_38 = arith.constant dense<0.000000e+00> : vector<384x128xf32>
    %35 = tpu.matmul %32, %34, %cst_38 {dimension_numbers = #tpu.dot_dimension_numbers<[1], [0], [0], [1], [0, 0, 1, 1], [], []>} : vector<384x128xbf16>, vector<128x128xbf16>, vector<384x128xf32> -> vector<384x128xf32>
    %36 = arith.addf %30, %35 : vector<384x128xf32>
    %c0_39 = arith.constant 0 : index
    %c0_40 = arith.constant 0 : index
    %c48 = arith.constant 48 : index
    %c0_41 = arith.constant 0 : index
    %37 = vector.load %arg1[%c0_39, %c0_40, %c48, %c0_41] : memref<1x1x456x128xbf16, #tpu.memory_space<vmem>>, vector<1x1x384x128xbf16>
    %38 = vector.shape_cast %37 : vector<1x1x384x128xbf16> to vector<384x128xbf16>
    %c6 = arith.constant 6 : index
    %c0_42 = arith.constant 0 : index
    %c0_43 = arith.constant 0 : index
    %39 = vector.load %arg2[%c6, %c0_42, %c0_43] : memref<9x128x128xbf16, #tpu.memory_space<vmem>>, vector<1x128x128xbf16>
    %40 = vector.shape_cast %39 : vector<1x128x128xbf16> to vector<128x128xbf16>
    %cst_44 = arith.constant dense<0.000000e+00> : vector<384x128xf32>
    %41 = tpu.matmul %38, %40, %cst_44 {dimension_numbers = #tpu.dot_dimension_numbers<[1], [0], [0], [1], [0, 0, 1, 1], [], []>} : vector<384x128xbf16>, vector<128x128xbf16>, vector<384x128xf32> -> vector<384x128xf32>
    %42 = arith.addf %36, %41 : vector<384x128xf32>
    %c0_45 = arith.constant 0 : index
    %c0_46 = arith.constant 0 : index
    %c49 = arith.constant 49 : index
    %c0_47 = arith.constant 0 : index
    %43 = vector.load %arg1[%c0_45, %c0_46, %c49, %c0_47] : memref<1x1x456x128xbf16, #tpu.memory_space<vmem>>, vector<1x1x384x128xbf16>
    %44 = vector.shape_cast %43 : vector<1x1x384x128xbf16> to vector<384x128xbf16>
    %c7 = arith.constant 7 : index
    %c0_48 = arith.constant 0 : index
    %c0_49 = arith.constant 0 : index
    %45 = vector.load %arg2[%c7, %c0_48, %c0_49] : memref<9x128x128xbf16, #tpu.memory_space<vmem>>, vector<1x128x128xbf16>
    %46 = vector.shape_cast %45 : vector<1x128x128xbf16> to vector<128x128xbf16>
    %cst_50 = arith.constant dense<0.000000e+00> : vector<384x128xf32>
    %47 = tpu.matmul %44, %46, %cst_50 {dimension_numbers = #tpu.dot_dimension_numbers<[1], [0], [0], [1], [0, 0, 1, 1], [], []>} : vector<384x128xbf16>, vector<128x128xbf16>, vector<384x128xf32> -> vector<384x128xf32>
    %48 = arith.addf %42, %47 : vector<384x128xf32>
    %c0_51 = arith.constant 0 : index
    %c0_52 = arith.constant 0 : index
    %c50 = arith.constant 50 : index
    %c0_53 = arith.constant 0 : index
    %49 = vector.load %arg1[%c0_51, %c0_52, %c50, %c0_53] : memref<1x1x456x128xbf16, #tpu.memory_space<vmem>>, vector<1x1x384x128xbf16>
    %50 = vector.shape_cast %49 : vector<1x1x384x128xbf16> to vector<384x128xbf16>
    %c8 = arith.constant 8 : index
    %c0_54 = arith.constant 0 : index
    %c0_55 = arith.constant 0 : index
    %51 = vector.load %arg2[%c8, %c0_54, %c0_55] : memref<9x128x128xbf16, #tpu.memory_space<vmem>>, vector<1x128x128xbf16>
    %52 = vector.shape_cast %51 : vector<1x128x128xbf16> to vector<128x128xbf16>
    %cst_56 = arith.constant dense<0.000000e+00> : vector<384x128xf32>
    %53 = tpu.matmul %50, %52, %cst_56 {dimension_numbers = #tpu.dot_dimension_numbers<[1], [0], [0], [1], [0, 0, 1, 1], [], []>} : vector<384x128xbf16>, vector<128x128xbf16>, vector<384x128xf32> -> vector<384x128xf32>
    %54 = arith.addf %48, %53 : vector<384x128xf32>
    %c0_57 = arith.constant 0 : index
    %c0_58 = arith.constant 0 : index
    %55 = vector.load %arg3[%c0_57, %c0_58] : memref<1x128xf32, #tpu.memory_space<vmem>>, vector<1x128xf32>
    %56 = vector.shape_cast %55 : vector<1x128xf32> to vector<128xf32>
    %57 = vector.shape_cast %56 : vector<128xf32> to vector<1x128xf32>
    %58 = vector.broadcast %57 : vector<1x128xf32> to vector<384x128xf32>
    %59 = arith.addf %54, %58 : vector<384x128xf32>
    %cst_59 = arith.constant 0.000000e+00 : f32
    %60 = vector.broadcast %cst_59 : f32 to vector<384x128xf32>
    %61 = arith.maximumf %59, %60 : vector<384x128xf32>
    %62 = tpu.iota {dimensions = array<i32: 0>} : vector<384x1xi32>
    %c24_i32 = arith.constant 24 : i32
    %c0_i32 = arith.constant 0 : i32
    %63 = arith.cmpi eq, %c24_i32, %c0_i32 : i32
    %c1_i32 = arith.constant 1 : i32
    %64 = arith.select %63, %c1_i32, %c24_i32 : i32
    %65 = vector.broadcast %64 : i32 to vector<384x1xi32>
    %66 = arith.remsi %62, %65 : vector<384x1xi32>
    %c0_i32_60 = arith.constant 0 : i32
    %67 = vector.broadcast %c0_i32_60 : i32 to vector<384x1xi32>
    %68 = arith.cmpi ne, %66, %67 : vector<384x1xi32>
    %c0_i32_61 = arith.constant 0 : i32
    %69 = vector.broadcast %c0_i32_61 : i32 to vector<384x1xi32>
    %70 = arith.cmpi slt, %66, %69 : vector<384x1xi32>
    %c0_i32_62 = arith.constant 0 : i32
    %71 = arith.cmpi slt, %64, %c0_i32_62 : i32
    %72 = vector.broadcast %71 : i1 to vector<384x1xi1>
    %73 = vector.broadcast %72 : vector<384x1xi1> to vector<384x1xi1>
    %74 = arith.xori %70, %73 : vector<384x1xi1>
    %75 = arith.andi %74, %68 : vector<384x1xi1>
    %76 = vector.broadcast %64 : i32 to vector<384x1xi32>
    %77 = arith.addi %66, %76 : vector<384x1xi32>
    %78 = arith.select %75, %77, %66 : vector<384x1xi1>, vector<384x1xi32>
    %c16_i32 = arith.constant 16 : i32
    %79 = vector.broadcast %c16_i32 : i32 to vector<384x1xi32>
    %80 = arith.cmpi slt, %78, %79 : vector<384x1xi32>
    %cst_63 = arith.constant 0.000000e+00 : f32
    %81 = vector.shape_cast %80 : vector<384x1xi1> to vector<384x1xi1>
    %82 = vector.broadcast %81 : vector<384x1xi1> to vector<384x128xi1>
    %83 = vector.broadcast %cst_63 : f32 to vector<384x128xf32>
    %84 = arith.select %82, %61, %83 : vector<384x128xi1>, vector<384x128xf32>
    %85 = arith.truncf %84 : vector<384x128xf32> to vector<384x128xbf16>
    %cst_64 = arith.constant 0.000000e+00 : bf16
    %86 = vector.broadcast %cst_64 : bf16 to vector<48x128xbf16>
    %c0_65 = arith.constant 0 : index
    %c0_66 = arith.constant 0 : index
    %87 = vector.load %arg9[%c0_65, %c0_66] : memref<480x128xbf16, #tpu.memory_space<vmem>>, vector<48x128xbf16>
    tpu.vector_store %arg9[%c0_65, %c0_66], %86 {strides = array<i32>} : memref<480x128xbf16, #tpu.memory_space<vmem>>, vector<48x128xbf16>,
    %c432 = arith.constant 432 : index
    %c0_67 = arith.constant 0 : index
    %88 = vector.load %arg9[%c432, %c0_67] : memref<480x128xbf16, #tpu.memory_space<vmem>>, vector<48x128xbf16>
    tpu.vector_store %arg9[%c432, %c0_67], %86 {strides = array<i32>} : memref<480x128xbf16, #tpu.memory_space<vmem>>, vector<48x128xbf16>,
    %c48_68 = arith.constant 48 : index
    %c0_69 = arith.constant 0 : index
    %89 = vector.load %arg9[%c48_68, %c0_69] : memref<480x128xbf16, #tpu.memory_space<vmem>>, vector<384x128xbf16>
    tpu.vector_store %arg9[%c48_68, %c0_69], %85 {strides = array<i32>} : memref<480x128xbf16, #tpu.memory_space<vmem>>, vector<384x128xbf16>,
    %cst_70 = arith.constant 0.000000e+00 : f32
    %90 = vector.broadcast %cst_70 : f32 to vector<384x128xf32>
    %c0_71 = arith.constant 0 : index
    %c0_72 = arith.constant 0 : index
    %c25_73 = arith.constant 25 : index
    %c0_74 = arith.constant 0 : index
    %91 = vector.load %arg1[%c0_71, %c0_72, %c25_73, %c0_74] : memref<1x1x456x128xbf16, #tpu.memory_space<vmem>>, vector<1x1x384x128xbf16>
    %92 = vector.shape_cast %91 : vector<1x1x384x128xbf16> to vector<384x128xbf16>
    %c0_75 = arith.constant 0 : index
    %c0_76 = arith.constant 0 : index
    %c0_77 = arith.constant 0 : index
    %93 = vector.load %arg6[%c0_75, %c0_76, %c0_77] : memref<1x128x128xbf16, #tpu.memory_space<vmem>>, vector<1x128x128xbf16>
    %94 = vector.shape_cast %93 : vector<1x128x128xbf16> to vector<128x128xbf16>
    %cst_78 = arith.constant dense<0.000000e+00> : vector<384x128xf32>
    %95 = tpu.matmul %92, %94, %cst_78 {dimension_numbers = #tpu.dot_dimension_numbers<[1], [0], [0], [1], [0, 0, 1, 1], [], []>} : vector<384x128xbf16>, vector<128x128xbf16>, vector<384x128xf32> -> vector<384x128xf32>
    %96 = arith.addf %90, %95 : vector<384x128xf32>
    %c0_79 = arith.constant 0 : index
    %c0_80 = arith.constant 0 : index
    %97 = vector.load %arg7[%c0_79, %c0_80] : memref<1x128xf32, #tpu.memory_space<vmem>>, vector<1x128xf32>
    %98 = vector.shape_cast %97 : vector<1x128xf32> to vector<128xf32>
    %99 = vector.shape_cast %98 : vector<128xf32> to vector<1x128xf32>
    %100 = vector.broadcast %99 : vector<1x128xf32> to vector<384x128xf32>
    %101 = arith.addf %96, %100 : vector<384x128xf32>
    %c23 = arith.constant 23 : index
    %c0_81 = arith.constant 0 : index
    %102 = vector.load %arg9[%c23, %c0_81] : memref<480x128xbf16, #tpu.memory_space<vmem>>, vector<384x128xbf16>
    %c0_82 = arith.constant 0 : index
    %c0_83 = arith.constant 0 : index
    %c0_84 = arith.constant 0 : index
    %103 = vector.load %arg4[%c0_82, %c0_83, %c0_84] : memref<9x128x128xbf16, #tpu.memory_space<vmem>>, vector<1x128x128xbf16>
    %104 = vector.shape_cast %103 : vector<1x128x128xbf16> to vector<128x128xbf16>
    %cst_85 = arith.constant dense<0.000000e+00> : vector<384x128xf32>
    %105 = tpu.matmul %102, %104, %cst_85 {dimension_numbers = #tpu.dot_dimension_numbers<[1], [0], [0], [1], [0, 0, 1, 1], [], []>} : vector<384x128xbf16>, vector<128x128xbf16>, vector<384x128xf32> -> vector<384x128xf32>
    %106 = arith.addf %101, %105 : vector<384x128xf32>
    %c24_86 = arith.constant 24 : index
    %c0_87 = arith.constant 0 : index
    %107 = vector.load %arg9[%c24_86, %c0_87] : memref<480x128xbf16, #tpu.memory_space<vmem>>, vector<384x128xbf16>
    %c1_88 = arith.constant 1 : index
    %c0_89 = arith.constant 0 : index
    %c0_90 = arith.constant 0 : index
    %108 = vector.load %arg4[%c1_88, %c0_89, %c0_90] : memref<9x128x128xbf16, #tpu.memory_space<vmem>>, vector<1x128x128xbf16>
    %109 = vector.shape_cast %108 : vector<1x128x128xbf16> to vector<128x128xbf16>
    %cst_91 = arith.constant dense<0.000000e+00> : vector<384x128xf32>
    %110 = tpu.matmul %107, %109, %cst_91 {dimension_numbers = #tpu.dot_dimension_numbers<[1], [0], [0], [1], [0, 0, 1, 1], [], []>} : vector<384x128xbf16>, vector<128x128xbf16>, vector<384x128xf32> -> vector<384x128xf32>
    %111 = arith.addf %106, %110 : vector<384x128xf32>
    %c25_92 = arith.constant 25 : index
    %c0_93 = arith.constant 0 : index
    %112 = vector.load %arg9[%c25_92, %c0_93] : memref<480x128xbf16, #tpu.memory_space<vmem>>, vector<384x128xbf16>
    %c2_94 = arith.constant 2 : index
    %c0_95 = arith.constant 0 : index
    %c0_96 = arith.constant 0 : index
    %113 = vector.load %arg4[%c2_94, %c0_95, %c0_96] : memref<9x128x128xbf16, #tpu.memory_space<vmem>>, vector<1x128x128xbf16>
    %114 = vector.shape_cast %113 : vector<1x128x128xbf16> to vector<128x128xbf16>
    %cst_97 = arith.constant dense<0.000000e+00> : vector<384x128xf32>
    %115 = tpu.matmul %112, %114, %cst_97 {dimension_numbers = #tpu.dot_dimension_numbers<[1], [0], [0], [1], [0, 0, 1, 1], [], []>} : vector<384x128xbf16>, vector<128x128xbf16>, vector<384x128xf32> -> vector<384x128xf32>
    %116 = arith.addf %111, %115 : vector<384x128xf32>
    %c47 = arith.constant 47 : index
    %c0_98 = arith.constant 0 : index
    %117 = vector.load %arg9[%c47, %c0_98] : memref<480x128xbf16, #tpu.memory_space<vmem>>, vector<384x128xbf16>
    %c3_99 = arith.constant 3 : index
    %c0_100 = arith.constant 0 : index
    %c0_101 = arith.constant 0 : index
    %118 = vector.load %arg4[%c3_99, %c0_100, %c0_101] : memref<9x128x128xbf16, #tpu.memory_space<vmem>>, vector<1x128x128xbf16>
    %119 = vector.shape_cast %118 : vector<1x128x128xbf16> to vector<128x128xbf16>
    %cst_102 = arith.constant dense<0.000000e+00> : vector<384x128xf32>
    %120 = tpu.matmul %117, %119, %cst_102 {dimension_numbers = #tpu.dot_dimension_numbers<[1], [0], [0], [1], [0, 0, 1, 1], [], []>} : vector<384x128xbf16>, vector<128x128xbf16>, vector<384x128xf32> -> vector<384x128xf32>
    %121 = arith.addf %116, %120 : vector<384x128xf32>
    %c48_103 = arith.constant 48 : index
    %c0_104 = arith.constant 0 : index
    %122 = vector.load %arg9[%c48_103, %c0_104] : memref<480x128xbf16, #tpu.memory_space<vmem>>, vector<384x128xbf16>
    %c4_105 = arith.constant 4 : index
    %c0_106 = arith.constant 0 : index
    %c0_107 = arith.constant 0 : index
    %123 = vector.load %arg4[%c4_105, %c0_106, %c0_107] : memref<9x128x128xbf16, #tpu.memory_space<vmem>>, vector<1x128x128xbf16>
    %124 = vector.shape_cast %123 : vector<1x128x128xbf16> to vector<128x128xbf16>
    %cst_108 = arith.constant dense<0.000000e+00> : vector<384x128xf32>
    %125 = tpu.matmul %122, %124, %cst_108 {dimension_numbers = #tpu.dot_dimension_numbers<[1], [0], [0], [1], [0, 0, 1, 1], [], []>} : vector<384x128xbf16>, vector<128x128xbf16>, vector<384x128xf32> -> vector<384x128xf32>
    %126 = arith.addf %121, %125 : vector<384x128xf32>
    %c49_109 = arith.constant 49 : index
    %c0_110 = arith.constant 0 : index
    %127 = vector.load %arg9[%c49_109, %c0_110] : memref<480x128xbf16, #tpu.memory_space<vmem>>, vector<384x128xbf16>
    %c5_111 = arith.constant 5 : index
    %c0_112 = arith.constant 0 : index
    %c0_113 = arith.constant 0 : index
    %128 = vector.load %arg4[%c5_111, %c0_112, %c0_113] : memref<9x128x128xbf16, #tpu.memory_space<vmem>>, vector<1x128x128xbf16>
    %129 = vector.shape_cast %128 : vector<1x128x128xbf16> to vector<128x128xbf16>
    %cst_114 = arith.constant dense<0.000000e+00> : vector<384x128xf32>
    %130 = tpu.matmul %127, %129, %cst_114 {dimension_numbers = #tpu.dot_dimension_numbers<[1], [0], [0], [1], [0, 0, 1, 1], [], []>} : vector<384x128xbf16>, vector<128x128xbf16>, vector<384x128xf32> -> vector<384x128xf32>
    %131 = arith.addf %126, %130 : vector<384x128xf32>
    %c71 = arith.constant 71 : index
    %c0_115 = arith.constant 0 : index
    %132 = vector.load %arg9[%c71, %c0_115] : memref<480x128xbf16, #tpu.memory_space<vmem>>, vector<384x128xbf16>
    %c6_116 = arith.constant 6 : index
    %c0_117 = arith.constant 0 : index
    %c0_118 = arith.constant 0 : index
    %133 = vector.load %arg4[%c6_116, %c0_117, %c0_118] : memref<9x128x128xbf16, #tpu.memory_space<vmem>>, vector<1x128x128xbf16>
    %134 = vector.shape_cast %133 : vector<1x128x128xbf16> to vector<128x128xbf16>
    %cst_119 = arith.constant dense<0.000000e+00> : vector<384x128xf32>
    %135 = tpu.matmul %132, %134, %cst_119 {dimension_numbers = #tpu.dot_dimension_numbers<[1], [0], [0], [1], [0, 0, 1, 1], [], []>} : vector<384x128xbf16>, vector<128x128xbf16>, vector<384x128xf32> -> vector<384x128xf32>
    %136 = arith.addf %131, %135 : vector<384x128xf32>
    %c72 = arith.constant 72 : index
    %c0_120 = arith.constant 0 : index
    %137 = vector.load %arg9[%c72, %c0_120] : memref<480x128xbf16, #tpu.memory_space<vmem>>, vector<384x128xbf16>
    %c7_121 = arith.constant 7 : index
    %c0_122 = arith.constant 0 : index
    %c0_123 = arith.constant 0 : index
    %138 = vector.load %arg4[%c7_121, %c0_122, %c0_123] : memref<9x128x128xbf16, #tpu.memory_space<vmem>>, vector<1x128x128xbf16>
    %139 = vector.shape_cast %138 : vector<1x128x128xbf16> to vector<128x128xbf16>
    %cst_124 = arith.constant dense<0.000000e+00> : vector<384x128xf32>
    %140 = tpu.matmul %137, %139, %cst_124 {dimension_numbers = #tpu.dot_dimension_numbers<[1], [0], [0], [1], [0, 0, 1, 1], [], []>} : vector<384x128xbf16>, vector<128x128xbf16>, vector<384x128xf32> -> vector<384x128xf32>
    %141 = arith.addf %136, %140 : vector<384x128xf32>
    %c73 = arith.constant 73 : index
    %c0_125 = arith.constant 0 : index
    %142 = vector.load %arg9[%c73, %c0_125] : memref<480x128xbf16, #tpu.memory_space<vmem>>, vector<384x128xbf16>
    %c8_126 = arith.constant 8 : index
    %c0_127 = arith.constant 0 : index
    %c0_128 = arith.constant 0 : index
    %143 = vector.load %arg4[%c8_126, %c0_127, %c0_128] : memref<9x128x128xbf16, #tpu.memory_space<vmem>>, vector<1x128x128xbf16>
    %144 = vector.shape_cast %143 : vector<1x128x128xbf16> to vector<128x128xbf16>
    %cst_129 = arith.constant dense<0.000000e+00> : vector<384x128xf32>
    %145 = tpu.matmul %142, %144, %cst_129 {dimension_numbers = #tpu.dot_dimension_numbers<[1], [0], [0], [1], [0, 0, 1, 1], [], []>} : vector<384x128xbf16>, vector<128x128xbf16>, vector<384x128xf32> -> vector<384x128xf32>
    %146 = arith.addf %141, %145 : vector<384x128xf32>
    %c0_130 = arith.constant 0 : index
    %c0_131 = arith.constant 0 : index
    %147 = vector.load %arg5[%c0_130, %c0_131] : memref<1x128xf32, #tpu.memory_space<vmem>>, vector<1x128xf32>
    %148 = vector.shape_cast %147 : vector<1x128xf32> to vector<128xf32>
    %149 = vector.shape_cast %148 : vector<128xf32> to vector<1x128xf32>
    %150 = vector.broadcast %149 : vector<1x128xf32> to vector<384x128xf32>
    %151 = arith.addf %146, %150 : vector<384x128xf32>
    %cst_132 = arith.constant 0.000000e+00 : f32
    %152 = vector.broadcast %cst_132 : f32 to vector<384x128xf32>
    %153 = arith.maximumf %151, %152 : vector<384x128xf32>
    %154 = vector.shape_cast %153 : vector<384x128xf32> to vector<16x24x128xf32>
    %155 = vector.extract_strided_slice %154 {offsets = [0, 0, 0], sizes = [16, 16, 128], strides = [1, 1, 1]} : vector<16x24x128xf32> to vector<16x16x128xf32>
    %c0_133 = arith.constant 0 : index
    %c0_134 = arith.constant 0 : index
    %c0_135 = arith.constant 0 : index
    %c0_136 = arith.constant 0 : index
    %156 = vector.load %arg8[%c0_133, %c0_134, %c0_135, %c0_136] : memref<1x16x16x128xf32, #tpu.memory_space<vmem>>, vector<1x16x16x128xf32>
    %157 = vector.shape_cast %156 : vector<1x16x16x128xf32> to vector<16x16x128xf32>
    %158 = vector.shape_cast %155 : vector<16x16x128xf32> to vector<1x16x16x128xf32>
    tpu.vector_store %arg8[%c0_133, %c0_134, %c0_135, %c0_136], %158 {strides = array<i32>} : memref<1x16x16x128xf32, #tpu.memory_space<vmem>>, vector<1x16x16x128xf32>,
    return
  }
  func.func @transform_0(%arg0: i32) -> (i32, i32, i32, i32) {
    %c0_i32 = arith.constant 0 : i32
    %c0_i32_0 = arith.constant 0 : i32
    %c0_i32_1 = arith.constant 0 : i32
    %c0_i32_2 = arith.constant 0 : i32
    return %arg0, %c0_i32, %c0_i32_0, %c0_i32_1 : i32, i32, i32, i32
  }
  func.func @transform_1(%arg0: i32) -> (i32, i32, i32) {
    %c0_i32 = arith.constant 0 : i32
    %c0_i32_0 = arith.constant 0 : i32
    %c0_i32_1 = arith.constant 0 : i32
    %c0_i32_2 = arith.constant 0 : i32
    return %c0_i32, %c0_i32_0, %c0_i32_1 : i32, i32, i32
  }
  func.func @transform_2(%arg0: i32) -> (i32, i32) {
    %c0_i32 = arith.constant 0 : i32
    %c0_i32_0 = arith.constant 0 : i32
    %c0_i32_1 = arith.constant 0 : i32
    return %c0_i32, %c0_i32_0 : i32, i32
  }
  func.func @transform_3(%arg0: i32) -> (i32, i32, i32) {
    %c0_i32 = arith.constant 0 : i32
    %c0_i32_0 = arith.constant 0 : i32
    %c0_i32_1 = arith.constant 0 : i32
    %c0_i32_2 = arith.constant 0 : i32
    return %c0_i32, %c0_i32_0, %c0_i32_1 : i32, i32, i32
  }
  func.func @transform_4(%arg0: i32) -> (i32, i32) {
    %c0_i32 = arith.constant 0 : i32
    %c0_i32_0 = arith.constant 0 : i32
    %c0_i32_1 = arith.constant 0 : i32
    return %c0_i32, %c0_i32_0 : i32, i32
  }
  func.func @transform_5(%arg0: i32) -> (i32, i32, i32) {
    %c0_i32 = arith.constant 0 : i32
    %c0_i32_0 = arith.constant 0 : i32
    %c0_i32_1 = arith.constant 0 : i32
    %c0_i32_2 = arith.constant 0 : i32
    return %c0_i32, %c0_i32_0, %c0_i32_1 : i32, i32, i32
  }
  func.func @transform_6(%arg0: i32) -> (i32, i32) {
    %c0_i32 = arith.constant 0 : i32
    %c0_i32_0 = arith.constant 0 : i32
    %c0_i32_1 = arith.constant 0 : i32
    return %c0_i32, %c0_i32_0 : i32, i32
  }
  func.func @transform_7(%arg0: i32) -> (i32, i32, i32, i32) {
    %c0_i32 = arith.constant 0 : i32
    %c0_i32_0 = arith.constant 0 : i32
    %c0_i32_1 = arith.constant 0 : i32
    %c0_i32_2 = arith.constant 0 : i32
    return %arg0, %c0_i32, %c0_i32_0, %c0_i32_1 : i32, i32, i32, i32
  }
}

</mosaic_0001>

<bundles_post_ra>
// kernel: tpu_custom_call.1
= control target key start
LH: loop header
LB: loop body
LE: loop exit
PB: predicated region body
PF: predicated region fallthrough
CT: control target
= control target key end

     0   :  { %12 = vsyncpa [#allocation4], 0  ;;  %s19723_s0 = inlined_call_operand.hbm [shape: bf16[2,1,456,128], index: 0, kind: input, shape index: {}]   ;;  %s19724_s1 = inlined_call_operand.hbm [shape: bf16[9,128,128], index: 1, kind: input, shape index: {}]   ;;  %s19725_s2 = inlined_call_operand.vmem [shape: f32[1,128], index: 2, kind: input, shape index: {}]   ;;  %s19726_s3 = inlined_call_operand.hbm [shape: bf16[9,128,128], index: 3, kind: input, shape index: {}]   ;;  %s19727_s4 = inlined_call_operand.vmem [shape: f32[1,128], index: 4, kind: input, shape index: {}]   ;;  %s19728_s5 = inlined_call_operand.hbm [shape: bf16[1,128,128], index: 5, kind: input, shape index: {}]   ;;  %s19729_s6 = inlined_call_operand.vmem [shape: f32[1,128], index: 6, kind: input, shape index: {}]   ;;  %s19730_s7 = inlined_call_operand.hbm [shape: f32[2,16,16,128], index: 7, kind: output, shape index: {}]  }
   0x1   :  { %14 = vsyncpa [#allocation4 + $0x1], 0 }
   0x2   :  { %15 = vsyncpa [#allocation7], 0 }
   0x3   :  { %16 = vsyncpa [#allocation10], 0 }
   0x4   :  { %17 = vsyncpa [#allocation5], 0 }
   0x5   :  { %19 = vsyncpa [#allocation5 + $0x1], 0  ;;  %s14774_s24 = smov 0   ;;  %s14776_s25 = smov 0  }
   0x6   :  { %s14778_s26 = smov 0   ;;  %s14780_s27 = smov 0  }
   0x7 LB: > { %s14795_s28 = sadd.s32 4294967295, %s14722_s27   ;;  %s11420_s29 = sadd.s32 4294967294, %s14722_s27   ;;  %s14722_s27 = sphi %s14780_s27, %s20991_s27   ;;  %s14718_s26 = sphi %s14778_s26, %s20990_s26   ;;  %s14714_s25 = sphi %s14776_s25, %s20989_s25   ;;  %s14710_s24 = sphi %s14774_s24, %s20988_s24  }
   0x8   : > { %p45_p0 = scmp.ne.s32.totalorder %s14714_s25, %s14710_s24  ;;  %p19731_p1 = scmp.eq.s32.totalorder %s14795_s28, 0 }
   0x9   : > { %p201_p3 = scmp.eq.s32.totalorder %s11420_s29, 1  ;;  %p11421_p5 = scmp.ge.s32.totalorder %s14722_s27, 1 }
   0xa   : > { %p14804_p4 = por %p19731_p1, %p45_p0  ;;  %p208_p7 = scmp.lt.s32.totalorder %s14722_s27, 3 }
   0xb   : > { %p14809_p6 = por %p201_p3, %p45_p0  ;;  %s14724_s10 = smov [#allocation6]  }
   0xc   : > { %s19937_s30 = scalar_select %p14804_p4, 1, 0 }
   0xd   : > { %s19938_s8 = scalar_select %p14809_p6, 1, 0 }
   0xe   : > { %p14814_p8 = pnand %p11421_p5, %p208_p7  ;;  %s220_s11 = sshll.u32 %s14724_s10, 4  ;;  %s14818_s11 = int_to_ptr.vmem [resolvable:$true] %s220_s11 }
   0xf   : > { %19939 = sst [smem:[#allocation16_spill]] %s19938_s8  ;;  %s14725_s13 = smov [#allocation8]  }
  0x10   : > { %s19940_s9 = scalar_select %p14814_p8, 1, 0 }
  0x11   : > { %p14083_p9 = pneg %p14814_p8  ;;  %s236_s14 = sshll.u32 %s14725_s13, 4  ;;  %s14829_s14 = int_to_ptr.vmem [resolvable:$true] %s236_s14 }
  0x12   : > { %s14726_s15 = smov [#allocation9]   ;;  %s14534_s19 = scalar_lea.hbm %s19724_s1, 9216 }
  0x13   : > { %p14825_p11 = pnand %p14083_p9, %p19731_p1  ;;  %s14831_s16 = sshll.u32 %s14726_s15, 4  ;;  %s253_s16 = int_to_ptr.vmem [resolvable:$true] %s14831_s16 }
  0x14   : > { %p14535_p12 = scmp.ne.s32.totalorder %s19724_s1, %s14534_s19  ;;  %p14541_p5 = scmp.lt.u32.totalorder %s14534_s19, %s19724_s1 }
  0x15   : > { %p14841_p13 = pneg %p14825_p11 }
  0x17   : > { %p14537_p0 = pnand %p14841_p13, %p14535_p12 }
  0x19   : > { %p14538_p3 = pneg %p14537_p0 }
  0x1b   : > { %p14543_p7 = pnand %p14541_p5, %p14538_p3 }
  0x1d   : > { %14546 = shalt.err (!%p14543_p7)
}
  0x1e   : > { %s14547_s10 = scalar_lea.vmem %s14818_s11, 9216  ;;  %p14555_p2 = scmp.lt.s32.totalorder %s14818_s11, %s14818_s11 }
  0x1f   : > { %p14548_p9 = scmp.ne.s32.totalorder %s14818_s11, %s14547_s10  ;;  %p14556_p6 = scmp.lt.s32.totalorder %s14547_s10, %s14547_s10 }
  0x21   : > { %p14550_p10 = pnand %p14548_p9, %p14841_p13  ;;  %p14557_p12 = por %p14556_p6, %p14555_p2 }
  0x23   : > { %p14551_p1 = pneg %p14550_p10 }
  0x25   : > { %p14558_p0 = pnand %p14557_p12, %p14551_p1 }
  0x27   : > { %14561 = shalt.err (!%p14558_p0)
}
  0x28   : > { %s19735_s13 = smov 64   ;;  %s19736_s15 = smov 4  }
  0x29   : > { %14086 = dma.hbm_to_vmem [thread:$0]  (!%p14825_p11), %s19724_s1, 9216, %s14818_s11, [#allocation7], %s19735_s13, %s19735_s13, %s19736_s15  }
  0x2a   : > { %s14562_s21 = scalar_lea.hbm %s19726_s3, 9216 }
  0x2b   : > { %p14563_p1 = scmp.ne.s32.totalorder %s19726_s3, %s14562_s21  ;;  %p14569_p10 = scmp.lt.u32.totalorder %s14562_s21, %s19726_s3 }
  0x2d   : > { %p14565_p2 = pnand %p14563_p1, %p14841_p13 }
  0x2f   : > { %p14566_p6 = pneg %p14565_p2 }
  0x31   : > { %p14571_p3 = pnand %p14569_p10, %p14566_p6 }
  0x33   : > { %14574 = shalt.err (!%p14571_p3)
}
  0x34   : > { %s14575_s11 = scalar_lea.vmem %s14829_s14, 9216  ;;  %p14583_p12 = scmp.lt.s32.totalorder %s14829_s14, %s14829_s14 }
  0x35   : > { %p14576_p5 = scmp.ne.s32.totalorder %s14829_s14, %s14575_s11  ;;  %p14584_p0 = scmp.lt.s32.totalorder %s14575_s11, %s14575_s11 }
  0x37   : > { %p14578_p7 = pnand %p14576_p5, %p14841_p13  ;;  %p14585_p1 = por %p14584_p0, %p14583_p12 }
  0x39   : > { %p14579_p9 = pneg %p14578_p7 }
  0x3b   : > { %p14586_p2 = pnand %p14585_p1, %p14579_p9 }
  0x3d   : > { %14589 = shalt.err (!%p14586_p2)
}
  0x3e   : > { %14089 = dma.hbm_to_vmem [thread:$0]  (!%p14825_p11), %s19726_s3, 9216, %s14829_s14, [#allocation7], %s19735_s13, %s19735_s13, %s19736_s15  }
  0x3f   : > { %s14590_s20 = scalar_lea.hbm %s19728_s5, 1024 }
  0x40   : > { %p14591_p6 = scmp.ne.s32.totalorder %s19728_s5, %s14590_s20  ;;  %p14597_p5 = scmp.lt.u32.totalorder %s14590_s20, %s19728_s5 }
  0x42   : > { %p14593_p10 = pnand %p14591_p6, %p14841_p13 }
  0x44   : > { %p14594_p3 = pneg %p14593_p10 }
  0x46   : > { %p14599_p7 = pnand %p14597_p5, %p14594_p3 }
  0x48   : > { %14602 = shalt.err (!%p14599_p7)
}
  0x49   : > { %s14603_s11 = scalar_lea.vmem %s253_s16, 1024  ;;  %p14611_p1 = scmp.lt.s32.totalorder %s253_s16, %s253_s16 }
  0x4a   : > { %p14604_p9 = scmp.ne.s32.totalorder %s253_s16, %s14603_s11  ;;  %p14612_p2 = scmp.lt.s32.totalorder %s14603_s11, %s14603_s11 }
  0x4c   : > { %p14606_p12 = pnand %p14604_p9, %p14841_p13  ;;  %p14613_p4 = por %p14612_p2, %p14611_p1 }
  0x4e   : > { %p14607_p0 = pneg %p14606_p12 }
  0x50   : > { %p14614_p8 = pnand %p14613_p4, %p14607_p0 }
  0x52   : > { %14617 = shalt.err (!%p14614_p8)
}
  0x53   : > { %14092 = dma.hbm_to_vmem [thread:$0]  (!%p14825_p11), %s19728_s5, 1024, %s253_s16, [#allocation10], %s19735_s13, %s19735_s13, %s19736_s15  }
  0x54   : > { %s14914_s22 = sadd.s32 1, %s14722_s27   ;;  %s32_s17 = sadd.s32 1, %s14718_s26 }
  0x55   : > { %s29_s12 = ssub.s32 %s14722_s27, %s14914_s22  ;;  %p39_p8 = scmp.ne.s32.totalorder %s14718_s26, %s14714_s25 }
  0x56   : > { %p30_p4 = scmp.eq.s32.totalorder %s29_s12, 0  ;;  %p40_p13 = scmp.eq.s32.totalorder %s14722_s27, 0 }
  0x57   : > { %p14104_p6 = scmp.lt.s32.totalorder %s14722_s27, 2  ;;  %p19943_p3 = scmp.eq.s32.totalorder %s14795_s28, 1 }
  0x58   : > { %s14924_s18 = scalar_select %p30_p4, %s14718_s26, %s32_s17  }
  0x59   : > { %p41_p10 = por %p40_p13, %p39_p8  ;;  %p14928_p5 = por %p19943_p3, %p39_p8 }
  0x5a   : > { %s269_s20 = sand.u32 1, %s14718_s26   ;;  %s13969_s21 = smul.u32 3648, %s14722_s27 }
  0x5b   : > { %s13968_s16 = smul.u32 228, %s269_s20  ;;  %p14934_p11 = pnand %p14104_p6, %p41_p10 }
  0x5c   : > { %s14941_s11 = scalar_lea.hbm %s19723_s0, %s13969_s21  ;;  %s14945_s12 = scalar_lea.sflag [#allocation4], %s269_s20 }
  0x5d   : > { %s273_s14 = scalar_lea.vmem [#allocation3], %s13968_s16  ;;  %s14618_s17 = scalar_lea.hbm %s14941_s11, 3648 }
  0x5e   : > { %s280_s8 = sshll.u32 %s273_s14, 4  ;;  %p14619_p7 = scmp.ne.s32.totalorder %s14941_s11, %s14618_s17  ;;  %s14943_s8 = int_to_ptr.vmem [resolvable:$true] %s280_s8 }
  0x5f   : > { %p14620_p9 = pneg %p14934_p11  ;;  %s14623_s10 = scalar_lea.hbm %s19723_s0, 7296 }
  0x60   : > { %p14624_p1 = scmp.lt.u32.totalorder %s14941_s11, %s19723_s0  ;;  %p14625_p2 = scmp.lt.u32.totalorder %s14623_s10, %s14618_s17 }
  0x61   : > { %p14621_p12 = pnand %p14620_p9, %p14619_p7  ;;  %p14627_p8 = scmp.lt.u32.totalorder %s14618_s17, %s14941_s11 }
  0x62   : > { %p14626_p4 = por %p14625_p2, %p14624_p1 }
  0x63   : > { %p14622_p0 = pneg %p14621_p12 }
  0x64   : > { %p14628_p13 = por %p14627_p8, %p14626_p4 }
  0x66   : > { %p14629_p6 = pnand %p14628_p13, %p14622_p0 }
  0x68   : > { %14632 = shalt.err (!%p14629_p6)
}
  0x69   : > { %s14633_s20 = scalar_lea.vmem %s14943_s8, 3648  ;;  %s14729_s16 = smov [#allocation3]  }
  0x6a   : > { %p14634_p10 = scmp.ne.s32.totalorder %s14943_s8, %s14633_s20  ;;  %s14638_s14 = sshll.u32 %s14729_s16, 4  ;;  %s14639_s14 = int_to_ptr.vmem [resolvable:$false] %s14638_s14 }
  0x6b   : > { %s14640_s13 = scalar_lea.vmem %s14639_s14, 7296  ;;  %p14641_p12 = scmp.lt.s32.totalorder %s14943_s8, %s14639_s14 }
  0x6c   : > { %p14636_p3 = pnand %p14634_p10, %p14620_p9  ;;  %p14642_p1 = scmp.lt.s32.totalorder %s14640_s13, %s14633_s20 }
  0x6e   : > { %p14637_p7 = pneg %p14636_p3  ;;  %p14643_p2 = por %p14642_p1, %p14641_p12 }
  0x70   : > { %p14644_p4 = pnand %p14643_p2, %p14637_p7 }
  0x72   : > { %14647 = shalt.err (!%p14644_p4)
}
  0x73   : > { %s19946_s15 = smov 4   ;;  %s19947_s17 = smov 64  }
  0x74   : > { %14096 = dma.hbm_to_vmem [thread:$0]  (!%p14934_p11), %s14941_s11, 3648, %s14943_s8, %s14945_s12, %s19947_s17, %s19947_s17, %s19946_s15  }
  0x75   : > { %p19948_p9 = scmp.ne.s32.totalorder %s19940_s9, 0 }
  0x77   : > { %292 = sbr.rel (%p19948_p9) target bundleno = 2176 (0x880), region = 48 }
  0x7e   : > { %s14979_s21 = sand.u32 1, %s14714_s25   ;;  %p19949_p0 = scmp.ne.s32.totalorder %s19937_s30, 0 }
  0x7f   : > { %s13970_s29 = smul.u32 228, %s14979_s21  ;;  %s295_s10 = scalar_lea.sflag [#allocation4], %s14979_s21 }
  0x81   : > { %s14983_s20 = scalar_lea.vmem [#allocation3], %s13970_s29 }
  0x82   : > { %14693 = dma.done.wait (%p19949_p0), %s295_s10, 3648  }
  0x83   : > { %14695 = vsyncadd (%p19949_p0), %s295_s10, 4294963648  ;;  %p19950_p11 = scmp.eq.s32.totalorder %s14795_s28, 0 }
  0x85   : > { %14697 = dma.done.wait (%p19950_p11), [#allocation7], 18432   ;;  %p19951_p8 = pmov %p19950_p11 }
  0x87   : > { %14699 = vsyncadd (%p19951_p8), [#allocation7], 4294948864  ;;  %p19952_p13 = pmov %p19951_p8 }
  0x88   : > { %p19953_p6 = pmov %p19951_p8 }
  0x89   : > { %14701 = dma.done.wait (%p19952_p13), [#allocation10], 1024  }
  0x8a   : > { %14703 = vsyncadd (%p19953_p6), [#allocation10], 4294966272  ;;  %v14149_v0 = vld [vmem:[#allocation6 + $0x40] sm:$0xff]   ;;  %v14150_v1 = vld [vmem:[#allocation6 + $0x48] sm:$0xff]   ;;  %vm19738_vm0 = vsmask.f32 7424 }
  0x8b   : > { %12352 = vmatprep.subr.bf16.mxu0 %v14149_v0  ;;  %13568 = vmatprep.subr.bf16.mxu1 %v14149_v0  ;;  %v14151_v2 = vld [vmem:[#allocation6 + $0x50] sm:$0xff]   ;;  %v14152_v3 = vld [vmem:[#allocation6 + $0x58] sm:$0xff]   ;;  %v15002_v7 = vld [vmem:[%s14983_s20 + $0x8] sm:$0xff]   ;;  %vm1359_vm1 = vcmask 1046528   ;;  %vm19739_vm14 = vsmask.f32 4352 }
  0x8c   : > { %12353 = vmatpush3.bf16.msra.mxu0 %v14149_v0  ;;  %13576 = vmatpush3.bf16.msra.mxu1 %v14149_v0  ;;  %v342_v4 = vld [vmem:[%s14983_s20] sm:$0xf]  ;;  %v343_v5 = vld [vmem:[%s14983_s20 + $0x4] sm:$0xf]  ;;  %v556_v10 = vshll.u32 %v15002_v7, 16  ;;  %v14154_v14 = vld [vmem:[#allocation6 + $0x68] sm:$0xff]  }
  0x8d   : > { %12354 = vmatprep.subr.bf16.mxu0 %v14150_v1  ;;  %13569 = vmatprep.subr.bf16.mxu1 %v14150_v1  ;;  %v14999_v6 = vcombine.low %v342_v4, %v343_v5  ;;  %v14153_v11 = vld [vmem:[#allocation6 + $0x60] sm:$0xff]   ;;  %v15009_v17 = vld [vmem:[%s14983_s20 + $0x10] sm:$0xff]   ;;  %v15012_v19 = vld [vmem:[%s14983_s20 + $0x18] sm:$0xff]   ;;  %v560_v22 = vshrl.u32 %v15002_v7, 16  ;;  %s11431_s13 = sshll.u32 %s14979_s21, 8  ;;  %s11743_s17 = sshll.u32 %s14795_s28, 12 }
  0x8e   : > { %v558_v13 = vrot.slane %v556_v10, 1  ;;  %v14155_v18 = vld [vmem:[#allocation6 + $0x70] sm:$0xff]   ;;  %v564_v20 = vshll.u32 %v15009_v17, 16  ;;  %v14156_v21 = vld [vmem:[#allocation6 + $0x78] sm:$0xff]   ;;  %v568_v23 = vshrl.u32 %v15009_v17, 16  ;;  %v572_v24 = vshll.u32 %v15012_v19, 16  ;;  %s19676_s30 = scalar_lea.hbm %s19730_s7, %s11743_s17 }
  0x8f   : > { %v549_v8 = vshrl.u32 %v14999_v6, 16  ;;  %v551_v9 = vshll.u32 %v14999_v6, 16  ;;  %v15019_v26 = vld [vmem:[%s14983_s20 + $0x20] sm:$0xff]   ;;  %v15022_v31 = vld [vmem:[%s14983_s20 + $0x28] sm:$0xff]   ;;  %v576_v34 = vshrl.u32 %v15012_v19, 16  ;;  %v15031_v40 = vld [vmem:[%s14983_s20 + $0x30] sm:$0xff]  }
  0x90   : > { %12355 = vmatpush3.bf16.msra.mxu0 %v14150_v1  ;;  %13577 = vmatpush3.bf16.msra.mxu1 %v14150_v1  ;;  %v566_v25 = vrot.slane %v564_v20, 1  ;;  %v562_v27 = vor.u32 %v560_v22, %v558_v13  ;;  %v14160_v28 = vld [vmem:[#allocation6] sm:$0xff]   ;;  %v574_v30 = vrot.slane %v572_v24, 1  ;;  %v580_v32 = vshll.u32 %v15019_v26, 16  ;;  %v14161_v35 = vld [vmem:[#allocation6 + $0x8] sm:$0xff]   ;;  %v14164_v42 = vld [vmem:[#allocation6 + $0x10] sm:$0xff]  }
  0x91   : > { %12356 = vmatprep.subr.bf16.mxu0 %v14151_v2  ;;  %13570 = vmatprep.subr.bf16.mxu1 %v14151_v2  ;;  %v553_v12 = vrot.slane %v551_v9, 1  ;;  %v584_v37 = vshrl.u32 %v15019_v26, 16  ;;  %v588_v38 = vshll.u32 %v15022_v31, 16  ;;  %v15034_v45 = vld [vmem:[%s14983_s20 + $0x38] sm:$0xff]   ;;  %v596_v46 = vshll.u32 %v15031_v40, 16  ;;  %v15043_v53 = vld [vmem:[%s14983_s20 + $0x40] sm:$0xff]  }
  0x92   : > { %v570_v29 = vor.u32 %v568_v23, %v566_v25  ;;  %v567_v33 = vsel %vm19738_vm0, %v562_v27, %v566_v25  ;;  %v582_v39 = vrot.slane %v580_v32, 1  ;;  %v578_v41 = vor.u32 %v576_v34, %v574_v30  ;;  %v14167_v49 = vld [vmem:[#allocation6 + $0x18] sm:$0xff]   ;;  %v14170_v55 = vld [vmem:[#allocation6 + $0x20] sm:$0xff]   ;;  %v15049_v60 = vld [vmem:[%s14983_s20 + $0x50] sm:$0xff]   ;;  %s19552_s15 = scalar_lea.vmem [#allocation11], %s11431_s13  ;;  %s11305_s9 = scalar_lea.sflag [#allocation5], %s14979_s21 }
  0x93   : > { %v554_v15 = vor.u32 %v553_v12, %v549_v8  ;;  %v590_v44 = vrot.slane %v588_v38, 1  ;;  %v592_v48 = vshrl.u32 %v15022_v31, 16  ;;  %v600_v51 = vshrl.u32 %v15031_v40, 16  ;;  %v15046_v57 = vld [vmem:[%s14983_s20 + $0x48] sm:$0xff]   ;;  %v15059_v5 = vld [vmem:[%s14983_s20 + $0x58] sm:$0xff]   ;;  %s11318_s29 = sshll.u32 %s19552_s15, 4  ;;  %s19678_s29 = int_to_ptr.vmem [resolvable:$true] %s11318_s29 }
  0x94   : > { %12357 = vmatpush3.bf16.msra.mxu0 %v14151_v2  ;;  %13578 = vmatpush3.bf16.msra.mxu1 %v14151_v2  ;;  %v575_v36 = vsel %vm19738_vm0, %v570_v29, %v574_v30  ;;  %v586_v43 = vor.u32 %v584_v37, %v582_v39  ;;  %v583_v47 = vsel %vm19738_vm0, %v578_v41, %v582_v39  ;;  %v604_v52 = vshll.u32 %v15034_v45, 16  ;;  %v14171_v0 = vld [vmem:[#allocation6 + $0x28] sm:$0xff]   ;;  %v14174_v9 = vld [vmem:[#allocation6 + $0x30] sm:$0xff]   ;;  %v14177_v20 = vld [vmem:[#allocation6 + $0x38] sm:$0xff]   ;;  %s14648_s23 = scalar_lea.vmem %s19678_s29, 4096  ;;  %s14731_s28 = smov [#allocation11]  }
  0x95   : > { %12358 = vmatprep.subr.bf16.mxu0 %v14152_v3  ;;  %13571 = vmatprep.subr.bf16.mxu1 %v14152_v3  ;;  %v559_v16 = vsel %vm19738_vm0, %v554_v15, %v558_v13  ;;  %v598_v54 = vrot.slane %v596_v46, 1  ;;  %v594_v56 = vor.u32 %v592_v48, %v590_v44  ;;  %v608_v61 = vshrl.u32 %v15034_v45, 16  ;;  %v14180_v37 = vld [vmem:[#allocation6 + $0x90] sm:$0xff]   ;;  %v14181_v38 = vld [vmem:[#allocation6 + $0x98] sm:$0xff]   ;;  %v14183_v39 = vld [vmem:[#allocation6 + $0xa0] sm:$0xff]   ;;  %p14649_p10 = scmp.ne.s32.totalorder %s19678_s29, %s14648_s23  ;;  %s14652_s11 = sshll.u32 %s14731_s28, 4  ;;  %s14653_s11 = int_to_ptr.vmem [resolvable:$false] %s14652_s11 }
  0x96   : > { %12368 = vmatprep.mubr.bf16.mxu0 %v559_v16  ;;  %v591_v50 = vsel %vm19738_vm0, %v586_v43, %v590_v44  ;;  %v606_v59 = vrot.slane %v604_v52, 1  ;;  %v612_v62 = vshll.u32 %v15043_v53, 16  ;;  %v620_v1 = vshll.u32 %v15046_v57, 16  ;;  %v14186_v41 = vld [vmem:[#allocation6 + $0xa8] sm:$0xff]   ;;  %v15111_v44 = vld [vmem:[%s14983_s20 + $0x98] sm:$0xff]   ;;  %s14654_s8 = scalar_lea.vmem %s14653_s11, 8192  ;;  %p14655_p12 = scmp.lt.s32.totalorder %s19678_s29, %s14653_s11 }
  0x97   : > { %v602_v58 = vor.u32 %v600_v51, %v598_v54  ;;  %v599_v63 = vsel %vm19738_vm0, %v594_v56, %v598_v54  ;;  %v628_v4 = vshll.u32 %v15049_v60, 16  ;;  %v624_v12 = vshrl.u32 %v15046_v57, 16  ;;  %v15106_v43 = vld [vmem:[%s14983_s20 + $0x90] sm:$0xff]   ;;  %v1338_v46 = vld [vmem:[%s14983_s20] sm:$0xe]  ;;  %v14453_v52 = vld [vmem:[%s14983_s20 + $0x8] sm:$0xff]   ;;  %p14650_p3 = pnand %p14649_p10, %p14928_p5  ;;  %p14656_p1 = scmp.lt.s32.totalorder %s14654_s8, %s14648_s23 }
  0x98   : > { %12359 = vmatpush3.bf16.msra.mxu0 %v14152_v3  ;;  %13579 = vmatpush3.bf16.msra.mxu1 %v14152_v3  ;;  %v616_v3 = vshrl.u32 %v15043_v53, 16  ;;  %v614_v8 = vrot.slane %v612_v62, 1  ;;  %v610_v10 = vor.u32 %v608_v61, %v606_v59  ;;  %v632_v15 = vshrl.u32 %v15049_v60, 16  ;;  %v15123_v48 = vld [vmem:[%s14983_s20 + $0xb0] sm:$0xff]   ;;  %v15130_v54 = vld [vmem:[%s14983_s20 + $0xb8] sm:$0xff]  }
  0x99   : > { %12360 = vmatprep.subr.bf16.mxu0 %v14153_v11  ;;  %13572 = vmatprep.subr.bf16.mxu1 %v14153_v11  ;;  %v607_v2 = vsel %vm19738_vm0, %v602_v58, %v606_v59  ;;  %v636_v16 = vshll.u32 %v15059_v5, 16  ;;  %v640_v24 = vshrl.u32 %v15059_v5, 16  ;;  %v14454_v56 = vld [vmem:[%s14983_s20 + $0x10] sm:$0xff]   ;;  %v14455_v58 = vld [vmem:[%s14983_s20 + $0x18] sm:$0xff]   ;;  %p14651_p7 = pneg %p14650_p3  ;;  %p14657_p2 = por %p14656_p1, %p14655_p12 }
  0x9a   : > { %v618_v13 = vor.u32 %v616_v3, %v614_v8  ;;  %v1365_v59 = vrot.slane %v14455_v58, 1  ;;  %v14200_v3 = vld [vmem:[#allocation6 + $0xd0] sm:$0xff]  }
  0x9b   : > { %v638_v23 = vrot.slane %v636_v16, 1  ;;  %p14658_p4 = pnand %p14657_p2, %p14651_p7 }
  0x9c   : > { %12361 = vmatpush3.bf16.msra.mxu0 %v14153_v11  ;;  %13580 = vmatpush3.bf16.msra.mxu1 %v14153_v11  ;;  %v622_v11 = vrot.slane %v620_v1, 1  ;;  %v14457_v1 = vld [vmem:[%s14983_s20 + $0x28] sm:$0xff]  }
  0x9d   : > { %12362 = vmatprep.subr.bf16.mxu0 %v14154_v14  ;;  %13573 = vmatprep.subr.bf16.mxu1 %v14154_v14 }
  0x9e   : > { %v623_v22 = vsel %vm19738_vm0, %v618_v13, %v622_v11  ;;  %v626_v25 = vor.u32 %v624_v12, %v622_v11  ;;  %v14459_v11 = vld [vmem:[%s14983_s20 + $0x38] sm:$0xff]   ;;  %v14202_v13 = vld [vmem:[#allocation6 + $0xe0] sm:$0xff]  }
  0x9f   : > { %v1373_v12 = vrot.slane %v14459_v11, 1  ;;  %v14218_v11 = vld [vmem:[%s14983_s20 + $0x4c] sm:$0xff]  }
  0xa0   : > { %12363 = vmatpush3.bf16.msra.mxu0 %v14154_v14  ;;  %13581 = vmatpush3.bf16.msra.mxu1 %v14154_v14  ;;  %v630_v14 = vrot.slane %v628_v4, 1  ;;  %v14201_v4 = vld [vmem:[#allocation6 + $0xd8] sm:$0xff]  }
  0xa1   : > { %12364 = vmatprep.subr.bf16.mxu0 %v14155_v18  ;;  %13574 = vmatprep.subr.bf16.mxu1 %v14155_v18 }
  0xa2   : > { %v634_v29 = vor.u32 %v632_v15, %v630_v14  ;;  %v631_v30 = vsel %vm19738_vm0, %v626_v25, %v630_v14  ;;  %v14203_v14 = vld [vmem:[#allocation6 + $0xe8] sm:$0xff]  }
  0xa4   : > { %12365 = vmatpush3.bf16.msra.mxu0 %v14155_v18  ;;  %13582 = vmatpush3.bf16.msra.mxu1 %v14155_v18  ;;  %v14176_v18 = vld [vmem:[%s14983_s20 + $0x60] sm:$0xff]   ;;  %v639_v32 = vsel %vm19738_vm0, %v634_v29, %v638_v23 }
  0xa5   : > { %12366 = vmatprep.subr.bf16.mxu0 %v14156_v21  ;;  %13575 = vmatprep.subr.bf16.mxu1 %v14156_v21  ;;  %v644_v27 = vshll.u32 %v14176_v18, 16 }
  0xa7   : > { %v15070_v34 = vrot.slane %v644_v27, 1 }
  0xa8   : > { %12367 = vmatpush3.bf16.msra.mxu0 %v14156_v21  ;;  %13583 = vmatpush3.bf16.msra.mxu1 %v14156_v21  ;;  %v615_v21 = vsel %vm19738_vm0, %v610_v10, %v614_v8 }
  0xa9   : > { %12416 = vmatprep.subr.bf16.mxu0 %v14160_v28 }
  0xab   : > { %12369 = vmatmul.mubr.bf16.vlgmr.msra.gmra.mrb[0].mxu0 %v567_v33  ;;  %v642_v33 = vor.u32 %v640_v24, %v638_v23  ;;  %v14204_v23 = vld [vmem:[#allocation6 + $0xf0] sm:$0xff]   ;;  %v14205_v24 = vld [vmem:[#allocation6 + $0xf8] sm:$0xff]  }
  0xac   : > { %12417 = vmatpush3.bf16.msra.mxu0 %v14160_v28  ;;  %12372 = vmatprep.mubr.bf16.mxu0 %v575_v36  ;;  %v14178_v28 = vld [vmem:[#allocation6 + $0x80] sm:$0xff]   ;;  %v14179_v36 = vld [vmem:[#allocation6 + $0x88] sm:$0xff]  }
  0xad   : > { %12418 = vmatprep.subr.bf16.mxu0 %v14161_v35 }
  0xb0   : > { %12419 = vmatpush3.bf16.msra.mxu0 %v14161_v35  ;;  %v647_v35 = vsel %vm19738_vm0, %v642_v33, %v15070_v34  ;;  %v14209_v33 = vld [vmem:[#allocation6 + $0x100] sm:$0xff]  }
  0xb1   : > { %12420 = vmatprep.subr.bf16.mxu0 %v14164_v42 }
  0xb3   : > { %12373 = vmatmul.mubr.bf16.gmra.mrb[4].mxu0 %v583_v47  ;;  %v15120_v47 = vld [vmem:[%s14983_s20 + $0xa8] sm:$0xff]  }
  0xb4   : > { %12421 = vmatpush3.bf16.msra.mxu0 %v14164_v42  ;;  %12376 = vmatprep.mubr.bf16.mxu0 %v591_v50  ;;  %v15103_v42 = vld [vmem:[%s14983_s20 + $0x88] sm:$0xff]  }
  0xb5   : > { %12422 = vmatprep.subr.bf16.mxu0 %v14167_v49 }
  0xb8   : > { %12423 = vmatpush3.bf16.msra.mxu0 %v14167_v49  ;;  %v14452_v49 = vld [vmem:[%s14983_s20 + $0x4] sm:$0xf] }
  0xb9   : > { %12424 = vmatprep.subr.bf16.mxu0 %v14170_v55  ;;  %v11473_v50 = vcombine.low %v1338_v46, %v14452_v49 }
  0xbb   : > { %12377 = vmatmul.mubr.bf16.gmra.mrb[8].mxu0 %v599_v63  ;;  %v1360_v51 = vrot.slane %v11473_v50, 1  ;;  %v14456_v63 = vld [vmem:[%s14983_s20 + $0x20] sm:$0xff]  }
  0xbc   : > { %12380 = vmatprep.mubr.bf16.mxu0 %v607_v2  ;;  %12425 = vmatpush3.bf16.msra.mxu0 %v14170_v55  ;;  %v1369_v2 = vrot.slane %v14457_v1, 1  ;;  %v14213_v1 = vld [vmem:[%s14983_s20 + $0x2c] sm:$0xff]  }
  0xbd   : > { %12426 = vmatprep.subr.bf16.mxu0 %v14171_v0 }
  0xc0   : > { %12427 = vmatpush3.bf16.msra.mxu0 %v14171_v0  ;;  %v1367_v0 = vrot.slane %v14456_v63, 1  ;;  %v14210_v63 = vld [vmem:[%s14983_s20 + $0x1c] sm:$0xff]  }
  0xc1   : > { %12428 = vmatprep.subr.bf16.mxu0 %v14174_v9 }
  0xc2   : > { %v1370_v8 = vsel %vm1359_vm1, %v1367_v0, %v1369_v2 }
  0xc3   : > { %12381 = vmatmul.mubr.bf16.gmra.mrb[12].mxu0 %v615_v21  ;;  %v14461_v21 = vld [vmem:[%s14983_s20 + $0x48] sm:$0xff]  }
  0xc4   : > { %12384 = vmatprep.mubr.bf16.mxu0 %v623_v22  ;;  %12429 = vmatpush3.bf16.msra.mxu0 %v14174_v9  ;;  %v14458_v9 = vld [vmem:[%s14983_s20 + $0x30] sm:$0xff]   ;;  %v1377_v22 = vrot.slane %v14461_v21, 1  ;;  %v14226_v21 = vld [vmem:[%s14983_s20 + $0x7c] sm:$0xff]  }
  0xc5   : > { %12430 = vmatprep.subr.bf16.mxu0 %v14177_v20  ;;  %v1371_v10 = vrot.slane %v14458_v9, 1  ;;  %v14233_v9 = vld [vmem:[#allocation6 + $0x130] sm:$0xff]  }
  0xc7   : > { %v1372_v15 = vsel %vm1359_vm1, %v1369_v2, %v1371_v10  ;;  %v1374_v16 = vsel %vm1359_vm1, %v1371_v10, %v1373_v12  ;;  %v14220_v2 = vld [vmem:[#allocation6 + $0x118] sm:$0xff]  }
  0xc8   : > { %12431 = vmatpush3.bf16.msra.mxu0 %v14177_v20  ;;  %v14216_v10 = vld [vmem:[%s14983_s20 + $0x44] sm:$0xff]  }
  0xc9   : > { %12480 = vmatprep.subr.bf16.mxu0 %v14178_v28 }
  0xcb   : > { %12385 = vmatmul.mubr.bf16.gmra.mrb[16].mxu0 %v631_v30  ;;  %v14463_v30 = vld [vmem:[%s14983_s20 + $0x58] sm:$0xff]  }
  0xcc   : > { %12388 = vmatprep.mubr.bf16.mxu0 %v639_v32  ;;  %v1381_v32 = vrot.slane %v14463_v30, 1  ;;  %v14234_v30 = vld [vmem:[%s14983_s20 + $0xac] sm:$0xff]  }
  0xd3   : > { %12389 = vmatmul.mubr.bf16.gmra.mrb[20].mxu0 %v647_v35 }
  0xd4   : > { %12432 = vmatprep.mubr.bf16.mxu0 %v14999_v6  ;;  %v14191_v6 = vld [vmem:[#allocation6 + $0xb0] sm:$0xff]  }
  0xdb   : > { %12433 = vmatmul.mubr.bf16.vlgmr.msra.gmra.mrb[0].mxu0 %v15002_v7  ;;  %v14194_v7 = vld [vmem:[#allocation6 + $0xb8] sm:$0xff]  }
  0xdc   : > { %12481 = vmatpush3.bf16.msra.mxu0 %v14178_v28  ;;  %12436 = vmatprep.mubr.bf16.mxu0 %v15009_v17  ;;  %v14198_v17 = vld [vmem:[#allocation6 + $0xc0] sm:$0xff]   ;;  %v14462_v28 = vld [vmem:[%s14983_s20 + $0x50] sm:$0xff]  }
  0xdd   : > { %12482 = vmatprep.subr.bf16.mxu0 %v14179_v36  ;;  %v1379_v29 = vrot.slane %v14462_v28, 1  ;;  %v15204_v28 = vld [vmem:[%s14983_s20 + $0x10] sm:$0xf] }
  0xdf   : > { %v1380_v35 = vsel %vm1359_vm1, %v1377_v22, %v1379_v29 }
  0xe0   : > { %12483 = vmatpush3.bf16.msra.mxu0 %v14179_v36  ;;  %v1382_v36 = vsel %vm1359_vm1, %v1379_v29, %v1381_v32  ;;  %v14232_v29 = vld [vmem:[%s14983_s20 + $0xa4] sm:$0xff]  }
  0xe1   : > { %12484 = vmatprep.subr.bf16.mxu0 %v14180_v37 }
  0xe3   : > { %12437 = vmatmul.mubr.bf16.gmra.mrb[4].mxu0 %v15012_v19  ;;  %v15087_v19 = vld [vmem:[%s14983_s20 + $0x68] sm:$0xff]  }
  0xe4   : > { %12440 = vmatprep.mubr.bf16.mxu0 %v15019_v26  ;;  %12485 = vmatpush3.bf16.msra.mxu0 %v14180_v37  ;;  %v15090_v26 = vld [vmem:[%s14983_s20 + $0x70] sm:$0xff]   ;;  %v14464_v37 = vld [vmem:[%s14983_s20 + $0x60] sm:$0xff]  }
  0xe5   : > { %12486 = vmatprep.subr.bf16.mxu0 %v14181_v38 }
  0xe8   : > { %12487 = vmatpush3.bf16.msra.mxu0 %v14181_v38  ;;  %v1383_v38 = vrot.slane %v14464_v37, 1  ;;  %v14237_v37 = vld [vmem:[%s14983_s20 + $0xbc] sm:$0xff]  }
  0xe9   : > { %12488 = vmatprep.subr.bf16.mxu0 %v14183_v39 }
  0xeb   : > { %12441 = vmatmul.mubr.bf16.gmra.mrb[8].mxu0 %v15022_v31  ;;  %v15095_v31 = vld [vmem:[%s14983_s20 + $0x78] sm:$0xff]  }
  0xec   : > { %12444 = vmatprep.mubr.bf16.mxu0 %v15031_v40  ;;  %12489 = vmatpush3.bf16.msra.mxu0 %v14183_v39  ;;  %v15098_v40 = vld [vmem:[%s14983_s20 + $0x80] sm:$0xff]   ;;  %v1385_v39 = vrot.slane %v15087_v19, 1 }
  0xed   : > { %12490 = vmatprep.subr.bf16.mxu0 %v14186_v41  ;;  %v1391_v50 = vrot.slane %v15098_v40, 1 }
  0xf0   : > { %12491 = vmatpush3.bf16.msra.mxu0 %v14186_v41  ;;  %v1384_v41 = vsel %vm1359_vm1, %v1381_v32, %v1383_v38 }
  0xf1   : > { %12492 = vmatprep.subr.bf16.mxu0 %v14191_v6 }
  0xf3   : > { %12445 = vmatmul.mubr.bf16.gmra.mrb[12].mxu0 %v15034_v45  ;;  %v15114_v45 = vld [vmem:[%s14983_s20 + $0xa0] sm:$0xff]  }
  0xf4   : > { %12448 = vmatprep.mubr.bf16.mxu0 %v15043_v53  ;;  %12493 = vmatpush3.bf16.msra.mxu0 %v14191_v6  ;;  %v1361_v53 = vrot.slane %v14453_v52, 1  ;;  %v1386_v6 = vsel %vm1359_vm1, %v1383_v38, %v1385_v39 }
  0xf5   : > { %12494 = vmatprep.subr.bf16.mxu0 %v14194_v7 }
  0xf6   : > { %v1362_v55 = vsel %vm1359_vm1, %v1360_v51, %v1361_v53 }
  0xf8   : > { %12495 = vmatpush3.bf16.msra.mxu0 %v14194_v7  ;;  %v1387_v7 = vrot.slane %v15090_v26, 1 }
  0xf9   : > { %12544 = vmatprep.subr.bf16.mxu0 %v14198_v17 }
  0xfa   : > { %v1388_v46 = vsel %vm1359_vm1, %v1385_v39, %v1387_v7 }
  0xfb   : > { %12449 = vmatmul.mubr.bf16.gmra.mrb[16].mxu0 %v15046_v57  ;;  %v1363_v57 = vrot.slane %v14454_v56, 1 }
  0xfc   : > { %12452 = vmatprep.mubr.bf16.mxu0 %v15049_v60  ;;  %v14199_v60 = vld [vmem:[#allocation6 + $0xc8] sm:$0xff]  }
  0xfd   : > { %v1364_v61 = vsel %vm1359_vm1, %v1361_v53, %v1363_v57  ;;  %v1366_v62 = vsel %vm1359_vm1, %v1363_v57, %v1365_v59 }
 0x103   : > { %12453 = vmatmul.mubr.bf16.gmra.mrb[20].mxu0 %v15059_v5  ;;  %v1368_v5 = vsel %vm1359_vm1, %v1365_v59, %v1367_v0  ;;  %v14206_v59 = vld [vmem:[%s14983_s20 + $0xc0] ss:$0 sps:$4 sm:$0x11]   ;;  %v14211_v0 = vld [vmem:[%s14983_s20 + $0x24] sm:$0xff]  }
 0x104   : > { %12456 = vmatprep.mubr.bf16.mxu0 %v14176_v18  ;;  %v14460_v18 = vld [vmem:[%s14983_s20 + $0x40] sm:$0xff]  }
 0x105   : > { %v1375_v20 = vrot.slane %v14460_v18, 1  ;;  %v14223_v18 = vld [vmem:[%s14983_s20 + $0x6c] sm:$0xff]  }
 0x107   : > { %v1376_v25 = vsel %vm1359_vm1, %v1373_v12, %v1375_v20  ;;  %v1378_v27 = vsel %vm1359_vm1, %v1375_v20, %v1377_v22  ;;  %v14236_v12 = vld [vmem:[#allocation6 + $0x138] sm:$0xff]   ;;  %v14224_v20 = vld [vmem:[%s14983_s20 + $0x74] sm:$0xff]  }
 0x108   : > { %v14227_v22 = vld [vmem:[%s14983_s20 + $0x84] sm:$0xff]  }
 0x10b   : > { %12457 = vmatmul.mubr.bf16.gmra.mrb[24].mxu0 %v15087_v19  ;;  %v1393_v19 = vrot.slane %v15103_v42, 1 }
 0x10c   : > { %12460 = vmatprep.mubr.bf16.mxu0 %v15090_v26  ;;  %v1395_v26 = vrot.slane %v15106_v43, 1 }
 0x10d   : > { %v1394_v52 = vsel %vm1359_vm1, %v1391_v50, %v1393_v19 }
 0x10e   : > { %v1396_v53 = vsel %vm1359_vm1, %v1393_v19, %v1395_v26 }
 0x113   : > { %12461 = vmatmul.mubr.bf16.gmra.mrb[28].mxu0 %v15095_v31 }
 0x114   : > { %12464 = vmatprep.mubr.bf16.mxu0 %v15098_v40  ;;  %v1399_v40 = vrot.slane %v15114_v45, 1 }
 0x11b   : > { %12465 = vmatmul.mubr.bf16.gmra.mrb[32].mxu0 %v15103_v42  ;;  %v1401_v42 = vrot.slane %v15120_v47, 1 }
 0x11c   : > { %12468 = vmatprep.mubr.bf16.mxu0 %v15106_v43  ;;  %v1403_v43 = vrot.slane %v15123_v48, 1 }
 0x11d   : > { %v1402_v57 = vsel %vm1359_vm1, %v1399_v40, %v1401_v42 }
 0x11e   : > { %v1404_v58 = vsel %vm1359_vm1, %v1401_v42, %v1403_v43 }
 0x123   : > { %12469 = vmatmul.mubr.bf16.gmra.mrb[36].mxu0 %v15111_v44 }
 0x124   : > { %12472 = vmatprep.mubr.bf16.mxu0 %v15114_v45  ;;  %v1407_v45 = vrot.slane %v14206_v59, 1  ;;  %v14245_v59 = vld [vmem:[#allocation6 + $0x148] sm:$0xff]  }
 0x12b   : > { %12473 = vmatmul.mubr.bf16.gmra.mrb[40].mxu0 %v15120_v47 }
 0x12c   : > { %12476 = vmatprep.mubr.bf16.mxu0 %v15123_v48  ;;  %v14212_v48 = vld [vmem:[#allocation6 + $0x108] sm:$0xff]  }
 0x133   : > { %12477 = vmatmul.mubr.bf16.gmra.mrb[44].mxu0 %v15130_v54 }
 0x134   : > { %12496 = vmatprep.mubr.bf16.mxu0 %v1362_v55 }
 0x13b   : > { %12497 = vmatmul.mubr.bf16.vlgmr.msra.gmra.mrb[0].mxu0 %v1364_v61  ;;  %v14207_v61 = vld [vmem:[%s14983_s20 + $0xc] sm:$0xff]  }
 0x13c   : > { %12545 = vmatpush3.bf16.msra.mxu0 %v14198_v17  ;;  %12500 = vmatprep.mubr.bf16.mxu0 %v1366_v62  ;;  %v1389_v17 = vrot.slane %v15095_v31, 1  ;;  %v1397_v31 = vrot.slane %v15111_v44, 1  ;;  %v1405_v44 = vrot.slane %v15130_v54, 1  ;;  %v14208_v62 = vld [vmem:[%s14983_s20 + $0x14] sm:$0xff]  }
 0x13d   : > { %12546 = vmatprep.subr.bf16.mxu0 %v14199_v60  ;;  %v14217_v54 = vld [vmem:[#allocation6 + $0x110] sm:$0xff]  }
 0x13e   : > { %v1390_v49 = vsel %vm1359_vm1, %v1387_v7, %v1389_v17  ;;  %v1392_v51 = vsel %vm1359_vm1, %v1389_v17, %v1391_v50  ;;  %v1398_v55 = vsel %vm1359_vm1, %v1395_v26, %v1397_v31  ;;  %v1400_v56 = vsel %vm1359_vm1, %v1397_v31, %v1399_v40 }
 0x13f   : > { %v1408_v47 = vsel %vm1359_vm1, %v1405_v44, %v1407_v45 }
 0x140   : > { %12547 = vmatpush3.bf16.msra.mxu0 %v14199_v60  ;;  %v1406_v60 = vsel %vm1359_vm1, %v1403_v43, %v1405_v44 }
 0x141   : > { %12548 = vmatprep.subr.bf16.mxu0 %v14200_v3 }
 0x143   : > { %12501 = vmatmul.mubr.bf16.gmra.mrb[4].mxu0 %v1368_v5  ;;  %v14215_v5 = vld [vmem:[%s14983_s20 + $0x3c] sm:$0xff]  }
 0x144   : > { %12504 = vmatprep.mubr.bf16.mxu0 %v1370_v8  ;;  %12549 = vmatpush3.bf16.msra.mxu0 %v14200_v3  ;;  %v14225_v3 = vld [vmem:[#allocation6 + $0x120] sm:$0xff]   ;;  %v14228_v8 = vld [vmem:[#allocation6 + $0x128] sm:$0xff]  }
 0x145   : > { %12550 = vmatprep.subr.bf16.mxu0 %v14201_v4 }
 0x148   : > { %12551 = vmatpush3.bf16.msra.mxu0 %v14201_v4  ;;  %v14214_v4 = vld [vmem:[%s14983_s20 + $0x34] sm:$0xff]  }
 0x149   : > { %12552 = vmatprep.subr.bf16.mxu0 %v14202_v13 }
 0x14b   : > { %12505 = vmatmul.mubr.bf16.gmra.mrb[8].mxu0 %v1372_v15  ;;  %v14221_v15 = vld [vmem:[%s14983_s20 + $0x5c] sm:$0xff]  }
 0x14c   : > { %12508 = vmatprep.mubr.bf16.mxu0 %v1374_v16  ;;  %12553 = vmatpush3.bf16.msra.mxu0 %v14202_v13  ;;  %v15189_v13 = vld [vmem:[#allocation6 + $0x140] sm:$0xff]  }
 0x14d   : > { %12554 = vmatprep.subr.bf16.mxu0 %v14203_v14  ;;  %v14222_v16 = vld [vmem:[%s14983_s20 + $0x64] sm:$0xff]  }
 0x150   : > { %12555 = vmatpush3.bf16.msra.mxu0 %v14203_v14  ;;  %v14219_v14 = vld [vmem:[%s14983_s20 + $0x54] sm:$0xff]  }
 0x151   : > { %12556 = vmatprep.subr.bf16.mxu0 %v14204_v23 }
 0x153   : > { %12509 = vmatmul.mubr.bf16.gmra.mrb[12].mxu0 %v1376_v25  ;;  %v14231_v25 = vld [vmem:[%s14983_s20 + $0x9c] sm:$0xff]  }
 0x154   : > { %12512 = vmatprep.mubr.bf16.mxu0 %v1378_v27  ;;  %12557 = vmatpush3.bf16.msra.mxu0 %v14204_v23  ;;  %v14229_v23 = vld [vmem:[%s14983_s20 + $0x8c] sm:$0xff]  }
 0x155   : > { %12558 = vmatprep.subr.bf16.mxu0 %v14205_v24  ;;  %v2284_v27 = vld [vmem:[%s14983_s20 + $0xc] sm:$0xf] }
 0x156   : > { %v11514_v32 = vcombine.low %v2284_v27, %v15204_v28 }
 0x158   : > { %12559 = vmatpush3.bf16.msra.mxu0 %v14205_v24  ;;  %v14230_v24 = vld [vmem:[%s14983_s20 + $0x94] sm:$0xff]   ;;  %v2474_v38 = vshrl.u32 %v11514_v32, 16 }
 0x159   : > { %12608 = vmatprep.subr.bf16.mxu0 %v14209_v33 }
 0x15b   : > { %12513 = vmatmul.mubr.bf16.gmra.mrb[16].mxu0 %v1380_v35  ;;  %v2476_v35 = vshll.u32 %v11514_v32, 16 }
 0x15c   : > { %12516 = vmatprep.mubr.bf16.mxu0 %v1382_v36  ;;  %v14235_v36 = vld [vmem:[%s14983_s20 + $0xb4] sm:$0xff]  }
 0x15d   : > { %v2478_v39 = vrot.slane %v2476_v35, 1 }
 0x15f   : > { %v2479_v7 = vor.u32 %v2478_v39, %v2474_v38 }
 0x163   : > { %12517 = vmatmul.mubr.bf16.gmra.mrb[20].mxu0 %v1384_v41 }
 0x164   : > { %12520 = vmatprep.mubr.bf16.mxu0 %v1386_v6  ;;  %v15216_v6 = vld [vmem:[%s14983_s20 + $0x1c] sm:$0xff]  }
 0x165   : > { %v2489_v50 = vshll.u32 %v15216_v6, 16 }
 0x167   : > { %v2491_v31 = vrot.slane %v2489_v50, 1  ;;  %v14269_v50 = vld [vmem:[#allocation6 + $0x178] sm:$0xff]  }
 0x16b   : > { %12521 = vmatmul.mubr.bf16.gmra.mrb[24].mxu0 %v1388_v46  ;;  %v15219_v46 = vld [vmem:[%s14983_s20 + $0x24] sm:$0xff]  }
 0x16c   : > { %12524 = vmatprep.mubr.bf16.mxu0 %v1390_v49  ;;  %v14238_v49 = vld [vmem:[%s14983_s20 + $0xc4] sm:$0xff]   ;;  %v2497_v26 = vshll.u32 %v15219_v46, 16  ;;  %v2501_v44 = vshrl.u32 %v15219_v46, 16 }
 0x16e   : > { %v2499_v42 = vrot.slane %v2497_v26, 1 }
 0x173   : > { %12525 = vmatmul.mubr.bf16.gmra.mrb[28].mxu0 %v1392_v51 }
 0x174   : > { %12528 = vmatprep.mubr.bf16.mxu0 %v1394_v52  ;;  %v2493_v52 = vshrl.u32 %v15216_v6, 16 }
 0x176   : > { %v2495_v40 = vor.u32 %v2493_v52, %v2491_v31 }
 0x17b   : > { %12529 = vmatmul.mubr.bf16.gmra.mrb[32].mxu0 %v1396_v53  ;;  %v15228_v53 = vld [vmem:[%s14983_s20 + $0x2c] sm:$0xff]  }
 0x17c   : > { %12532 = vmatprep.mubr.bf16.mxu0 %v1398_v55 }
 0x183   : > { %12533 = vmatmul.mubr.bf16.gmra.mrb[36].mxu0 %v1400_v56  ;;  %v15231_v56 = vld [vmem:[%s14983_s20 + $0x34] sm:$0xff]  }
 0x184   : > { %12536 = vmatprep.mubr.bf16.mxu0 %v1402_v57  ;;  %v2505_v57 = vshll.u32 %v15228_v53, 16  ;;  %v2513_v45 = vshll.u32 %v15231_v56, 16 }
 0x18b   : > { %12537 = vmatmul.mubr.bf16.gmra.mrb[40].mxu0 %v1404_v58  ;;  %v2500_v58 = vsel %vm19738_vm0, %v2495_v40, %v2499_v42  ;;  %v15282_v40 = vld [vmem:[#allocation6 + $0x180] sm:$0xff]  }
 0x18c   : > { %12540 = vmatprep.mubr.bf16.mxu0 %v1406_v60  ;;  %v2509_v60 = vshrl.u32 %v15228_v53, 16 }
 0x193   : > { %12541 = vmatmul.mubr.bf16.gmra.mrb[44].mxu0 %v1408_v47  ;;  %v2507_v47 = vrot.slane %v2505_v57, 1 }
 0x194   : > { %12560 = vmatprep.mubr.bf16.mxu0 %v14207_v61  ;;  %v15240_v61 = vld [vmem:[%s14983_s20 + $0x3c] sm:$0xff]  }
 0x19b   : > { %12561 = vmatmul.mubr.bf16.vlgmr.msra.gmra.mrb[0].mxu0 %v14208_v62  ;;  %v2503_v62 = vor.u32 %v2501_v44, %v2499_v42 }
 0x19c   : > { %12609 = vmatpush3.bf16.msra.mxu0 %v14209_v33  ;;  %12564 = vmatprep.mubr.bf16.mxu0 %v14210_v63  ;;  %v15210_v33 = vld [vmem:[%s14983_s20 + $0x14] sm:$0xff]   ;;  %v2511_v63 = vor.u32 %v2509_v60, %v2507_v47 }
 0x19d   : > { %12610 = vmatprep.subr.bf16.mxu0 %v14212_v48  ;;  %v2481_v41 = vshll.u32 %v15210_v33, 16  ;;  %v2485_v19 = vshrl.u32 %v15210_v33, 16 }
 0x19f   : > { %v2483_v17 = vrot.slane %v2481_v41, 1 }
 0x1a0   : > { %12611 = vmatpush3.bf16.msra.mxu0 %v14212_v48  ;;  %v2515_v48 = vrot.slane %v2513_v45, 1  ;;  %v15292_v45 = vld [vmem:[%s14983_s20 + $0x7c] sm:$0xff]  }
 0x1a1   : > { %12612 = vmatprep.subr.bf16.mxu0 %v14217_v54  ;;  %v2484_v51 = vsel %vm19738_vm0, %v2479_v7, %v2483_v17  ;;  %v2487_v55 = vor.u32 %v2485_v19, %v2483_v17 }
 0x1a3   : > { %12565 = vmatmul.mubr.bf16.gmra.mrb[4].mxu0 %v14211_v0  ;;  %v2492_v43 = vsel %vm19738_vm0, %v2487_v55, %v2491_v31  ;;  %v14250_v0 = vld [vmem:[#allocation6 + $0x150] sm:$0xff]  }
 0x1a4   : > { %12568 = vmatprep.mubr.bf16.mxu0 %v14213_v1  ;;  %12613 = vmatpush3.bf16.msra.mxu0 %v14217_v54  ;;  %v15244_v54 = vld [vmem:[%s14983_s20 + $0x44] sm:$0xff]   ;;  %v2521_v1 = vshll.u32 %v15240_v61, 16  ;;  %v15280_v55 = vld [vmem:[%s14983_s20 + $0x74] sm:$0xff]  }
 0x1a5   : > { %12614 = vmatprep.subr.bf16.mxu0 %v14220_v2 }
 0x1a8   : > { %12615 = vmatpush3.bf16.msra.mxu0 %v14220_v2  ;;  %v2508_v2 = vsel %vm19738_vm0, %v2503_v62, %v2507_v47 }
 0x1a9   : > { %12616 = vmatprep.subr.bf16.mxu0 %v14225_v3 }
 0x1ab   : > { %12569 = vmatmul.mubr.bf16.gmra.mrb[8].mxu0 %v14214_v4  ;;  %v2516_v4 = vsel %vm19738_vm0, %v2511_v63, %v2515_v48 }
 0x1ac   : > { %12572 = vmatprep.mubr.bf16.mxu0 %v14215_v5  ;;  %12617 = vmatpush3.bf16.msra.mxu0 %v14225_v3  ;;  %v2517_v3 = vshrl.u32 %v15231_v56, 16  ;;  %v2525_v5 = vshrl.u32 %v15240_v61, 16 }
 0x1ad   : > { %12618 = vmatprep.subr.bf16.mxu0 %v14228_v8 }
 0x1b0   : > { %12619 = vmatpush3.bf16.msra.mxu0 %v14228_v8  ;;  %v2529_v8 = vshll.u32 %v15244_v54, 16 }
 0x1b1   : > { %12620 = vmatprep.subr.bf16.mxu0 %v14233_v9 }
 0x1b3   : > { %12573 = vmatmul.mubr.bf16.gmra.mrb[12].mxu0 %v14216_v10  ;;  %v2523_v10 = vrot.slane %v2521_v1, 1 }
 0x1b4   : > { %12576 = vmatprep.mubr.bf16.mxu0 %v14218_v11  ;;  %12621 = vmatpush3.bf16.msra.mxu0 %v14233_v9  ;;  %v14253_v9 = vld [vmem:[#allocation6 + $0x158] sm:$0xff]   ;;  %v15253_v11 = vld [vmem:[%s14983_s20 + $0x4c] sm:$0xff]  }
 0x1b5   : > { %12622 = vmatprep.subr.bf16.mxu0 %v14236_v12 }
 0x1b8   : > { %12623 = vmatpush3.bf16.msra.mxu0 %v14236_v12  ;;  %v2519_v12 = vor.u32 %v2517_v3, %v2515_v48  ;;  %v15295_v48 = vld [vmem:[%s14983_s20 + $0x84] sm:$0xff]  }
 0x1b9   : > { %12672 = vmatprep.subr.bf16.mxu0 %v15189_v13 }
 0x1bb   : > { %12577 = vmatmul.mubr.bf16.gmra.mrb[16].mxu0 %v14219_v14  ;;  %v2531_v14 = vrot.slane %v2529_v8, 1 }
 0x1bc   : > { %12580 = vmatprep.mubr.bf16.mxu0 %v14221_v15  ;;  %v15256_v15 = vld [vmem:[%s14983_s20 + $0x54] sm:$0xff]  }
 0x1bd   : > { %v2549_v41 = vshrl.u32 %v15256_v15, 16 }
 0x1c3   : > { %12581 = vmatmul.mubr.bf16.gmra.mrb[20].mxu0 %v14222_v16  ;;  %v14258_v16 = vld [vmem:[#allocation6 + $0x160] sm:$0xff]  }
 0x1c4   : > { %12584 = vmatprep.mubr.bf16.mxu0 %v14223_v18  ;;  %v2537_v18 = vshll.u32 %v15253_v11, 16 }
 0x1c6   : > { %v2539_v27 = vrot.slane %v2537_v18, 1 }
 0x1cb   : > { %12585 = vmatmul.mubr.bf16.gmra.mrb[24].mxu0 %v14224_v20  ;;  %v2524_v20 = vsel %vm19738_vm0, %v2519_v12, %v2523_v10 }
 0x1cc   : > { %12588 = vmatprep.mubr.bf16.mxu0 %v14226_v21  ;;  %v2533_v21 = vshrl.u32 %v15244_v54, 16 }
 0x1d3   : > { %12589 = vmatmul.mubr.bf16.gmra.mrb[28].mxu0 %v14227_v22 }
 0x1d4   : > { %12592 = vmatprep.mubr.bf16.mxu0 %v14229_v23  ;;  %v2541_v23 = vshrl.u32 %v15253_v11, 16 }
 0x1d6   : > { %v2543_v32 = vor.u32 %v2541_v23, %v2539_v27 }
 0x1db   : > { %12593 = vmatmul.mubr.bf16.gmra.mrb[32].mxu0 %v14230_v24  ;;  %v2545_v24 = vshll.u32 %v15256_v15, 16 }
 0x1dc   : > { %12596 = vmatprep.mubr.bf16.mxu0 %v14231_v25  ;;  %v14261_v25 = vld [vmem:[#allocation6 + $0x168] sm:$0xff]  }
 0x1dd   : > { %v2547_v35 = vrot.slane %v2545_v24, 1 }
 0x1df   : > { %v2548_v7 = vsel %vm19738_vm0, %v2543_v32, %v2547_v35  ;;  %v2551_v52 = vor.u32 %v2549_v41, %v2547_v35  ;;  %v15319_v35 = vld [vmem:[%s14983_s20 + $0xa4] sm:$0xff]  }
 0x1e3   : > { %12597 = vmatmul.mubr.bf16.gmra.mrb[36].mxu0 %v14232_v29  ;;  %v15265_v29 = vld [vmem:[%s14983_s20 + $0x5c] sm:$0xff]  }
 0x1e4   : > { %12600 = vmatprep.mubr.bf16.mxu0 %v14234_v30  ;;  %v2535_v30 = vor.u32 %v2533_v21, %v2531_v14  ;;  %v2553_v38 = vshll.u32 %v15265_v29, 16  ;;  %v2557_v17 = vshrl.u32 %v15265_v29, 16 }
 0x1e6   : > { %v2540_v39 = vsel %vm19738_vm0, %v2535_v30, %v2539_v27  ;;  %v2555_v19 = vrot.slane %v2553_v38, 1 }
 0x1e8   : > { %v2559_v26 = vor.u32 %v2557_v17, %v2555_v19  ;;  %v2556_v57 = vsel %vm19738_vm0, %v2551_v52, %v2555_v19  ;;  %v2625_v17 = vshll.u32 %v15319_v35, 16 }
 0x1eb   : > { %12601 = vmatmul.mubr.bf16.gmra.mrb[40].mxu0 %v14235_v36  ;;  %v15268_v36 = vld [vmem:[%s14983_s20 + $0x64] sm:$0xff]  }
 0x1ec   : > { %12604 = vmatprep.mubr.bf16.mxu0 %v14237_v37  ;;  %v14266_v37 = vld [vmem:[#allocation6 + $0x170] sm:$0xff]  }
 0x1f3   : > { %12605 = vmatmul.mubr.bf16.gmra.mrb[44].mxu0 %v14238_v49  ;;  %v2561_v49 = vshll.u32 %v15268_v36, 16 }
 0x1f4   : > { %12624 = vmatprep.mubr.bf16.mxu0 %v2484_v51  ;;  %v15277_v51 = vld [vmem:[%s14983_s20 + $0x6c] sm:$0xff]  }
 0x1f5   : > { %v2563_v31 = vrot.slane %v2561_v49, 1  ;;  %v2569_v42 = vshll.u32 %v15277_v51, 16 }
 0x1f7   : > { %v2564_v44 = vsel %vm19738_vm0, %v2559_v26, %v2563_v31  ;;  %v2571_v60 = vrot.slane %v2569_v42, 1  ;;  %v2627_v26 = vrot.slane %v2625_v17, 1  ;;  %v3038_v17 = vrot.slane %v15216_v6, 1 }
 0x1fb   : > { %12625 = vmatmul.mubr.bf16.vlgmr.msra.gmra.mrb[0].mxu0 %v2492_v43  ;;  %v2565_v43 = vshrl.u32 %v15268_v36, 16 }
 0x1fc   : > { %12673 = vmatpush3.bf16.msra.mxu0 %v15189_v13  ;;  %12628 = vmatprep.mubr.bf16.mxu0 %v2500_v58  ;;  %v2527_v13 = vor.u32 %v2525_v5, %v2523_v10  ;;  %v2573_v58 = vshrl.u32 %v15277_v51, 16  ;;  %v2593_v5 = vshll.u32 %v15295_v48, 16 }
 0x1fd   : > { %12674 = vmatprep.subr.bf16.mxu0 %v14245_v59  ;;  %v2567_v47 = vor.u32 %v2565_v43, %v2563_v31  ;;  %v15331_v31 = vld [vmem:[%s14983_s20 + $0xb4] sm:$0xff]   ;;  %v2629_v43 = vshrl.u32 %v15319_v35, 16 }
 0x1fe   : > { %v2532_v22 = vsel %vm19738_vm0, %v2527_v13, %v2531_v14  ;;  %v2575_v62 = vor.u32 %v2573_v58, %v2571_v60  ;;  %v2595_v13 = vrot.slane %v2593_v5, 1  ;;  %v15307_v14 = vld [vmem:[%s14983_s20 + $0x94] sm:$0xff]  }
 0x1ff   : > { %v2572_v1 = vsel %vm19738_vm0, %v2567_v47, %v2571_v60  ;;  %v2609_v23 = vshll.u32 %v15307_v14, 16  ;;  %v15340_v47 = vld [vmem:[%s14983_s20 + $0xbc] sm:$0xff]  }
 0x200   : > { %12675 = vmatpush3.bf16.msra.mxu0 %v14245_v59  ;;  %v2577_v59 = vshll.u32 %v15280_v55, 16 }
 0x201   : > { %12676 = vmatprep.subr.bf16.mxu0 %v14250_v0  ;;  %v2611_v32 = vrot.slane %v2609_v23, 1 }
 0x202   : > { %v2579_v63 = vrot.slane %v2577_v59, 1  ;;  %v2641_v59 = vshll.u32 %v15331_v31, 16 }
 0x203   : > { %12629 = vmatmul.mubr.bf16.gmra.mrb[4].mxu0 %v2508_v2  ;;  %v2581_v2 = vshrl.u32 %v15280_v55, 16 }
 0x204   : > { %12632 = vmatprep.mubr.bf16.mxu0 %v2516_v4  ;;  %12677 = vmatpush3.bf16.msra.mxu0 %v14250_v0  ;;  %v2585_v0 = vshll.u32 %v15292_v45, 16  ;;  %v2580_v3 = vsel %vm19738_vm0, %v2575_v62, %v2579_v63  ;;  %v2589_v4 = vshrl.u32 %v15292_v45, 16  ;;  %v2631_v62 = vor.u32 %v2629_v43, %v2627_v26 }
 0x205   : > { %12678 = vmatprep.subr.bf16.mxu0 %v14253_v9  ;;  %v2583_v10 = vor.u32 %v2581_v2, %v2579_v63  ;;  %v2649_v2 = vshll.u32 %v15340_v47, 16  ;;  %v3046_v43 = vrot.slane %v15240_v61, 1  ;;  %v14279_v61 = vld [vmem:[#allocation6 + $0x1b0] sm:$0xff]  }
 0x206   : > { %v2587_v8 = vrot.slane %v2585_v0, 1  ;;  %v2643_v0 = vrot.slane %v2641_v59, 1  ;;  %v3050_v59 = vrot.slane %v15253_v11, 1  ;;  %v14283_v11 = vld [vmem:[#allocation6 + $0x1c0] sm:$0xff]  }
 0x208   : > { %12679 = vmatpush3.bf16.msra.mxu0 %v14253_v9  ;;  %v15304_v9 = vld [vmem:[%s14983_s20 + $0x8c] sm:$0xff]   ;;  %v2591_v12 = vor.u32 %v2589_v4, %v2587_v8  ;;  %v2588_v18 = vsel %vm19738_vm0, %v2583_v10, %v2587_v8  ;;  %v2645_v4 = vshrl.u32 %v15331_v31, 16  ;;  %v2653_v8 = vshrl.u32 %v15340_v47, 16 }
 0x209   : > { %12680 = vmatprep.subr.bf16.mxu0 %v14258_v16 }
 0x20a   : > { %v2596_v21 = vsel %vm19738_vm0, %v2591_v12, %v2595_v13  ;;  %v2651_v12 = vrot.slane %v2649_v2, 1  ;;  %v3056_v2 = vrot.slane %v15268_v36, 1  ;;  %v3062_v36 = vrot.slane %v15292_v45, 1 }
 0x20b   : > { %12633 = vmatmul.mubr.bf16.gmra.mrb[8].mxu0 %v2524_v20  ;;  %v2597_v20 = vshrl.u32 %v15295_v48, 16 }
 0x20c   : > { %12636 = vmatprep.mubr.bf16.mxu0 %v2532_v22  ;;  %12681 = vmatpush3.bf16.msra.mxu0 %v14258_v16  ;;  %v2601_v16 = vshll.u32 %v15304_v9, 16  ;;  %v2605_v22 = vshrl.u32 %v15304_v9, 16 }
 0x20d   : > { %12682 = vmatprep.subr.bf16.mxu0 %v14261_v25  ;;  %v2599_v27 = vor.u32 %v2597_v20, %v2595_v13  ;;  %v2647_v13 = vor.u32 %v2645_v4, %v2643_v0  ;;  %v3058_v4 = vrot.slane %v15277_v51, 1  ;;  %v3066_v51 = vrot.slane %v15304_v9, 1 }
 0x20e   : > { %v2603_v24 = vrot.slane %v2601_v16, 1  ;;  %v15352_v16 = vld [vmem:[%s14983_s20 + $0xcc] ss:$0 sps:$4 sm:$0x11]  }
 0x210   : > { %12683 = vmatpush3.bf16.msra.mxu0 %v14261_v25  ;;  %v15316_v25 = vld [vmem:[%s14983_s20 + $0x9c] sm:$0xff]   ;;  %v2607_v30 = vor.u32 %v2605_v22, %v2603_v24  ;;  %v2604_v38 = vsel %vm19738_vm0, %v2599_v27, %v2603_v24  ;;  %v2652_v22 = vsel %vm19738_vm0, %v2647_v13, %v2651_v12  ;;  %v2665_v24 = vshll.u32 %v15352_v16, 16 }
 0x211   : > { %12684 = vmatprep.subr.bf16.mxu0 %v14266_v37  ;;  %v3070_v45 = vrot.slane %v15316_v25, 1 }
 0x212   : > { %v2612_v41 = vsel %vm19738_vm0, %v2607_v30, %v2611_v32 }
 0x213   : > { %12637 = vmatmul.mubr.bf16.gmra.mrb[12].mxu0 %v2540_v39  ;;  %v2613_v39 = vshrl.u32 %v15307_v14, 16 }
 0x214   : > { %12640 = vmatprep.mubr.bf16.mxu0 %v2548_v7  ;;  %12685 = vmatpush3.bf16.msra.mxu0 %v14266_v37  ;;  %v2617_v37 = vshll.u32 %v15316_v25, 16  ;;  %v2621_v7 = vshrl.u32 %v15316_v25, 16  ;;  %v3078_v25 = vrot.slane %v15340_v47, 1  ;;  %v14286_v47 = vld [vmem:[#allocation6 + $0x1c8] sm:$0xff]  }
 0x215   : > { %12686 = vmatprep.subr.bf16.mxu0 %v14269_v50  ;;  %v2615_v19 = vor.u32 %v2613_v39, %v2611_v32  ;;  %v3036_v39 = vrot.slane %v15210_v33, 1  ;;  %v3042_v33 = vrot.slane %v15228_v53, 1  ;;  %v14277_v53 = vld [vmem:[#allocation6 + $0x1a0] sm:$0xff]  }
 0x216   : > { %v2619_v49 = vrot.slane %v2617_v37, 1  ;;  %v2667_v37 = vrot.slane %v2665_v24, 1 }
 0x218   : > { %12687 = vmatpush3.bf16.msra.mxu0 %v14269_v50  ;;  %v15328_v50 = vld [vmem:[%s14983_s20 + $0xac] sm:$0xff]   ;;  %v2623_v52 = vor.u32 %v2621_v7, %v2619_v49 }
 0x219   : > { %12736 = vmatprep.subr.bf16.mxu0 %v15282_v40  ;;  %v2633_v42 = vshll.u32 %v15328_v50, 16  ;;  %v2637_v58 = vshrl.u32 %v15328_v50, 16  ;;  %v3074_v9 = vrot.slane %v15328_v50, 1  ;;  %v3082_v50 = vrot.slane %v15352_v16, 1  ;;  %v14294_v16 = vld [vmem:[#allocation6 + $0x1d8] sm:$0xff]  }
 0x21b   : > { %12641 = vmatmul.mubr.bf16.gmra.mrb[16].mxu0 %v2556_v57  ;;  %v2620_v57 = vsel %vm19738_vm0, %v2615_v19, %v2619_v49  ;;  %v2635_v60 = vrot.slane %v2633_v42, 1  ;;  %v3040_v49 = vrot.slane %v15219_v46, 1  ;;  %v3039_v19 = vsel %vm1359_vm1, %v3036_v39, %v3038_v17  ;;  %v14275_v42 = vld [vmem:[#allocation6 + $0x190] sm:$0xff]   ;;  %v14276_v46 = vld [vmem:[#allocation6 + $0x198] sm:$0xff]  }
 0x21c   : > { %12644 = vmatprep.mubr.bf16.mxu0 %v2564_v44  ;;  %v2628_v44 = vsel %vm19738_vm0, %v2623_v52, %v2627_v26  ;;  %v14274_v52 = vld [vmem:[#allocation6 + $0x188] sm:$0xff]   ;;  %v3044_v26 = vrot.slane %v15231_v56, 1 }
 0x21d   : > { %v2639_v63 = vor.u32 %v2637_v58, %v2635_v60  ;;  %v14278_v58 = vld [vmem:[#allocation6 + $0x1a8] sm:$0xff]  }
 0x21e   : > { %v3045_v6 = vsel %vm1359_vm1, %v3042_v33, %v3044_v26 }
 0x21f   : > { %v2644_v5 = vsel %vm19738_vm0, %v2639_v63, %v2643_v0  ;;  %v14280_v63 = vld [vmem:[#allocation6 + $0x1b8] sm:$0xff]   ;;  %v3054_v0 = vrot.slane %v15265_v29, 1 }
 0x223   : > { %12645 = vmatmul.mubr.bf16.gmra.mrb[20].mxu0 %v2572_v1  ;;  %v15343_v1 = vld [vmem:[%s14983_s20 + $0xc4] sm:$0xff]  }
 0x224   : > { %12648 = vmatprep.mubr.bf16.mxu0 %v2580_v3  ;;  %v2636_v3 = vsel %vm19738_vm0, %v2631_v62, %v2635_v60  ;;  %v2657_v10 = vshll.u32 %v15343_v1, 16  ;;  %v2661_v23 = vshrl.u32 %v15343_v1, 16  ;;  %v3052_v60 = vrot.slane %v15256_v15, 1 }
 0x226   : > { %v2659_v20 = vrot.slane %v2657_v10, 1  ;;  %v3053_v62 = vsel %vm1359_vm1, %v3050_v59, %v3052_v60  ;;  %v3055_v15 = vsel %vm1359_vm1, %v3052_v60, %v3054_v0  ;;  %v3064_v10 = vrot.slane %v15295_v48, 1  ;;  %v3959_v60 = vld [vmem:[%s14983_s20 + $0x18] sm:$0xf] }
 0x227   : > { %v3072_v48 = vrot.slane %v15319_v35, 1  ;;  %v3080_v35 = vrot.slane %v15343_v1, 1  ;;  %v14291_v1 = vld [vmem:[#allocation6 + $0x1d0] sm:$0xff]  }
 0x228   : > { %v2663_v32 = vor.u32 %v2661_v23, %v2659_v20  ;;  %v3065_v13 = vsel %vm1359_vm1, %v3062_v36, %v3064_v10 }
 0x229   : > { %v3075_v23 = vsel %vm1359_vm1, %v3072_v48, %v3074_v9 }
 0x22b   : > { %12649 = vmatmul.mubr.bf16.gmra.mrb[24].mxu0 %v2588_v18  ;;  %v2655_v18 = vor.u32 %v2653_v8, %v2651_v12  ;;  %v3059_v8 = vsel %vm1359_vm1, %v3056_v2, %v3058_v4 }
 0x22c   : > { %12652 = vmatprep.mubr.bf16.mxu0 %v2596_v21  ;;  %v3014_v21 = vld [vmem:[%s14983_s20 + $0xc] sm:$0xe] }
 0x22d   : > { %v2660_v27 = vsel %vm19738_vm0, %v2655_v18, %v2659_v20  ;;  %v11547_v30 = vcombine.low %v3014_v21, %v15204_v28  ;;  %v3041_v28 = vsel %vm1359_vm1, %v3038_v17, %v3040_v49  ;;  %v3067_v18 = vsel %vm1359_vm1, %v3064_v10, %v3066_v51  ;;  %v14288_v17 = vld [vmem:[%s14983_s20 + $0x40] sm:$0xff]   ;;  %v15449_v10 = vld [vmem:[%s14983_s20 + $0x30] sm:$0xff]  }
 0x233   : > { %12653 = vmatmul.mubr.bf16.gmra.mrb[28].mxu0 %v2604_v38  ;;  %v3035_v38 = vrot.slane %v11547_v30, 1  ;;  %v3081_v30 = vsel %vm1359_vm1, %v3078_v25, %v3080_v35 }
 0x234   : > { %12656 = vmatprep.mubr.bf16.mxu0 %v2612_v41  ;;  %v2668_v41 = vsel %vm19738_vm0, %v2663_v32, %v2667_v37  ;;  %v14281_v32 = vld [vmem:[%s14983_s20 + $0x18] sm:$0xff]   ;;  %v14282_v37 = vld [vmem:[%s14983_s20 + $0x20] sm:$0xff]  }
 0x235   : > { %v3037_v7 = vsel %vm1359_vm1, %v3035_v38, %v3036_v39  ;;  %v14284_v38 = vld [vmem:[%s14983_s20 + $0x28] sm:$0xff]   ;;  %v14285_v39 = vld [vmem:[%s14983_s20 + $0x30] sm:$0xff]  }
 0x23b   : > { %12657 = vmatmul.mubr.bf16.gmra.mrb[32].mxu0 %v2620_v57  ;;  %v3043_v57 = vsel %vm1359_vm1, %v3040_v49, %v3042_v33  ;;  %v14289_v49 = vld [vmem:[%s14983_s20 + $0x48] sm:$0xff]   ;;  %v14292_v33 = vld [vmem:[%s14983_s20 + $0x58] sm:$0xff]  }
 0x23c   : > { %12660 = vmatprep.mubr.bf16.mxu0 %v2628_v44  ;;  %v3047_v44 = vsel %vm1359_vm1, %v3044_v26, %v3046_v43  ;;  %v14310_v26 = vld [vmem:[#allocation6 + $0x1f8] sm:$0xff]  }
 0x243   : > { %12661 = vmatmul.mubr.bf16.gmra.mrb[36].mxu0 %v2636_v3  ;;  %v3057_v3 = vsel %vm1359_vm1, %v3054_v0, %v3056_v2  ;;  %v15440_v0 = vld [vmem:[%s14983_s20 + $0x20] sm:$0xff]  }
 0x244   : > { %12664 = vmatprep.mubr.bf16.mxu0 %v2644_v5  ;;  %v3060_v5 = vrot.slane %v15280_v55, 1  ;;  %v3068_v55 = vrot.slane %v15307_v14, 1  ;;  %v3076_v14 = vrot.slane %v15331_v31, 1  ;;  %v3083_v31 = vsel %vm1359_vm1, %v3080_v35, %v3082_v50 }
 0x246   : > { %v3061_v29 = vsel %vm1359_vm1, %v3058_v4, %v3060_v5  ;;  %v3063_v12 = vsel %vm1359_vm1, %v3060_v5, %v3062_v36  ;;  %v3069_v20 = vsel %vm1359_vm1, %v3066_v51, %v3068_v55  ;;  %v3071_v21 = vsel %vm1359_vm1, %v3068_v55, %v3070_v45 }
 0x247   : > { %v3077_v24 = vsel %vm1359_vm1, %v3074_v9, %v3076_v14  ;;  %v4156_v5 = vshll.u32 %v15440_v0, 16  ;;  %v4160_v51 = vshrl.u32 %v15440_v0, 16 }
 0x249   : > { %v4158_v36 = vrot.slane %v4156_v5, 1 }
 0x24b   : > { %12665 = vmatmul.mubr.bf16.gmra.mrb[40].mxu0 %v2652_v22  ;;  %v3073_v22 = vsel %vm1359_vm1, %v3070_v45, %v3072_v48  ;;  %v15458_v48 = vld [vmem:[%s14983_s20 + $0x38] sm:$0xff]  }
 0x24c   : > { %12668 = vmatprep.mubr.bf16.mxu0 %v2660_v27  ;;  %v3079_v27 = vsel %vm1359_vm1, %v3076_v14, %v3078_v25  ;;  %v15461_v14 = vld [vmem:[%s14983_s20 + $0x40] sm:$0xff]   ;;  %v4176_v25 = vshrl.u32 %v15449_v10, 16 }
 0x24d   : > { %v4188_v50 = vshll.u32 %v15461_v14, 16 }
 0x253   : > { %12669 = vmatmul.mubr.bf16.gmra.mrb[44].mxu0 %v2668_v41  ;;  %v14287_v41 = vld [vmem:[%s14983_s20 + $0x38] sm:$0xff]  }
 0x254   : > { %12688 = vmatprep.mubr.bf16.mxu0 %v3037_v7  ;;  %v14299_v7 = vld [vmem:[#allocation6 + $0x1e0] sm:$0xff]  }
 0x25b   : > { %12689 = vmatmul.mubr.bf16.vlgmr.msra.gmra.mrb[0].mxu0 %v3039_v19  ;;  %v14302_v19 = vld [vmem:[#allocation6 + $0x1e8] sm:$0xff]  }
 0x25c   : > { %12737 = vmatpush3.bf16.msra.mxu0 %v15282_v40  ;;  %12692 = vmatprep.mubr.bf16.mxu0 %v3041_v28  ;;  %v3048_v40 = vrot.slane %v15244_v54, 1  ;;  %v14307_v28 = vld [vmem:[#allocation6 + $0x1f0] sm:$0xff]  }
 0x25d   : > { %12738 = vmatprep.subr.bf16.mxu0 %v14274_v52 }
 0x25e   : > { %v3049_v56 = vsel %vm1359_vm1, %v3046_v43, %v3048_v40  ;;  %v3051_v54 = vsel %vm1359_vm1, %v3048_v40, %v3050_v59  ;;  %v14297_v43 = vld [vmem:[%s14983_s20 + $0x78] sm:$0xff]   ;;  %v14298_v40 = vld [vmem:[%s14983_s20 + $0x80] sm:$0xff]   ;;  %v14305_v59 = vld [vmem:[%s14983_s20 + $0xa8] sm:$0xff]  }
 0x260   : > { %12739 = vmatpush3.bf16.msra.mxu0 %v14274_v52  ;;  %v14290_v52 = vld [vmem:[%s14983_s20 + $0x50] sm:$0xff]  }
 0x261   : > { %12740 = vmatprep.subr.bf16.mxu0 %v14275_v42 }
 0x263   : > { %12693 = vmatmul.mubr.bf16.gmra.mrb[4].mxu0 %v3043_v57  ;;  %v14293_v57 = vld [vmem:[%s14983_s20 + $0x60] sm:$0xff]  }
 0x264   : > { %12696 = vmatprep.mubr.bf16.mxu0 %v3045_v6  ;;  %12741 = vmatpush3.bf16.msra.mxu0 %v14275_v42  ;;  %v15419_v42 = vld [vmem:[#allocation6 + $0x200] sm:$0xff]  }
 0x265   : > { %12742 = vmatprep.subr.bf16.mxu0 %v14276_v46  ;;  %v14295_v6 = vld [vmem:[%s14983_s20 + $0x68] sm:$0xff]  }
 0x268   : > { %12743 = vmatpush3.bf16.msra.mxu0 %v14276_v46  ;;  %v14296_v46 = vld [vmem:[%s14983_s20 + $0x70] sm:$0xff]  }
 0x269   : > { %12744 = vmatprep.subr.bf16.mxu0 %v14277_v53 }
 0x26b   : > { %12697 = vmatmul.mubr.bf16.gmra.mrb[8].mxu0 %v3047_v44  ;;  %v14301_v44 = vld [vmem:[%s14983_s20 + $0x90] sm:$0xff]  }
 0x26c   : > { %12700 = vmatprep.mubr.bf16.mxu0 %v3049_v56  ;;  %12745 = vmatpush3.bf16.msra.mxu0 %v14277_v53  ;;  %v14300_v53 = vld [vmem:[%s14983_s20 + $0x88] sm:$0xff]   ;;  %v14303_v56 = vld [vmem:[%s14983_s20 + $0x98] sm:$0xff]  }
 0x26d   : > { %12746 = vmatprep.subr.bf16.mxu0 %v14278_v58 }
 0x270   : > { %12747 = vmatpush3.bf16.msra.mxu0 %v14278_v58  ;;  %v14304_v58 = vld [vmem:[%s14983_s20 + $0xa0] sm:$0xff]  }
 0x271   : > { %12748 = vmatprep.subr.bf16.mxu0 %v14279_v61 }
 0x273   : > { %12701 = vmatmul.mubr.bf16.gmra.mrb[12].mxu0 %v3051_v54  ;;  %v14306_v54 = vld [vmem:[%s14983_s20 + $0xb0] sm:$0xff]  }
 0x274   : > { %12704 = vmatprep.mubr.bf16.mxu0 %v3053_v62  ;;  %12749 = vmatpush3.bf16.msra.mxu0 %v14279_v61  ;;  %v15434_v61 = vld [vmem:[%s14983_s20 + $0x1c] sm:$0xf] }
 0x275   : > { %12750 = vmatprep.subr.bf16.mxu0 %v14280_v63  ;;  %v14308_v62 = vld [vmem:[%s14983_s20 + $0xb8] sm:$0xff]  }
 0x278   : > { %12751 = vmatpush3.bf16.msra.mxu0 %v14280_v63  ;;  %v11588_v63 = vcombine.low %v3959_v60, %v15434_v61  ;;  %v15490_v60 = vld [vmem:[%s14983_s20 + $0x60] sm:$0xff]  }
 0x279   : > { %12800 = vmatprep.subr.bf16.mxu0 %v14283_v11 }
 0x27a   : > { %v4151_v2 = vshll.u32 %v11588_v63, 16 }
 0x27b   : > { %12705 = vmatmul.mubr.bf16.gmra.mrb[16].mxu0 %v3055_v15  ;;  %v14311_v15 = vld [vmem:[%s14983_s20 + $0xc8] sm:$0xff]  }
 0x27c   : > { %12708 = vmatprep.mubr.bf16.mxu0 %v3057_v3  ;;  %v4149_v3 = vshrl.u32 %v11588_v63, 16  ;;  %v4153_v4 = vrot.slane %v4151_v2, 1 }
 0x283   : > { %12709 = vmatmul.mubr.bf16.gmra.mrb[20].mxu0 %v3059_v8  ;;  %v15446_v8 = vld [vmem:[%s14983_s20 + $0x28] sm:$0xff]  }
 0x284   : > { %12712 = vmatprep.mubr.bf16.mxu0 %v3061_v29  ;;  %v4154_v29 = vor.u32 %v4153_v4, %v4149_v3 }
 0x286   : > { %v4159_v55 = vsel %vm19738_vm0, %v4154_v29, %v4158_v36  ;;  %v4220_v29 = vshll.u32 %v15490_v60, 16 }
 0x28b   : > { %12713 = vmatmul.mubr.bf16.gmra.mrb[24].mxu0 %v3063_v12  ;;  %v14312_v12 = vld [vmem:[%s14983_s20 + $0xd0] sm:$0xff]  }
 0x28c   : > { %12716 = vmatprep.mubr.bf16.mxu0 %v3065_v13  ;;  %v4164_v13 = vshll.u32 %v15446_v8, 16 }
 0x28e   : > { %v4166_v45 = vrot.slane %v4164_v13, 1 }
 0x293   : > { %12717 = vmatmul.mubr.bf16.gmra.mrb[28].mxu0 %v3067_v18  ;;  %v4168_v18 = vshrl.u32 %v15446_v8, 16 }
 0x294   : > { %12720 = vmatprep.mubr.bf16.mxu0 %v3069_v20  ;;  %v4172_v20 = vshll.u32 %v15449_v10, 16 }
 0x296   : > { %v4174_v9 = vrot.slane %v4172_v20, 1 }
 0x29b   : > { %12721 = vmatmul.mubr.bf16.gmra.mrb[32].mxu0 %v3071_v21  ;;  %v4162_v21 = vor.u32 %v4160_v51, %v4158_v36  ;;  %v14335_v36 = vld [vmem:[#allocation6 + $0x228] sm:$0xff]  }
 0x29c   : > { %12724 = vmatprep.mubr.bf16.mxu0 %v3073_v22  ;;  %v4170_v22 = vor.u32 %v4168_v18, %v4166_v45  ;;  %v15502_v18 = vld [vmem:[%s14983_s20 + $0x68] sm:$0xff]  }
 0x29e   : > { %v4175_v35 = vsel %vm19738_vm0, %v4170_v22, %v4174_v9 }
 0x2a3   : > { %12725 = vmatmul.mubr.bf16.gmra.mrb[36].mxu0 %v3075_v23  ;;  %v4180_v23 = vshll.u32 %v15458_v48, 16 }
 0x2a4   : > { %12728 = vmatprep.mubr.bf16.mxu0 %v3077_v24  ;;  %v4167_v24 = vsel %vm19738_vm0, %v4162_v21, %v4166_v45  ;;  %v14469_v21 = vld [vmem:[%s14983_s20 + $0x80] sm:$0xff]  }
 0x2a5   : > { %v676_v22 = vshll.u32 %v14469_v21, 16 }
 0x2ab   : > { %12729 = vmatmul.mubr.bf16.gmra.mrb[40].mxu0 %v3079_v27  ;;  %v14319_v27 = vld [vmem:[#allocation6 + $0x208] sm:$0xff]  }
 0x2ac   : > { %12732 = vmatprep.mubr.bf16.mxu0 %v3081_v30  ;;  %v4184_v30 = vshrl.u32 %v15458_v48, 16 }
 0x2b3   : > { %12733 = vmatmul.mubr.bf16.gmra.mrb[44].mxu0 %v3083_v31  ;;  %v4182_v31 = vrot.slane %v4180_v23, 1 }
 0x2b4   : > { %12752 = vmatprep.mubr.bf16.mxu0 %v14281_v32  ;;  %v15470_v32 = vld [vmem:[%s14983_s20 + $0x48] sm:$0xff]  }
 0x2bb   : > { %12753 = vmatmul.mubr.bf16.vlgmr.msra.gmra.mrb[0].mxu0 %v14282_v37  ;;  %v4178_v37 = vor.u32 %v4176_v25, %v4174_v9  ;;  %v4222_v25 = vrot.slane %v4220_v29, 1 }
 0x2bc   : > { %12801 = vmatpush3.bf16.msra.mxu0 %v14283_v11  ;;  %12756 = vmatprep.mubr.bf16.mxu0 %v14284_v38  ;;  %v14309_v11 = vld [vmem:[%s14983_s20 + $0xc0] sm:$0xff]   ;;  %v4186_v38 = vor.u32 %v4184_v30, %v4182_v31 }
 0x2bd   : > { %12802 = vmatprep.subr.bf16.mxu0 %v14286_v47 }
 0x2c0   : > { %12803 = vmatpush3.bf16.msra.mxu0 %v14286_v47  ;;  %v4190_v47 = vrot.slane %v4188_v50, 1  ;;  %v678_v50 = vrot.slane %v676_v22, 1 }
 0x2c1   : > { %12804 = vmatprep.subr.bf16.mxu0 %v14291_v1 }
 0x2c3   : > { %12757 = vmatmul.mubr.bf16.gmra.mrb[4].mxu0 %v14285_v39  ;;  %v14324_v39 = vld [vmem:[#allocation6 + $0x210] sm:$0xff]  }
 0x2c4   : > { %12760 = vmatprep.mubr.bf16.mxu0 %v14287_v41  ;;  %12805 = vmatpush3.bf16.msra.mxu0 %v14291_v1  ;;  %v15474_v1 = vld [vmem:[%s14983_s20 + $0x50] sm:$0xff]   ;;  %v4196_v41 = vshll.u32 %v15470_v32, 16 }
 0x2c5   : > { %12806 = vmatprep.subr.bf16.mxu0 %v14294_v16 }
 0x2c8   : > { %12807 = vmatpush3.bf16.msra.mxu0 %v14294_v16  ;;  %v4183_v16 = vsel %vm19738_vm0, %v4178_v37, %v4182_v31  ;;  %v4228_v37 = vshll.u32 %v15502_v18, 16 }
 0x2c9   : > { %12808 = vmatprep.subr.bf16.mxu0 %v14299_v7 }
 0x2cb   : > { %12761 = vmatmul.mubr.bf16.gmra.mrb[8].mxu0 %v14288_v17  ;;  %v4191_v17 = vsel %vm19738_vm0, %v4186_v38, %v4190_v47 }
 0x2cc   : > { %12764 = vmatprep.mubr.bf16.mxu0 %v14289_v49  ;;  %12809 = vmatpush3.bf16.msra.mxu0 %v14299_v7  ;;  %v4192_v7 = vshrl.u32 %v15461_v14, 16  ;;  %v4200_v49 = vshrl.u32 %v15470_v32, 16 }
 0x2cd   : > { %12810 = vmatprep.subr.bf16.mxu0 %v14302_v19 }
 0x2d0   : > { %12811 = vmatpush3.bf16.msra.mxu0 %v14302_v19  ;;  %v4204_v19 = vshll.u32 %v15474_v1, 16 }
 0x2d1   : > { %12812 = vmatprep.subr.bf16.mxu0 %v14307_v28 }
 0x2d3   : > { %12765 = vmatmul.mubr.bf16.gmra.mrb[12].mxu0 %v14290_v52  ;;  %v14465_v52 = vld [vmem:[%s14983_s20 + $0x68] sm:$0xff]  }
 0x2d4   : > { %12768 = vmatprep.mubr.bf16.mxu0 %v14292_v33  ;;  %12813 = vmatpush3.bf16.msra.mxu0 %v14307_v28  ;;  %v14327_v28 = vld [vmem:[#allocation6 + $0x218] sm:$0xff]   ;;  %v652_v33 = vshll.u32 %v14465_v52, 16 }
 0x2d5   : > { %12814 = vmatprep.subr.bf16.mxu0 %v14310_v26 }
 0x2d8   : > { %12815 = vmatpush3.bf16.msra.mxu0 %v14310_v26  ;;  %v14466_v26 = vld [vmem:[%s14983_s20 + $0x60] sm:$0xff]  }
 0x2d9   : > { %12864 = vmatprep.subr.bf16.mxu0 %v15419_v42 }
 0x2db   : > { %12769 = vmatmul.mubr.bf16.gmra.mrb[16].mxu0 %v14293_v57  ;;  %v4198_v57 = vrot.slane %v4196_v41, 1 }
 0x2dc   : > { %12772 = vmatprep.mubr.bf16.mxu0 %v14295_v6  ;;  %v15485_v6 = vld [vmem:[%s14983_s20 + $0x58] sm:$0xff]  }
 0x2dd   : > { %v4216_v5 = vshrl.u32 %v15485_v6, 16 }
 0x2e3   : > { %12773 = vmatmul.mubr.bf16.gmra.mrb[20].mxu0 %v14296_v46  ;;  %v654_v46 = vrot.slane %v652_v33, 1  ;;  %v15518_v33 = vld [vmem:[%s14983_s20 + $0x78] sm:$0xff]  }
 0x2e4   : > { %12776 = vmatprep.mubr.bf16.mxu0 %v14297_v43  ;;  %v656_v43 = vshrl.u32 %v14465_v52, 16  ;;  %v4230_v52 = vrot.slane %v4228_v37, 1 }
 0x2eb   : > { %12777 = vmatmul.mubr.bf16.gmra.mrb[24].mxu0 %v14298_v40  ;;  %v14467_v40 = vld [vmem:[%s14983_s20 + $0x70] sm:$0xff]  }
 0x2ec   : > { %12780 = vmatprep.mubr.bf16.mxu0 %v14300_v53  ;;  %v660_v53 = vshll.u32 %v14467_v40, 16  ;;  %v664_v51 = vshrl.u32 %v14467_v40, 16 }
 0x2ee   : > { %v662_v63 = vrot.slane %v660_v53, 1 }
 0x2f0   : > { %v666_v23 = vor.u32 %v664_v51, %v662_v63 }
 0x2f3   : > { %12781 = vmatmul.mubr.bf16.gmra.mrb[28].mxu0 %v14301_v44  ;;  %v4194_v44 = vor.u32 %v4192_v7, %v4190_v47 }
 0x2f4   : > { %12784 = vmatprep.mubr.bf16.mxu0 %v14303_v56 }
 0x2f5   : > { %v4199_v3 = vsel %vm19738_vm0, %v4194_v44, %v4198_v57 }
 0x2fb   : > { %12785 = vmatmul.mubr.bf16.gmra.mrb[32].mxu0 %v14304_v58  ;;  %v4202_v58 = vor.u32 %v4200_v49, %v4198_v57  ;;  %v14470_v49 = vld [vmem:[%s14983_s20 + $0x88] sm:$0xff]   ;;  %v14471_v57 = vld [vmem:[%s14983_s20 + $0x90] sm:$0xff]  }
 0x2fc   : > { %12788 = vmatprep.mubr.bf16.mxu0 %v14305_v59  ;;  %v4206_v59 = vrot.slane %v4204_v19, 1  ;;  %v684_v19 = vshll.u32 %v14470_v49, 16  ;;  %v696_v29 = vshrl.u32 %v14471_v57, 16 }
 0x2fe   : > { %v4207_v4 = vsel %vm19738_vm0, %v4202_v58, %v4206_v59 }
 0x303   : > { %12789 = vmatmul.mubr.bf16.gmra.mrb[36].mxu0 %v14306_v54  ;;  %v14332_v54 = vld [vmem:[#allocation6 + $0x220] sm:$0xff]  }
 0x304   : > { %12792 = vmatprep.mubr.bf16.mxu0 %v14308_v62  ;;  %v658_v62 = vor.u32 %v656_v43, %v654_v46 }
 0x30b   : > { %12793 = vmatmul.mubr.bf16.gmra.mrb[40].mxu0 %v14309_v11  ;;  %v4212_v11 = vshll.u32 %v15485_v6, 16 }
 0x30c   : > { %12796 = vmatprep.mubr.bf16.mxu0 %v14311_v15  ;;  %v663_v15 = vsel %vm19738_vm0, %v658_v62, %v662_v63  ;;  %v4244_v62 = vshll.u32 %v15518_v33, 16 }
 0x313   : > { %12797 = vmatmul.mubr.bf16.gmra.mrb[44].mxu0 %v14312_v12  ;;  %v14468_v12 = vld [vmem:[%s14983_s20 + $0x78] sm:$0xff]  }
 0x314   : > { %12816 = vmatprep.mubr.bf16.mxu0 %v4159_v55  ;;  %v668_v13 = vshll.u32 %v14468_v12, 16  ;;  %v4214_v55 = vrot.slane %v4212_v11, 1  ;;  %v672_v45 = vshrl.u32 %v14468_v12, 16  ;;  %v15534_v12 = vld [vmem:[%s14983_s20 + $0x88] sm:$0xff]  }
 0x316   : > { %v670_v20 = vrot.slane %v668_v13, 1 }
 0x318   : > { %v674_v30 = vor.u32 %v672_v45, %v670_v20  ;;  %v671_v31 = vsel %vm19738_vm0, %v666_v23, %v670_v20  ;;  %v15538_v23 = vld [vmem:[%s14983_s20 + $0x90] sm:$0xff]  }
 0x31a   : > { %v679_v38 = vsel %vm19738_vm0, %v674_v30, %v678_v50  ;;  %v4260_v30 = vshll.u32 %v15534_v12, 16 }
 0x31b   : > { %12817 = vmatmul.mubr.bf16.vlgmr.msra.gmra.mrb[0].mxu0 %v4167_v24  ;;  %v4218_v24 = vor.u32 %v4216_v5, %v4214_v55 }
 0x31c   : > { %12865 = vmatpush3.bf16.msra.mxu0 %v15419_v42  ;;  %12820 = vmatprep.mubr.bf16.mxu0 %v4175_v35  ;;  %v648_v42 = vshrl.u32 %v14466_v26, 16  ;;  %v15506_v35 = vld [vmem:[%s14983_s20 + $0x70] sm:$0xff]   ;;  %v686_v26 = vrot.slane %v684_v19, 1 }
 0x31d   : > { %12866 = vmatprep.subr.bf16.mxu0 %v14319_v27  ;;  %v4223_v41 = vsel %vm19738_vm0, %v4218_v24, %v4222_v25  ;;  %v4236_v7 = vshll.u32 %v15506_v35, 16  ;;  %v4240_v11 = vshrl.u32 %v15506_v35, 16 }
 0x31e   : > { %v650_v56 = vor.u32 %v648_v42, %v15070_v34  ;;  %v4208_v34 = vshrl.u32 %v15474_v1, 16  ;;  %v688_v42 = vshrl.u32 %v14470_v49, 16  ;;  %v15550_v49 = vld [vmem:[%s14983_s20 + $0x98] sm:$0xff]  }
 0x31f   : > { %v4238_v44 = vrot.slane %v4236_v7, 1 }
 0x320   : > { %12867 = vmatpush3.bf16.msra.mxu0 %v14319_v27  ;;  %v655_v2 = vsel %vm19738_vm0, %v650_v56, %v654_v46  ;;  %v4210_v9 = vor.u32 %v4208_v34, %v4206_v59  ;;  %v14340_v27 = vld [vmem:[#allocation6 + $0x230] sm:$0xff]   ;;  %v692_v46 = vshll.u32 %v14471_v57, 16  ;;  %v15522_v56 = vld [vmem:[%s14983_s20 + $0x80] sm:$0xff]   ;;  %v690_v58 = vor.u32 %v688_v42, %v686_v26 }
 0x321   : > { %12868 = vmatprep.subr.bf16.mxu0 %v14324_v39  ;;  %12392 = vmatprep.mubr.bf16.mxu1 %v655_v2  ;;  %v4252_v34 = vshll.u32 %v15522_v56, 16  ;;  %v4242_v45 = vor.u32 %v4240_v11, %v4238_v44  ;;  %v4256_v37 = vshrl.u32 %v15522_v56, 16  ;;  %v4280_v11 = vshrl.u32 %v15550_v49, 16 }
 0x322   : > { %12393 = vmatmul.mubr.bf16.vlgmr.msra.gmra.mrb[0].mxu1 %v663_v15  ;;  %v4215_v47 = vsel %vm19738_vm0, %v4210_v9, %v4214_v55  ;;  %v694_v59 = vrot.slane %v692_v46, 1  ;;  %v14473_v55 = vld [vmem:[%s14983_s20 + $0xa0] sm:$0xff]  }
 0x323   : > { %12821 = vmatmul.mubr.bf16.gmra.mrb[4].mxu0 %v4183_v16  ;;  %12396 = vmatprep.mubr.bf16.mxu1 %v671_v31  ;;  %v4232_v16 = vshrl.u32 %v15502_v18, 16  ;;  %v708_v20 = vshll.u32 %v14473_v55, 16  ;;  %v4254_v9 = vrot.slane %v4252_v34, 1  ;;  %v712_v7 = vshrl.u32 %v14473_v55, 16 }
 0x324   : > { %12824 = vmatprep.mubr.bf16.mxu0 %v4191_v17  ;;  %12869 = vmatpush3.bf16.msra.mxu0 %v14324_v39  ;;  %v4224_v39 = vshrl.u32 %v15490_v60, 16  ;;  %v14343_v17 = vld [vmem:[#allocation6 + $0x238] sm:$0xff]   ;;  %v695_v63 = vsel %vm19738_vm0, %v690_v58, %v694_v59 }
 0x325   : > { %12870 = vmatprep.subr.bf16.mxu0 %v14327_v28  ;;  %v4234_v53 = vor.u32 %v4232_v16, %v4230_v52  ;;  %v4258_v42 = vor.u32 %v4256_v37, %v4254_v9 }
 0x326   : > { %v4226_v43 = vor.u32 %v4224_v39, %v4222_v25  ;;  %v710_v25 = vrot.slane %v708_v20, 1  ;;  %v4268_v39 = vshll.u32 %v15538_v23, 16 }
 0x327   : > { %v4239_v15 = vsel %vm19738_vm0, %v4234_v53, %v4238_v44 }
 0x328   : > { %12871 = vmatpush3.bf16.msra.mxu0 %v14327_v28  ;;  %v680_v28 = vshrl.u32 %v14469_v21, 16  ;;  %v4231_v2 = vsel %vm19738_vm0, %v4226_v43, %v4230_v52  ;;  %v698_v21 = vor.u32 %v696_v29, %v694_v59  ;;  %v14475_v52 = vld [vmem:[%s14983_s20 + $0xb0] sm:$0xff]   ;;  %v714_v57 = vor.u32 %v712_v7, %v710_v25  ;;  %v15566_v29 = vld [vmem:[%s14983_s20 + $0xa8] sm:$0xff]  }
 0x329   : > { %12872 = vmatprep.subr.bf16.mxu0 %v14332_v54  ;;  %v4270_v43 = vrot.slane %v4268_v39, 1  ;;  %v4276_v59 = vshll.u32 %v15550_v49, 16  ;;  %v14347_v7 = vld [vmem:[#allocation9] sm:$0xff]  }
 0x32a   : > { %12397 = vmatmul.mubr.bf16.gmra.mrb[4].mxu1 %v679_v38  ;;  %v682_v40 = vor.u32 %v680_v28, %v678_v50  ;;  %12928 = vmatprep.subr.bf16.mxu1 %v14347_v7 }
 0x32b   : > { %12825 = vmatmul.mubr.bf16.gmra.mrb[8].mxu0 %v4199_v3  ;;  %v4248_v3 = vshrl.u32 %v15518_v33, 16  ;;  %12929 = vmatpush3.bf16.msra.mxu1 %v14347_v7  ;;  %v4689_v7 = vld [vmem:[%s14983_s20 + $0x18] sm:$0xe] }
 0x32c   : > { %12828 = vmatprep.mubr.bf16.mxu0 %v4207_v4  ;;  %12873 = vmatpush3.bf16.msra.mxu0 %v14332_v54  ;;  %v687_v54 = vsel %vm19738_vm0, %v682_v40, %v686_v26  ;;  %v14472_v4 = vld [vmem:[%s14983_s20 + $0x98] sm:$0xff]   ;;  %v724_v26 = vshll.u32 %v14475_v52, 16  ;;  %v15554_v40 = vld [vmem:[%s14983_s20 + $0xa0] sm:$0xff]  }
 0x32d   : > { %12874 = vmatprep.subr.bf16.mxu0 %v14335_v36  ;;  %12400 = vmatprep.mubr.bf16.mxu1 %v687_v54  ;;  %v700_v5 = vshll.u32 %v14472_v4, 16  ;;  %v704_v51 = vshrl.u32 %v14472_v4, 16  ;;  %v728_v4 = vshrl.u32 %v14475_v52, 16  ;;  %v4288_v37 = vshrl.u32 %v15554_v40, 16 }
 0x32e   : > { %v726_v44 = vrot.slane %v724_v26, 1  ;;  %v15584_v26 = vld [vmem:[%s14983_s20 + $0xc0] sm:$0xff]  }
 0x32f   : > { %v702_v13 = vrot.slane %v700_v5, 1  ;;  %v4278_v5 = vrot.slane %v4276_v59, 1 }
 0x330   : > { %12875 = vmatpush3.bf16.msra.mxu0 %v14335_v36  ;;  %v4246_v36 = vrot.slane %v4244_v62, 1 }
 0x331   : > { %12876 = vmatprep.subr.bf16.mxu0 %v14340_v27  ;;  %v706_v24 = vor.u32 %v704_v51, %v702_v13  ;;  %v14477_v51 = vld [vmem:[%s14983_s20 + $0xc0] ss:$0 sps:$4 sm:$0x11]  }
 0x332   : > { %12401 = vmatmul.mubr.bf16.gmra.mrb[8].mxu1 %v695_v63  ;;  %v4250_v22 = vor.u32 %v4248_v3, %v4246_v36  ;;  %v4247_v31 = vsel %vm19738_vm0, %v4242_v45, %v4246_v36  ;;  %v4272_v63 = vshrl.u32 %v15538_v23, 16  ;;  %v14476_v3 = vld [vmem:[%s14983_s20 + $0xb8] sm:$0xff]   ;;  %v740_v55 = vshll.u32 %v14477_v51, 16 }
 0x333   : > { %12829 = vmatmul.mubr.bf16.gmra.mrb[12].mxu0 %v4215_v47  ;;  %v711_v50 = vsel %vm19738_vm0, %v706_v24, %v710_v25  ;;  %v4264_v47 = vshrl.u32 %v15534_v12, 16  ;;  %v732_v34 = vshll.u32 %v14476_v3, 16  ;;  %v730_v45 = vor.u32 %v728_v4, %v726_v44  ;;  %v14350_v4 = vld [vmem:[#allocation9 + $0x18] sm:$0xff]  }
 0x334   : > { %12832 = vmatprep.mubr.bf16.mxu0 %v4223_v41  ;;  %12877 = vmatpush3.bf16.msra.mxu0 %v14340_v27  ;;  %v703_v27 = vsel %vm19738_vm0, %v698_v21, %v702_v13  ;;  %v4255_v38 = vsel %vm19738_vm0, %v4250_v22, %v4254_v9  ;;  %v14474_v41 = vld [vmem:[%s14983_s20 + $0xa8] sm:$0xff]   ;;  %v736_v13 = vshrl.u32 %v14476_v3, 16  ;;  %v4274_v20 = vor.u32 %v4272_v63, %v4270_v43  ;;  %v15570_v9 = vld [vmem:[%s14983_s20 + $0xb0] sm:$0xff]  }
 0x335   : > { %12878 = vmatprep.subr.bf16.mxu0 %v14343_v17  ;;  %12404 = vmatprep.mubr.bf16.mxu1 %v703_v27  ;;  %v716_v16 = vshll.u32 %v14474_v41, 16  ;;  %v720_v28 = vshrl.u32 %v14474_v41, 16  ;;  %v734_v36 = vrot.slane %v732_v34, 1  ;;  %v4282_v21 = vor.u32 %v4280_v11, %v4278_v5  ;;  %v15598_v34 = vld [vmem:[%s14983_s20 + $0xc8] sm:$0xff]  }
 0x336   : > { %v742_v25 = vrot.slane %v740_v55, 1  ;;  %v4300_v39 = vshll.u32 %v15570_v9, 16  ;;  %v4304_v59 = vshrl.u32 %v15570_v9, 16  ;;  %v15601_v55 = vld [vmem:[%s14983_s20 + $0xd0] sm:$0xff]  }
 0x337   : > { %v718_v19 = vrot.slane %v716_v16, 1  ;;  %v738_v24 = vor.u32 %v736_v13, %v734_v36  ;;  %v735_v27 = vsel %vm19738_vm0, %v730_v45, %v734_v36  ;;  %v15581_v16 = vld [vmem:[%s14983_s20 + $0xb8] sm:$0xff]   ;;  %v4324_v45 = vshll.u32 %v15598_v34, 16 }
 0x338   : > { %12879 = vmatpush3.bf16.msra.mxu0 %v14343_v17  ;;  %v4262_v17 = vrot.slane %v4260_v30, 1  ;;  %v4292_v30 = vshll.u32 %v15566_v29, 16  ;;  %v4302_v52 = vrot.slane %v4300_v39, 1  ;;  %v4312_v63 = vshrl.u32 %v15581_v16, 16 }
 0x339   : > { %v722_v53 = vor.u32 %v720_v28, %v718_v19  ;;  %v719_v58 = vsel %vm19738_vm0, %v714_v57, %v718_v19  ;;  %v15588_v57 = vld [vmem:[%s14983_s20 + $0x14] sm:$0xff]  }
 0x33a   : > { %12405 = vmatmul.mubr.bf16.gmra.mrb[12].mxu1 %v711_v50  ;;  %v4266_v46 = vor.u32 %v4264_v47, %v4262_v17  ;;  %v4263_v62 = vsel %vm19738_vm0, %v4258_v42, %v4262_v17  ;;  %v743_v50 = vsel %vm19738_vm0, %v738_v24, %v742_v25  ;;  %v4296_v47 = vshrl.u32 %v15566_v29, 16  ;;  %v14348_v17 = vld [vmem:[#allocation9 + $0x8] sm:$0xff]  }
 0x33b   : > { %12833 = vmatmul.mubr.bf16.gmra.mrb[16].mxu0 %v4231_v2  ;;  %12408 = vmatprep.mubr.bf16.mxu1 %v719_v58  ;;  %v727_v54 = vsel %vm19738_vm0, %v722_v53, %v726_v44  ;;  %v4294_v41 = vrot.slane %v4292_v30, 1  ;;  %v14355_v42 = vld [vmem:[%s14983_s20 + $0xc] sm:$0xff]   ;;  %v4306_v36 = vor.u32 %v4304_v59, %v4302_v52  ;;  %v4320_v24 = vshrl.u32 %v15584_v26, 16 }
 0x33c   : > { %12836 = vmatprep.mubr.bf16.mxu0 %v4239_v15  ;;  %v4271_v2 = vsel %vm19738_vm0, %v4266_v46, %v4270_v43  ;;  %v4284_v15 = vshll.u32 %v15554_v40, 16  ;;  %v4308_v46 = vshll.u32 %v15581_v16, 16  ;;  %12930 = vmatprep.subr.bf16.mxu1 %v14348_v17  ;;  %v14349_v43 = vld [vmem:[#allocation9 + $0x10] sm:$0xff]   ;;  %v6466_v53 = vshrl.u32 %v14355_v42, 16 }
 0x33d   : > { %v4298_v28 = vor.u32 %v4296_v47, %v4294_v41  ;;  %v6468_v44 = vshll.u32 %v14355_v42, 16  ;;  %12931 = vmatpush3.bf16.msra.mxu1 %v14348_v17  ;;  %v4332_v30 = vshll.u32 %v15601_v55, 16  ;;  %v14353_v17 = vld [vmem:[#allocation9 + $0x30] sm:$0xff]  }
 0x33e   : > { %v4286_v22 = vrot.slane %v4284_v15, 1  ;;  %v4310_v3 = vrot.slane %v4308_v46, 1  ;;  %12932 = vmatprep.subr.bf16.mxu1 %v14349_v43 }
 0x33f   : > { %v6470_v11 = vrot.slane %v6468_v44, 1  ;;  %v4334_v39 = vrot.slane %v4332_v30, 1  ;;  %v6477_v44 = vshrl.u32 %v15588_v57, 16  ;;  %v4715_v30 = vrot.slane %v15449_v10, 1 }
 0x340   : > { %v4290_v19 = vor.u32 %v4288_v37, %v4286_v22  ;;  %v4314_v13 = vor.u32 %v4312_v63, %v4310_v3 }
 0x341   : > { %12933 = vmatpush3.bf16.msra.mxu1 %v14349_v43  ;;  %v11621_v43 = vcombine.low %v4689_v7, %v15434_v61  ;;  %v14366_v7 = vld [vmem:[#allocation8 + $0x10] sm:$0xff]  }
 0x342   : > { %12409 = vmatmul.mubr.bf16.gmra.mrb[16].mxu1 %v727_v54  ;;  %v4295_v58 = vsel %vm19738_vm0, %v4290_v19, %v4294_v41  ;;  %v6473_v54 = vshll.u32 %v15588_v57, 16  ;;  %12934 = vmatprep.subr.bf16.mxu1 %v14350_v4  ;;  %v14357_v41 = vld [vmem:[%s14983_s20 + $0x1c] sm:$0xff]   ;;  %v14359_v19 = vld [vmem:[%s14983_s20 + $0x24] sm:$0xff]  }
 0x343   : > { %12837 = vmatmul.mubr.bf16.gmra.mrb[20].mxu0 %v4247_v31  ;;  %12412 = vmatprep.mubr.bf16.mxu1 %v735_v27  ;;  %v4279_v31 = vsel %vm19738_vm0, %v4274_v20, %v4278_v5  ;;  %v6471_v5 = vor.u32 %v6470_v11, %v6466_v53  ;;  %v4328_v27 = vshrl.u32 %v15598_v34, 16  ;;  %v6481_v53 = vshll.u32 %v14357_v41, 16 }
 0x344   : > { %12840 = vmatprep.mubr.bf16.mxu0 %v4255_v38  ;;  %v4287_v38 = vsel %vm19738_vm0, %v4282_v21, %v4286_v22  ;;  %v6475_v15 = vrot.slane %v6473_v54, 1  ;;  %v14351_v21 = vld [vmem:[#allocation9 + $0x20] sm:$0xff]   ;;  %v4311_v22 = vsel %vm19738_vm0, %v4306_v36, %v4310_v3  ;;  %v6485_v59 = vshrl.u32 %v14357_v41, 16 }
 0x345   : > { %12935 = vmatpush3.bf16.msra.mxu1 %v14350_v4  ;;  %v6489_v54 = vshll.u32 %v14359_v19, 16  ;;  %v4711_v11 = vrot.slane %v15440_v0, 1  ;;  %v6483_v3 = vrot.slane %v6481_v53, 1  ;;  %v14360_v4 = vld [vmem:[%s14983_s20 + $0x2c] sm:$0xff]   ;;  %v14364_v41 = vld [vmem:[%s14983_s20 + $0x44] sm:$0xff]   ;;  %v4717_v53 = vrot.slane %v15458_v48, 1 }
 0x346   : > { %v6476_v20 = vsel %vm19738_vm0, %v6471_v5, %v6475_v15  ;;  %12936 = vmatprep.subr.bf16.mxu1 %v14351_v21  ;;  %v6479_v61 = vor.u32 %v6477_v44, %v6475_v15  ;;  %v14358_v5 = vld [vmem:[#allocation8] sm:$0xff]   ;;  %v14361_v15 = vld [vmem:[#allocation8 + $0x8] sm:$0xff]   ;;  %v4719_v44 = vrot.slane %v15461_v14, 1  ;;  %v6525_v14 = vshrl.u32 %v14364_v41, 16 }
 0x347   : > { %v6487_v36 = vor.u32 %v6485_v59, %v6483_v3  ;;  %v6491_v57 = vrot.slane %v6489_v54, 1  ;;  %v14365_v59 = vld [vmem:[%s14983_s20 + $0x4c] sm:$0xff]  }
 0x349   : > { %12937 = vmatpush3.bf16.msra.mxu1 %v14351_v21  ;;  %v6484_v21 = vsel %vm19738_vm0, %v6479_v61, %v6483_v3  ;;  %v6492_v0 = vsel %vm19738_vm0, %v6487_v36, %v6491_v57  ;;  %v4718_v3 = vsel %vm1359_vm1, %v4715_v30, %v4717_v53  ;;  %v6529_v61 = vshll.u32 %v14365_v59, 16 }
 0x34a   : > { %12413 = vmatmul.mubr.bf16.gmra.mrb[20].mxu1 %v743_v50  ;;  %v4326_v50 = vrot.slane %v4324_v45, 1  ;;  %v6497_v45 = vshll.u32 %v14360_v4, 16  ;;  %v6533_v36 = vshrl.u32 %v14365_v59, 16 }
 0x34b   : > { %12841 = vmatmul.mubr.bf16.gmra.mrb[24].mxu0 %v4263_v62  ;;  %v4303_v62 = vsel %vm19738_vm0, %v4298_v28, %v4302_v52  ;;  %12944 = vmatprep.mubr.bf16.mxu1 %v6476_v20  ;;  %v4336_v52 = vshrl.u32 %v15601_v55, 16 }
 0x34c   : > { %12844 = vmatprep.mubr.bf16.mxu0 %v4271_v2  ;;  %v4316_v2 = vshll.u32 %v15584_v26, 16  ;;  %v4330_v47 = vor.u32 %v4328_v27, %v4326_v50  ;;  %v4713_v27 = vrot.slane %v15446_v8, 1 }
 0x34e   : > { %v4318_v51 = vrot.slane %v4316_v2, 1  ;;  %v4335_v46 = vsel %vm19738_vm0, %v4330_v47, %v4334_v39  ;;  %v4710_v2 = vrot.slane %v11621_v43, 1  ;;  %v14369_v43 = vld [vmem:[#allocation8 + $0x18] sm:$0xff]  }
 0x350   : > { %v4319_v25 = vsel %vm19738_vm0, %v4314_v13, %v4318_v51  ;;  %v4322_v37 = vor.u32 %v4320_v24, %v4318_v51  ;;  %v14362_v13 = vld [vmem:[%s14983_s20 + $0x34] sm:$0xff]   ;;  %v4712_v20 = vsel %vm1359_vm1, %v4710_v2, %v4711_v11  ;;  %v6501_v24 = vshrl.u32 %v14360_v4, 16 }
 0x351   : > { %v6509_v10 = vshrl.u32 %v14362_v13, 16  ;;  %v14367_v2 = vld [vmem:[%s14983_s20 + $0x54] sm:$0xff]   ;;  %v4720_v4 = vsel %vm1359_vm1, %v4717_v53, %v4719_v44 }
 0x352   : > { %v4327_v28 = vsel %vm19738_vm0, %v4322_v37, %v4326_v50  ;;  %v6499_v50 = vrot.slane %v6497_v45, 1  ;;  %v6531_v45 = vrot.slane %v6529_v61, 1 }
 0x353   : > { %12845 = vmatmul.mubr.bf16.gmra.mrb[28].mxu0 %v4279_v31  ;;  %v14352_v31 = vld [vmem:[#allocation9 + $0x28] sm:$0xff]  }
 0x354   : > { %12848 = vmatprep.mubr.bf16.mxu0 %v4287_v38  ;;  %v15611_v38 = vld [vmem:[%s14983_s20 + $0xd8] ss:$0 sps:$4 sm:$0x11]   ;;  %12938 = vmatprep.subr.bf16.mxu1 %v14352_v31  ;;  %v6503_v47 = vor.u32 %v6501_v24, %v6499_v50  ;;  %v14370_v24 = vld [vmem:[%s14983_s20 + $0x64] sm:$0xff]  }
 0x355   : > { %v4340_v42 = vshll.u32 %v15611_v38, 16  ;;  %12939 = vmatpush3.bf16.msra.mxu1 %v14352_v31  ;;  %v14363_v31 = vld [vmem:[%s14983_s20 + $0x3c] sm:$0xff]  }
 0x356   : > { %12940 = vmatprep.subr.bf16.mxu1 %v14353_v17 }
 0x357   : > { %v4342_v63 = vrot.slane %v4340_v42, 1  ;;  %v6517_v42 = vshrl.u32 %v14363_v31, 16 }
 0x359   : > { %12941 = vmatpush3.bf16.msra.mxu1 %v14353_v17  ;;  %v4714_v17 = vsel %vm1359_vm1, %v4711_v11, %v4713_v27  ;;  %v14374_v11 = vld [vmem:[#allocation8 + $0x20] sm:$0xff]  }
 0x35b   : > { %12849 = vmatmul.mubr.bf16.gmra.mrb[32].mxu0 %v4295_v58  ;;  %v14354_v58 = vld [vmem:[#allocation9 + $0x38] sm:$0xff]  }
 0x35c   : > { %12852 = vmatprep.mubr.bf16.mxu0 %v4303_v62  ;;  %v4338_v62 = vor.u32 %v4336_v52, %v4334_v39  ;;  %12942 = vmatprep.subr.bf16.mxu1 %v14354_v58 }
 0x35d   : > { %12943 = vmatpush3.bf16.msra.mxu1 %v14354_v58 }
 0x35e   : > { %v4343_v51 = vsel %vm19738_vm0, %v4338_v62, %v4342_v63  ;;  %12992 = vmatprep.subr.bf16.mxu1 %v14358_v5 }
 0x360   : > { %12945 = vmatmul.mubr.bf16.vlgmr.msra.gmra.mrb[24].mxu1 %v6484_v21  ;;  %v14368_v21 = vld [vmem:[%s14983_s20 + $0x5c] sm:$0xff]  }
 0x361   : > { %12993 = vmatpush3.bf16.msra.mxu1 %v14358_v5  ;;  %12948 = vmatprep.mubr.bf16.mxu1 %v6492_v0  ;;  %v6535_v0 = vor.u32 %v6533_v36, %v6531_v45  ;;  %v4733_v36 = vrot.slane %v15518_v33, 1 }
 0x362   : > { %12994 = vmatprep.subr.bf16.mxu1 %v14361_v15 }
 0x363   : > { %12853 = vmatmul.mubr.bf16.gmra.mrb[36].mxu0 %v4311_v22  ;;  %v6493_v22 = vshrl.u32 %v14359_v19, 16  ;;  %v4716_v19 = vsel %vm1359_vm1, %v4713_v27, %v4715_v30  ;;  %v6545_v30 = vshll.u32 %v14368_v21, 16 }
 0x364   : > { %12856 = vmatprep.mubr.bf16.mxu0 %v4319_v25  ;;  %v6505_v25 = vshll.u32 %v14362_v13, 16  ;;  %v14377_v13 = vld [vmem:[#allocation8 + $0x28] sm:$0xff]  }
 0x365   : > { %v6495_v37 = vor.u32 %v6493_v22, %v6491_v57  ;;  %12995 = vmatpush3.bf16.msra.mxu1 %v14361_v15  ;;  %v6537_v57 = vshll.u32 %v14367_v2, 16 }
 0x366   : > { %v6507_v39 = vrot.slane %v6505_v25, 1  ;;  %12996 = vmatprep.subr.bf16.mxu1 %v14366_v7 }
 0x367   : > { %v6500_v8 = vsel %vm19738_vm0, %v6495_v37, %v6499_v50  ;;  %v6539_v15 = vrot.slane %v6537_v57, 1  ;;  %v6541_v50 = vshrl.u32 %v14367_v2, 16  ;;  %v6553_v37 = vshll.u32 %v14370_v24, 16 }
 0x368   : > { %v6508_v52 = vsel %vm19738_vm0, %v6503_v47, %v6507_v39  ;;  %12949 = vmatmul.mubr.bf16.gmra.mrb[28].mxu1 %v6500_v8  ;;  %v6511_v54 = vor.u32 %v6509_v10, %v6507_v39  ;;  %v4725_v47 = vrot.slane %v15485_v6, 1  ;;  %v4727_v39 = vrot.slane %v15490_v60, 1  ;;  %v14372_v8 = vld [vmem:[%s14983_s20 + $0x74] sm:$0xff]  }
 0x369   : > { %12952 = vmatprep.mubr.bf16.mxu1 %v6508_v52  ;;  %12997 = vmatpush3.bf16.msra.mxu1 %v14366_v7  ;;  %v14371_v7 = vld [vmem:[%s14983_s20 + $0x6c] sm:$0xff]   ;;  %v6557_v6 = vshrl.u32 %v14370_v24, 16  ;;  %v6569_v53 = vshll.u32 %v14372_v8, 16  ;;  %v4735_v57 = vrot.slane %v15522_v56, 1 }
 0x36a   : > { %12998 = vmatprep.subr.bf16.mxu1 %v14369_v43  ;;  %v4728_v52 = vsel %vm1359_vm1, %v4725_v47, %v4727_v39 }
 0x36b   : > { %12857 = vmatmul.mubr.bf16.gmra.mrb[40].mxu0 %v4327_v28  ;;  %v6513_v28 = vshll.u32 %v14363_v31, 16  ;;  %v6549_v31 = vshrl.u32 %v14368_v21, 16  ;;  %v6571_v2 = vrot.slane %v6569_v53, 1  ;;  %v4749_v53 = vrot.slane %v15581_v16, 1 }
 0x36c   : > { %12860 = vmatprep.mubr.bf16.mxu0 %v4335_v46  ;;  %v6521_v46 = vshll.u32 %v14364_v41, 16  ;;  %v6547_v41 = vrot.slane %v6545_v30, 1  ;;  %v4755_v16 = vrot.slane %v15601_v55, 1 }
 0x36d   : > { %v6515_v58 = vrot.slane %v6513_v28, 1  ;;  %12999 = vmatpush3.bf16.msra.mxu1 %v14369_v43  ;;  %v6555_v28 = vrot.slane %v6553_v37, 1  ;;  %v6565_v43 = vshrl.u32 %v14371_v7, 16  ;;  %v14379_v37 = vld [vmem:[%s14983_s20 + $0x9c] sm:$0xff]  }
 0x36e   : > { %v6523_v63 = vrot.slane %v6521_v46, 1  ;;  %13000 = vmatprep.subr.bf16.mxu1 %v14374_v11 }
 0x36f   : > { %v6519_v62 = vor.u32 %v6517_v42, %v6515_v58  ;;  %v6516_v48 = vsel %vm19738_vm0, %v6511_v54, %v6515_v58  ;;  %v6561_v42 = vshll.u32 %v14371_v7, 16  ;;  %v4731_v58 = vrot.slane %v15506_v35, 1  ;;  %v14373_v54 = vld [vmem:[%s14983_s20 + $0x7c] sm:$0xff]  }
 0x370   : > { %12953 = vmatmul.mubr.bf16.gmra.mrb[32].mxu1 %v6516_v48  ;;  %v6527_v22 = vor.u32 %v6525_v14, %v6523_v63  ;;  %v6577_v61 = vshll.u32 %v14373_v54, 16  ;;  %v6581_v14 = vshrl.u32 %v14373_v54, 16 }
 0x371   : > { %v6524_v5 = vsel %vm19738_vm0, %v6519_v62, %v6523_v63  ;;  %13001 = vmatpush3.bf16.msra.mxu1 %v14374_v11  ;;  %v6563_v59 = vrot.slane %v6561_v42, 1  ;;  %v6559_v62 = vor.u32 %v6557_v6, %v6555_v28  ;;  %v14375_v11 = vld [vmem:[%s14983_s20 + $0x84] sm:$0xff]  }
 0x372   : > { %12956 = vmatprep.mubr.bf16.mxu1 %v6524_v5  ;;  %13002 = vmatprep.subr.bf16.mxu1 %v14377_v13  ;;  %v6585_v5 = vshll.u32 %v14375_v11, 16 }
 0x373   : > { %12861 = vmatmul.mubr.bf16.gmra.mrb[44].mxu0 %v4343_v51  ;;  %v4721_v51 = vrot.slane %v15470_v32, 1  ;;  %v6532_v32 = vsel %vm19738_vm0, %v6527_v22, %v6531_v45  ;;  %v6567_v63 = vor.u32 %v6565_v43, %v6563_v59  ;;  %v6564_v48 = vsel %vm19738_vm0, %v6559_v62, %v6563_v59  ;;  %v14378_v22 = vld [vmem:[%s14983_s20 + $0x94] sm:$0xff]  }
 0x374   : > { %12880 = vmatprep.mubr.bf16.mxu0 %v4712_v20  ;;  %v4723_v20 = vrot.slane %v15474_v1, 1  ;;  %v6540_v1 = vsel %vm19738_vm0, %v6535_v0, %v6539_v15  ;;  %v6587_v21 = vrot.slane %v6585_v5, 1  ;;  %v4734_v0 = vsel %vm1359_vm1, %v4731_v58, %v4733_v36 }
 0x375   : > { %v4722_v25 = vsel %vm1359_vm1, %v4719_v44, %v4721_v51  ;;  %13003 = vmatpush3.bf16.msra.mxu1 %v14377_v13  ;;  %v4729_v44 = vrot.slane %v15502_v18, 1  ;;  %v6573_v18 = vshrl.u32 %v14372_v8, 16  ;;  %v6572_v35 = vsel %vm19738_vm0, %v6567_v63, %v6571_v2 }
 0x376   : > { %v4724_v27 = vsel %vm1359_vm1, %v4721_v51, %v4723_v20  ;;  %v4726_v10 = vsel %vm1359_vm1, %v4723_v20, %v4725_v47  ;;  %v6579_v13 = vrot.slane %v6577_v61, 1  ;;  %v14376_v51 = vld [vmem:[%s14983_s20 + $0x8c] sm:$0xff]   ;;  %v6601_v30 = vshll.u32 %v14378_v22, 16 }
 0x377   : > { %v6575_v20 = vor.u32 %v6573_v18, %v6571_v2  ;;  %v6593_v24 = vshll.u32 %v14376_v51, 16  ;;  %v6597_v56 = vshrl.u32 %v14376_v51, 16  ;;  %v4743_v8 = vrot.slane %v15554_v40, 1  ;;  %v14384_v51 = vld [vmem:[#allocation8 + $0x208] sm:$0xff]  }
 0x378   : > { %12957 = vmatmul.mubr.bf16.gmra.mrb[36].mxu1 %v6532_v32  ;;  %v6583_v45 = vor.u32 %v6581_v14, %v6579_v13  ;;  %v4737_v32 = vrot.slane %v15534_v12, 1  ;;  %v5207_v18 = vlaneseq  ;;  %v14385_v14 = vld [vmem:[%s14983_s20 + $0xb4] sm:$0xff]  }
 0x379   : > { %12960 = vmatprep.mubr.bf16.mxu1 %v6540_v1  ;;  %v6595_v1 = vrot.slane %v6593_v24, 1 }
 0x37a   : > { %v6588_v33 = vsel %vm19738_vm0, %v6583_v45, %v6587_v21  ;;  %v15706_v55 = vshrl.u32 %v5207_v18, 7  ;;  %v4757_v45 = vrot.slane %v15611_v38, 1 }
 0x37b   : > { %12881 = vmatmul.mubr.bf16.vlgmr.msra.gmra.mrb[0].mxu0 %v4714_v17  ;;  %v6543_v17 = vor.u32 %v6541_v50, %v6539_v15  ;;  %v4736_v15 = vsel %vm1359_vm1, %v4733_v36, %v4735_v57  ;;  %v4739_v50 = vrot.slane %v15538_v23, 1  ;;  %v6599_v47 = vor.u32 %v6597_v56, %v6595_v1 }
 0x37c   : > { %12884 = vmatprep.mubr.bf16.mxu0 %v4716_v19  ;;  %v6551_v19 = vor.u32 %v6549_v31, %v6547_v41  ;;  %v4741_v23 = vrot.slane %v15550_v49, 1  ;;  %v4747_v49 = vrot.slane %v15570_v9, 1  ;;  %v6613_v9 = vshrl.u32 %v14379_v37, 16 }
 0x37d   : > { %v6548_v46 = vsel %vm19738_vm0, %v6543_v17, %v6547_v41  ;;  %v4738_v41 = vsel %vm1359_vm1, %v4735_v57, %v4737_v32  ;;  %v4740_v7 = vsel %vm1359_vm1, %v4737_v32, %v4739_v50  ;;  %v4758_v24 = vsel %vm1359_vm1, %v4755_v16, %v4757_v45 }
 0x37e   : > { %v6556_v60 = vsel %vm19738_vm0, %v6551_v19, %v6555_v28  ;;  %v6605_v19 = vshrl.u32 %v14378_v22, 16  ;;  %v6609_v28 = vshll.u32 %v14379_v37, 16  ;;  %v4742_v42 = vsel %vm1359_vm1, %v4739_v50, %v4741_v23 }
 0x37f   : > { %v4750_v59 = vsel %vm1359_vm1, %v4747_v49, %v4749_v53  ;;  %v15723_v32 = vmul.u32.u64.low 2863311531, %v15706_v55  ;;  %v15724_v50 = vmul.u32.u64.high 2863311531, %v15706_v55, %v15723_v32  ;;  %v15731_v37 = vadd.s32 8, %v15706_v55 }
 0x380   : > { %12961 = vmatmul.mubr.bf16.gmra.mrb[40].mxu1 %v6548_v46  ;;  %v4744_v46 = vsel %vm1359_vm1, %v4741_v23, %v4743_v8 }
 0x381   : > { %12964 = vmatprep.mubr.bf16.mxu1 %v6556_v60  ;;  %v4745_v60 = vrot.slane %v15566_v29, 1  ;;  %v14381_v29 = vld [vmem:[%s14983_s20 + $0xac] sm:$0xff]  }
 0x383   : > { %12885 = vmatmul.mubr.bf16.gmra.mrb[4].mxu0 %v4718_v3  ;;  %v4730_v3 = vsel %vm1359_vm1, %v4727_v39, %v4729_v44  ;;  %v6603_v39 = vrot.slane %v6601_v30, 1  ;;  %v4746_v40 = vsel %vm1359_vm1, %v4743_v8, %v4745_v60  ;;  %v4748_v43 = vsel %vm1359_vm1, %v4745_v60, %v4747_v49  ;;  %v14388_v30 = vld [vmem:[#allocation8 + $0x218] sm:$0xff]   ;;  %v14393_v60 = vld [vmem:[#allocation8 + $0x228] sm:$0xff]  }
 0x384   : > { %12888 = vmatprep.mubr.bf16.mxu0 %v4720_v4  ;;  %v4732_v4 = vsel %vm1359_vm1, %v4729_v44, %v4731_v58  ;;  %v4751_v44 = vrot.slane %v15584_v26, 1  ;;  %v14380_v58 = vld [vmem:[%s14983_s20 + $0xa4] sm:$0xff]   ;;  %v15738_v23 = vmul.u32.u64.low 2863311531, %v15731_v37  ;;  %v15739_v8 = vmul.u32.u64.high 2863311531, %v15731_v37, %v15738_v23 }
 0x385   : > { %v6604_v12 = vsel %vm19738_vm0, %v6599_v47, %v6603_v39  ;;  %v6617_v62 = vshll.u32 %v14380_v58, 16  ;;  %v6621_v2 = vshrl.u32 %v14380_v58, 16  ;;  %v14383_v47 = vld [vmem:[#allocation8 + $0x30] sm:$0xff]   ;;  %v5262_v49 = vshrl.u32 %v15724_v50, 4 }
 0x386   : > { %v4752_v54 = vsel %vm1359_vm1, %v4749_v53, %v4751_v44  ;;  %13004 = vmatprep.subr.bf16.mxu1 %v14383_v47  ;;  %v15753_v53 = vadd.s32 56, %v15706_v55 }
 0x387   : > { %v6619_v63 = vrot.slane %v6617_v62, 1  ;;  %13005 = vmatpush3.bf16.msra.mxu1 %v14383_v47  ;;  %v14394_v62 = vld [vmem:[#allocation8 + $0x230] sm:$0xff]  }
 0x388   : > { %12965 = vmatmul.mubr.bf16.gmra.mrb[44].mxu1 %v6564_v48 }
 0x389   : > { %12968 = vmatprep.mubr.bf16.mxu1 %v6572_v35  ;;  %v6623_v26 = vor.u32 %v6621_v2, %v6619_v63  ;;  %v14382_v35 = vld [vmem:[#allocation8 + $0x200] sm:$0xff]  }
 0x38a   : > { %13504 = vmatprep.subr.bf16.mxu0 %v14382_v35  ;;  %v14391_v2 = vld [vmem:[%s14983_s20 + $0xcc] ss:$0 sps:$4 sm:$0x11]  }
 0x38b   : > { %12889 = vmatmul.mubr.bf16.gmra.mrb[8].mxu0 %v4722_v25  ;;  %v6580_v25 = vsel %vm19738_vm0, %v6575_v20, %v6579_v13  ;;  %v6629_v13 = vshrl.u32 %v14381_v29, 16 }
 0x38c   : > { %12892 = vmatprep.mubr.bf16.mxu0 %v4724_v27  ;;  %v6589_v27 = vshrl.u32 %v14375_v11, 16  ;;  %v6625_v11 = vshll.u32 %v14381_v29, 16  ;;  %13505 = vmatpush3.bf16.msra.mxu0 %v14382_v35  ;;  %v5263_v29 = vmul.u32 24, %v5262_v49  ;;  %v14396_v35 = vld [vmem:[#allocation8 + $0x238] sm:$0xff]  }
 0x38d   : > { %13506 = vmatprep.subr.bf16.mxu0 %v14384_v51 }
 0x38e   : > { %v6591_v31 = vor.u32 %v6589_v27, %v6587_v21  ;;  %v6627_v48 = vrot.slane %v6625_v11, 1  ;;  %v14386_v27 = vld [vmem:[%s14983_s20 + $0xbc] sm:$0xff]  }
 0x390   : > { %12969 = vmatmul.mubr.bf16.gmra.mrb[48].mxu1 %v6580_v25  ;;  %v6596_v17 = vsel %vm19738_vm0, %v6591_v31, %v6595_v1  ;;  %v6628_v36 = vsel %vm19738_vm0, %v6623_v26, %v6627_v48  ;;  %v6631_v21 = vor.u32 %v6629_v13, %v6627_v48  ;;  %13507 = vmatpush3.bf16.msra.mxu0 %v14384_v51  ;;  %v15715_v25 = vadd.s32 24, %v15706_v55 }
 0x391   : > { %12972 = vmatprep.mubr.bf16.mxu1 %v6588_v33  ;;  %v6637_v33 = vshrl.u32 %v14385_v14, 16  ;;  %v5273_v26 = vshrl.u32 %v15739_v8, 4  ;;  %v19737_v51 = vmov 0  }
 0x392   : > { %v15727_v1 = vmul.u32.u64.low 2863311531, %v15715_v25  ;;  %v15728_v31 = vmul.u32.u64.high 2863311531, %v15715_v25, %v15727_v1  ;;  %6240 = vst [vmem:[#allocation2] sm:$0xff] %v19737_v51  ;;  %6241 = vst [vmem:[#allocation2 + $0x8] sm:$0xff] %v19737_v51 }
 0x393   : > { %12893 = vmatmul.mubr.bf16.gmra.mrb[12].mxu0 %v4726_v10  ;;  %v6607_v10 = vor.u32 %v6605_v19, %v6603_v39  ;;  %6242 = vst [vmem:[#allocation2 + $0x10] sm:$0xff] %v19737_v51  ;;  %6243 = vst [vmem:[#allocation2 + $0xd8] sm:$0xff] %v19737_v51 }
 0x394   : > { %12896 = vmatprep.mubr.bf16.mxu0 %v4728_v52  ;;  %v6611_v52 = vrot.slane %v6609_v28, 1  ;;  %v14390_v28 = vld [vmem:[%s14983_s20 + $0xc4] sm:$0xff]   ;;  %6244 = vst [vmem:[#allocation2 + $0xe0] sm:$0xff] %v19737_v51 }
 0x395   : > { %v6649_v58 = vshll.u32 %v14390_v28, 16 }
 0x396   : > { %v6612_v6 = vsel %vm19738_vm0, %v6607_v10, %v6611_v52 }
 0x398   : > { %12973 = vmatmul.mubr.bf16.gmra.mrb[52].mxu1 %v6596_v17  ;;  %v14392_v17 = vld [vmem:[#allocation8 + $0x220] sm:$0xff]  }
 0x399   : > { %12976 = vmatprep.mubr.bf16.mxu1 %v6604_v12  ;;  %v6645_v12 = vshrl.u32 %v14386_v27, 16 }
 0x39b   : > { %12897 = vmatmul.mubr.bf16.gmra.mrb[16].mxu0 %v4730_v3  ;;  %v4753_v3 = vrot.slane %v15598_v34, 1  ;;  %v6633_v34 = vshll.u32 %v14385_v14, 16  ;;  %v15771_v14 = vsub.s32 %v15706_v55, %v5263_v29 }
 0x39c   : > { %12900 = vmatprep.mubr.bf16.mxu0 %v4732_v4  ;;  %v6615_v4 = vor.u32 %v6613_v9, %v6611_v52  ;;  %v14389_v52 = vld [vmem:[#allocation8 + $0x38] sm:$0xff]  }
 0x39d   : > { %v4754_v5 = vsel %vm1359_vm1, %v4751_v44, %v4753_v3  ;;  %v4756_v57 = vsel %vm1359_vm1, %v4753_v3, %v4755_v16  ;;  %v6635_v20 = vrot.slane %v6633_v34, 1  ;;  %13006 = vmatprep.subr.bf16.mxu1 %v14389_v52  ;;  %v5274_v34 = vmul.u32 24, %v5273_v26 }
 0x39e   : > { %v6620_v61 = vsel %vm19738_vm0, %v6615_v4, %v6619_v63  ;;  %13007 = vmatpush3.bf16.msra.mxu1 %v14389_v52  ;;  %v15761_v3 = vmul.u32.u64.low 2863311531, %v15753_v53  ;;  %v15762_v4 = vmul.u32.u64.high 2863311531, %v15753_v53, %v15761_v3  ;;  %vm5784_vm4 = vcmp.ne.s32.totalorder %v15771_v14, 0 }
 0x39f   : > { %v6636_v22 = vsel %vm19738_vm0, %v6631_v21, %v6635_v20  ;;  %v6639_v39 = vor.u32 %v6637_v33, %v6635_v20  ;;  %v15790_v21 = vadd.s32 80, %v15706_v55  ;;  %vm5832_vm5 = vcmp.lt.s32.totalorder %v15771_v14, 0 }
 0x3a0   : > { %12977 = vmatmul.mubr.bf16.gmra.mrb[56].mxu1 %v6612_v6  ;;  %v15843_v52 = vadd.s32 96, %v15706_v55  ;;  %vm15880_vm13 = vmand %vm5832_vm5, %vm5784_vm4 }
 0x3a1   : > { %12980 = vmatprep.mubr.bf16.mxu1 %v6620_v61  ;;  %v6653_v61 = vshrl.u32 %v14390_v28, 16  ;;  %v15834_v28 = vadd.s32 72, %v15706_v55 }
 0x3a3   : > { %12901 = vmatmul.mubr.bf16.gmra.mrb[20].mxu0 %v4734_v0  ;;  %v15711_v0 = vadd.s32 16, %v15706_v55 }
 0x3a4   : > { %12904 = vmatprep.mubr.bf16.mxu0 %v4736_v15  ;;  %v14387_v15 = vld [vmem:[#allocation8 + $0x210] sm:$0xff]  }
 0x3a5   : > { %13508 = vmatprep.subr.bf16.mxu0 %v14387_v15  ;;  %v15719_v38 = vmul.u32.u64.low 2863311531, %v15711_v0  ;;  %v15720_v56 = vmul.u32.u64.high 2863311531, %v15711_v0, %v15719_v38 }
 0x3a6   : > { %13509 = vmatpush3.bf16.msra.mxu0 %v14387_v15  ;;  %v15799_v15 = vadd.s32 64, %v15706_v55  ;;  %v15808_v38 = vadd.s32 88, %v15706_v55 }
 0x3a7   : > { %13510 = vmatprep.subr.bf16.mxu0 %v14388_v30 }
 0x3a8   : > { %12981 = vmatmul.mubr.bf16.gmra.mrb[60].mxu1 %v6628_v36 }
 0x3a9   : > { %12984 = vmatprep.mubr.bf16.mxu1 %v6636_v22  ;;  %v15795_v22 = vadd.s32 24, %v15771_v14 }
 0x3aa   : > { %13511 = vmatpush3.bf16.msra.mxu0 %v14388_v30  ;;  %v15815_v30 = vsub.s32 %v15731_v37, %v5274_v34 }
 0x3ab   : > { %12905 = vmatmul.mubr.bf16.gmra.mrb[24].mxu0 %v4738_v41  ;;  %v6641_v41 = vshll.u32 %v14386_v27, 16  ;;  %13512 = vmatprep.subr.bf16.mxu0 %v14392_v17 }
 0x3ac   : > { %12908 = vmatprep.mubr.bf16.mxu0 %v4740_v7  ;;  %v15734_v7 = vadd.s32 48, %v15706_v55  ;;  %vm5785_vm8 = vcmp.ne.s32.totalorder %v15815_v30, 0  ;;  %vm5833_vm9 = vcmp.lt.s32.totalorder %v15815_v30, 0  ;;  %v15897_v3 = vadd.s32 24, %v15815_v30 }
 0x3ad   : > { %v6643_v19 = vrot.slane %v6641_v41, 1 }
 0x3ae   : > { %13513 = vmatpush3.bf16.msra.mxu0 %v14392_v17 }
 0x3af   : > { %v6644_v10 = vsel %vm19738_vm0, %v6639_v39, %v6643_v19  ;;  %v6647_v44 = vor.u32 %v6645_v12, %v6643_v19  ;;  %13514 = vmatprep.subr.bf16.mxu0 %v14393_v60  ;;  %v15826_v39 = vmul.u32.u64.low 2863311531, %v15799_v15  ;;  %v15827_v41 = vmul.u32.u64.high 2863311531, %v15799_v15, %v15826_v39 }
 0x3b0   : > { %12985 = vmatmul.mubr.bf16.gmra.mrb[64].mxu1 %v6644_v10  ;;  %v15830_v19 = vmul.u32.u64.low 2863311531, %v15808_v38  ;;  %v15831_v37 = vmul.u32.u64.high 2863311531, %v15808_v38, %v15830_v19  ;;  %v15837_v12 = vadd.s32 112, %v15706_v55  ;;  %v6995_v10 = vrot.slane %v19737_v51, 3 }
 0x3b1   : > { %v20000_v19 = vmov 0 }
 0x3b2   : > { %13515 = vmatpush3.bf16.msra.mxu0 %v14393_v60  ;;  %v5383_v34 = vshrl.u32 %v15831_v37, 4 }
 0x3b3   : > { %12909 = vmatmul.mubr.bf16.gmra.mrb[28].mxu0 %v4742_v42  ;;  %v5284_v42 = vshrl.u32 %v15720_v56, 4  ;;  %13516 = vmatprep.subr.bf16.mxu0 %v14394_v62 }
 0x3b4   : > { %12912 = vmatprep.mubr.bf16.mxu0 %v4744_v46  ;;  %v15744_v46 = vmul.u32.u64.low 2863311531, %v15734_v7  ;;  %v15745_v6 = vmul.u32.u64.high 2863311531, %v15734_v7, %v15744_v46 }
 0x3b6   : > { %13517 = vmatpush3.bf16.msra.mxu0 %v14394_v62  ;;  %v5328_v18 = vshrl.u32 %v15745_v6, 4 }
 0x3b7   : > { %13518 = vmatprep.subr.bf16.mxu0 %v14396_v35 }
 0x3b8   : > { %v5329_v45 = vmul.u32 24, %v5328_v18 }
 0x3ba   : > { %13519 = vmatpush3.bf16.msra.mxu0 %v14396_v35  ;;  %v15819_v50 = vsub.s32 %v15734_v7, %v5329_v45  ;;  %v6942_v7 = vld [vmem:[#allocation2 + $0x8] sm:$0xf8]  ;;  %v5350_v35 = vshrl.u32 %v15827_v41, 4  ;;  %v16126_v45 = vadd.s32 168, %v15706_v55 }
 0x3bb   : > { %12913 = vmatmul.mubr.bf16.gmra.mrb[32].mxu0 %v4746_v40  ;;  %v15749_v40 = vadd.s32 32, %v15706_v55  ;;  %v6985_v23 = vshrl.u32 %v6942_v7, 16  ;;  %v6988_v8 = vshll.u32 %v6942_v7, 16  ;;  %v5384_v7 = vmul.u32 24, %v5383_v34 }
 0x3bc   : > { %12916 = vmatprep.mubr.bf16.mxu0 %v4748_v43  ;;  %v5295_v43 = vshrl.u32 %v15728_v31, 4  ;;  %v15822_v1 = vmul.u32.u64.low 2863311531, %v15790_v21  ;;  %v15823_v31 = vmul.u32.u64.high 2863311531, %v15790_v21, %v15822_v1  ;;  %vm5790_vm10 = vcmp.ne.s32.totalorder %v15819_v50, 0 }
 0x3bd   : > { %v15756_v9 = vmul.u32.u64.low 2863311531, %v15749_v40  ;;  %v15757_v63 = vmul.u32.u64.high 2863311531, %v15749_v40, %v15756_v9  ;;  %vm5838_vm11 = vcmp.lt.s32.totalorder %v15819_v50, 0  ;;  %v6987_v6 = vrot.slane %v6985_v23, 3 }
 0x3be   : > { %v5296_v11 = vmul.u32 24, %v5295_v43  ;;  %v15855_v49 = vmul.u32.u64.low 2863311531, %v15834_v28  ;;  %v15856_v43 = vmul.u32.u64.high 2863311531, %v15834_v28, %v15855_v49  ;;  %v15911_v26 = vadd.s32 24, %v15819_v50  ;;  %vm15921_vm4 = vmand %vm5838_vm11, %vm5790_vm10 }
 0x3bf   : > { %v15957_v1 = vadd.s32 104, %v15706_v55  ;;  %v5351_v41 = vmul.u32 24, %v5350_v35  ;;  %v16030_v34 = vadd.s32 136, %v15706_v55 }
 0x3c0   : > { %v15774_v36 = vsub.s32 %v15715_v25, %v5296_v11  ;;  %v5339_v25 = vshrl.u32 %v15762_v4, 4  ;;  %v5372_v4 = vshrl.u32 %v15823_v31, 4 }
 0x3c2   : > { %vm5787_vm6 = vcmp.ne.s32.totalorder %v15774_v36, 0  ;;  %vm5835_vm7 = vcmp.lt.s32.totalorder %v15774_v36, 0  ;;  %v15812_v56 = vadd.s32 24, %v15774_v36  ;;  %v5340_v17 = vmul.u32 24, %v5339_v25 }
 0x3c3   : > { %12917 = vmatmul.mubr.bf16.gmra.mrb[36].mxu0 %v4750_v59  ;;  %v5285_v59 = vmul.u32 24, %v5284_v42  ;;  %v15846_v42 = vrot.slane %v19737_v51, 4  ;;  %vm15892_vm15 = vmand %vm5835_vm7, %vm5787_vm6  ;;  %v15947_v25 = vadd.s32 120, %v15706_v55 }
 0x3c4   : > { %12920 = vmatprep.mubr.bf16.mxu0 %v4752_v54  ;;  %v6651_v54 = vrot.slane %v6649_v58, 1  ;;  %v14395_v58 = vld [vmem:[#allocation8 + $0x40] sm:$0xff]  }
 0x3c5   : > { %v15767_v48 = vsub.s32 %v15711_v0, %v5285_v59  ;;  %v5306_v0 = vshrl.u32 %v15757_v63, 4  ;;  %19954 = vst [vmem:[#allocation17_spill] sm:$0xff] %v15846_v42  ;;  %v15874_v29 = vor.u32 %v15846_v42, %v6995_v10  ;;  %13056 = vmatprep.subr.bf16.mxu1 %v14395_v58  ;;  %v16005_v58 = vsub.s32 %v15799_v15, %v5351_v41 }
 0x3c6   : > { %v6652_v16 = vsel %vm19738_vm0, %v6647_v44, %v6651_v54  ;;  %v6655_v13 = vor.u32 %v6653_v61, %v6651_v54  ;;  %v6990_v44 = vrot.slane %v6988_v8, 4  ;;  %v16022_v15 = vadd.s32 152, %v15706_v55 }
 0x3c7   : > { %12988 = vmatprep.mubr.bf16.mxu1 %v6652_v16  ;;  %vm5786_vm2 = vcmp.ne.s32.totalorder %v15767_v48, 0  ;;  %vm5834_vm3 = vcmp.lt.s32.totalorder %v15767_v48, 0  ;;  %v15787_v20 = vadd.s32 24, %v15767_v48  ;;  %v5307_v47 = vmul.u32 24, %v5306_v0  ;;  %19959 = vst [vmem:[#allocation20_spill] sm:$0xff] %v15874_v29  ;;  %19976 = vst [vmem:[#allocation25_spill] sm:$0xff] %v16005_v58 }
 0x3c8   : > { %vm15862_vm12 = vmand %vm5834_vm3, %vm5786_vm2  ;;  %v15870_v54 = vmul.u32.u64.low 2863311531, %v15837_v12  ;;  %v15871_v62 = vmul.u32.u64.high 2863311531, %v15837_v12, %v15870_v54  ;;  %v20202_v59 = vmov 0  ;;  %v16985_v16 = vld [vmem:[%s19725_s2] ss:$0 sm:$0xff] }
 0x3c9   : > { %v15851_v46 = vsub.s32 %v15749_v40, %v5307_v47  ;;  %v15867_v40 = vsub.s32 %v15753_v53, %v5340_v17  ;;  %v6991_v53 = vor.u32 %v6990_v44, %v6987_v6  ;;  %vm15906_vm3 = vmand %vm5833_vm9, %vm5785_vm8  ;;  %v19972_v47 = vmov 0 }
 0x3ca   : > { %v5361_v17 = vshrl.u32 %v15856_v43, 4  ;;  %v5416_v23 = vshrl.u32 %v15871_v62, 4  ;;  %v15990_v6 = vadd.s32 144, %v15706_v55  ;;  %v16008_v62 = vadd.s32 128, %v15706_v55 }
 0x3cb   : > { %12921 = vmatmul.mubr.bf16.gmra.mrb[40].mxu0 %v4754_v5  ;;  %v6657_v5 = vshll.u32 %v14391_v2, 16  ;;  %19955 = vst [vmem:[#allocation18_spill] sm:$0xff] %v15851_v46  ;;  %19958 = vst [vmem:[#allocation19_spill] sm:$0xff] %v15867_v40  ;;  %v15885_v63 = vmul.u32.u64.low 2863311531, %v15843_v52  ;;  %v15886_v2 = vmul.u32.u64.high 2863311531, %v15843_v52, %v15885_v63  ;;  %vm5788_vm1 = vcmp.ne.s32.totalorder %v15851_v46, 0 }
 0x3cc   : > { %12924 = vmatprep.mubr.bf16.mxu0 %v4756_v57  ;;  %v15777_v57 = vadd.s32 40, %v15706_v55  ;;  %vm5836_vm2 = vcmp.lt.s32.totalorder %v15851_v46, 0  ;;  %v15914_v61 = vadd.s32 24, %v15851_v46  ;;  %vm5791_vm5 = vcmp.ne.s32.totalorder %v15867_v40, 0 }
 0x3cd   : > { %vm5839_vm6 = vcmp.lt.s32.totalorder %v15867_v40, 0  ;;  %vm15942_vm7 = vmand %vm5836_vm2, %vm5788_vm1  ;;  %v5394_v8 = vshrl.u32 %v15886_v2, 4  ;;  %v16000_v43 = vmul.u32.u64.low 2863311531, %v15957_v1  ;;  %v16001_v44 = vmul.u32.u64.high 2863311531, %v15957_v1, %v16000_v43 }
 0x3ce   : > { %v15804_v27 = vmul.u32.u64.low 2863311531, %v15777_v57  ;;  %v15805_v33 = vmul.u32.u64.high 2863311531, %v15777_v57, %v15804_v27  ;;  %19966 = vst [vmem:[#allocation21_spill] sm:$0xff] %v15914_v61  ;;  %vm15967_vm8 = vmand %vm5839_vm6, %vm5791_vm5  ;;  %v5362_v54 = vmul.u32 24, %v5361_v17  ;;  %vm5792_vm2 = vcmp.ne.s32.totalorder %v16005_v58, 0 }
 0x3cf   : > { %v19973_v47 = vsel %vm15967_vm8, 4294967295, %v19972_v47  ;;  %v5417_v2 = vmul.u32 24, %v5416_v23  ;;  %v16044_v17 = vadd.s32 24, %v16005_v58  ;;  %vm19994_vm6 = vcmp.lt.s32.totalorder %v16005_v58, 0 }
 0x3d0   : > { %v5317_v60 = vshrl.u32 %v15805_v33, 4  ;;  %v15954_v33 = vadd.s32 24, %v15867_v40 }
 0x3d1   : > { %19982 = vst [vmem:[#allocation31_spill] sm:$0xff] %v16044_v17 }
 0x3d2   : > { %v5318_v18 = vmul.u32 24, %v5317_v60 }
 0x3d3   : > { %12925 = vmatmul.mubr.bf16.gmra.mrb[44].mxu0 %v4758_v24  ;;  %v6659_v24 = vrot.slane %v6657_v5, 1  ;;  %v19967_v5 = vmov 0 }
 0x3d4   : > { %v19968_v5 = vsel %vm15921_vm4, 4294967295, %v19967_v5  ;;  %v15972_v39 = vsub.s32 %v15777_v57, %v5318_v18  ;;  %v15986_v57 = vmul.u32.u64.low 2863311531, %v15947_v25  ;;  %v15987_v10 = vmul.u32.u64.high 2863311531, %v15947_v25, %v15986_v57 }
 0x3d5   : > { %v6660_v32 = vsel %vm19738_vm0, %v6655_v13, %v6659_v24  ;;  %v7000_v13 = vsel %vm19739_vm14, %v6991_v53, %v15874_v29  ;;  %v19969_v24 = vmov 0  ;;  %v5395_v53 = vmul.u32 24, %v5394_v8 }
 0x3d6   : > { %12989 = vmatmul.mubr.bf16.gmra.mrb[68].mxu1 %v6660_v32  ;;  %v19970_v24 = vsel %vm15942_vm7, 4294967295, %v19969_v24  ;;  %v5373_v32 = vmul.u32 24, %v5372_v4  ;;  %19974 = vst [vmem:[#allocation23_spill] sm:$0xff] %v15972_v39  ;;  %vm5789_vm9 = vcmp.ne.s32.totalorder %v15972_v39, 0  ;;  %vm5837_vm10 = vcmp.lt.s32.totalorder %v15972_v39, 0  ;;  %vm16106_vm7 = vmand %vm19994_vm6, %vm5792_vm2 }
 0x3d7   : > { %19971 = vst [vmem:[#allocation22_spill] sm:$0xff] %v19970_v24  ;;  %13008 = vmatprep.mubr.bf16.mxu1 %v7000_v13  ;;  %v16012_v63 = vadd.s32 24, %v15972_v39  ;;  %v16018_v4 = vmul.u32.u64.low 2863311531, %v15990_v6  ;;  %v16019_v18 = vmul.u32.u64.high 2863311531, %v15990_v6, %v16018_v4  ;;  %v5427_v8 = vshrl.u32 %v15987_v10, 4  ;;  %vm16074_vm0 = vmand %vm5837_vm10, %vm5789_vm9 }
 0x3d8   : > { %v15997_v49 = vsub.s32 %v15790_v21, %v5373_v32  ;;  %v16015_v21 = vsub.s32 %v15808_v38, %v5384_v7  ;;  %v16034_v38 = vsub.s32 %v15834_v28, %v5362_v54  ;;  %v16048_v7 = vsub.s32 %v15837_v12, %v5417_v2 }
 0x3d9   : > { %19977 = vst [vmem:[#allocation26_spill] sm:$0xff] %v16012_v63  ;;  %v16037_v13 = vmul.u32.u64.low 2863311531, %v16008_v62  ;;  %v16038_v32 = vmul.u32.u64.high 2863311531, %v16008_v62, %v16037_v13  ;;  %v16053_v28 = vsub.s32 %v15843_v52, %v5395_v53  ;;  %v5405_v4 = vshrl.u32 %v16001_v44, 4 }
 0x3da   : > { %19975 = vst [vmem:[#allocation24_spill] sm:$0xff] %v15997_v49  ;;  %19978 = vst [vmem:[#allocation27_spill] sm:$0xff] %v16015_v21  ;;  %vm5794_vm11 = vcmp.ne.s32.totalorder %v15997_v49, 0  ;;  %vm5842_vm1 = vcmp.lt.s32.totalorder %v15997_v49, 0  ;;  %v16027_v35 = vadd.s32 24, %v15997_v49  ;;  %v16068_v12 = vadd.s32 176, %v15706_v55 }
 0x3db   : > { %19980 = vst [vmem:[#allocation29_spill] sm:$0xff] %v16034_v38  ;;  %19983 = vst [vmem:[#allocation32_spill] sm:$0xff] %v16048_v7  ;;  %v16057_v57 = vmul.u32.u64.low 2863311531, %v16022_v15  ;;  %v16058_v43 = vmul.u32.u64.high 2863311531, %v16022_v15, %v16057_v57  ;;  %v16064_v13 = vmul.u32.u64.low 2863311531, %v16030_v34  ;;  %v16065_v51 = vmul.u32.u64.high 2863311531, %v16030_v34, %v16064_v13 }
 0x3dc   : > { %19979 = vst [vmem:[#allocation28_spill] sm:$0xff] %v16027_v35  ;;  %19985 = vst [vmem:[#allocation34_spill] sm:$0xff] %v16053_v28  ;;  %v19987_v52 = vmov 0  ;;  %v16080_v10 = vadd.s32 24, %v16015_v21  ;;  %v16084_v44 = vadd.s32 160, %v15706_v55  ;;  %v19992_v53 = vmov 0 }
 0x3dd   : > { %v19988_v52 = vsel %vm16074_vm0, 4294967295, %v19987_v52  ;;  %vm16092_vm9 = vmand %vm5842_vm1, %vm5794_vm11  ;;  %v16100_v57 = vadd.s32 184, %v15706_v55  ;;  %v19995_v13 = vmov 0  ;;  %v5428_v37 = vmul.u32 24, %v5427_v8 }
 0x3de   : > { %19989 = vst [vmem:[#allocation36_spill] sm:$0xff] %v19988_v52  ;;  %19990 = vst [vmem:[#allocation37_spill] sm:$0xff] %v16080_v10  ;;  %v19993_v53 = vsel %vm16092_vm9, 4294967295, %v19992_v53  ;;  %v19996_v13 = vsel %vm16106_vm7, 4294967295, %v19995_v13  ;;  %v5460_v60 = vshrl.u32 %v16019_v18, 4  ;;  %vm19998_vm5 = vcmp.ne.s32.totalorder %v16015_v21, 0 }
 0x3df   : > { %19997 = vst [vmem:[#allocation39_spill] sm:$0xff] %v19996_v13  ;;  %vm19999_vm14 = vcmp.lt.s32.totalorder %v16015_v21, 0  ;;  %v5406_v31 = vmul.u32 24, %v5405_v4  ;;  %v16122_v0 = vmul.u32.u64.low 2863311531, %v16068_v12  ;;  %v16123_v27 = vmul.u32.u64.high 2863311531, %v16068_v12, %v16122_v0 }
 0x3e0   : > { %vm16117_vm10 = vmand %vm19999_vm14, %vm19998_vm5  ;;  %vm20003_vm2 = vcmp.ne.s32.totalorder %v16034_v38, 0  ;;  %vm20004_vm6 = vcmp.lt.s32.totalorder %v16034_v38, 0  ;;  %v20005_v18 = vmov 0  ;;  %v16137_v8 = vadd.s32 24, %v16034_v38 }
 0x3e1   : > { %v20001_v19 = vsel %vm16117_vm10, 4294967295, %v20000_v19  ;;  %vm16132_vm1 = vmand %vm20004_vm6, %vm20003_vm2  ;;  %v5438_v4 = vshrl.u32 %v16038_v32, 4  ;;  %vm20009_vm14 = vcmp.ne.s32.totalorder %v16048_v7, 0  ;;  %vm20010_vm5 = vcmp.lt.s32.totalorder %v16048_v7, 0 }
 0x3e2   : > { %20002 = vst [vmem:[#allocation40_spill] sm:$0xff] %v20001_v19  ;;  %v20006_v18 = vsel %vm16132_vm1, 4294967295, %v20005_v18  ;;  %20008 = vst [vmem:[#allocation42_spill] sm:$0xff] %v16137_v8  ;;  %v20011_v0 = vmov 0  ;;  %vm20016_vm2 = vcmp.ne.s32.totalorder %v16053_v28, 0  ;;  %vm20017_vm6 = vcmp.lt.s32.totalorder %v16053_v28, 0 }
 0x3e3   : > { %20007 = vst [vmem:[#allocation41_spill] sm:$0xff] %v20006_v18  ;;  %vm16148_vm11 = vmand %vm20010_vm5, %vm20009_vm14  ;;  %v20018_v29 = vmov 0  ;;  %v16175_v46 = vsub.s32 %v15947_v25, %v5428_v37  ;;  %v5461_v61 = vmul.u32 24, %v5460_v60  ;;  %v5471_v24 = vshrl.u32 %v16058_v43, 4 }
 0x3e4   : > { %v20012_v0 = vsel %vm16148_vm11, 4294967295, %v20011_v0  ;;  %vm16170_vm14 = vmand %vm20017_vm6, %vm20016_vm2  ;;  %v16181_v40 = vsub.s32 %v15957_v1, %v5406_v31  ;;  %v16185_v39 = vmul.u32.u64.low 2863311531, %v16126_v45  ;;  %v16186_v63 = vmul.u32.u64.high 2863311531, %v16126_v45, %v16185_v39 }
 0x3e5   : > { %20013 = vst [vmem:[#allocation43_spill] sm:$0xff] %v20012_v0  ;;  %v20019_v29 = vsel %vm16170_vm14, 4294967295, %v20018_v29  ;;  %20021 = vst [vmem:[#allocation47_spill] sm:$0xff] %v16175_v46  ;;  %v5439_v1 = vmul.u32 24, %v5438_v4  ;;  %vm5799_vm5 = vcmp.ne.s32.totalorder %v16175_v46, 0  ;;  %v16224_v39 = vsub.s32 %v15990_v6, %v5461_v61 }
 0x3e6   : > { %20020 = vst [vmem:[#allocation46_spill] sm:$0xff] %v20019_v29  ;;  %20023 = vst [vmem:[#allocation49_spill] sm:$0xff] %v16181_v40  ;;  %v5472_v37 = vmul.u32 24, %v5471_v24  ;;  %v16227_v60 = vadd.s32 192, %v15706_v55  ;;  %v16230_v25 = vadd.s32 24, %v16175_v46  ;;  %vm20042_vm2 = vcmp.lt.s32.totalorder %v16175_v46, 0 }
 0x3e7   : > { %20027 = vst [vmem:[#allocation53_spill] sm:$0xff] %v16224_v39  ;;  %v16239_v61 = vsub.s32 %v16008_v62, %v5439_v1  ;;  %v16268_v29 = vadd.s32 24, %v16224_v39  ;;  %vm16312_vm6 = vmand %vm20042_vm2, %vm5799_vm5  ;;  %v20043_v0 = vmov 0  ;;  %vm20048_vm11 = vcmp.ne.s32.totalorder %v16181_v40, 0 }
 0x3e8   : > { %20028 = vst [vmem:[#allocation54_spill] sm:$0xff] %v16230_v25  ;;  %v20044_v0 = vsel %vm16312_vm6, 4294967295, %v20043_v0  ;;  %vm20049_vm1 = vcmp.lt.s32.totalorder %v16181_v40, 0  ;;  %v16338_v8 = vadd.s32 248, %v15706_v55  ;;  %vm20053_vm5 = vcmp.ne.s32.totalorder %v16224_v39, 0 }
 0x3e9   : > { %20030 = vst [vmem:[#allocation56_spill] sm:$0xff] %v16239_v61  ;;  %20035 = vst [vmem:[#allocation61_spill] sm:$0xff] %v16268_v29  ;;  %vm20054_vm2 = vcmp.lt.s32.totalorder %v16224_v39, 0  ;;  %vm20059_vm7 = vcmp.ne.s32.totalorder %v16239_v61, 0  ;;  %vm20060_vm9 = vcmp.lt.s32.totalorder %v16239_v61, 0  ;;  %v20091_v46 = vmov 0 }
 0x3ea   : > { %20045 = vst [vmem:[#allocation68_spill] sm:$0xff] %v20044_v0  ;;  %vm16328_vm10 = vmand %vm20049_vm1, %vm20048_vm11  ;;  %v16401_v17 = vmul.u32.u64.low 2863311531, %v16338_v8  ;;  %v16402_v13 = vmul.u32.u64.high 2863311531, %v16338_v8, %v16401_v17 }
 0x3eb   : > { %vm16346_vm14 = vmand %vm20054_vm2, %vm20053_vm5 }
 0x3ec   : > { %vm16364_vm5 = vmand %vm20060_vm9, %vm20059_vm7 }
 0x3f5   : > { %v16040_v41 = vpop.f32.mrb[0].mxu1 }
 0x3f6   : > { %19981 = vst [vmem:[#allocation30_spill] sm:$0xff] %v16040_v41  ;;  %v16050_v23 = vpop.f32.mrb[1].mxu1  ;;  %v16159_v32 = vmul.u32.u64.low 2863311531, %v16100_v57  ;;  %v16160_v41 = vmul.u32.u64.high 2863311531, %v16100_v57, %v16159_v32 }
 0x3f7   : > { %19984 = vst [vmem:[#allocation33_spill] sm:$0xff] %v16050_v23  ;;  %v16060_v54 = vpop.f32.mrb[2].mxu1  ;;  %v16156_v23 = vadd.s32 24, %v16053_v28  ;;  %v16255_v28 = vmul.u32.u64.low 2863311531, %v16227_v60  ;;  %v16256_v62 = vmul.u32.u64.high 2863311531, %v16227_v60, %v16255_v28 }
 0x3f8   : > { %19986 = vst [vmem:[#allocation35_spill] sm:$0xff] %v16060_v54  ;;  %v16086_v2 = vpop.f32.mrb[3].mxu1  ;;  %v16153_v54 = vadd.s32 24, %v16048_v7  ;;  %v5515_v6 = vshrl.u32 %v16160_v41, 4  ;;  %v16272_v28 = vadd.s32 200, %v15706_v55 }
 0x3f9   : > { %19991 = vst [vmem:[#allocation38_spill] sm:$0xff] %v16086_v2  ;;  %v16141_v42 = vmul.u32.u64.low 2863311531, %v16084_v44  ;;  %v16142_v2 = vmul.u32.u64.high 2863311531, %v16084_v44, %v16141_v42  ;;  %20015 = vst [vmem:[#allocation45_spill] sm:$0xff] %v16156_v23 }
 0x3fa   : > { %20014 = vst [vmem:[#allocation44_spill] sm:$0xff] %v16153_v54  ;;  %v5449_v42 = vshrl.u32 %v16065_v51, 4  ;;  %v16217_v51 = vadd.s32 208, %v15706_v55  ;;  %v16306_v54 = vadd.s32 224, %v15706_v55 }
 0x3fb   : > { %v5482_v24 = vshrl.u32 %v16142_v2, 4  ;;  %v5493_v2 = vshrl.u32 %v16186_v63, 4 }
 0x3fc   : > { %v5450_v43 = vmul.u32 24, %v5449_v42  ;;  %v16248_v42 = vadd.s32 216, %v15706_v55 }
 0x3fd   : > { %v16178_v32 = vpop.f32.mrb[4].mxu1 }
 0x3fe   : > { %20022 = vst [vmem:[#allocation48_spill] sm:$0xff] %v16178_v32  ;;  %v16188_v52 = vpop.f32.mrb[5].mxu1  ;;  %v16262_v41 = vsub.s32 %v16030_v34, %v5450_v43  ;;  %v5516_v34 = vmul.u32 24, %v5515_v6 }
 0x3ff   : > { %20024 = vst [vmem:[#allocation50_spill] sm:$0xff] %v16188_v52  ;;  %v16202_v31 = vpop.f32.mrb[6].mxu1  ;;  %v16244_v52 = vmul.u32.u64.low 2863311531, %v16217_v51  ;;  %v16245_v32 = vmul.u32.u64.high 2863311531, %v16217_v51, %v16244_v52 }
 0x400   : > { %20025 = vst [vmem:[#allocation51_spill] sm:$0xff] %v16202_v31  ;;  %v16219_v4 = vpop.f32.mrb[7].mxu1  ;;  %v5504_v31 = vshrl.u32 %v16123_v27, 4  ;;  %v16252_v27 = vsub.s32 %v16022_v15, %v5472_v37  ;;  %20033 = vst [vmem:[#allocation59_spill] sm:$0xff] %v16262_v41  ;;  %v5483_v15 = vmul.u32 24, %v5482_v24  ;;  %v16289_v24 = vadd.s32 240, %v15706_v55 }
 0x401   : > { %20026 = vst [vmem:[#allocation52_spill] sm:$0xff] %v16219_v4  ;;  %v16236_v4 = vadd.s32 24, %v16181_v40  ;;  %vm20072_vm2 = vcmp.ne.s32.totalorder %v16262_v41, 0  ;;  %vm20073_vm8 = vcmp.lt.s32.totalorder %v16262_v41, 0 }
 0x402   : > { %20031 = vst [vmem:[#allocation57_spill] sm:$0xff] %v16252_v27  ;;  %v5505_v52 = vmul.u32 24, %v5504_v31  ;;  %v16278_v31 = vmul.u32.u64.low 2863311531, %v16248_v42  ;;  %v16279_v43 = vmul.u32.u64.high 2863311531, %v16248_v42, %v16278_v31  ;;  %vm20066_vm1 = vcmp.ne.s32.totalorder %v16252_v27, 0  ;;  %vm16395_vm4 = vmand %vm20073_vm8, %vm20072_vm2 }
 0x403   : > { %20029 = vst [vmem:[#allocation55_spill] sm:$0xff] %v16236_v4  ;;  %v5494_v31 = vmul.u32 24, %v5493_v2  ;;  %v5526_v2 = vshrl.u32 %v16256_v62, 4  ;;  %vm20067_vm11 = vcmp.lt.s32.totalorder %v16252_v27, 0  ;;  %v20097_v4 = vmov 0 }
 0x404   : > { %v16296_v6 = vsub.s32 %v16068_v12, %v5505_v52  ;;  %v16318_v12 = vadd.s32 24, %v16262_v41  ;;  %v20050_v52 = vmov 0  ;;  %vm16382_vm0 = vmand %vm20067_vm11, %vm20066_vm1  ;;  %v5559_v19 = vshrl.u32 %v16279_v43, 4 }
 0x405   : > { %v16258_v1 = vpop.f32.mrb[8].mxu1  ;;  %v20051_v52 = vsel %vm16328_vm10, 4294967295, %v20050_v52  ;;  %v16353_v62 = vsub.s32 %v16126_v45, %v5494_v31  ;;  %v16373_v45 = vmul.u32.u64.low 2863311531, %v16306_v54  ;;  %v16374_v31 = vmul.u32.u64.high 2863311531, %v16306_v54, %v16373_v45 }
 0x406   : > { %20032 = vst [vmem:[#allocation58_spill] sm:$0xff] %v16258_v1  ;;  %v16265_v23 = vpop.f32.mrb[9].mxu1  ;;  %20040 = vst [vmem:[#allocation66_spill] sm:$0xff] %v16296_v6  ;;  %v16302_v1 = vmul.u32.u64.low 2863311531, %v16272_v28  ;;  %v16303_v7 = vmul.u32.u64.high 2863311531, %v16272_v28, %v16302_v1  ;;  %v16369_v18 = vadd.s32 24, %v16296_v6 }
 0x407   : > { %20034 = vst [vmem:[#allocation60_spill] sm:$0xff] %v16265_v23  ;;  %v16274_v37 = vpop.f32.mrb[10].mxu1  ;;  %v16284_v23 = vadd.s32 24, %v16239_v61  ;;  %20046 = vst [vmem:[#allocation69_spill] sm:$0xff] %v16318_v12  ;;  %v5548_v1 = vshrl.u32 %v16245_v32, 4  ;;  %v20055_v32 = vmov 0 }
 0x408   : > { %20036 = vst [vmem:[#allocation62_spill] sm:$0xff] %v16274_v37  ;;  %v16281_v63 = vpop.f32.mrb[11].mxu1  ;;  %v16292_v37 = vadd.s32 24, %v16252_v27  ;;  %v20056_v32 = vsel %vm16346_vm14, 4294967295, %v20055_v32  ;;  %20057 = vst [vmem:[#allocation72_spill] sm:$0xff] %v16353_v62  ;;  %v20074_v45 = vmov 0 }
 0x409   : > { %20037 = vst [vmem:[#allocation63_spill] sm:$0xff] %v16281_v63  ;;  %20038 = vst [vmem:[#allocation64_spill] sm:$0xff] %v16284_v23  ;;  %v16299_v63 = vsub.s32 %v16084_v44, %v5483_v15  ;;  %v16321_v44 = vsub.s32 %v16100_v57, %v5516_v34  ;;  %v16334_v15 = vmul.u32.u64.low 2863311531, %v16289_v24  ;;  %v16335_v38 = vmul.u32.u64.high 2863311531, %v16289_v24, %v16334_v15 }
 0x40a   : > { %20039 = vst [vmem:[#allocation65_spill] sm:$0xff] %v16292_v37  ;;  %v16356_v34 = vadd.s32 232, %v15706_v55  ;;  %20064 = vst [vmem:[#allocation75_spill] sm:$0xff] %v16369_v18  ;;  %v5549_v10 = vmul.u32 24, %v5548_v1  ;;  %v20075_v45 = vsel %vm16395_vm4, 4294967295, %v20074_v45  ;;  %vm20077_vm1 = vcmp.ne.s32.totalorder %v16296_v6, 0 }
 0x40b   : > { %20041 = vst [vmem:[#allocation67_spill] sm:$0xff] %v16299_v63  ;;  %20047 = vst [vmem:[#allocation70_spill] sm:$0xff] %v16321_v44  ;;  %vm20078_vm9 = vcmp.lt.s32.totalorder %v16296_v6, 0  ;;  %v20079_v43 = vmov 0  ;;  %vm5805_vm8 = vcmp.ne.s32.totalorder %v16353_v62, 0  ;;  %vm20082_vm11 = vcmp.ne.s32.totalorder %v16299_v63, 0 }
 0x40c   : > { %20076 = vst [vmem:[#allocation79_spill] sm:$0xff] %v20075_v45  ;;  %vm16408_vm7 = vmand %vm20078_vm9, %vm20077_vm1  ;;  %vm20083_vm9 = vcmp.lt.s32.totalorder %v16299_v63, 0  ;;  %v16431_v49 = vadd.s32 24, %v16299_v63  ;;  %v16434_v35 = vadd.s32 24, %v16321_v44  ;;  %vm20089_vm2 = vcmp.ne.s32.totalorder %v16321_v44, 0 }
 0x40d   : > { %v16340_v57 = vpop.f32.mrb[12].mxu1  ;;  %v20080_v43 = vsel %vm16408_vm7, 4294967295, %v20079_v43  ;;  %vm16426_vm1 = vmand %vm20083_vm9, %vm20082_vm11  ;;  %vm20090_vm11 = vcmp.lt.s32.totalorder %v16321_v44, 0  ;;  %v16450_v25 = vadd.s32 24, %v16353_v62  ;;  %v16453_v0 = vsub.s32 %v16217_v51, %v5549_v10 }
 0x40e   : > { %20052 = vst [vmem:[#allocation71_spill] sm:$0xff] %v16340_v57  ;;  %v16358_v15 = vpop.f32.mrb[13].mxu1  ;;  %v20061_v57 = vmov 0  ;;  %20081 = vst [vmem:[#allocation80_spill] sm:$0xff] %v20080_v43  ;;  %v16473_v10 = vadd.s32 272, %v15706_v55  ;;  %v5570_v41 = vshrl.u32 %v16374_v31, 4 }
 0x40f   : > { %20058 = vst [vmem:[#allocation73_spill] sm:$0xff] %v16358_v15  ;;  %v20062_v57 = vsel %vm16364_vm5, 4294967295, %v20061_v57  ;;  %v16376_v21 = vpop.f32.mrb[14].mxu1  ;;  %v20068_v15 = vmov 0  ;;  %20087 = vst [vmem:[#allocation82_spill] sm:$0xff] %v16431_v49 }
 0x410   : > { %20063 = vst [vmem:[#allocation74_spill] sm:$0xff] %v20062_v57  ;;  %20065 = vst [vmem:[#allocation76_spill] sm:$0xff] %v16376_v21  ;;  %v20069_v15 = vsel %vm16382_vm0, 4294967295, %v20068_v15  ;;  %v16389_v58 = vpop.f32.mrb[15].mxu1  ;;  %v5527_v21 = vmul.u32 24, %v5526_v2  ;;  %v20084_v2 = vmov 0 }
 0x411   : > { %20070 = vst [vmem:[#allocation77_spill] sm:$0xff] %v20069_v15  ;;  %20071 = vst [vmem:[#allocation78_spill] sm:$0xff] %v16389_v58  ;;  %v16415_v1 = vmul.u32.u64.low 2863311531, %v16356_v34  ;;  %v16416_v58 = vmul.u32.u64.high 2863311531, %v16356_v34, %v16415_v1  ;;  %v20085_v2 = vsel %vm16426_vm1, 4294967295, %v20084_v2 }
 0x412   : > { %20086 = vst [vmem:[#allocation81_spill] sm:$0xff] %v20085_v2  ;;  %20088 = vst [vmem:[#allocation83_spill] sm:$0xff] %v16434_v35  ;;  %v5537_v1 = vshrl.u32 %v16303_v7, 4  ;;  %v5560_v7 = vmul.u32 24, %v5559_v19  ;;  %v5592_v19 = vshrl.u32 %v16335_v38, 4  ;;  %v16490_v61 = vsub.s32 %v16227_v60, %v5527_v21 }
 0x413   : > { %vm16445_vm9 = vmand %vm20090_vm11, %vm20089_vm2  ;;  %20094 = vst [vmem:[#allocation85_spill] sm:$0xff] %v16450_v25  ;;  %vm20096_vm2 = vcmp.lt.s32.totalorder %v16353_v62, 0  ;;  %v16512_v60 = vadd.s32 24, %v16453_v0  ;;  %v5603_v38 = vshrl.u32 %v16402_v13, 4  ;;  %v5571_v13 = vmul.u32 24, %v5570_v41 }
 0x414   : > { %v20092_v46 = vsel %vm16445_vm9, 4294967295, %v20091_v46  ;;  %20095 = vst [vmem:[#allocation86_spill] sm:$0xff] %v16453_v0  ;;  %vm16467_vm11 = vmand %vm20096_vm2, %vm5805_vm8  ;;  %v16515_v40 = vsub.s32 %v16248_v42, %v5560_v7  ;;  %v5593_v17 = vmul.u32 24, %v5592_v19  ;;  %v16531_v42 = vadd.s32 280, %v15706_v55 }
 0x415   : > { %20093 = vst [vmem:[#allocation84_spill] sm:$0xff] %v20092_v46  ;;  %v20098_v4 = vsel %vm16467_vm11, 4294967295, %v20097_v4  ;;  %v16475_v51 = vpop.f32.mrb[16].mxu1  ;;  %20101 = vst [vmem:[#allocation89_spill] sm:$0xff] %v16490_v61  ;;  %v16534_v7 = vadd.s32 24, %v16490_v61  ;;  %v5604_v41 = vmul.u32 24, %v5603_v38 }
 0x416   : > { %20099 = vst [vmem:[#allocation87_spill] sm:$0xff] %v20098_v4  ;;  %20100 = vst [vmem:[#allocation88_spill] sm:$0xff] %v16475_v51  ;;  %v16492_v23 = vpop.f32.mrb[17].mxu1  ;;  %v5538_v51 = vmul.u32 24, %v5537_v1  ;;  %v16518_v1 = vadd.s32 256, %v15706_v55  ;;  %v16552_v25 = vadd.s32 24, %v16515_v40 }
 0x417   : > { %20102 = vst [vmem:[#allocation90_spill] sm:$0xff] %v16492_v23  ;;  %v16503_v43 = vpop.f32.mrb[18].mxu1  ;;  %20104 = vst [vmem:[#allocation92_spill] sm:$0xff] %v16515_v40  ;;  %v5581_v23 = vshrl.u32 %v16416_v58, 4  ;;  %v16548_v58 = vadd.s32 304, %v15706_v55  ;;  %v16562_v35 = vadd.s32 288, %v15706_v55 }
 0x418   : > { %20103 = vst [vmem:[#allocation91_spill] sm:$0xff] %v16503_v43  ;;  %v16520_v31 = vpop.f32.mrb[19].mxu1  ;;  %v16524_v21 = vmul.u32.u64.low 2863311531, %v16473_v10  ;;  %v16525_v43 = vmul.u32.u64.high 2863311531, %v16473_v10, %v16524_v21  ;;  %20106 = vst [vmem:[#allocation94_spill] sm:$0xff] %v16534_v7  ;;  %v16537_v19 = vsub.s32 %v16272_v28, %v5538_v51  ;;  %v16555_v28 = vsub.s32 %v16289_v24, %v5593_v17 }
 0x419   : > { %20105 = vst [vmem:[#allocation93_spill] sm:$0xff] %v16520_v31  ;;  %v16540_v31 = vadd.s32 264, %v15706_v55  ;;  %v16544_v21 = vmul.u32.u64.low 2863311531, %v16518_v1  ;;  %v16545_v62 = vmul.u32.u64.high 2863311531, %v16518_v1, %v16544_v21  ;;  %20108 = vst [vmem:[#allocation96_spill] sm:$0xff] %v16552_v25  ;;  %v5582_v51 = vmul.u32 24, %v5581_v23 }
 0x41a   : > { %20107 = vst [vmem:[#allocation95_spill] sm:$0xff] %v16537_v19  ;;  %20109 = vst [vmem:[#allocation97_spill] sm:$0xff] %v16555_v28  ;;  %v16558_v4 = vmul.u32.u64.low 2863311531, %v16531_v42  ;;  %v16559_v44 = vmul.u32.u64.high 2863311531, %v16531_v42, %v16558_v4  ;;  %v16566_v21 = vsub.s32 %v16306_v54, %v5571_v13  ;;  %v16585_v54 = vadd.s32 24, %v16537_v19 }
 0x41b   : > { %v16569_v46 = vmul.u32.u64.low 2863311531, %v16540_v31  ;;  %v16570_v63 = vmul.u32.u64.high 2863311531, %v16540_v31, %v16569_v46  ;;  %v16576_v23 = vmul.u32.u64.low 2863311531, %v16548_v58  ;;  %v16577_v17 = vmul.u32.u64.high 2863311531, %v16548_v58, %v16576_v23 }
 0x41c   : > { %20110 = vst [vmem:[#allocation98_spill] sm:$0xff] %v16566_v21  ;;  %v16580_v4 = vadd.s32 312, %v15706_v55  ;;  %20113 = vst [vmem:[#allocation101_spill] sm:$0xff] %v16585_v54  ;;  %v16589_v46 = vsub.s32 %v16338_v8, %v5604_v41  ;;  %v5636_v13 = vshrl.u32 %v16525_v43, 4  ;;  %v16595_v49 = vsub.s32 %v16356_v34, %v5582_v51 }
 0x41d   : > { %v16572_v24 = vpop.f32.mrb[20].mxu1  ;;  %v16598_v23 = vmul.u32.u64.low 2863311531, %v16562_v35  ;;  %v16599_v2 = vmul.u32.u64.high 2863311531, %v16562_v35, %v16598_v23  ;;  %vm20118_vm11 = vcmp.ne.s32.totalorder %v16453_v0, 0  ;;  %vm20119_vm8 = vcmp.lt.s32.totalorder %v16453_v0, 0 }
 0x41e   : > { %20111 = vst [vmem:[#allocation99_spill] sm:$0xff] %v16572_v24  ;;  %v16582_v38 = vpop.f32.mrb[21].mxu1  ;;  %20114 = vst [vmem:[#allocation102_spill] sm:$0xff] %v16589_v46  ;;  %v20120_v8 = vmov 0  ;;  %v16616_v34 = vadd.s32 24, %v16555_v28  ;;  %v16620_v43 = vadd.s32 336, %v15706_v55 }
 0x41f   : > { %20112 = vst [vmem:[#allocation100_spill] sm:$0xff] %v16582_v38  ;;  %v16592_v24 = vpop.f32.mrb[22].mxu1  ;;  %20116 = vst [vmem:[#allocation104_spill] sm:$0xff] %v16595_v49  ;;  %v16602_v38 = vadd.s32 296, %v15706_v55  ;;  %vm20123_vm7 = vcmp.ne.s32.totalorder %v16490_v61, 0  ;;  %vm20124_vm4 = vcmp.lt.s32.totalorder %v16490_v61, 0 }
 0x420   : > { %20115 = vst [vmem:[#allocation103_spill] sm:$0xff] %v16592_v24  ;;  %v16604_v6 = vpop.f32.mrb[23].mxu1  ;;  %vm16610_vm2 = vmand %vm20119_vm8, %vm20118_vm11  ;;  %v20125_v41 = vmov 0  ;;  %v5614_v51 = vshrl.u32 %v16545_v62, 4  ;;  %vm20127_vm8 = vcmp.ne.s32.totalorder %v16515_v40, 0  ;;  %vm20128_vm1 = vcmp.lt.s32.totalorder %v16515_v40, 0 }
 0x421   : > { %20117 = vst [vmem:[#allocation105_spill] sm:$0xff] %v16604_v6  ;;  %v20121_v8 = vsel %vm16610_vm2, 4294967295, %v20120_v8  ;;  %20122 = vst [vmem:[#allocation106_spill] sm:$0xff] %v16616_v34  ;;  %v16633_v23 = vmul.u32.u64.low 2863311531, %v16580_v4  ;;  %v16634_v6 = vmul.u32.u64.high 2863311531, %v16580_v4, %v16633_v23  ;;  %v20129_v24 = vmov 0 }
 0x422   : > { %vm16626_vm0 = vmand %vm20124_vm4, %vm20123_vm7  ;;  %v16645_v18 = vadd.s32 24, %v16566_v21  ;;  %v5637_v62 = vmul.u32 24, %v5636_v13  ;;  %vm20132_vm11 = vcmp.ne.s32.totalorder %v16537_v19, 0  ;;  %vm20133_vm5 = vcmp.lt.s32.totalorder %v16537_v19, 0 }
 0x423   : > { %v20126_v41 = vsel %vm16626_vm0, 4294967295, %v20125_v41  ;;  %vm16640_vm9 = vmand %vm20128_vm1, %vm20127_vm8  ;;  %v20134_v23 = vmov 0  ;;  %v5647_v12 = vshrl.u32 %v16559_v44, 4  ;;  %vm20137_vm8 = vcmp.ne.s32.totalorder %v16555_v28, 0 }
 0x424   : > { %v20130_v24 = vsel %vm16640_vm9, 4294967295, %v20129_v24  ;;  %20131 = vst [vmem:[#allocation107_spill] sm:$0xff] %v16645_v18  ;;  %vm16653_vm14 = vmand %vm20133_vm5, %vm20132_vm11  ;;  %v16660_v45 = vmul.u32.u64.low 2863311531, %v16602_v38  ;;  %v16661_v27 = vmul.u32.u64.high 2863311531, %v16602_v38, %v16660_v45  ;;  %vm20138_vm7 = vcmp.lt.s32.totalorder %v16555_v28, 0 }
 0x425   : > { %v20135_v23 = vsel %vm16653_vm14, 4294967295, %v20134_v23  ;;  %vm16667_vm4 = vmand %vm20138_vm7, %vm20137_vm8  ;;  %v20139_v13 = vmov 0  ;;  %v5625_v37 = vshrl.u32 %v16570_v63, 4  ;;  %vm20142_vm11 = vcmp.ne.s32.totalorder %v16566_v21, 0 }
 0x426   : > { %20136 = vst [vmem:[#allocation108_spill] sm:$0xff] %v20135_v23  ;;  %v20140_v13 = vsel %vm16667_vm4, 4294967295, %v20139_v13  ;;  %v16674_v15 = vmul.u32.u64.low 2863311531, %v16620_v43  ;;  %v16675_v57 = vmul.u32.u64.high 2863311531, %v16620_v43, %v16674_v15  ;;  %vm20143_vm7 = vcmp.lt.s32.totalorder %v16566_v21, 0 }
 0x427   : > { %20141 = vst [vmem:[#allocation109_spill] sm:$0xff] %v20140_v13  ;;  %vm16685_vm8 = vmand %vm20143_vm7, %vm20142_vm11  ;;  %v20144_v45 = vmov 0  ;;  %v16690_v39 = vadd.s32 24, %v16589_v46  ;;  %v5615_v63 = vmul.u32 24, %v5614_v51  ;;  %v5680_v29 = vshrl.u32 %v16577_v17, 4 }
 0x428   : > { %v20145_v45 = vsel %vm16685_vm8, 4294967295, %v20144_v45  ;;  %vm20148_vm5 = vcmp.ne.s32.totalorder %v16589_v46, 0  ;;  %vm20149_vm1 = vcmp.lt.s32.totalorder %v16589_v46, 0  ;;  %v20150_v44 = vmov 0 }
 0x429   : > { %20146 = vst [vmem:[#allocation110_spill] sm:$0xff] %v20145_v45  ;;  %20147 = vst [vmem:[#allocation111_spill] sm:$0xff] %v16690_v39  ;;  %v16706_v0 = vadd.s32 24, %v16595_v49  ;;  %v16709_v51 = vsub.s32 %v16473_v10, %v5637_v62  ;;  %v5658_v17 = vshrl.u32 %v16599_v2, 4  ;;  %v20156_v7 = vmov 0 }
 0x42a   : > { %vm16701_vm2 = vmand %vm20149_vm1, %vm20148_vm5  ;;  %vm20154_vm1 = vcmp.ne.s32.totalorder %v16595_v49, 0  ;;  %vm20155_vm5 = vcmp.lt.s32.totalorder %v16595_v49, 0  ;;  %v5648_v10 = vmul.u32 24, %v5647_v12  ;;  %v16729_v2 = vadd.s32 320, %v15706_v55 }
 0x42b   : > { %v20151_v44 = vsel %vm16701_vm2, 4294967295, %v20150_v44  ;;  %20153 = vst [vmem:[#allocation113_spill] sm:$0xff] %v16706_v0  ;;  %vm16724_vm11 = vmand %vm20155_vm5, %vm20154_vm1  ;;  %v5626_v15 = vmul.u32 24, %v5625_v37  ;;  %v16740_v19 = vadd.s32 344, %v15706_v55  ;;  %v16747_v54 = vsub.s32 %v16518_v1, %v5615_v63 }
 0x42c   : > { %20152 = vst [vmem:[#allocation112_spill] sm:$0xff] %v20151_v44  ;;  %v20157_v7 = vsel %vm16724_vm11, 4294967295, %v20156_v7  ;;  %v5681_v23 = vmul.u32 24, %v5680_v29  ;;  %v5691_v62 = vshrl.u32 %v16634_v6, 4  ;;  %v5659_v37 = vmul.u32 24, %v5658_v17 }
 0x42d   : > { %20158 = vst [vmem:[#allocation114_spill] sm:$0xff] %v20157_v7  ;;  %v5669_v21 = vshrl.u32 %v16661_v27, 4  ;;  %v16757_v18 = vsub.s32 %v16531_v42, %v5648_v10  ;;  %v5724_v12 = vshrl.u32 %v16675_v57, 4  ;;  %v16766_v6 = vsub.s32 %v16540_v31, %v5626_v15 }
 0x42e   : > { %v16761_v1 = vmul.u32.u64.low 2863311531, %v16729_v2  ;;  %v16762_v29 = vmul.u32.u64.high 2863311531, %v16729_v2, %v16761_v1  ;;  %v16769_v63 = vmul.u32.u64.low 2863311531, %v16740_v19  ;;  %v16770_v61 = vmul.u32.u64.high 2863311531, %v16740_v19, %v16769_v63 }
 0x42f   : > { %v16773_v27 = vadd.s32 24, %v16709_v51  ;;  %v16777_v57 = vsub.s32 %v16548_v58, %v5681_v23  ;;  %v5692_v42 = vmul.u32 24, %v5691_v62  ;;  %v16781_v17 = vsub.s32 %v16562_v35, %v5659_v37 }
 0x430   : > { %v5670_v31 = vmul.u32 24, %v5669_v21  ;;  %v16784_v15 = vadd.s32 328, %v15706_v55  ;;  %v16787_v10 = vadd.s32 24, %v16747_v54  ;;  %v5725_v1 = vmul.u32 24, %v5724_v12 }
 0x431   : > { %20159 = vst [vmem:[#allocation115_spill] sm:$0xff] %v16781_v17  ;;  %v5702_v58 = vshrl.u32 %v16762_v29, 4  ;;  %v16795_v35 = vadd.s32 368, %v15706_v55  ;;  %v16800_v21 = vsub.s32 %v16580_v4, %v5692_v42  ;;  %v16803_v23 = vadd.s32 352, %v15706_v55 }
 0x432   : > { %vm20161_vm5 = vcmp.ne.s32.totalorder %v16709_v51, 0  ;;  %vm20162_vm11 = vcmp.lt.s32.totalorder %v16709_v51, 0  ;;  %v16815_v12 = vsub.s32 %v16602_v38, %v5670_v31  ;;  %vm20166_vm8 = vcmp.ne.s32.totalorder %v16747_v54, 0 }
 0x433   : > { %20160 = vst [vmem:[#allocation116_spill] sm:$0xff] %v16800_v21  ;;  %vm16809_vm2 = vmand %vm20162_vm11, %vm20161_vm5  ;;  %v16818_v37 = vmul.u32.u64.low 2863311531, %v16784_v15  ;;  %v16819_v4 = vmul.u32.u64.high 2863311531, %v16784_v15, %v16818_v37  ;;  %vm20167_vm7 = vcmp.lt.s32.totalorder %v16747_v54, 0  ;;  %v16830_v63 = vsub.s32 %v16620_v43, %v5725_v1  ;;  %v12946_v45 = vpop.f32.mrb[24].mxu1 }
 0x434   : > { %20165 = vst [vmem:[#allocation117_spill] sm:$0xff] %v16815_v12  ;;  %vm16825_vm4 = vmand %vm20167_vm7, %vm20166_vm8  ;;  %v5735_v42 = vshrl.u32 %v16770_v61, 4  ;;  %v16834_v38 = vmul.u32.u64.low 2863311531, %v16795_v35  ;;  %v16835_v31 = vmul.u32.u64.high 2863311531, %v16795_v35, %v16834_v38  ;;  %vm20171_vm11 = vcmp.ne.s32.totalorder %v16757_v18, 0 }
 0x435   : > { %20170 = vst [vmem:[#allocation118_spill] sm:$0xff] %v16830_v63  ;;  %vm20172_vm5 = vcmp.lt.s32.totalorder %v16757_v18, 0  ;;  %v20173_v37 = vmov 0  ;;  %v5703_v49 = vmul.u32 24, %v5702_v58  ;;  %v16851_v61 = vadd.s32 24, %v16757_v18 }
 0x436   : > { %vm16841_vm1 = vmand %vm20172_vm5, %vm20171_vm11  ;;  %v16847_v43 = vmul.u32.u64.low 2863311531, %v16803_v23  ;;  %v16848_v1 = vmul.u32.u64.high 2863311531, %v16803_v23, %v16847_v43  ;;  %vm20175_vm7 = vcmp.ne.s32.totalorder %v16766_v6, 0  ;;  %vm20176_vm14 = vcmp.lt.s32.totalorder %v16766_v6, 0 }
 0x437   : > { %v20174_v37 = vsel %vm16841_vm1, 4294967295, %v20173_v37  ;;  %vm16857_vm9 = vmand %vm20176_vm14, %vm20175_vm7  ;;  %v20177_v38 = vmov 0  ;;  %v16864_v58 = vadd.s32 376, %v15706_v55  ;;  %v16867_v43 = vadd.s32 24, %v16766_v6 }
 0x438   : > { %v20178_v38 = vsel %vm16857_vm9, 4294967295, %v20177_v38  ;;  %vm20179_vm8 = vcmp.ne.s32.totalorder %v16777_v57, 0  ;;  %vm20180_vm0 = vcmp.lt.s32.totalorder %v16777_v57, 0  ;;  %v20181_v0 = vmov 0 }
 0x439   : > { %vm16873_vm10 = vmand %vm20180_vm0, %vm20179_vm8  ;;  %vm5821_vm14 = vcmp.ne.s32.totalorder %v16815_v12, 0  ;;  %vm5869_vm7 = vcmp.lt.s32.totalorder %v16815_v12, 0  ;;  %v5713_v7 = vshrl.u32 %v16819_v4, 4  ;;  %vm20183_vm5 = vcmp.ne.s32.totalorder %v16781_v17, 0 }
 0x43a   : > { %v20182_v0 = vsel %vm16873_vm10, 4294967295, %v20181_v0  ;;  %vm20184_vm11 = vcmp.lt.s32.totalorder %v16781_v17, 0  ;;  %v20185_v46 = vmov 0  ;;  %vm5826_vm9 = vcmp.ne.s32.totalorder %v16830_v63, 0 }
 0x43b   : > { %vm16884_vm6 = vmand %vm20184_vm11, %vm20183_vm5  ;;  %v5736_v39 = vmul.u32 24, %v5735_v42  ;;  %v5768_v44 = vshrl.u32 %v16835_v31, 4  ;;  %v16892_v28 = vadd.s32 24, %v16777_v57  ;;  %v16895_v4 = vadd.s32 24, %v16781_v17  ;;  %v20285_v17 = vld [vmem:[#allocation41_spill] sm:$0xff] }
 0x43c   : > { %v20186_v46 = vsel %vm16884_vm6, 4294967295, %v20185_v46  ;;  %vm20189_vm8 = vcmp.ne.s32.totalorder %v16800_v21, 0  ;;  %vm20190_vm11 = vcmp.lt.s32.totalorder %v16800_v21, 0  ;;  %v20191_v34 = vmov 0 }
 0x43d   : > { %20187 = vst [vmem:[#allocation119_spill] sm:$0xff] %v20186_v46  ;;  %20188 = vst [vmem:[#allocation120_spill] sm:$0xff] %v16895_v4  ;;  %v16906_v13 = vadd.s32 24, %v16800_v21  ;;  %v16909_v42 = vsub.s32 %v16729_v2, %v5703_v49  ;;  %v20196_v45 = vsel %vm15862_vm12, %v15787_v20, %v15767_v48  ;;  %v20199_v40 = vsel %vm15892_vm15, %v15812_v56, %v15774_v36  ;;  %v20255_v2 = vld [vmem:[#allocation28_spill] sm:$0xff] }
 0x43e   : > { %vm16901_vm5 = vmand %vm20190_vm11, %vm20189_vm8  ;;  %vm16916_vm0 = vcmp.lt.s32.totalorder %v20196_v45, 16  ;;  %vm16925_vm8 = vcmp.lt.s32.totalorder %v20199_v40, 16  ;;  %v16938_v48 = vadd.s32 24, %v16815_v12  ;;  %v16941_v20 = vadd.s32 24, %v16830_v63 }
 0x43f   : > { %v20192_v34 = vsel %vm16901_vm5, 4294967295, %v20191_v34  ;;  %20194 = vst [vmem:[#allocation122_spill] sm:$0xff] %v16906_v13  ;;  %20195 = vst [vmem:[#allocation123_spill] sm:$0xff] %v16909_v42  ;;  %v16944_v36 = vmul.u32.u64.low 2863311531, %v16864_v58  ;;  %v16945_v56 = vmul.u32.u64.high 2863311531, %v16864_v58, %v16944_v36  ;;  %v20207_v40 = vsel %vm15880_vm13, %v15795_v22, %v15771_v14 }
 0x440   : > { %20193 = vst [vmem:[#allocation121_spill] sm:$0xff] %v20192_v34  ;;  %vm16933_vm11 = vmand %vm5869_vm7, %vm5821_vm14  ;;  %vm16952_vm12 = vcmp.lt.s32.totalorder %v20207_v40, 16  ;;  %v20210_v49 = vsel %vm15906_vm3, %v15897_v3, %v15815_v30  ;;  %vm20213_vm13 = vcmp.lt.s32.totalorder %v16830_v63, 0  ;;  %v20214_v22 = vmov 0 }
 0x441   : > { %v20203_v59 = vsel %vm16933_vm11, 4294967295, %v20202_v59  ;;  %20205 = vst [vmem:[#allocation125_spill] sm:$0xff] %v16938_v48  ;;  %20206 = vst [vmem:[#allocation126_spill] sm:$0xff] %v16941_v20  ;;  %vm16961_vm15 = vcmp.lt.s32.totalorder %v20210_v49, 16  ;;  %v5714_v30 = vmul.u32 24, %v5713_v7  ;;  %v5746_v3 = vshrl.u32 %v16848_v1, 4 }
 0x442   : > { %20204 = vst [vmem:[#allocation124_spill] sm:$0xff] %v20203_v59  ;;  %vm16977_vm14 = vmand %vm20213_vm13, %vm5826_vm9  ;;  %v16996_v40 = vsub.s32 %v16740_v19, %v5736_v39  ;;  %v5769_v7 = vmul.u32 24, %v5768_v44  ;;  %vm5824_vm9 = vcmp.ne.s32.totalorder %v16909_v42, 0  ;;  %vm5872_vm7 = vcmp.lt.s32.totalorder %v16909_v42, 0 }
 0x443   : > { %v20215_v22 = vsel %vm16977_vm14, 4294967295, %v20214_v22  ;;  %v17005_v49 = vadd.s32 360, %v15706_v55  ;;  %v17025_v39 = vadd.s32 24, %v16909_v42  ;;  %v17028_v14 = vsub.s32 %v16784_v15, %v5714_v30  ;;  %vm17035_vm13 = vmand %vm5872_vm7, %vm5824_vm9 }
 0x444   : > { %20216 = vst [vmem:[#allocation127_spill] sm:$0xff] %v20215_v22  ;;  %v5747_v19 = vmul.u32 24, %v5746_v3  ;;  %v20219_v44 = vmov 0  ;;  %vm20223_vm9 = vnez %v19968_v5  ;;  %vm20227_vm11 = vnez %v19973_v47 }
 0x445   : > { %20218 = vst [vmem:[#allocation128_spill] sm:$0xff] %v17025_v39  ;;  %v20220_v44 = vsel %vm17035_vm13, 4294967295, %v20219_v44  ;;  %v20224_v22 = vsel %vm20223_vm9, %v15911_v26, %v15819_v50  ;;  %v5779_v5 = vshrl.u32 %v16945_v56, 4  ;;  %v20232_v50 = vld [vmem:[#allocation22_spill] sm:$0xff]  ;;  %v20234_v26 = vld [vmem:[#allocation21_spill] sm:$0xff] }
 0x446   : > { %20221 = vst [vmem:[#allocation129_spill] sm:$0xff] %v20220_v44  ;;  %vm17056_vm7 = vcmp.lt.s32.totalorder %v20224_v22, 16  ;;  %vm20233_vm9 = vnez %v20232_v50  ;;  %v20235_v22 = vld [vmem:[#allocation18_spill] sm:$0xff] }
 0x44e   : > { %v12882_v45 = vpop.f32.mrb[0].mxu0 }
 0x44f   : > { %v5113_v1 = vadd.f32 %v12882_v45, %v16985_v16  ;;  %v4865_v36 = vpop.f32.mrb[1].mxu0  ;;  %v17042_v45 = vsub.s32 %v16795_v35, %v5769_v7 }
 0x450   : > { %v5111_v9 = vadd.f32 %v16985_v16, %v4865_v36  ;;  %v12883_v21 = vpop.f32.mrb[2].mxu0  ;;  %v17046_v36 = vmul.u32.u64.low 2863311531, %v17005_v49  ;;  %v17047_v55 = vmul.u32.u64.high 2863311531, %v17005_v49, %v17046_v36 }
 0x451   : > { %20222 = vst [vmem:[#allocation130_spill] sm:$0xff] %v17042_v45  ;;  %v5161_v15 = vmax.f32 %v5113_v1, 0.0  ;;  %v5114_v30 = vadd.f32 %v12883_v21, %v16985_v16  ;;  %v4868_v3 = vpop.f32.mrb[3].mxu0  ;;  %v20228_v21 = vld [vmem:[#allocation19_spill] sm:$0xff]  ;;  %v20236_v36 = vsel %vm20233_vm9, %v20234_v26, %v20235_v22  ;;  %vm5825_vm9 = vcmp.ne.s32.totalorder %v17028_v14, 0  ;;  %v20299_v1 = vld [vmem:[#allocation20_spill] sm:$0xff] }
 0x452   : > { %v5159_v63 = vmax.f32 %v5111_v9, 0.0  ;;  %v5112_v20 = vadd.f32 %v16985_v16, %v4868_v3  ;;  %v20229_v7 = vsel %vm20227_vm11, %v15954_v33, %v20228_v21  ;;  %v17070_v9 = vadd.s32 24, %v16996_v40  ;;  %v20239_v33 = vld [vmem:[#allocation36_spill] sm:$0xff]  ;;  %v20241_v21 = vld [vmem:[#allocation26_spill] sm:$0xff] }
 0x453   : > { %vm17065_vm14 = vcmp.lt.s32.totalorder %v20229_v7, 16  ;;  %v5162_v3 = vmax.f32 %v5114_v30, 0.0  ;;  %vm17078_vm5 = vcmp.lt.s32.totalorder %v20236_v36, 16  ;;  %vm20240_vm11 = vnez %v20239_v33  ;;  %v20242_v7 = vld [vmem:[#allocation23_spill] sm:$0xff] }
 0x454   : > { %v20243_v12 = vsel %vm20240_vm11, %v20241_v21, %v20242_v7  ;;  %v17097_v30 = vsub.s32 %v16803_v23, %v5747_v19  ;;  %v5160_v50 = vmax.f32 %v5112_v20, 0.0  ;;  %v17101_v26 = vadd.s32 24, %v17028_v14 }
 0x455   : > { %vm17087_vm6 = vcmp.lt.s32.totalorder %v20243_v12, 16  ;;  %v6170_v12 = vsel %vm16916_vm0, %v5161_v15, 0.0  ;;  %v6171_v22 = vsel %vm16925_vm8, %v5162_v3, 0.0  ;;  %v17110_v36 = vadd.s32 24, %v17042_v45 }
 0x456   : > { %20246 = vst [vmem:[#allocation19_spill] sm:$0xff] %v17097_v30  ;;  %v6168_v23 = vsel %vm16952_vm12, %v5159_v63, 0.0  ;;  %v17114_v20 = vpack.c.bf16 %v6171_v22, %v6170_v12  ;;  %v6169_v19 = vsel %vm16961_vm15, %v5160_v50, 0.0  ;;  %v12886_v33 = vpop.f32.mrb[4].mxu0  ;;  %v5780_v21 = vmul.u32 24, %v5779_v5  ;;  %v20256_v5 = vld [vmem:[#allocation24_spill] sm:$0xff] }
 0x457   : > { %20247 = vst [vmem:[#allocation22_spill] sm:$0xff] %v17110_v36  ;;  %v17118_v31 = vpack.c.bf16 %v6169_v19, %v6168_v23  ;;  %v5117_v25 = vadd.f32 %v12886_v33, %v16985_v16  ;;  %v4881_v15 = vpop.f32.mrb[5].mxu0  ;;  %vm20250_vm0 = vcmp.ne.s32.totalorder %v16996_v40, 0  ;;  %vm20251_vm8 = vcmp.lt.s32.totalorder %v16996_v40, 0  ;;  %v17292_v50 = vpop.f32.mrb[25].mxu1 }
 0x458   : > { %20248 = vst [vmem:[#allocation21_spill] sm:$0xff] %v17114_v20  ;;  %vm17125_vm13 = vmand %vm20251_vm8, %vm20250_vm0  ;;  %v5115_v63 = vadd.f32 %v16985_v16, %v4881_v15  ;;  %v12887_v11 = vpop.f32.mrb[6].mxu0  ;;  %vm20254_vm15 = vnez %v19993_v53  ;;  %vm20260_vm0 = vcmp.lt.s32.totalorder %v17028_v14, 0  ;;  %v17153_v53 = vadd.s32 24, %v17097_v30 }
 0x459   : > { %20249 = vst [vmem:[#allocation18_spill] sm:$0xff] %v17118_v31  ;;  %6247 = vst [vmem:[#allocation2 + $0x20] sm:$0xff] %v17114_v20  ;;  %v20257_v7 = vsel %vm20254_vm15, %v20255_v2, %v20256_v5  ;;  %v5165_v19 = vmax.f32 %v5117_v25, 0.0  ;;  %v5118_v33 = vadd.f32 %v12887_v11, %v16985_v16  ;;  %v4884_v15 = vpop.f32.mrb[7].mxu0  ;;  %v20264_v2 = vld [vmem:[#allocation39_spill] sm:$0xff]  ;;  %v20273_v25 = vmov 0 }
 0x45a   : > { %vm17138_vm10 = vcmp.lt.s32.totalorder %v20257_v7, 16  ;;  %vm17148_vm8 = vmand %vm20260_vm0, %vm5825_vm9  ;;  %20263 = vst [vmem:[#allocation36_spill] sm:$0xff] %v17153_v53  ;;  %vm20265_vm15 = vnez %v20264_v2  ;;  %v20266_v5 = vld [vmem:[#allocation31_spill] sm:$0xff]  ;;  %v20267_v7 = vld [vmem:[#allocation25_spill] sm:$0xff]  ;;  %vm20271_vm9 = vcmp.ne.s32.totalorder %v17042_v45, 0  ;;  %vm20272_vm0 = vcmp.lt.s32.totalorder %v17042_v45, 0 }
 0x45b   : > { %6246 = vst [vmem:[#allocation2 + $0x18] sm:$0xff] %v17118_v31  ;;  %v20268_v56 = vsel %vm20265_vm15, %v20266_v5, %v20267_v7  ;;  %vm17172_vm12 = vmand %vm20272_vm0, %vm20271_vm9  ;;  %v5163_v11 = vmax.f32 %v5115_v63, 0.0  ;;  %v5116_v2 = vadd.f32 %v16985_v16, %v4884_v15  ;;  %v20276_v5 = vld [vmem:[#allocation40_spill] sm:$0xff]  ;;  %v20279_v7 = vld [vmem:[#allocation27_spill] sm:$0xff]  ;;  %v20283_v42 = vshrl.u32 %v17114_v20, 16 }
 0x45c   : > { %vm17162_vm11 = vcmp.lt.s32.totalorder %v20268_v56, 16  ;;  %v20274_v25 = vsel %vm17172_vm12, 4294967295, %v20273_v25  ;;  %vm20277_vm15 = vnez %v20276_v5  ;;  %v20278_v56 = vld [vmem:[#allocation37_spill] sm:$0xff]  ;;  %v20284_v59 = vshll.u32 %v17114_v20, 16  ;;  %v20287_v63 = vld [vmem:[#allocation42_spill] sm:$0xff]  ;;  %v20316_v53 = vld [vmem:[#allocation68_spill] sm:$0xff] }
 0x45d   : > { %20275 = vst [vmem:[#allocation26_spill] sm:$0xff] %v20274_v25  ;;  %v20280_v39 = vsel %vm20277_vm15, %v20278_v56, %v20279_v7  ;;  %v7013_v44 = vrot.slane %v20283_v42, 3  ;;  %v5166_v34 = vmax.f32 %v5118_v33, 0.0  ;;  %vm20286_vm9 = vnez %v20285_v17  ;;  %v20288_v15 = vld [vmem:[#allocation29_spill] sm:$0xff]  ;;  %v20309_v20 = vld [vmem:[#allocation46_spill] sm:$0xff]  ;;  %20329 = vst [vmem:[#allocation28_spill] sm:$0xff] %v17292_v50 }
 0x45e   : > { %vm17182_vm3 = vcmp.lt.s32.totalorder %v20280_v39, 16  ;;  %v7016_v13 = vrot.slane %v20284_v59, 4  ;;  %v20289_v4 = vsel %vm20286_vm9, %v20287_v63, %v20288_v15  ;;  %v20292_v39 = vshrl.u32 %v17118_v31, 16  ;;  %v12890_v42 = vpop.f32.mrb[8].mxu0  ;;  %v14397_v63 = vld [vmem:[#allocation8 + $0x48] sm:$0xff]  }
 0x45f   : > { %vm17195_vm0 = vcmp.lt.s32.totalorder %v20289_v4, 16  ;;  %v20293_v7 = vshll.u32 %v17118_v31, 16  ;;  %vm20294_vm15 = vcmp.ne.s32.totalorder %v17097_v30, 0  ;;  %vm20295_vm1 = vcmp.lt.s32.totalorder %v17097_v30, 0  ;;  %v20312_v31 = vld [vmem:[#allocation34_spill] sm:$0xff] }
 0x460   : > { %v7004_v56 = vrot.slane %v20292_v39, 3  ;;  %vm17211_vm9 = vmand %vm20295_vm1, %vm20294_vm15  ;;  %v20296_v17 = vmov 0  ;;  %v5164_v4 = vmax.f32 %v5116_v2, 0.0  ;;  %v17215_v59 = vor.u32 %v7016_v13, %v7013_v44 }
 0x461   : > { %v7007_v46 = vrot.slane %v20293_v7, 4  ;;  %v20297_v17 = vsel %vm17211_vm9, 4294967295, %v20296_v17  ;;  %v6174_v15 = vsel %vm17056_vm7, %v5165_v19, 0.0  ;;  %v6175_v39 = vsel %vm17065_vm14, %v5166_v34, 0.0  ;;  %v10356_v19 = vld [vmem:[#allocation2 + $0x20] sm:$0xf0] }
 0x462   : > { %20298 = vst [vmem:[#allocation23_spill] sm:$0xff] %v20297_v17  ;;  %v17230_v13 = vsub.s32 %v16864_v58, %v5780_v21  ;;  %v6172_v44 = vsel %vm17078_vm5, %v5163_v11, 0.0  ;;  %v17234_v2 = vpack.c.bf16 %v6175_v39, %v6174_v15  ;;  %v6173_v33 = vsel %vm17087_vm6, %v5164_v4, 0.0  ;;  %v4897_v58 = vpop.f32.mrb[9].mxu0  ;;  %v20304_v4 = vld [vmem:[#allocation44_spill] sm:$0xff]  ;;  %v20319_v17 = vld [vmem:[#allocation47_spill] sm:$0xff] }
 0x463   : > { %v7008_v7 = vor.u32 %v7007_v46, %v7004_v56  ;;  %v6218_v34 = vpack.c.bf16 %v6173_v33, %v6172_v44  ;;  %v5121_v46 = vadd.f32 %v12890_v42, %v16985_v16  ;;  %vm20300_vm1 = vsmask.f32 4352  ;;  %v12891_v11 = vpop.f32.mrb[10].mxu0  ;;  %v20302_v56 = vld [vmem:[#allocation43_spill] sm:$0xff]  ;;  %v20305_v15 = vld [vmem:[#allocation32_spill] sm:$0xff] }
 0x464   : > { %vm20301_vm5 = vmmov %vm20300_vm1  ;;  %6249 = vst [vmem:[#allocation2 + $0x30] sm:$0xff] %v17234_v2  ;;  %v5119_v48 = vadd.f32 %v16985_v16, %v4897_v58  ;;  %vm20303_vm6 = vnez %v20302_v56  ;;  %v10780_v39 = vshrl.u32 %v10356_v19, 16  ;;  %v10783_v44 = vshll.u32 %v10356_v19, 16  ;;  %v4900_v35 = vpop.f32.mrb[11].mxu0  ;;  %v20311_v56 = vld [vmem:[#allocation45_spill] sm:$0xff] }
 0x465   : > { %v7009_v47 = vsel %vm20300_vm1, %v20299_v1, %v7008_v7  ;;  %v7018_v21 = vsel %vm20301_vm5, %v7008_v7, %v17215_v59  ;;  %v20306_v33 = vsel %vm20303_vm6, %v20304_v4, %v20305_v15  ;;  %v7029_v7 = vshrl.u32 %v17234_v2, 16  ;;  %6248 = vst [vmem:[#allocation2 + $0x28] sm:$0xff] %v6218_v34 }
 0x466   : > { %vm17254_vm14 = vcmp.lt.s32.totalorder %v20306_v33, 16  ;;  %13009 = vmatmul.mubr.bf16.vlgmr.msra.gmra.mrb[72].mxu1 %v7009_v47  ;;  %v5169_v1 = vmax.f32 %v5121_v46, 0.0  ;;  %v5122_v58 = vadd.f32 %v12891_v11, %v16985_v16  ;;  %vm20310_vm15 = vnez %v20309_v20  ;;  %v14478_v47 = vld [vmem:[#allocation8 + $0x40] sm:$0xff]   ;;  %v20318_v11 = vld [vmem:[#allocation54_spill] sm:$0xff]  ;;  %v12894_v22 = vpop.f32.mrb[12].mxu0 }
 0x467   : > { %v20313_v4 = vsel %vm20310_vm15, %v20311_v56, %v20312_v31  ;;  %13012 = vmatprep.mubr.bf16.mxu1 %v7018_v21  ;;  %13057 = vmatpush3.bf16.msra.mxu1 %v14478_v47  ;;  %v7020_v19 = vshrl.u32 %v6218_v34, 16  ;;  %v7023_v33 = vshll.u32 %v6218_v34, 16  ;;  %v5167_v30 = vmax.f32 %v5119_v48, 0.0  ;;  %v14398_v21 = vld [vmem:[#allocation8 + $0x50] sm:$0xff]   ;;  %v20325_v48 = vld [vmem:[#allocation49_spill] sm:$0xff]  ;;  %v20369_v47 = vld [vmem:[#allocation80_spill] sm:$0xff] }
 0x468   : > { %vm17265_vm1 = vcmp.lt.s32.totalorder %v20313_v4, 16  ;;  %v5120_v46 = vadd.f32 %v16985_v16, %v4900_v35  ;;  %vm20317_vm5 = vnez %v20316_v53  ;;  %v10782_v31 = vrot.slane %v10780_v39, 4  ;;  %13058 = vmatprep.subr.bf16.mxu1 %v14397_v63  ;;  %v20324_v35 = vld [vmem:[#allocation55_spill] sm:$0xff] }
 0x469   : > { %v20320_v20 = vsel %vm20317_vm5, %v20318_v11, %v20319_v17  ;;  %v10785_v56 = vrot.slane %v10783_v44, 5  ;;  %v6178_v4 = vsel %vm17138_vm10, %v5169_v1, 0.0  ;;  %v5170_v34 = vmax.f32 %v5122_v58, 0.0 }
 0x46a   : > { %vm17275_vm6 = vcmp.lt.s32.totalorder %v20320_v20, 16  ;;  %vm20323_vm15 = vnez %v20051_v52  ;;  %v7022_v17 = vrot.slane %v7020_v19, 3  ;;  %v7025_v11 = vrot.slane %v7023_v33, 4 }
 0x46b   : > { %v20326_v53 = vsel %vm20323_vm15, %v20324_v35, %v20325_v48  ;;  %v6176_v39 = vsel %vm17162_vm11, %v5167_v30, 0.0  ;;  %v5168_v44 = vmax.f32 %v5120_v46, 0.0  ;;  %v10786_v20 = vor.u32 %v10785_v56, %v10782_v31  ;;  %13059 = vmatpush3.bf16.msra.mxu1 %v14397_v63  ;;  %v17298_v48 = vpop.f32.mrb[26].mxu1  ;;  %v14399_v31 = vld [vmem:[#allocation8 + $0x58] sm:$0xff]  }
 0x46c   : > { %vm17286_vm7 = vcmp.lt.s32.totalorder %v20326_v53, 16  ;;  %v10787_v36 = vrot.slane %v7020_v19, 4  ;;  %v6179_v52 = vsel %vm17182_vm3, %v5170_v34, 0.0  ;;  %v17296_v1 = vor.u32 %v7025_v11, %v7022_v17  ;;  %20331 = vst [vmem:[#allocation39_spill] sm:$0xff] %v17298_v48  ;;  %13060 = vmatprep.subr.bf16.mxu1 %v14398_v21  ;;  %v17305_v12 = vpop.f32.mrb[27].mxu1  ;;  %v4913_v34 = vpop.f32.mrb[13].mxu0 }
 0x46d   : > { %v10788_v58 = vrot.slane %v7023_v33, 5  ;;  %v7031_v35 = vrot.slane %v7029_v7, 3  ;;  %v17300_v53 = vpack.c.bf16 %v6179_v52, %v6178_v4  ;;  %v6177_v30 = vsel %vm17195_vm0, %v5168_v44, 0.0  ;;  %20332 = vst [vmem:[#allocation31_spill] sm:$0xff] %v17305_v12  ;;  %v20337_v17 = vld [vmem:[#allocation53_spill] sm:$0xff] }
 0x46e   : > { %20330 = vst [vmem:[#allocation24_spill] sm:$0xff] %v17296_v1  ;;  %v7032_v19 = vshll.u32 %v17234_v2, 16  ;;  %v10791_v46 = vrot.slane %v7029_v7, 4  ;;  %v6220_v56 = vpack.c.bf16 %v6177_v30, %v6176_v39  ;;  %v5125_v33 = vadd.f32 %v12894_v22, %v16985_v16  ;;  %v12895_v2 = vpop.f32.mrb[14].mxu0  ;;  %v20336_v7 = vld [vmem:[#allocation61_spill] sm:$0xff]  ;;  %v20341_v22 = vld [vmem:[#allocation74_spill] sm:$0xff] }
 0x46f   : > { %vm20333_vm10 = vsmask.f32 4352  ;;  %v17311_v4 = vor.u32 %v10788_v58, %v10787_v36  ;;  %6251 = vst [vmem:[#allocation2 + $0x40] sm:$0xff] %v17300_v53  ;;  %v5123_v5 = vadd.f32 %v16985_v16, %v4913_v34  ;;  %vm20335_vm3 = vnez %v20056_v32  ;;  %v4916_v30 = vpop.f32.mrb[15].mxu0  ;;  %v20343_v32 = vld [vmem:[#allocation64_spill] sm:$0xff]  ;;  %13061 = vmatpush3.bf16.msra.mxu1 %v14398_v21  ;;  %v20352_v48 = vld [vmem:[#allocation57_spill] sm:$0xff] }
 0x470   : > { %v7027_v63 = vsel %vm20333_vm10, %v17215_v59, %v17296_v1  ;;  %v20338_v11 = vsel %vm20335_vm3, %v20336_v7, %v20337_v17  ;;  %v7034_v44 = vrot.slane %v7032_v19, 4  ;;  %v10792_v52 = vrot.slane %v7032_v19, 5  ;;  %6250 = vst [vmem:[#allocation2 + $0x38] sm:$0xff] %v6220_v56  ;;  %v20344_v34 = vld [vmem:[#allocation56_spill] sm:$0xff]  ;;  %13062 = vmatprep.subr.bf16.mxu1 %v14399_v31 }
 0x471   : > { %20334 = vst [vmem:[#allocation25_spill] sm:$0xff] %v17311_v4  ;;  %vm17320_vm11 = vcmp.lt.s32.totalorder %v20338_v11, 16  ;;  %13013 = vmatmul.mubr.bf16.gmra.mrb[76].mxu1 %v7027_v63  ;;  %v7047_v36 = vshrl.u32 %v17300_v53, 16  ;;  %v5173_v59 = vmax.f32 %v5125_v33, 0.0  ;;  %v5126_v58 = vadd.f32 %v12895_v2, %v16985_v16  ;;  %v20349_v11 = vld [vmem:[#allocation77_spill] sm:$0xff] }
 0x472   : > { %vm20342_vm0 = vnez %v20341_v22  ;;  %vm20348_vm15 = vsmask.f32 3328  ;;  %v7038_v19 = vshrl.u32 %v6220_v56, 16  ;;  %v5171_v17 = vmax.f32 %v5123_v5, 0.0  ;;  %v20351_v2 = vld [vmem:[#allocation65_spill] sm:$0xff]  ;;  %v20356_v5 = vld [vmem:[#allocation79_spill] sm:$0xff] }
 0x473   : > { %v20345_v12 = vsel %vm20342_vm0, %v20343_v32, %v20344_v34  ;;  %v10790_v63 = vsel %vm20348_vm15, %v10786_v20, %v17311_v4  ;;  %v5124_v33 = vadd.f32 %v16985_v16, %v4916_v30  ;;  %vm20350_vm10 = vnez %v20349_v11  ;;  %v20358_v30 = vld [vmem:[#allocation69_spill] sm:$0xff]  ;;  %v20359_v34 = vld [vmem:[#allocation59_spill] sm:$0xff]  ;;  %13063 = vmatpush3.bf16.msra.mxu1 %v14399_v31 }
 0x474   : > { %vm17331_vm5 = vcmp.lt.s32.totalorder %v20345_v12, 16  ;;  %v20353_v22 = vsel %vm20350_vm10, %v20351_v2, %v20352_v48  ;;  %13520 = vmatprep.mubr.bf16.mxu0 %v10790_v63  ;;  %v7035_v12 = vor.u32 %v7034_v44, %v7031_v35  ;;  %v10793_v32 = vor.u32 %v10792_v52, %v10791_v46  ;;  %v17358_v63 = vpop.f32.mrb[28].mxu1 }
 0x475   : > { %vm17343_vm3 = vcmp.lt.s32.totalorder %v20353_v22, 16  ;;  %v6182_v20 = vsel %vm17254_vm14, %v5173_v59, 0.0  ;;  %v5174_v21 = vmax.f32 %v5126_v58, 0.0  ;;  %vm20357_vm0 = vnez %v20356_v5  ;;  %v14400_v22 = vld [vmem:[#allocation8 + $0x60] sm:$0xff]   ;;  %v17370_v52 = vpop.f32.mrb[29].mxu1 }
 0x476   : > { %v20360_v11 = vsel %vm20357_vm0, %v20358_v30, %v20359_v34  ;;  %v7040_v48 = vrot.slane %v7038_v19, 3  ;;  %v7041_v2 = vshll.u32 %v6220_v56, 16  ;;  %v6180_v35 = vsel %vm17265_vm1, %v5171_v17, 0.0  ;;  %20367 = vst [vmem:[#allocation27_spill] sm:$0xff] %v17370_v52  ;;  %v17376_v17 = vpop.f32.mrb[30].mxu1  ;;  %v12898_v30 = vpop.f32.mrb[16].mxu0  ;;  %13064 = vmatprep.subr.bf16.mxu1 %v14400_v22 }
 0x477   : > { %vm17354_vm15 = vcmp.lt.s32.totalorder %v20360_v11, 16  ;;  %v5172_v42 = vmax.f32 %v5124_v33, 0.0  ;;  %vm20363_vm14 = vsmask.f32 4352  ;;  %vm20365_vm10 = vsmask.f32 3328  ;;  %13065 = vmatpush3.bf16.msra.mxu1 %v14400_v22 }
 0x478   : > { %v17364_v46 = vsel %vm20363_vm14, %v17296_v1, %v7035_v12  ;;  %v17368_v44 = vsel %vm20365_vm10, %v17311_v4, %v10793_v32  ;;  %v6183_v56 = vsel %vm17275_vm6, %v5174_v21, 0.0  ;;  %v7043_v15 = vrot.slane %v7041_v2, 4  ;;  %20368 = vst [vmem:[#allocation41_spill] sm:$0xff] %v17376_v17  ;;  %v6785_v45 = vpop.f32.mrb[31].mxu1  ;;  %v4929_v1 = vpop.f32.mrb[17].mxu0 }
 0x479   : > { %20364 = vst [vmem:[#allocation40_spill] sm:$0xff] %v17364_v46  ;;  %20366 = vst [vmem:[#allocation37_spill] sm:$0xff] %v17368_v44  ;;  %13016 = vmatprep.mubr.bf16.mxu1 %v17364_v46  ;;  %13521 = vmatmul.mubr.bf16.vlgmr.msra.gmra.mrb[48].mxu0 %v17368_v44  ;;  %v10795_v59 = vrot.slane %v7038_v19, 4  ;;  %v10796_v58 = vrot.slane %v7041_v2, 5  ;;  %v17378_v33 = vpack.c.bf16 %v6183_v56, %v6182_v20  ;;  %v6181_v5 = vsel %vm17286_vm7, %v5172_v42, 0.0  ;;  %v12899_v2 = vpop.f32.mrb[18].mxu0 }
 0x47a   : > { %v7049_v34 = vrot.slane %v7047_v36, 3  ;;  %v7050_v11 = vshll.u32 %v17300_v53, 16  ;;  %v6222_v21 = vpack.c.bf16 %v6181_v5, %v6180_v35  ;;  %v5129_v46 = vadd.f32 %v12898_v30, %v16985_v16  ;;  %v20371_v42 = vld [vmem:[#allocation75_spill] sm:$0xff]  ;;  %v20372_v56 = vld [vmem:[#allocation66_spill] sm:$0xff] }
 0x47b   : > { %v7044_v44 = vor.u32 %v7043_v15, %v7040_v48  ;;  %v10797_v19 = vor.u32 %v10796_v58, %v10795_v59  ;;  %6253 = vst [vmem:[#allocation2 + $0x50] sm:$0xff] %v17378_v33  ;;  %v5127_v20 = vadd.f32 %v16985_v16, %v4929_v1  ;;  %vm20370_vm7 = vnez %v20369_v47  ;;  %v14401_v5 = vld [vmem:[#allocation8 + $0x68] sm:$0xff]   ;;  %v4932_v1 = vpop.f32.mrb[19].mxu0  ;;  %v20376_v58 = vld [vmem:[#allocation81_spill] sm:$0xff]  ;;  %v20379_v45 = vld [vmem:[#allocation67_spill] sm:$0xff] }
 0x47c   : > { %v20373_v17 = vsel %vm20370_vm7, %v20371_v42, %v20372_v56  ;;  %v7052_v31 = vrot.slane %v7050_v11, 4  ;;  %v10799_v35 = vrot.slane %v7047_v36, 4  ;;  %6252 = vst [vmem:[#allocation2 + $0x48] sm:$0xff] %v6222_v21  ;;  %v5177_v15 = vmax.f32 %v5129_v46, 0.0  ;;  %v20378_v30 = vld [vmem:[#allocation82_spill] sm:$0xff]  ;;  %v20386_v48 = vld [vmem:[#allocation83_spill] sm:$0xff]  ;;  %13066 = vmatprep.subr.bf16.mxu1 %v14401_v5 }
 0x47d   : > { %vm17391_vm1 = vcmp.lt.s32.totalorder %v20373_v17, 16  ;;  %v5130_v59 = vadd.f32 %v12899_v2, %v16985_v16  ;;  %vm20377_vm6 = vnez %v20376_v58  ;;  %v17407_v42 = vsel %vm20363_vm14, %v7035_v12, %v7044_v44  ;;  %v20384_v2 = vld [vmem:[#allocation84_spill] sm:$0xff]  ;;  %v20387_v58 = vld [vmem:[#allocation70_spill] sm:$0xff]  ;;  %13067 = vmatpush3.bf16.msra.mxu1 %v14401_v5 }
 0x47e   : > { %v20380_v47 = vsel %vm20377_vm6, %v20378_v30, %v20379_v45  ;;  %20383 = vst [vmem:[#allocation42_spill] sm:$0xff] %v17407_v42  ;;  %v17410_v36 = vsel %vm20365_vm10, %v10793_v32, %v10797_v19  ;;  %v5175_v56 = vmax.f32 %v5127_v20, 0.0  ;;  %v5128_v46 = vadd.f32 %v16985_v16, %v4932_v1  ;;  %13017 = vmatmul.mubr.bf16.gmra.mrb[80].mxu1 %v17407_v42  ;;  %v20391_v1 = vld [vmem:[#allocation87_spill] sm:$0xff]  ;;  %v17435_v42 = vpop.f32.mrb[32].mxu1 }
 0x47f   : > { %vm17402_vm0 = vcmp.lt.s32.totalorder %v20380_v47, 16  ;;  %vm20385_vm7 = vnez %v20384_v2  ;;  %13524 = vmatprep.mubr.bf16.mxu0 %v17410_v36  ;;  %v7053_v12 = vor.u32 %v7052_v31, %v7049_v34  ;;  %v10800_v45 = vrot.slane %v7050_v11, 5  ;;  %v20393_v47 = vld [vmem:[#allocation85_spill] sm:$0xff]  ;;  %v20394_v2 = vld [vmem:[#allocation72_spill] sm:$0xff] }
 0x480   : > { %v20388_v52 = vsel %vm20385_vm7, %v20386_v48, %v20387_v58  ;;  %v6186_v32 = vsel %vm17320_vm11, %v5177_v15, 0.0  ;;  %v5178_v20 = vmax.f32 %v5130_v59, 0.0  ;;  %vm20392_vm6 = vnez %v20391_v1  ;;  %v14402_v15 = vld [vmem:[#allocation8 + $0x70] sm:$0xff]   ;;  %v6797_v59 = vpop.f32.mrb[33].mxu1 }
 0x481   : > { %vm17418_vm9 = vcmp.lt.s32.totalorder %v20388_v52, 16  ;;  %v20395_v4 = vsel %vm20392_vm6, %v20393_v47, %v20394_v2  ;;  %v7056_v48 = vshrl.u32 %v6222_v21, 16  ;;  %v7059_v58 = vshll.u32 %v6222_v21, 16  ;;  %v12955_v47 = vpop.f32.mrb[34].mxu1  ;;  %13068 = vmatprep.subr.bf16.mxu1 %v14402_v15  ;;  %v20438_v52 = vld [vmem:[#allocation33_spill] sm:$0xff] }
 0x482   : > { %vm17431_vm14 = vcmp.lt.s32.totalorder %v20395_v4, 16  ;;  %v6184_v34 = vsel %vm17331_vm5, %v5175_v56, 0.0  ;;  %v5176_v39 = vmax.f32 %v5128_v46, 0.0  ;;  %vm20398_vm11 = vsmask.f32 4352  ;;  %vm20400_vm5 = vmmov %vm20365_vm10  ;;  %v17452_v46 = vpop.f32.mrb[35].mxu1  ;;  %13069 = vmatpush3.bf16.msra.mxu1 %v14402_v15 }
 0x483   : > { %v17440_v11 = vsel %vm20398_vm11, %v7044_v44, %v7053_v12  ;;  %v10801_v31 = vor.u32 %v10800_v45, %v10799_v35  ;;  %v6187_v4 = vsel %vm17343_vm3, %v5178_v20, 0.0  ;;  %v7058_v21 = vrot.slane %v7056_v48, 3  ;;  %v12902_v44 = vpop.f32.mrb[20].mxu0  ;;  %20401 = vst [vmem:[#allocation20_spill] sm:$0xff] %v17452_v46  ;;  %v12958_v25 = vpop.f32.mrb[36].mxu1  ;;  %vm20402_vm3 = vmmov %vm20398_vm11  ;;  %v20442_v46 = vld [vmem:[#allocation109_spill] sm:$0xff] }
 0x484   : > { %20399 = vst [vmem:[#allocation29_spill] sm:$0xff] %v17440_v11  ;;  %13020 = vmatprep.mubr.bf16.mxu1 %v17440_v11  ;;  %v7061_v22 = vrot.slane %v7059_v58, 4  ;;  %v10803_v1 = vrot.slane %v7056_v48, 4  ;;  %v17445_v2 = vpack.c.bf16 %v6187_v4, %v6186_v32  ;;  %v6185_v7 = vsel %vm17354_vm15, %v5176_v39, 0.0  ;;  %v4945_v20 = vpop.f32.mrb[21].mxu0  ;;  %v14403_v4 = vld [vmem:[#allocation8 + $0x78] sm:$0xff]   ;;  %vm20409_vm7 = vmmov %vm20400_vm5 }
 0x485   : > { %v17450_v35 = vsel %vm20400_vm5, %v10797_v19, %v10801_v31  ;;  %v10804_v56 = vrot.slane %v7059_v58, 5  ;;  %v17454_v50 = vpack.c.bf16 %v6185_v7, %v6184_v34  ;;  %v5133_v45 = vadd.f32 %v12902_v44, %v16985_v16  ;;  %v12903_v39 = vpop.f32.mrb[22].mxu0  ;;  %13070 = vmatprep.subr.bf16.mxu1 %v14403_v4  ;;  %v17510_v15 = vpop.f32.mrb[37].mxu1 }
 0x486   : > { %13525 = vmatmul.mubr.bf16.gmra.mrb[52].mxu0 %v17450_v35  ;;  %v7062_v48 = vor.u32 %v7061_v22, %v7058_v21  ;;  %v7065_v32 = vshrl.u32 %v17378_v33, 16  ;;  %6255 = vst [vmem:[#allocation2 + $0x60] sm:$0xff] %v17445_v2  ;;  %v5131_v19 = vadd.f32 %v16985_v16, %v4945_v20  ;;  %v7068_v59 = vshll.u32 %v17378_v33, 16  ;;  %v4948_v5 = vpop.f32.mrb[23].mxu0  ;;  %v20405_v33 = vld [vmem:[#allocation86_spill] sm:$0xff]  ;;  %20423 = vst [vmem:[#allocation32_spill] sm:$0xff] %v17510_v15 }
 0x487   : > { %v10805_v58 = vor.u32 %v10804_v56, %v10803_v1  ;;  %v17463_v34 = vadd.s32 24, %v17230_v13  ;;  %6254 = vst [vmem:[#allocation2 + $0x58] sm:$0xff] %v17454_v50  ;;  %v5181_v21 = vmax.f32 %v5133_v45, 0.0  ;;  %v5134_v22 = vadd.f32 %v12903_v39, %v16985_v16  ;;  %v20413_v39 = vld [vmem:[#allocation89_spill] sm:$0xff]  ;;  %13071 = vmatpush3.bf16.msra.mxu1 %v14403_v4 }
 0x488   : > { %v17468_v47 = vsel %vm20402_vm3, %v7053_v12, %v7062_v48  ;;  %v7067_v7 = vrot.slane %v7065_v32, 3  ;;  %v5179_v44 = vmax.f32 %v5131_v19, 0.0  ;;  %v5132_v1 = vadd.f32 %v16985_v16, %v4948_v5 }
 0x489   : > { %20403 = vst [vmem:[#allocation43_spill] sm:$0xff] %v17468_v47  ;;  %vm20404_vm15 = vnez %v20121_v8  ;;  %13021 = vmatmul.mubr.bf16.gmra.mrb[84].mxu1 %v17468_v47  ;;  %v17482_v45 = vsel %vm20409_vm7, %v10801_v31, %v10805_v58  ;;  %v7070_v12 = vrot.slane %v7068_v59, 4  ;;  %v6190_v25 = vsel %vm17391_vm1, %v5181_v21, 0.0  ;;  %v20412_v8 = vld [vmem:[#allocation94_spill] sm:$0xff]  ;;  %v20418_v21 = vld [vmem:[#allocation96_spill] sm:$0xff] }
 0x48a   : > { %v20406_v56 = vsel %vm20404_vm15, %v16512_v60, %v20405_v33  ;;  %20410 = vst [vmem:[#allocation44_spill] sm:$0xff] %v17482_v45  ;;  %v5182_v19 = vmax.f32 %v5134_v22, 0.0  ;;  %vm20411_vm6 = vnez %v20126_v41  ;;  %13528 = vmatprep.mubr.bf16.mxu0 %v17482_v45  ;;  %v10807_v33 = vrot.slane %v7065_v32, 4  ;;  %v20419_v41 = vld [vmem:[#allocation92_spill] sm:$0xff]  ;;  %v17508_v32 = vld [vmem:[#allocation8 + $0x80] sm:$0xff]   ;;  %vm20436_vm15 = vmmov %vm20409_vm7 }
 0x48b   : > { %vm17476_vm10 = vcmp.lt.s32.totalorder %v20406_v56, 16  ;;  %v20414_v5 = vsel %vm20411_vm6, %v20412_v8, %v20413_v39  ;;  %v10808_v56 = vrot.slane %v7068_v59, 5  ;;  %v6188_v31 = vsel %vm17402_vm0, %v5179_v44, 0.0  ;;  %v20424_v59 = vld [vmem:[#allocation108_spill] sm:$0xff]  ;;  %v20427_v44 = vld [vmem:[#allocation95_spill] sm:$0xff]  ;;  %13120 = vmatprep.subr.bf16.mxu1 %v17508_v32 }
 0x48c   : > { %vm17491_vm11 = vcmp.lt.s32.totalorder %v20414_v5, 16  ;;  %v5180_v53 = vmax.f32 %v5132_v1, 0.0  ;;  %vm20417_vm1 = vnez %v20130_v24  ;;  %v7071_v39 = vor.u32 %v7070_v12, %v7067_v7  ;;  %v20426_v24 = vld [vmem:[#allocation101_spill] sm:$0xff] }
 0x48d   : > { %v20420_v22 = vsel %vm20417_vm1, %v20418_v21, %v20419_v41  ;;  %v7074_v5 = vshrl.u32 %v17454_v50, 16  ;;  %v6191_v17 = vsel %vm17418_vm9, %v5182_v19, 0.0  ;;  %vm20425_vm0 = vnez %v20424_v59  ;;  %v12906_v19 = vpop.f32.mrb[24].mxu0 }
 0x48e   : > { %vm17503_vm5 = vcmp.lt.s32.totalorder %v20420_v22, 16  ;;  %v20428_v1 = vsel %vm20425_vm0, %v20426_v24, %v20427_v44  ;;  %v10809_v7 = vor.u32 %v10808_v56, %v10807_v33  ;;  %v7077_v12 = vshll.u32 %v17454_v50, 16  ;;  %v17525_v22 = vpop.f32.mrb[38].mxu1  ;;  %v20435_v33 = vld [vmem:[#allocation30_spill] sm:$0xff]  ;;  %v4961_v56 = vpop.f32.mrb[25].mxu0 }
 0x48f   : > { %vm17519_vm3 = vcmp.lt.s32.totalorder %v20428_v1, 16  ;;  %v7083_v41 = vshrl.u32 %v17445_v2, 16  ;;  %20431 = vst [vmem:[#allocation46_spill] sm:$0xff] %v17525_v22  ;;  %v17527_v47 = vpack.c.bf16 %v6191_v17, %v6190_v25  ;;  %v6189_v30 = vsel %vm17431_vm14, %v5180_v53, 0.0  ;;  %v17534_v44 = vpop.f32.mrb[39].mxu1  ;;  %v12907_v53 = vpop.f32.mrb[26].mxu0 }
 0x490   : > { %vm20432_vm9 = vsmask.f32 4352  ;;  %v7076_v24 = vrot.slane %v7074_v5, 3  ;;  %20434 = vst [vmem:[#allocation34_spill] sm:$0xff] %v17534_v44  ;;  %v17536_v1 = vpack.c.bf16 %v6189_v30, %v6188_v31  ;;  %v13584_v50 = vadd.f32 %v12906_v19, %v20435_v33 }
 0x491   : > { %v17532_v59 = vsel %vm20432_vm9, %v7062_v48, %v7071_v39  ;;  %v17541_v25 = vsel %vm20436_vm15, %v10805_v58, %v10809_v7  ;;  %v7079_v17 = vrot.slane %v7077_v12, 4  ;;  %6257 = vst [vmem:[#allocation2 + $0x70] sm:$0xff] %v17527_v47  ;;  %v13585_v48 = vadd.f32 %v4961_v56, %v20438_v52  ;;  %v20439_v58 = vld [vmem:[#allocation35_spill] sm:$0xff]  ;;  %v20440_v52 = vld [vmem:[#allocation38_spill] sm:$0xff]  ;;  %vm20449_vm6 = vmmov %vm20432_vm9 }
 0x492   : > { %20433 = vst [vmem:[#allocation45_spill] sm:$0xff] %v17532_v59  ;;  %13024 = vmatprep.mubr.bf16.mxu1 %v17532_v59  ;;  %20437 = vst [vmem:[#allocation68_spill] sm:$0xff] %v17541_v25  ;;  %13529 = vmatmul.mubr.bf16.gmra.mrb[56].mxu0 %v17541_v25  ;;  %v10811_v11 = vrot.slane %v7074_v5, 4  ;;  %v10812_v31 = vrot.slane %v7077_v12, 5  ;;  %v7085_v30 = vrot.slane %v7083_v41, 3  ;;  %v5137_v19 = vadd.f32 %v13584_v50, %v16985_v16  ;;  %v4964_v59 = vpop.f32.mrb[27].mxu0 }
 0x493   : > { %6256 = vst [vmem:[#allocation2 + $0x68] sm:$0xff] %v17536_v1  ;;  %v13586_v33 = vadd.f32 %v12907_v53, %v20439_v58  ;;  %v7080_v4 = vor.u32 %v7079_v17, %v7076_v24  ;;  %v7086_v44 = vshll.u32 %v17445_v2, 16  ;;  %v5135_v56 = vadd.f32 %v13585_v48, %v16985_v16  ;;  %v20444_v50 = vld [vmem:[#allocation106_spill] sm:$0xff]  ;;  %v20445_v53 = vld [vmem:[#allocation97_spill] sm:$0xff] }
 0x494   : > { %v13587_v22 = vadd.f32 %v4964_v59, %v20440_v52  ;;  %v10813_v15 = vor.u32 %v10812_v31, %v10811_v11  ;;  %v20441_v5 = vshrl.u32 %v17047_v55, 4  ;;  %v5185_v25 = vmax.f32 %v5137_v19, 0.0  ;;  %v17570_v59 = vpop.f32.mrb[40].mxu1  ;;  %v20452_v48 = vld [vmem:[#allocation110_spill] sm:$0xff]  ;;  %v20454_v31 = vld [vmem:[#allocation107_spill] sm:$0xff]  ;;  %v20459_v52 = vld [vmem:[#allocation112_spill] sm:$0xff] }
 0x495   : > { %v5138_v45 = vadd.f32 %v13586_v33, %v16985_v16  ;;  %vm20443_vm14 = vnez %v20442_v46  ;;  %v17568_v2 = vsel %vm20449_vm6, %v7071_v39, %v7080_v4  ;;  %v7088_v11 = vrot.slane %v7086_v44, 4  ;;  %20451 = vst [vmem:[#allocation47_spill] sm:$0xff] %v17570_v59  ;;  %v20455_v46 = vld [vmem:[#allocation98_spill] sm:$0xff] }
 0x496   : > { %v17555_v12 = vmul.u32 24, %v20441_v5  ;;  %v20446_v58 = vsel %vm20443_vm14, %v20444_v50, %v20445_v53  ;;  %20450 = vst [vmem:[#allocation54_spill] sm:$0xff] %v17568_v2  ;;  %v5183_v55 = vmax.f32 %v5135_v56, 0.0  ;;  %v5136_v17 = vadd.f32 %v13587_v22, %v16985_v16  ;;  %v20461_v5 = vld [vmem:[#allocation111_spill] sm:$0xff]  ;;  %v20462_v39 = vld [vmem:[#allocation102_spill] sm:$0xff]  ;;  %13025 = vmatmul.mubr.bf16.gmra.mrb[88].mxu1 %v17568_v2 }
 0x497   : > { %vm17563_vm7 = vcmp.lt.s32.totalorder %v20446_v58, 16  ;;  %vm20453_vm1 = vnez %v20452_v48  ;;  %vm20460_vm9 = vnez %v20459_v52  ;;  %vm20466_vm14 = vsmask.f32 3328  ;;  %v17595_v58 = vpop.f32.mrb[41].mxu1  ;;  %v20471_v52 = vld [vmem:[#allocation104_spill] sm:$0xff] }
 0x498   : > { %v20456_v19 = vsel %vm20453_vm1, %v20454_v31, %v20455_v46  ;;  %v20463_v50 = vsel %vm20460_vm9, %v20461_v5, %v20462_v39  ;;  %v17593_v22 = vsel %vm20466_vm14, %v10809_v7, %v10813_v15  ;;  %v10815_v56 = vrot.slane %v7083_v41, 4  ;;  %20467 = vst [vmem:[#allocation55_spill] sm:$0xff] %v17595_v58  ;;  %v20468_v46 = vld [vmem:[#allocation114_spill] sm:$0xff]  ;;  %v17609_v41 = vpop.f32.mrb[42].mxu1  ;;  %v20503_v39 = vld [vmem:[#allocation63_spill] sm:$0xff] }
 0x499   : > { %vm17578_vm0 = vcmp.lt.s32.totalorder %v20456_v19, 16  ;;  %vm17587_vm15 = vcmp.lt.s32.totalorder %v20463_v50, 16  ;;  %v6194_v48 = vsel %vm17476_vm10, %v5185_v25, 0.0  ;;  %v5186_v31 = vmax.f32 %v5138_v45, 0.0  ;;  %13532 = vmatprep.mubr.bf16.mxu0 %v17593_v22  ;;  %v20470_v19 = vld [vmem:[#allocation113_spill] sm:$0xff]  ;;  %20475 = vst [vmem:[#allocation49_spill] sm:$0xff] %v17609_v41 }
 0x49a   : > { %vm20469_vm6 = vnez %v20468_v46  ;;  %v7089_v7 = vor.u32 %v7088_v11, %v7085_v30  ;;  %v10816_v50 = vrot.slane %v7086_v44, 5  ;;  %v6192_v20 = vsel %vm17491_vm11, %v5183_v55, 0.0  ;;  %v12910_v45 = vpop.f32.mrb[28].mxu0  ;;  %v6829_v58 = vpop.f32.mrb[43].mxu1  ;;  %v20479_v55 = vld [vmem:[#allocation50_spill] sm:$0xff]  ;;  %vm20481_vm11 = vmmov %vm20466_vm14 }
 0x49b   : > { %v20472_v5 = vsel %vm20469_vm6, %v20470_v19, %v20471_v52  ;;  %v5184_v25 = vmax.f32 %v5136_v17, 0.0  ;;  %v7092_v2 = vshrl.u32 %v17536_v1, 16  ;;  %v7095_v46 = vshll.u32 %v17536_v1, 16  ;;  %v20476_v52 = vld [vmem:[#allocation48_spill] sm:$0xff]  ;;  %v4977_v59 = vpop.f32.mrb[29].mxu0 }
 0x49c   : > { %vm17605_vm1 = vcmp.lt.s32.totalorder %v20472_v5, 16  ;;  %v6195_v19 = vsel %vm17503_vm5, %v5186_v31, 0.0  ;;  %v13588_v5 = vadd.f32 %v12910_v45, %v20476_v52  ;;  %vm20477_vm10 = vsmask.f32 4352  ;;  %v12911_v41 = vpop.f32.mrb[30].mxu0  ;;  %v20480_v45 = vld [vmem:[#allocation51_spill] sm:$0xff] }
 0x49d   : > { %v17619_v44 = vsel %vm20477_vm10, %v7080_v4, %v7089_v7  ;;  %v10817_v30 = vor.u32 %v10816_v50, %v10815_v56  ;;  %v17621_v11 = vpack.c.bf16 %v6195_v19, %v6194_v48  ;;  %v6193_v60 = vsel %vm17519_vm3, %v5184_v25, 0.0  ;;  %v4980_v4 = vpop.f32.mrb[31].mxu0  ;;  %v20482_v48 = vld [vmem:[#allocation52_spill] sm:$0xff] }
 0x49e   : > { %20478 = vst [vmem:[#allocation61_spill] sm:$0xff] %v17619_v44  ;;  %v13589_v17 = vadd.f32 %v4977_v59, %v20479_v55  ;;  %13028 = vmatprep.mubr.bf16.mxu1 %v17619_v44  ;;  %v7094_v58 = vrot.slane %v7092_v2, 3  ;;  %v17627_v8 = vpack.c.bf16 %v6193_v60, %v6192_v20  ;;  %v5141_v31 = vadd.f32 %v13588_v5, %v16985_v16  ;;  %v17659_v60 = vpop.f32.mrb[44].mxu1  ;;  %v20598_v44 = vld [vmem:[#allocation103_spill] sm:$0xff] }
 0x49f   : > { %v13590_v52 = vadd.f32 %v12911_v41, %v20480_v45  ;;  %v17632_v56 = vsel %vm20481_vm11, %v10813_v15, %v10817_v30  ;;  %6259 = vst [vmem:[#allocation2 + $0x80] sm:$0xff] %v17621_v11  ;;  %v13591_v59 = vadd.f32 %v4980_v4, %v20482_v48  ;;  %v20483_v50 = vsel %vm16809_vm2, %v16773_v27, %v16709_v51 }
 0x4a0   : > { %v5139_v21 = vadd.f32 %v13589_v17, %v16985_v16  ;;  %13533 = vmatmul.mubr.bf16.gmra.mrb[60].mxu0 %v17632_v56  ;;  %vm17643_vm5 = vcmp.lt.s32.totalorder %v20483_v50, 16  ;;  %v7097_v41 = vrot.slane %v7095_v46, 4  ;;  %v10819_v15 = vrot.slane %v7092_v2, 4  ;;  %6258 = vst [vmem:[#allocation2 + $0x78] sm:$0xff] %v17627_v8 }
 0x4a1   : > { %v5189_v25 = vmax.f32 %v5141_v31, 0.0  ;;  %v5142_v19 = vadd.f32 %v13590_v52, %v16985_v16  ;;  %v20486_v5 = vsel %vm16825_vm4, %v16787_v10, %v16747_v54  ;;  %v10820_v51 = vrot.slane %v7095_v46, 5  ;;  %v6841_v46 = vpop.f32.mrb[45].mxu1 }
 0x4a2   : > { %vm17654_vm3 = vcmp.lt.s32.totalorder %v20486_v5, 16  ;;  %v7101_v27 = vshrl.u32 %v17527_v47, 16  ;;  %v5187_v2 = vmax.f32 %v5139_v21, 0.0  ;;  %v5140_v55 = vadd.f32 %v13591_v59, %v16985_v16  ;;  %v12914_v21 = vpop.f32.mrb[32].mxu0 }
 0x4a3   : > { %vm20489_vm2 = vnez %v20174_v37  ;;  %v7098_v54 = vor.u32 %v7097_v41, %v7094_v58  ;;  %v7104_v10 = vshll.u32 %v17527_v47, 16  ;;  %v5190_v31 = vmax.f32 %v5142_v19, 0.0  ;;  %v12967_v58 = vpop.f32.mrb[46].mxu1  ;;  %v4993_v41 = vpop.f32.mrb[33].mxu0  ;;  %v20501_v19 = vld [vmem:[#allocation60_spill] sm:$0xff] }
 0x4a4   : > { %v20490_v29 = vsel %vm20489_vm2, %v16851_v61, %v16757_v18  ;;  %v10821_v45 = vor.u32 %v10820_v51, %v10819_v15  ;;  %vm20493_vm4 = vnez %v20178_v38  ;;  %v7103_v18 = vrot.slane %v7101_v27, 3  ;;  %v17692_v48 = vpop.f32.mrb[47].mxu1  ;;  %v12915_v5 = vpop.f32.mrb[34].mxu0 }
 0x4a5   : > { %vm17667_vm9 = vcmp.lt.s32.totalorder %v20490_v29, 16  ;;  %v20494_v52 = vsel %vm20493_vm4, %v16867_v43, %v16766_v6  ;;  %vm5831_vm6 = vcmp.ne.s32.totalorder %v17230_v13, 0  ;;  %vm5879_vm10 = vcmp.lt.s32.totalorder %v17230_v13, 0  ;;  %v12970_v15 = vpop.f32.mrb[48].mxu1 }
 0x4a6   : > { %vm17677_vm14 = vcmp.lt.s32.totalorder %v20494_v52, 16  ;;  %v17685_v61 = vsub.s32 %v17005_v49, %v17555_v12  ;;  %v6198_v38 = vsel %vm17563_vm7, %v5189_v25, 0.0  ;;  %v5188_v4 = vmax.f32 %v5140_v55, 0.0  ;;  %v20499_v49 = vld [vmem:[#allocation58_spill] sm:$0xff] }
 0x4a7   : > { %vm20497_vm11 = vsmask.f32 4352  ;;  %v7106_v43 = vrot.slane %v7104_v10, 4  ;;  %v6196_v59 = vsel %vm17578_vm0, %v5187_v2, 0.0  ;;  %v6199_v50 = vsel %vm17587_vm15, %v5190_v31, 0.0  ;;  %v20502_v55 = vld [vmem:[#allocation62_spill] sm:$0xff] }
 0x4a8   : > { %v17690_v6 = vsel %vm20497_vm11, %v7089_v7, %v7098_v54  ;;  %v13592_v12 = vadd.f32 %v12914_v21, %v20499_v49  ;;  %vm20500_vm7 = vsmask.f32 3328  ;;  %v17703_v7 = vpack.c.bf16 %v6199_v50, %v6198_v38  ;;  %vm20504_vm0 = vmmov %vm20497_vm11  ;;  %v20519_v15 = vld [vmem:[#allocation122_spill] sm:$0xff] }
 0x4a9   : > { %20498 = vst [vmem:[#allocation53_spill] sm:$0xff] %v17690_v6  ;;  %13029 = vmatmul.mubr.bf16.gmra.mrb[92].mxu1 %v17690_v6  ;;  %v17701_v24 = vsel %vm20500_vm7, %v10817_v30, %v10821_v45  ;;  %v6197_v25 = vsel %vm17605_vm1, %v5188_v4, 0.0  ;;  %v13593_v33 = vadd.f32 %v4993_v41, %v20501_v19  ;;  %v7107_v53 = vor.u32 %v7106_v43, %v7103_v18  ;;  %v4996_v30 = vpop.f32.mrb[35].mxu0  ;;  %v20510_v43 = vld [vmem:[#allocation119_spill] sm:$0xff]  ;;  %v20517_v41 = vld [vmem:[#allocation121_spill] sm:$0xff] }
 0x4aa   : > { %13536 = vmatprep.mubr.bf16.mxu0 %v17701_v24  ;;  %v17709_v51 = vpack.c.bf16 %v6197_v25, %v6196_v59  ;;  %v5145_v2 = vadd.f32 %v13592_v12, %v16985_v16  ;;  %v13594_v29 = vadd.f32 %v12915_v5, %v20502_v55  ;;  %v10823_v46 = vrot.slane %v7101_v27, 4  ;;  %6261 = vst [vmem:[#allocation2 + $0x90] sm:$0xff] %v17703_v7  ;;  %v20520_v25 = vld [vmem:[#allocation116_spill] sm:$0xff] }
 0x4ab   : > { %v5143_v31 = vadd.f32 %v13593_v33, %v16985_v16  ;;  %v13595_v52 = vadd.f32 %v4996_v30, %v20503_v39  ;;  %v17717_v58 = vsel %vm20504_vm0, %v7098_v54, %v7107_v53  ;;  %v10824_v38 = vrot.slane %v7104_v10, 5  ;;  %v20512_v54 = vld [vmem:[#allocation120_spill] sm:$0xff]  ;;  %v20513_v10 = vld [vmem:[#allocation115_spill] sm:$0xff] }
 0x4ac   : > { %20505 = vst [vmem:[#allocation74_spill] sm:$0xff] %v17717_v58  ;;  %vm20506_vm15 = vnez %v20182_v0  ;;  %6260 = vst [vmem:[#allocation2 + $0x88] sm:$0xff] %v17709_v51  ;;  %v5193_v27 = vmax.f32 %v5145_v2, 0.0  ;;  %v5146_v21 = vadd.f32 %v13594_v29, %v16985_v16  ;;  %13032 = vmatprep.mubr.bf16.mxu1 %v17717_v58  ;;  %vm20511_vm2 = vnez %v20510_v43  ;;  %v17753_v2 = vpop.f32.mrb[49].mxu1  ;;  %v20525_v30 = vld [vmem:[#allocation124_spill] sm:$0xff] }
 0x4ad   : > { %v20507_v18 = vsel %vm20506_vm15, %v16892_v28, %v16777_v57  ;;  %v20514_v59 = vsel %vm20511_vm2, %v20512_v54, %v20513_v10  ;;  %v7110_v28 = vshrl.u32 %v17627_v8, 16  ;;  %v7113_v57 = vshll.u32 %v17627_v8, 16  ;;  %20524 = vst [vmem:[#allocation64_spill] sm:$0xff] %v17753_v2  ;;  %v17766_v43 = vpop.f32.mrb[50].mxu1 }
 0x4ae   : > { %vm17724_vm1 = vcmp.lt.s32.totalorder %v20507_v18, 16  ;;  %vm17736_vm4 = vcmp.lt.s32.totalorder %v20514_v59, 16  ;;  %v5191_v50 = vmax.f32 %v5143_v31, 0.0  ;;  %v5144_v49 = vadd.f32 %v13595_v52, %v16985_v16  ;;  %v20528_v31 = vld [vmem:[#allocation117_spill] sm:$0xff]  ;;  %20532 = vst [vmem:[#allocation56_spill] sm:$0xff] %v17766_v43  ;;  %v17773_v59 = vpop.f32.mrb[51].mxu1 }
 0x4af   : > { %v10825_v12 = vor.u32 %v10824_v38, %v10823_v46  ;;  %vm20518_vm11 = vnez %v20517_v41  ;;  %v7119_v5 = vshrl.u32 %v17621_v11, 16  ;;  %v6202_v55 = vsel %vm17643_vm5, %v5193_v27, 0.0  ;;  %v20527_v46 = vld [vmem:[#allocation125_spill] sm:$0xff]  ;;  %v12918_v27 = vpop.f32.mrb[36].mxu0  ;;  %20534 = vst [vmem:[#allocation77_spill] sm:$0xff] %v17773_v59  ;;  %vm17788_vm5 = vmand %vm5879_vm10, %vm5831_vm6 }
 0x4b0   : > { %v20521_v19 = vsel %vm20518_vm11, %v20519_v15, %v20520_v25  ;;  %v5194_v29 = vmax.f32 %v5146_v21, 0.0  ;;  %vm20526_vm0 = vnez %v20525_v30  ;;  %v7112_v38 = vrot.slane %v7110_v28, 3  ;;  %v20535_v15 = vld [vmem:[#allocation71_spill] sm:$0xff] }
 0x4b1   : > { %vm17748_vm7 = vcmp.lt.s32.totalorder %v20521_v19, 16  ;;  %v20529_v39 = vsel %vm20526_vm0, %v20527_v46, %v20528_v31  ;;  %v7115_v18 = vrot.slane %v7113_v57, 4  ;;  %v6200_v54 = vsel %vm17654_vm3, %v5191_v50, 0.0  ;;  %v5009_v19 = vpop.f32.mrb[37].mxu0  ;;  %v20536_v50 = vld [vmem:[#allocation73_spill] sm:$0xff] }
 0x4b2   : > { %vm17762_vm15 = vcmp.lt.s32.totalorder %v20529_v39, 16  ;;  %v5192_v10 = vmax.f32 %v5144_v49, 0.0  ;;  %vm20533_vm2 = vsmask.f32 3328  ;;  %v10827_v21 = vrot.slane %v7110_v28, 4  ;;  %v12919_v28 = vpop.f32.mrb[38].mxu0 }
 0x4b3   : > { %v17771_v20 = vsel %vm20533_vm2, %v10821_v45, %v10825_v12  ;;  %v6203_v41 = vsel %vm17667_vm9, %v5194_v29, 0.0  ;;  %v13596_v25 = vadd.f32 %v12918_v27, %v20535_v15  ;;  %v7116_v30 = vor.u32 %v7115_v18, %v7112_v38  ;;  %v5012_v37 = vpop.f32.mrb[39].mxu0  ;;  %vm20551_vm6 = vmmov %vm20533_vm2 }
 0x4b4   : > { %13537 = vmatmul.mubr.bf16.gmra.mrb[64].mxu0 %v17771_v20  ;;  %v10828_v46 = vrot.slane %v7113_v57, 5  ;;  %v17779_v62 = vpack.c.bf16 %v6203_v41, %v6202_v55  ;;  %v6201_v45 = vsel %vm17677_vm14, %v5192_v10, 0.0  ;;  %v13597_v49 = vadd.f32 %v5009_v19, %v20536_v50  ;;  %v20539_v55 = vld [vmem:[#allocation76_spill] sm:$0xff]  ;;  %v20542_v10 = vld [vmem:[#allocation78_spill] sm:$0xff] }
 0x4b5   : > { %v7121_v31 = vrot.slane %v7119_v5, 3  ;;  %v17792_v29 = vpack.c.bf16 %v6201_v45, %v6200_v54  ;;  %v5149_v57 = vadd.f32 %v13596_v25, %v16985_v16  ;;  %v13598_v39 = vadd.f32 %v12919_v28, %v20539_v55  ;;  %v20543_v45 = vld [vmem:[#allocation127_spill] sm:$0xff]  ;;  %v20546_v50 = vld [vmem:[#allocation118_spill] sm:$0xff] }
 0x4b6   : > { %vm20540_vm3 = vsmask.f32 4352  ;;  %6263 = vst [vmem:[#allocation2 + $0xa0] sm:$0xff] %v17779_v62  ;;  %v5147_v18 = vadd.f32 %v13597_v49, %v16985_v16  ;;  %v13599_v27 = vadd.f32 %v5012_v37, %v20542_v10  ;;  %v10829_v41 = vor.u32 %v10828_v46, %v10827_v21  ;;  %v17819_v46 = vpop.f32.mrb[52].mxu1  ;;  %v20552_v37 = vld [vmem:[#allocation129_spill] sm:$0xff]  ;;  %v20554_v10 = vld [vmem:[#allocation128_spill] sm:$0xff] }
 0x4b7   : > { %v17797_v38 = vsel %vm20540_vm3, %v7107_v53, %v7116_v30  ;;  %v7122_v54 = vshll.u32 %v17621_v11, 16  ;;  %6262 = vst [vmem:[#allocation2 + $0x98] sm:$0xff] %v17792_v29  ;;  %v5197_v15 = vmax.f32 %v5149_v57, 0.0  ;;  %v5150_v25 = vadd.f32 %v13598_v39, %v16985_v16  ;;  %v20545_v53 = vld [vmem:[#allocation126_spill] sm:$0xff]  ;;  %20550 = vst [vmem:[#allocation57_spill] sm:$0xff] %v17819_v46 }
 0x4b8   : > { %20541 = vst [vmem:[#allocation65_spill] sm:$0xff] %v17797_v38  ;;  %13033 = vmatmul.mubr.bf16.gmra.mrb[96].mxu1 %v17797_v38  ;;  %v10831_v19 = vrot.slane %v7119_v5, 4  ;;  %vm20544_vm9 = vnez %v20543_v45  ;;  %v6023_v21 = vsel %vm17788_vm5, %v17463_v34, %v17230_v13  ;;  %v5195_v57 = vmax.f32 %v5147_v18, 0.0  ;;  %v20555_v45 = vld [vmem:[#allocation123_spill] sm:$0xff]  ;;  %v17845_v34 = vpop.f32.mrb[53].mxu1 }
 0x4b9   : > { %v20547_v28 = vsel %vm20544_vm9, %v20545_v53, %v20546_v50  ;;  %v5148_v55 = vadd.f32 %v13599_v27, %v16985_v16  ;;  %v17823_v5 = vsel %vm20551_vm6, %v10825_v12, %v10829_v41  ;;  %v7124_v39 = vrot.slane %v7122_v54, 4  ;;  %20562 = vst [vmem:[#allocation79_spill] sm:$0xff] %v17845_v34  ;;  %v17860_v27 = vpop.f32.mrb[54].mxu1  ;;  %v20586_v38 = vld [vmem:[#allocation19_spill] sm:$0xff] }
 0x4ba   : > { %vm17811_vm14 = vcmp.lt.s32.totalorder %v20547_v28, 16  ;;  %vm20553_vm10 = vnez %v20552_v37  ;;  %v20559_v13 = vsel %vm17125_vm13, %v17070_v9, %v16996_v40  ;;  %vm5829_vm2 = vcmp.ne.s32.totalorder %v17685_v61, 0  ;;  %13540 = vmatprep.mubr.bf16.mxu0 %v17823_v5  ;;  %20566 = vst [vmem:[#allocation69_spill] sm:$0xff] %v17860_v27  ;;  %v12922_v28 = vpop.f32.mrb[40].mxu0  ;;  %v6873_v23 = vpop.f32.mrb[55].mxu1  ;;  %v20567_v37 = vld [vmem:[#allocation88_spill] sm:$0xff] }
 0x4bb   : > { %v20556_v53 = vsel %vm20553_vm10, %v20554_v10, %v20555_v45  ;;  %vm17839_vm0 = vcmp.lt.s32.totalorder %v20559_v13, 16  ;;  %vm5877_vm5 = vcmp.lt.s32.totalorder %v17685_v61, 0  ;;  %v6206_v12 = vsel %vm17724_vm1, %v5197_v15, 0.0  ;;  %v5025_v45 = vpop.f32.mrb[41].mxu0  ;;  %vm20571_vm1 = vmmov %vm20551_vm6 }
 0x4bc   : > { %vm17830_vm11 = vcmp.lt.s32.totalorder %v20556_v53, 16  ;;  %v5198_v17 = vmax.f32 %v5150_v25, 0.0  ;;  %v10832_v3 = vrot.slane %v7122_v54, 5  ;;  %v20563_v40 = vsel %vm17148_vm8, %v17101_v26, %v17028_v14  ;;  %vm20568_vm8 = vmmov %vm20540_vm3 }
 0x4bd   : > { %vm17855_vm13 = vcmp.lt.s32.totalorder %v20563_v40, 16  ;;  %v7128_v18 = vshrl.u32 %v17709_v51, 16  ;;  %v6204_v4 = vsel %vm17736_vm4, %v5195_v57, 0.0  ;;  %v5196_v15 = vmax.f32 %v5148_v55, 0.0  ;;  %vm20592_vm9 = vmmov %vm20571_vm1 }
 0x4be   : > { %v7125_v25 = vor.u32 %v7124_v39, %v7121_v31  ;;  %v7131_v54 = vshll.u32 %v17709_v51, 16  ;;  %v6207_v14 = vsel %vm17748_vm7, %v5198_v17, 0.0  ;;  %v10833_v26 = vor.u32 %v10832_v3, %v10831_v19  ;;  %v20570_v31 = vld [vmem:[#allocation90_spill] sm:$0xff]  ;;  %v12923_v39 = vpop.f32.mrb[42].mxu0  ;;  %vm20599_vm6 = vmmov %vm20568_vm8 }
 0x4bf   : > { %v13600_v10 = vadd.f32 %v12922_v28, %v20567_v37  ;;  %v7130_v53 = vrot.slane %v7128_v18, 3  ;;  %v17868_v13 = vpack.c.bf16 %v6207_v14, %v6206_v12  ;;  %v6205_v0 = vsel %vm17762_vm15, %v5196_v15, 0.0  ;;  %v17885_v19 = vld [vmem:[%s19725_s2] ss:$0 sm:$0xff]  ;;  %v20572_v12 = vld [vmem:[#allocation91_spill] sm:$0xff]  ;;  %v5028_v17 = vpop.f32.mrb[43].mxu0 }
 0x4c0   : > { %v17873_v57 = vsel %vm20568_vm8, %v7116_v30, %v7125_v25  ;;  %v13601_v55 = vadd.f32 %v5025_v45, %v20570_v31  ;;  %v17876_v40 = vpack.c.bf16 %v6205_v0, %v6204_v4  ;;  %v17880_v33 = vsel %vm20571_vm1, %v10829_v41, %v10833_v26  ;;  %v20573_v4 = vld [vmem:[#allocation93_spill] sm:$0xff]  ;;  %v17896_v45 = vpop.f32.mrb[56].mxu1 }
 0x4c1   : > { %20569 = vst [vmem:[#allocation59_spill] sm:$0xff] %v17873_v57  ;;  %13036 = vmatprep.mubr.bf16.mxu1 %v17873_v57  ;;  %v5153_v52 = vadd.f32 %v17885_v19, %v13600_v10  ;;  %v13602_v30 = vadd.f32 %v12923_v39, %v20572_v12  ;;  %6265 = vst [vmem:[#allocation2 + $0xb0] sm:$0xff] %v17868_v13  ;;  %13541 = vmatmul.mubr.bf16.gmra.mrb[68].mxu0 %v17880_v33  ;;  %v7133_v41 = vrot.slane %v7131_v54, 4 }
 0x4c2   : > { %v5151_v3 = vadd.f32 %v17885_v19, %v13601_v55  ;;  %v13603_v15 = vadd.f32 %v5028_v17, %v20573_v4  ;;  %v10835_v28 = vrot.slane %v7128_v18, 4  ;;  %6264 = vst [vmem:[#allocation2 + $0xa8] sm:$0xff] %v17876_v40  ;;  %v10836_v37 = vrot.slane %v7131_v54, 5  ;;  %20574 = vst [vmem:[#allocation80_spill] sm:$0xff] %v17896_v45  ;;  %v20576_v17 = vld [vmem:[#allocation22_spill] sm:$0xff] }
 0x4c3   : > { %v5201_v23 = vmax.f32 %v5153_v52, 0.0  ;;  %v5154_v14 = vadd.f32 %v17885_v19, %v13602_v30  ;;  %v7137_v10 = vshrl.u32 %v17703_v7, 16  ;;  %v7134_v39 = vor.u32 %v7133_v41, %v7130_v53  ;;  %v20577_v18 = vld [vmem:[#allocation130_spill] sm:$0xff]  ;;  %v6885_v30 = vpop.f32.mrb[57].mxu1  ;;  %v20583_v53 = vld [vmem:[#allocation23_spill] sm:$0xff]  ;;  %v20585_v41 = vld [vmem:[#allocation36_spill] sm:$0xff] }
 0x4c4   : > { %v5199_v0 = vmax.f32 %v5151_v3, 0.0  ;;  %v5152_v31 = vadd.f32 %v17885_v19, %v13603_v15  ;;  %v7140_v55 = vshll.u32 %v17703_v7, 16  ;;  %v20578_v4 = vsel %vm17172_vm12, %v20576_v17, %v20577_v18  ;;  %v12979_v18 = vpop.f32.mrb[58].mxu1  ;;  %vm20590_vm12 = vmmov %vm20568_vm8 }
 0x4c5   : > { %vm17905_vm4 = vcmp.lt.s32.totalorder %v20578_v4, 16  ;;  %vm17909_vm7 = vcmp.lt.s32.totalorder %v6023_v21, 16  ;;  %v5202_v3 = vmax.f32 %v5154_v14, 0.0  ;;  %v10837_v57 = vor.u32 %v10836_v37, %v10835_v28  ;;  %v12926_v37 = vpop.f32.mrb[44].mxu0  ;;  %v17928_v30 = vpop.f32.mrb[59].mxu1 }
 0x4c6   : > { %v7139_v15 = vrot.slane %v7137_v10, 3  ;;  %vm20584_vm15 = vnez %v20583_v53  ;;  %v5973_v17 = vadd.s32 24, %v17685_v61  ;;  %v6210_v21 = vsel %vm17811_vm14, %v5201_v23, 0.0  ;;  %v5041_v23 = vpop.f32.mrb[45].mxu0  ;;  %vm17942_vm14 = vmand %vm5877_vm5, %vm5829_vm2  ;;  %v12982_v50 = vpop.f32.mrb[60].mxu1 }
 0x4c7   : > { %v20587_v12 = vsel %vm20584_vm15, %v20585_v41, %v20586_v38  ;;  %v5200_v4 = vmax.f32 %v5152_v31, 0.0  ;;  %v17926_v14 = vsel %vm20590_vm12, %v7125_v25, %v7134_v39  ;;  %v7142_v28 = vrot.slane %v7140_v55, 4  ;;  %vm20609_vm2 = vmmov %vm20571_vm1 }
 0x4c8   : > { %vm17918_vm3 = vcmp.lt.s32.totalorder %v20587_v12, 16  ;;  %20591 = vst [vmem:[#allocation75_spill] sm:$0xff] %v17926_v14  ;;  %v6208_v38 = vsel %vm17830_vm11, %v5199_v0, 0.0  ;;  %v6211_v53 = vsel %vm17839_vm0, %v5202_v3, 0.0  ;;  %13037 = vmatmul.mubr.bf16.gmra.mrb[100].mxu1 %v17926_v14  ;;  %v17936_v41 = vsel %vm20592_vm9, %v10833_v26, %v10837_v57  ;;  %v20596_v12 = vld [vmem:[#allocation99_spill] sm:$0xff]  ;;  %v20597_v14 = vld [vmem:[#allocation100_spill] sm:$0xff]  ;;  %vm20604_vm11 = vmmov %vm20571_vm1 }
 0x4c9   : > { %20593 = vst [vmem:[#allocation66_spill] sm:$0xff] %v17936_v41  ;;  %v10839_v49 = vrot.slane %v7137_v10, 4  ;;  %v17946_v0 = vpack.c.bf16 %v6211_v53, %v6210_v21  ;;  %v6209_v16 = vsel %vm17855_vm13, %v5200_v4, 0.0  ;;  %13544 = vmatprep.mubr.bf16.mxu0 %v17936_v41  ;;  %v7143_v26 = vor.u32 %v7142_v28, %v7139_v15  ;;  %v12927_v10 = vpop.f32.mrb[46].mxu0  ;;  %v20601_v4 = vld [vmem:[#allocation105_spill] sm:$0xff]  ;;  %v17973_v28 = vpop.f32.mrb[61].mxu1  ;;  %vm20607_vm0 = vmmov %vm20599_vm6 }
 0x4ca   : > { %v10840_v31 = vrot.slane %v7140_v55, 5  ;;  %v17951_v3 = vpack.c.bf16 %v6209_v16, %v6208_v38  ;;  %v13604_v18 = vadd.f32 %v12926_v37, %v20596_v12  ;;  %v13605_v6 = vadd.f32 %v5041_v23, %v20597_v14  ;;  %v5044_v27 = vpop.f32.mrb[47].mxu0  ;;  %v17981_v38 = vpop.f32.mrb[62].mxu1  ;;  %vm20611_vm5 = vmmov %vm20607_vm0 }
 0x4cb   : > { %v13606_v45 = vadd.f32 %v12927_v10, %v20598_v44  ;;  %6267 = vst [vmem:[#allocation2 + $0xc0] sm:$0xff] %v17946_v0  ;;  %v17958_v21 = vsel %vm20599_vm6, %v7134_v39, %v7143_v26  ;;  %v13607_v53 = vadd.f32 %v5044_v27, %v20601_v4  ;;  %v6021_v55 = vsel %vm17942_vm14, %v5973_v17, %v17685_v61  ;;  %v17985_v25 = vpop.f32.mrb[63].mxu1  ;;  %vm20613_vm13 = vmmov %vm20571_vm1 }
 0x4cc   : > { %20600 = vst [vmem:[#allocation81_spill] sm:$0xff] %v17958_v21  ;;  %v10841_v9 = vor.u32 %v10840_v31, %v10839_v49  ;;  %6266 = vst [vmem:[#allocation2 + $0xb8] sm:$0xff] %v17951_v3  ;;  %13040 = vmatprep.mubr.bf16.mxu1 %v17958_v21  ;;  %v5157_v15 = vadd.f32 %v17885_v19, %v13604_v18  ;;  %v5155_v44 = vadd.f32 %v17885_v19, %v13605_v6 }
 0x4cd   : > { %v5158_v14 = vadd.f32 %v17885_v19, %v13606_v45  ;;  %vm17969_vm10 = vcmp.lt.s32.totalorder %v6021_v55, 16  ;;  %v5156_v61 = vadd.f32 %v17885_v19, %v13607_v53  ;;  %v7146_v17 = vshrl.u32 %v17792_v29, 16  ;;  %vm20615_vm8 = vmmov %vm20607_vm0 }
 0x4ce   : > { %v17976_v27 = vsel %vm20604_vm11, %v10837_v57, %v10841_v9  ;;  %v7149_v37 = vshll.u32 %v17792_v29, 16  ;;  %v5205_v6 = vmax.f32 %v5157_v15, 0.0  ;;  %v5203_v45 = vmax.f32 %v5155_v44, 0.0  ;;  %vm20623_vm15 = vmmov %vm20571_vm1 }
 0x4cf   : > { %20605 = vst [vmem:[#allocation82_spill] sm:$0xff] %v17976_v27  ;;  %13545 = vmatmul.mubr.bf16.gmra.mrb[72].mxu0 %v17976_v27  ;;  %v5206_v49 = vmax.f32 %v5158_v14, 0.0  ;;  %v7155_v23 = vshrl.u32 %v17779_v62, 16  ;;  %v5204_v50 = vmax.f32 %v5156_v61, 0.0  ;;  %v7148_v57 = vrot.slane %v7146_v17, 3  ;;  %vm20627_vm12 = vmmov %vm20607_vm0 }
 0x4d0   : > { %v7151_v16 = vrot.slane %v7149_v37, 4  ;;  %v10843_v31 = vrot.slane %v7146_v17, 4  ;;  %v6214_v19 = vsel %vm17905_vm4, %v5205_v6, 0.0  ;;  %v10844_v12 = vrot.slane %v7149_v37, 5  ;;  %vm20618_vm4 = vmmov %vm20607_vm0 }
 0x4d1   : > { %v6215_v10 = vsel %vm17909_vm7, %v5206_v49, 0.0  ;;  %v6212_v18 = vsel %vm17918_vm3, %v5203_v45, 0.0  ;;  %v6213_v53 = vsel %vm17969_vm10, %v5204_v50, 0.0  ;;  %v7157_v14 = vrot.slane %v7155_v23, 3  ;;  %v18012_v49 = vpop.f32.mrb[64].mxu1  ;;  %vm20620_vm7 = vmmov %vm20571_vm1 }
 0x4d2   : > { %v17993_v4 = vpack.c.bf16 %v6215_v10, %v6214_v19  ;;  %v7152_v55 = vor.u32 %v7151_v16, %v7148_v57  ;;  %v17997_v15 = vpack.c.bf16 %v6213_v53, %v6212_v18  ;;  %v10845_v44 = vor.u32 %v10844_v12, %v10843_v31  ;;  %v18015_v16 = vpop.f32.mrb[65].mxu1  ;;  %vm20625_vm3 = vmmov %vm20607_vm0 }
 0x4d3   : > { %v7158_v52 = vshll.u32 %v17779_v62, 16  ;;  %v10847_v61 = vrot.slane %v7155_v23, 4  ;;  %v7164_v58 = vshrl.u32 %v17876_v40, 16  ;;  %v7167_v17 = vshll.u32 %v17876_v40, 16  ;;  %v18018_v12 = vpop.f32.mrb[66].mxu1  ;;  %vm20632_vm9 = vmmov %vm20571_vm1 }
 0x4d4   : > { %20606 = vst [vmem:[#allocation67_spill] sm:$0xff] %v17997_v15  ;;  %6269 = vst [vmem:[#allocation2 + $0xd0] sm:$0xff] %v17993_v4  ;;  %v18002_v54 = vsel %vm20607_vm0, %v7143_v26, %v7152_v55  ;;  %v18009_v39 = vsel %vm20609_vm2, %v10841_v9, %v10845_v44  ;;  %v7173_v45 = vshrl.u32 %v17868_v13, 16  ;;  %v7176_v9 = vshll.u32 %v17868_v13, 16 }
 0x4d5   : > { %20608 = vst [vmem:[#allocation84_spill] sm:$0xff] %v18002_v54  ;;  %6268 = vst [vmem:[#allocation2 + $0xc8] sm:$0xff] %v17997_v15  ;;  %13041 = vmatmul.mubr.bf16.gmra.mrb[104].mxu1 %v18002_v54  ;;  %v7160_v37 = vrot.slane %v7158_v52, 4  ;;  %v10848_v6 = vrot.slane %v7158_v52, 5  ;;  %13548 = vmatprep.mubr.bf16.mxu0 %v18009_v39  ;;  %v7166_v26 = vrot.slane %v7164_v58, 3  ;;  %v7169_v23 = vrot.slane %v7167_v17, 4 }
 0x4d6   : > { %20610 = vst [vmem:[#allocation83_spill] sm:$0xff] %v18009_v39  ;;  %v10851_v50 = vrot.slane %v7164_v58, 4  ;;  %v10852_v57 = vrot.slane %v7167_v17, 5  ;;  %v7175_v10 = vrot.slane %v7173_v45, 3  ;;  %v10855_v52 = vrot.slane %v7173_v45, 4  ;;  %v6917_v54 = vpop.f32.mrb[67].mxu1  ;;  %vm20634_vm14 = vmmov %vm20571_vm1 }
 0x4d7   : > { %v7161_v31 = vor.u32 %v7160_v37, %v7157_v14  ;;  %v10849_v19 = vor.u32 %v10848_v6, %v10847_v61  ;;  %v7170_v18 = vor.u32 %v7169_v23, %v7166_v26  ;;  %v7178_v58 = vrot.slane %v7176_v9, 4  ;;  %vm20635_vm6 = vmmov %vm20607_vm0 }
 0x4d8   : > { %v10853_v53 = vor.u32 %v10852_v57, %v10851_v50  ;;  %v10856_v17 = vrot.slane %v7176_v9, 5  ;;  %v7182_v54 = vshrl.u32 %v17951_v3, 16  ;;  %v7191_v6 = vshrl.u32 %v17946_v0, 16  ;;  %vm20637_vm11 = vmmov %vm20571_vm1 }
 0x4d9   : > { %v18021_v21 = vsel %vm20611_vm5, %v7152_v55, %v7161_v31  ;;  %v18024_v34 = vsel %vm20613_vm13, %v10845_v44, %v10849_v19  ;;  %v18029_v14 = vsel %vm20615_vm8, %v7161_v31, %v7170_v18  ;;  %v7185_v55 = vshll.u32 %v17951_v3, 16  ;;  %vm20638_vm0 = vmmov %vm20571_vm1 }
 0x4da   : > { %20612 = vst [vmem:[#allocation70_spill] sm:$0xff] %v18021_v21  ;;  %20614 = vst [vmem:[#allocation87_spill] sm:$0xff] %v18024_v34  ;;  %13044 = vmatprep.mubr.bf16.mxu1 %v18021_v21  ;;  %13549 = vmatmul.mubr.bf16.gmra.mrb[76].mxu0 %v18024_v34  ;;  %v18032_v61 = vsel %vm20571_vm1, %v10849_v19, %v10853_v53  ;;  %v7179_v44 = vor.u32 %v7178_v58, %v7175_v10  ;;  %v7194_v45 = vshll.u32 %v17946_v0, 16  ;;  %v18058_v34 = vpop.f32.mrb[68].mxu1  ;;  %vm7564_vm10 = vcmask 1043456  }
 0x4db   : > { %20616 = vst [vmem:[#allocation85_spill] sm:$0xff] %v18029_v14  ;;  %20617 = vst [vmem:[#allocation72_spill] sm:$0xff] %v18032_v61  ;;  %13552 = vmatprep.mubr.bf16.mxu0 %v18032_v61  ;;  %v10857_v37 = vor.u32 %v10856_v17, %v10855_v52  ;;  %v7184_v26 = vrot.slane %v7182_v54, 3  ;;  %v7187_v23 = vrot.slane %v7185_v55, 4  ;;  %v10859_v50 = vrot.slane %v7182_v54, 4 }
 0x4dc   : > { %v10860_v57 = vrot.slane %v7185_v55, 5  ;;  %v18039_v31 = vld [vmem:[#allocation2 + $0xc8] sm:$0xf]  ;;  %v18043_v19 = vsel %vm20618_vm4, %v7170_v18, %v7179_v44  ;;  %v7193_v9 = vrot.slane %v7191_v6, 3  ;;  %v7196_v21 = vrot.slane %v7194_v45, 4 }
 0x4dd   : > { %13045 = vmatmul.mubr.bf16.gmra.mrb[108].mxu1 %v18029_v14  ;;  %20619 = vst [vmem:[#allocation86_spill] sm:$0xff] %v18043_v19  ;;  %v18047_v10 = vsel %vm20620_vm7, %v10853_v53, %v10857_v37  ;;  %v7188_v52 = vor.u32 %v7187_v23, %v7184_v26  ;;  %v10863_v17 = vrot.slane %v7191_v6, 4  ;;  %v10864_v54 = vrot.slane %v7194_v45, 5  ;;  %v6929_v26 = vpop.f32.mrb[69].mxu1 }
 0x4de   : > { %13048 = vmatprep.mubr.bf16.mxu1 %v18043_v19  ;;  %20621 = vst [vmem:[#allocation94_spill] sm:$0xff] %v18047_v10  ;;  %v10861_v58 = vor.u32 %v10860_v57, %v10859_v50  ;;  %v18049_v61 = vor.u32 %v7196_v21, %v7193_v9  ;;  %v7200_v55 = vshrl.u32 %v18039_v31, 16  ;;  %v7203_v14 = vshll.u32 %v18039_v31, 16  ;;  %v12991_v57 = vpop.f32.mrb[70].mxu1 }
 0x4df   : > { %v19900_v46 = vshrl.u32 %v17997_v15, 16  ;;  %v19903_v19 = vshll.u32 %v17997_v15, 16  ;;  %v18061_v53 = vsel %vm20625_vm3, %v7179_v44, %v7188_v52  ;;  %v10017_v23 = vshrl.u32 %v17993_v4, 16  ;;  %v18077_v9 = vpop.f32.mrb[71].mxu1  ;;  %v18079_v15 = vld [vmem:[#allocation2 + $0x8] sm:$0xf0] }
 0x4e0   : > { %20622 = vst [vmem:[#allocation89_spill] sm:$0xff] %v18049_v61  ;;  %v18054_v18 = vsel %vm20623_vm15, %v10857_v37, %v10861_v58  ;;  %20626 = vst [vmem:[#allocation92_spill] sm:$0xff] %v18061_v53  ;;  %v7202_v6 = vrot.slane %v7200_v55, 3  ;;  %v7205_v21 = vrot.slane %v7203_v14, 4  ;;  %v10020_v50 = vshll.u32 %v17993_v4, 16 }
 0x4e1   : > { %20624 = vst [vmem:[#allocation96_spill] sm:$0xff] %v18054_v18  ;;  %v10867_v45 = vrot.slane %v19900_v46, 4  ;;  %v10868_v37 = vrot.slane %v19903_v19, 5  ;;  %v18073_v44 = vsel %vm20627_vm12, %v7188_v52, %v18049_v61  ;;  %v18075_v14 = vor.u32 %v10864_v54, %v10863_v17  ;;  %v18085_v19 = vld [vmem:[#allocation2] sm:$0xff] }
 0x4e2   : > { %13553 = vmatmul.mubr.bf16.gmra.mrb[80].mxu0 %v18047_v10  ;;  %20628 = vst [vmem:[#allocation108_spill] sm:$0xff] %v18073_v44  ;;  %v10019_v26 = vrot.slane %v10017_v23, 3  ;;  %v10022_v46 = vrot.slane %v10020_v50, 4  ;;  %v7206_v4 = vor.u32 %v7205_v21, %v7202_v6  ;;  %20631 = vst [vmem:[#allocation30_spill] sm:$0xff] %v18085_v19  ;;  %v19910_v52 = vshrl.u32 %v18085_v19, 16 }
 0x4e3   : > { %13556 = vmatprep.mubr.bf16.mxu0 %v18054_v18  ;;  %20629 = vst [vmem:[#allocation101_spill] sm:$0xff] %v18075_v14  ;;  %v10869_v55 = vor.u32 %v10868_v37, %v10867_v45  ;;  %v19911_v17 = vshll.u32 %v18085_v19, 16  ;;  %v18091_v54 = vsel %vm20632_vm9, %v10861_v58, %v18075_v14  ;;  %v10871_v45 = vrot.slane %v10017_v23, 4 }
 0x4e4   : > { %v18083_v57 = vor.u32 %v10022_v46, %v10019_v26  ;;  %20633 = vst [vmem:[#allocation33_spill] sm:$0xff] %v18091_v54  ;;  %v10872_v37 = vrot.slane %v10020_v50, 5  ;;  %v7565_v18 = vrot.slane %v18079_v15, 4  ;;  %v7566_v46 = vrot.slane %v18085_v19, 4  ;;  %v18255_v19 = vld [vmem:[#allocation2 + $0x78] sm:$0xff] }
 0x4e5   : > { %13049 = vmatmul.mubr.bf16.gmra.mrb[112].mxu1 %v18061_v53  ;;  %v7207_v6 = vsel %vm20635_vm6, %v18049_v61, %v7206_v4  ;;  %v10875_v21 = vrot.slane %v19910_v52, 4  ;;  %v10876_v58 = vrot.slane %v19911_v17, 5  ;;  %v14481_v53 = vld [vmem:[#allocation2 + $0x18] sm:$0xff]  ;;  %v14482_v4 = vld [vmem:[#allocation2 + $0x20] sm:$0xff]  ;;  %vm20665_vm2 = vsmask.f32 7424 }
 0x4e6   : > { %13052 = vmatprep.mubr.bf16.mxu1 %v18073_v44  ;;  %20630 = vst [vmem:[#allocation95_spill] sm:$0xff] %v18083_v57  ;;  %v10870_v44 = vsel %vm20634_vm14, %v18075_v14, %v10869_v55  ;;  %v10873_v23 = vor.u32 %v10872_v37, %v10871_v45  ;;  %v7567_v50 = vsel %vm7564_vm10, %v7565_v18, %v7566_v46  ;;  %v7568_v14 = vrot.slane %v14481_v53, 4  ;;  %v14405_v17 = vld [vmem:[#allocation8 + $0x88] sm:$0xff]   ;;  %v14406_v45 = vld [vmem:[#allocation8 + $0x90] sm:$0xff]   ;;  %vm20667_vm5 = vmmov %vm20665_vm2 }
 0x4e7   : > { %v18105_v26 = vor.u32 %v10876_v58, %v10875_v21  ;;  %v7570_v61 = vrot.slane %v14482_v4, 4  ;;  %v18114_v18 = vld [vmem:[%s19729_s6] ss:$0 sm:$0xff]  ;;  %v14483_v37 = vld [vmem:[#allocation2 + $0x28] sm:$0xff]  ;;  %vm20670_vm13 = vmmov %vm20665_vm2 }
 0x4e8   : > { %v10874_v57 = vsel %vm20637_vm11, %v10869_v55, %v10873_v23  ;;  %v18119_v53 = vadd.f32 %v18114_v18, %v17928_v30  ;;  %v7572_v30 = vrot.slane %v14483_v37, 4  ;;  %v18148_v21 = vadd.f32 %v18058_v34, %v18114_v18  ;;  %v14409_v34 = vld [vmem:[#allocation8 + $0xa8] sm:$0xff]   ;;  %v14488_v37 = vld [vmem:[#allocation2 + $0x50] sm:$0xff]  ;;  %vm20672_vm8 = vmmov %vm20665_vm2 }
 0x4e9   : > { %20636 = vst [vmem:[#allocation35_spill] sm:$0xff] %v18105_v26  ;;  %v10878_v52 = vsel %vm20638_vm0, %v10873_v23, %v18105_v26  ;;  %v7571_v55 = vsel %vm7564_vm10, %v7568_v14, %v7570_v61  ;;  %v18153_v58 = vadd.f32 %v18114_v18, %v18077_v9  ;;  %vm20676_vm1 = vmmov %vm20665_vm2 }
 0x4ea   : > { %13557 = vmatmul.mubr.bf16.gmra.mrb[84].mxu0 %v18091_v54  ;;  %20639 = vst [vmem:[#allocation38_spill] sm:$0xff] %v18119_v53  ;;  %20646 = vst [vmem:[#allocation112_spill] sm:$0xff] %v18148_v21  ;;  %v18301_v21 = vld [vmem:[#allocation2 + $0xc8] sm:$0xff]  ;;  %v18311_v54 = vld [vmem:[#allocation2 + $0xd0] sm:$0xff] }
 0x4eb   : > { %13560 = vmatprep.mubr.bf16.mxu0 %v10870_v44  ;;  %v7569_v44 = vsel %vm7564_vm10, %v7566_v46, %v7568_v14  ;;  %v18132_v14 = vadd.f32 %v18114_v18, %v17985_v25  ;;  %v18136_v46 = vadd.f32 %v18012_v49, %v18114_v18  ;;  %v14407_v25 = vld [vmem:[#allocation8 + $0x98] sm:$0xff]   ;;  %v7573_v49 = vsel %vm7564_vm10, %v7570_v61, %v7572_v30  ;;  %vm20681_vm4 = vmmov %vm20676_vm1 }
 0x4ec   : > { %20647 = vst [vmem:[#allocation111_spill] sm:$0xff] %v18153_v58  ;;  %v18263_v58 = vld [vmem:[#allocation2 + $0x88] sm:$0xff]  ;;  %20656 = vst [vmem:[#allocation51_spill] sm:$0xff] %v18311_v54 }
 0x4ed   : > { %13053 = vmatmul.mubr.bf16.gmra.mrb[116].mxu1 %v7207_v6  ;;  %20642 = vst [vmem:[#allocation97_spill] sm:$0xff] %v18132_v14  ;;  %20643 = vst [vmem:[#allocation110_spill] sm:$0xff] %v18136_v46  ;;  %v18279_v46 = vld [vmem:[#allocation2 + $0xa8] sm:$0xff] }
 0x4ee   : > { %13072 = vmatprep.mubr.bf16.mxu1 %v7567_v50  ;;  %v14486_v50 = vld [vmem:[#allocation2 + $0x40] sm:$0xff]  ;;  %vm20690_vm7 = vmmov %vm20676_vm1 }
 0x4ef   : > { %v7578_v4 = vrot.slane %v14486_v50, 4  ;;  %vm20695_vm15 = vmmov %vm20676_vm1 }
 0x4f0   : > { %vm20697_vm3 = vmmov %vm20676_vm1 }
 0x4f1   : > { %vm20699_vm12 = vmmov %vm20676_vm1 }
 0x4f2   : > { %13561 = vmatmul.mubr.bf16.gmra.mrb[88].mxu0 %v10874_v57  ;;  %v18123_v57 = vadd.f32 %v18114_v18, %v17973_v28  ;;  %v14484_v28 = vld [vmem:[#allocation2 + $0x30] sm:$0xff]  ;;  %vm20702_vm9 = vmmov %vm20676_vm1 }
 0x4f3   : > { %13564 = vmatprep.mubr.bf16.mxu0 %v10878_v52  ;;  %v18128_v52 = vadd.f32 %v17981_v38, %v18114_v18  ;;  %v7574_v6 = vrot.slane %v14484_v28, 4  ;;  %v18144_v38 = vadd.f32 %v18018_v12, %v18114_v18  ;;  %v14408_v12 = vld [vmem:[#allocation8 + $0xa0] sm:$0xff]   ;;  %v14411_v28 = vld [vmem:[#allocation8 + $0xb8] sm:$0xff]   ;;  %vm20704_vm14 = vmmov %vm20676_vm1 }
 0x4f4   : > { %20640 = vst [vmem:[#allocation109_spill] sm:$0xff] %v18123_v57  ;;  %v18294_v57 = vld [vmem:[#allocation2 + $0xc0] sm:$0xff]  ;;  %vm20708_vm6 = vmmov %vm20676_vm1 }
 0x4f5   : > { %13073 = vmatmul.mubr.bf16.vlgmr.msra.gmra.mrb[120].mxu1 %v7569_v44  ;;  %20641 = vst [vmem:[#allocation106_spill] sm:$0xff] %v18128_v52  ;;  %20645 = vst [vmem:[#allocation98_spill] sm:$0xff] %v18144_v38  ;;  %v14410_v44 = vld [vmem:[#allocation8 + $0xb0] sm:$0xff]   ;;  %v18271_v38 = vld [vmem:[#allocation2 + $0x98] sm:$0xff] }
 0x4f6   : > { %13076 = vmatprep.mubr.bf16.mxu1 %v7571_v55  ;;  %13121 = vmatpush3.bf16.msra.mxu1 %v17508_v32  ;;  %v18140_v32 = vadd.f32 %v18114_v18, %v18015_v16  ;;  %v7575_v16 = vsel %vm7564_vm10, %v7572_v30, %v7574_v6  ;;  %v14487_v55 = vld [vmem:[#allocation2 + $0x48] sm:$0xff]  ;;  %v7582_v30 = vrot.slane %v14488_v37, 4  ;;  %v7596_v37 = vrot.slane %v17709_v51, 4  ;;  %v18287_v52 = vld [vmem:[#allocation2 + $0xb8] sm:$0xff]  ;;  %vm20713_vm11 = vmmov %vm20676_vm1 }
 0x4f7   : > { %13122 = vmatprep.subr.bf16.mxu1 %v14405_v17  ;;  %vm20722_vm0 = vmmov %vm20676_vm1 }
 0x4f8   : > { %20644 = vst [vmem:[#allocation107_spill] sm:$0xff] %v18140_v32 }
 0x4fa   : > { %13123 = vmatpush3.bf16.msra.mxu1 %v14405_v17  ;;  %v14485_v17 = vld [vmem:[#allocation2 + $0x38] sm:$0xff] }
 0x4fb   : > { %13124 = vmatprep.subr.bf16.mxu1 %v14406_v45  ;;  %v7576_v23 = vrot.slane %v14485_v17, 4  ;;  %v14490_v17 = vld [vmem:[#allocation2 + $0x60] sm:$0xff] }
 0x4fd   : > { %13077 = vmatmul.mubr.bf16.gmra.mrb[124].mxu1 %v7573_v49  ;;  %v7577_v61 = vsel %vm7564_vm10, %v7574_v6, %v7576_v23  ;;  %v7579_v9 = vsel %vm7564_vm10, %v7576_v23, %v7578_v4  ;;  %v18160_v6 = vld [vmem:[#allocation8 + $0xc0] sm:$0xff]   ;;  %v7586_v23 = vrot.slane %v14490_v17, 4 }
 0x4fe   : > { %13080 = vmatprep.mubr.bf16.mxu1 %v7575_v16  ;;  %13125 = vmatpush3.bf16.msra.mxu1 %v14406_v45  ;;  %v7580_v45 = vrot.slane %v14487_v55, 4  ;;  %v14489_v16 = vld [vmem:[#allocation2 + $0x58] sm:$0xff]  ;;  %v18170_v55 = vrot.slane %v17621_v11, 4 }
 0x4ff   : > { %13126 = vmatprep.subr.bf16.mxu1 %v14407_v25 }
 0x500   : > { %v7583_v49 = vsel %vm7564_vm10, %v7580_v45, %v7582_v30  ;;  %20648 = vst [vmem:[#allocation102_spill] sm:$0xff] %v18170_v55  ;;  %v18190_v51 = vsel %vm7564_vm10, %v18170_v55, %v7596_v37 }
 0x502   : > { %13127 = vmatpush3.bf16.msra.mxu1 %v14407_v25  ;;  %v7581_v25 = vsel %vm7564_vm10, %v7578_v4, %v7580_v45  ;;  %v7592_v45 = vrot.slane %v17627_v8, 4 }
 0x503   : > { %13128 = vmatprep.subr.bf16.mxu1 %v14408_v12 }
 0x504   : > { %v7595_v8 = vsel %vm7564_vm10, %v7592_v45, %v18170_v55 }
 0x505   : > { %13081 = vmatmul.mubr.bf16.gmra.mrb[128].mxu1 %v7577_v61  ;;  %v7590_v61 = vrot.slane %v17527_v47, 4  ;;  %v7600_v47 = vrot.slane %v17792_v29, 4 }
 0x506   : > { %13084 = vmatprep.mubr.bf16.mxu1 %v7579_v9  ;;  %13129 = vmatpush3.bf16.msra.mxu1 %v14408_v12  ;;  %v7584_v12 = vrot.slane %v14489_v16, 4  ;;  %v18212_v16 = vld [vmem:[#allocation2 + $0x28] sm:$0xff] }
 0x507   : > { %13130 = vmatprep.subr.bf16.mxu1 %v14409_v34  ;;  %v7593_v11 = vsel %vm7564_vm10, %v7590_v61, %v7592_v45  ;;  %v18257_v45 = vld [vmem:[#allocation2 + $0x80] sm:$0xff]  ;;  %v20657_v14 = vshll.u32 %v18212_v16, 16  ;;  %v20662_v2 = vshrl.u32 %v18212_v16, 16 }
 0x508   : > { %v7585_v50 = vsel %vm7564_vm10, %v7582_v30, %v7584_v12  ;;  %v7587_v4 = vsel %vm7564_vm10, %v7584_v12, %v7586_v23  ;;  %v18175_v30 = vrot.slane %v17703_v7, 4  ;;  %v18192_v7 = vld [vmem:[#allocation2 + $0x18] sm:$0xff]  ;;  %v18214_v12 = vld [vmem:[#allocation2 + $0x30] sm:$0xff] }
 0x509   : > { %20652 = vst [vmem:[#allocation48_spill] sm:$0xff] %v18192_v7  ;;  %20653 = vst [vmem:[#allocation50_spill] sm:$0xff] %v18214_v12  ;;  %v20654_v26 = vshll.u32 %v18192_v7, 16  ;;  %v20658_v10 = vshll.u32 %v18214_v12, 16  ;;  %v20659_v39 = vshrl.u32 %v18192_v7, 16 }
 0x50a   : > { %13131 = vmatpush3.bf16.msra.mxu1 %v14409_v34  ;;  %v7588_v34 = vrot.slane %v17536_v1, 4  ;;  %20649 = vst [vmem:[#allocation114_spill] sm:$0xff] %v18175_v30  ;;  %v18178_v1 = vrot.slane %v17779_v62, 4  ;;  %v18194_v62 = vld [vmem:[#allocation2 + $0x20] sm:$0xff]  ;;  %v18198_v29 = vsel %vm7564_vm10, %v7596_v37, %v18175_v30 }
 0x50b   : > { %13132 = vmatprep.subr.bf16.mxu1 %v14410_v44  ;;  %v9273_v37 = vrot.slane %v20654_v26, 1  ;;  %v20655_v53 = vshll.u32 %v18194_v62, 16  ;;  %v20660_v59 = vshrl.u32 %v18194_v62, 16 }
 0x50c   : > { %v7589_v9 = vsel %vm7564_vm10, %v7586_v23, %v7588_v34  ;;  %20650 = vst [vmem:[#allocation113_spill] sm:$0xff] %v18178_v1  ;;  %v18249_v23 = vld [vmem:[#allocation2 + $0x70] sm:$0xff] }
 0x50d   : > { %13085 = vmatmul.mubr.bf16.gmra.mrb[132].mxu1 %v7581_v25  ;;  %v18183_v25 = vrot.slane %v17868_v13, 4  ;;  %v18202_v13 = vsel %vm7564_vm10, %v18175_v30, %v7600_v47  ;;  %v18247_v30 = vld [vmem:[#allocation2 + $0x68] sm:$0xff]  ;;  %v9274_v26 = vor.u32 %v9273_v37, %v20659_v39 }
 0x50e   : > { %13088 = vmatprep.mubr.bf16.mxu1 %v7583_v49  ;;  %13133 = vmatpush3.bf16.msra.mxu1 %v14410_v44  ;;  %v7591_v44 = vsel %vm7564_vm10, %v7588_v34, %v7590_v61  ;;  %v18223_v34 = vld [vmem:[#allocation2 + $0x38] sm:$0xff]  ;;  %v18225_v61 = vld [vmem:[#allocation2 + $0x40] sm:$0xff] }
 0x50f   : > { %13134 = vmatprep.subr.bf16.mxu1 %v14411_v28  ;;  %20651 = vst [vmem:[#allocation104_spill] sm:$0xff] %v18183_v25  ;;  %v20661_v55 = vshll.u32 %v18223_v34, 16 }
 0x511   : > { %v9302_v43 = vrot.slane %v20661_v55, 1  ;;  %v20669_v55 = vshrl.u32 %v18223_v34, 16 }
 0x512   : > { %13135 = vmatpush3.bf16.msra.mxu1 %v14411_v28  ;;  %v7604_v28 = vrot.slane %v17876_v40, 4  ;;  %v18206_v40 = vsel %vm7564_vm10, %v7600_v47, %v18178_v1  ;;  %v18231_v47 = vld [vmem:[#allocation2 + $0x48] sm:$0xff] }
 0x513   : > { %13184 = vmatprep.subr.bf16.mxu1 %v18160_v6  ;;  %v9306_v37 = vor.u32 %v9302_v43, %v20669_v55  ;;  %v20675_v7 = vshll.u32 %v18231_v47, 16 }
 0x514   : > { %v18210_v49 = vsel %vm7564_vm10, %v18178_v1, %v7604_v28  ;;  %v18218_v17 = vsel %vm7564_vm10, %v7604_v28, %v18183_v25  ;;  %v18233_v28 = vld [vmem:[#allocation2 + $0x50] sm:$0xff]  ;;  %v18273_v1 = vld [vmem:[#allocation2 + $0xa0] sm:$0xff] }
 0x515   : > { %13089 = vmatmul.mubr.bf16.gmra.mrb[136].mxu1 %v7585_v50  ;;  %v18265_v50 = vld [vmem:[#allocation2 + $0x90] sm:$0xff] }
 0x516   : > { %13092 = vmatprep.mubr.bf16.mxu1 %v7587_v4  ;;  %v18281_v4 = vld [vmem:[#allocation2 + $0xb0] sm:$0xff] }
 0x51d   : > { %13093 = vmatmul.mubr.bf16.gmra.mrb[140].mxu1 %v7589_v9  ;;  %v18239_v9 = vld [vmem:[#allocation2 + $0x58] sm:$0xff] }
 0x51e   : > { %13096 = vmatprep.mubr.bf16.mxu1 %v7591_v44  ;;  %v18241_v44 = vld [vmem:[#allocation2 + $0x60] sm:$0xff] }
 0x525   : > { %13097 = vmatmul.mubr.bf16.gmra.mrb[144].mxu1 %v7593_v11 }
 0x526   : > { %13100 = vmatprep.mubr.bf16.mxu1 %v7595_v8  ;;  %v9294_v8 = vrot.slane %v20658_v10, 1  ;;  %v20664_v10 = vshll.u32 %v18225_v61, 16 }
 0x528   : > { %v9310_v32 = vrot.slane %v20664_v10, 1 }
 0x52d   : > { %13101 = vmatmul.mubr.bf16.gmra.mrb[148].mxu1 %v18190_v51  ;;  %v9286_v51 = vrot.slane %v20657_v14, 1  ;;  %v20663_v14 = vshrl.u32 %v18214_v12, 16  ;;  %v9318_v12 = vrot.slane %v20675_v7, 1  ;;  %v20683_v7 = vshrl.u32 %v18231_v47, 16 }
 0x52e   : > { %13104 = vmatprep.mubr.bf16.mxu1 %v18198_v29  ;;  %v9278_v29 = vrot.slane %v20655_v53, 1 }
 0x52f   : > { %v9290_v27 = vor.u32 %v9286_v51, %v20662_v2  ;;  %v9298_v41 = vor.u32 %v9294_v8, %v20663_v14  ;;  %v20674_v14 = vshrl.u32 %v18225_v61, 16 }
 0x530   : > { %v9282_v53 = vor.u32 %v9278_v29, %v20660_v59  ;;  %v18333_v39 = vsel %vm20665_vm2, %v9274_v26, %v9278_v29  ;;  %v20678_v29 = vshll.u32 %v18233_v28, 16  ;;  %vm20727_vm2 = vmmov %vm20722_vm0 }
 0x531   : > { %20666 = vst [vmem:[#allocation52_spill] sm:$0xff] %v18333_v39  ;;  %v18341_v11 = vsel %vm20670_vm13, %v9290_v27, %v9294_v8  ;;  %v18344_v2 = vsel %vm20672_vm8, %v9298_v41, %v9302_v43  ;;  %v9314_v10 = vor.u32 %v9310_v32, %v20674_v14  ;;  %v20679_v27 = vshll.u32 %v18239_v9, 16  ;;  %vm20731_vm13 = vmmov %vm20722_vm0 }
 0x532   : > { %v18336_v59 = vsel %vm20667_vm5, %v9282_v53, %v9286_v51  ;;  %20671 = vst [vmem:[#allocation60_spill] sm:$0xff] %v18341_v11  ;;  %20673 = vst [vmem:[#allocation62_spill] sm:$0xff] %v18344_v2  ;;  %v18352_v51 = vsel %vm20676_vm1, %v9306_v37, %v9310_v32  ;;  %v9326_v26 = vrot.slane %v20678_v29, 1  ;;  %v20680_v43 = vshll.u32 %v18241_v44, 16 }
 0x533   : > { %20668 = vst [vmem:[#allocation58_spill] sm:$0xff] %v18336_v59  ;;  %20677 = vst [vmem:[#allocation63_spill] sm:$0xff] %v18352_v51  ;;  %v9334_v8 = vrot.slane %v20679_v27, 1  ;;  %v18362_v53 = vsel %vm20681_vm4, %v9314_v10, %v9318_v12  ;;  %v20684_v32 = vshll.u32 %v18247_v30, 16  ;;  %v20685_v37 = vshll.u32 %v18249_v23, 16 }
 0x534   : > { %v9342_v41 = vrot.slane %v20680_v43, 1  ;;  %20682 = vst [vmem:[#allocation119_spill] sm:$0xff] %v18362_v53  ;;  %v20686_v29 = vshrl.u32 %v18233_v28, 16  ;;  %v20687_v51 = vshrl.u32 %v18239_v9, 16  ;;  %v20689_v10 = vshll.u32 %v18255_v19, 16  ;;  %vm20729_vm5 = vmmov %vm20722_vm0 }
 0x535   : > { %13105 = vmatmul.mubr.bf16.gmra.mrb[152].mxu1 %v18202_v13  ;;  %v9322_v13 = vor.u32 %v9318_v12, %v20683_v7  ;;  %v9350_v55 = vrot.slane %v20684_v32, 1  ;;  %v9358_v14 = vrot.slane %v20685_v37, 1  ;;  %v20692_v7 = vshrl.u32 %v18247_v30, 16  ;;  %vm20734_vm8 = vmmov %vm20722_vm0 }
 0x536   : > { %13108 = vmatprep.mubr.bf16.mxu1 %v18206_v40  ;;  %v9330_v27 = vor.u32 %v9326_v26, %v20686_v29  ;;  %v9338_v43 = vor.u32 %v9334_v8, %v20687_v51  ;;  %v20688_v40 = vshrl.u32 %v18241_v44, 16  ;;  %v9366_v53 = vrot.slane %v20689_v10, 1  ;;  %vm20736_vm1 = vmmov %vm20722_vm0 }
 0x537   : > { %v18379_v12 = vsel %vm20690_vm7, %v9322_v13, %v9326_v26  ;;  %v9354_v32 = vor.u32 %v9350_v55, %v20692_v7  ;;  %v20693_v37 = vshrl.u32 %v18249_v23, 16  ;;  %v20694_v29 = vshll.u32 %v18257_v45, 16  ;;  %vm20741_vm4 = vmmov %vm20722_vm0 }
 0x538   : > { %v9346_v2 = vor.u32 %v9342_v41, %v20688_v40  ;;  %20691 = vst [vmem:[#allocation120_spill] sm:$0xff] %v18379_v12  ;;  %v18388_v51 = vsel %vm20695_vm15, %v9330_v27, %v9334_v8  ;;  %v18391_v40 = vsel %vm20697_vm3, %v9338_v43, %v9342_v41  ;;  %v20701_v26 = vshrl.u32 %v18255_v19, 16  ;;  %vm20744_vm7 = vmmov %vm20722_vm0 }
 0x539   : > { %v9362_v11 = vor.u32 %v9358_v14, %v20693_v37  ;;  %v9374_v59 = vrot.slane %v20694_v29, 1  ;;  %20696 = vst [vmem:[#allocation115_spill] sm:$0xff] %v18388_v51  ;;  %20698 = vst [vmem:[#allocation121_spill] sm:$0xff] %v18391_v40  ;;  %v18399_v7 = vsel %vm20702_vm9, %v9354_v32, %v9358_v14  ;;  %v20706_v29 = vshrl.u32 %v18257_v45, 16  ;;  %v20814_v51 = vld [vmem:[#allocation96_spill] sm:$0xff] }
 0x53a   : > { %v18394_v10 = vsel %vm20699_vm12, %v9346_v2, %v9350_v55  ;;  %v9370_v13 = vor.u32 %v9366_v53, %v20701_v26  ;;  %20703 = vst [vmem:[#allocation116_spill] sm:$0xff] %v18399_v7  ;;  %v20707_v8 = vshll.u32 %v18263_v58, 16  ;;  %v20710_v2 = vshll.u32 %v18265_v50, 16  ;;  %vm20751_vm15 = vmmov %vm20722_vm0 }
 0x53b   : > { %20700 = vst [vmem:[#allocation122_spill] sm:$0xff] %v18394_v10  ;;  %v18402_v37 = vsel %vm20704_vm14, %v9362_v11, %v9366_v53  ;;  %v9378_v12 = vor.u32 %v9374_v59, %v20706_v29  ;;  %v20711_v43 = vshll.u32 %v18271_v38, 16  ;;  %v20712_v14 = vshll.u32 %v18273_v1, 16 }
 0x53c   : > { %20705 = vst [vmem:[#allocation124_spill] sm:$0xff] %v18402_v37  ;;  %v9382_v27 = vrot.slane %v20707_v8, 1  ;;  %v18409_v41 = vsel %vm20708_vm6, %v9370_v13, %v9374_v59  ;;  %v9390_v55 = vrot.slane %v20710_v2, 1  ;;  %v20715_v53 = vshrl.u32 %v18263_v58, 16 }
 0x53d   : > { %20709 = vst [vmem:[#allocation125_spill] sm:$0xff] %v18409_v41  ;;  %v9398_v26 = vrot.slane %v20711_v43, 1  ;;  %v9406_v32 = vrot.slane %v20712_v14, 1  ;;  %v20716_v8 = vshll.u32 %v18279_v46, 16  ;;  %v20717_v59 = vshll.u32 %v18281_v4, 16  ;;  %13109 = vmatmul.mubr.bf16.gmra.mrb[156].mxu1 %v18210_v49 }
 0x53e   : > { %v18418_v11 = vsel %vm20713_vm11, %v9378_v12, %v9382_v27  ;;  %v9386_v29 = vor.u32 %v9382_v27, %v20715_v53  ;;  %v20718_v2 = vshrl.u32 %v18265_v50, 16  ;;  %v20719_v41 = vshrl.u32 %v18271_v38, 16  ;;  %13112 = vmatprep.mubr.bf16.mxu1 %v18218_v17 }
 0x53f   : > { %20714 = vst [vmem:[#allocation117_spill] sm:$0xff] %v18418_v11  ;;  %v9414_v37 = vrot.slane %v20716_v8, 1  ;;  %v9422_v13 = vrot.slane %v20717_v59, 1  ;;  %v20720_v12 = vshrl.u32 %v18273_v1, 16  ;;  %v20721_v7 = vshll.u32 %v18287_v52, 16 }
 0x540   : > { %v9394_v43 = vor.u32 %v9390_v55, %v20718_v2  ;;  %v9402_v14 = vor.u32 %v9398_v26, %v20719_v41  ;;  %v18437_v53 = vsel %vm20722_vm0, %v9386_v29, %v9390_v55  ;;  %v20724_v8 = vshrl.u32 %v18279_v46, 16 }
 0x541   : > { %v9410_v11 = vor.u32 %v9406_v32, %v20720_v12  ;;  %v9430_v27 = vrot.slane %v20721_v7, 1  ;;  %20723 = vst [vmem:[#allocation71_spill] sm:$0xff] %v18437_v53  ;;  %v20725_v59 = vshrl.u32 %v18281_v4, 16  ;;  %v20726_v10 = vshll.u32 %v18294_v57, 16 }
 0x542   : > { %v9418_v49 = vor.u32 %v9414_v37, %v20724_v8  ;;  %v18446_v40 = vsel %vm20727_vm2, %v9394_v43, %v9398_v26  ;;  %v18449_v12 = vsel %vm20729_vm5, %v9402_v14, %v9406_v32  ;;  %v20733_v7 = vshrl.u32 %v18287_v52, 16 }
 0x543   : > { %v9426_v2 = vor.u32 %v9422_v13, %v20725_v59  ;;  %v9438_v41 = vrot.slane %v20726_v10, 1  ;;  %20728 = vst [vmem:[#allocation73_spill] sm:$0xff] %v18446_v40  ;;  %20730 = vst [vmem:[#allocation76_spill] sm:$0xff] %v18449_v12  ;;  %v18452_v17 = vsel %vm20731_vm13, %v9410_v11, %v9414_v37  ;;  %v20738_v10 = vshrl.u32 %v18294_v57, 16  ;;  %v8368_v40 = vld [vmem:[#allocation2 + $0x10] sm:$0x80] }
 0x544   : > { %20732 = vst [vmem:[#allocation78_spill] sm:$0xff] %v18452_v17  ;;  %v9434_v55 = vor.u32 %v9430_v27, %v20733_v7  ;;  %v18457_v29 = vsel %vm20734_vm8, %v9418_v49, %v9422_v13  ;;  %v20739_v26 = vshll.u32 %v18301_v21, 16  ;;  %v18467_v32 = vrot.slane %v17946_v0, 4 }
 0x545   : > { %20735 = vst [vmem:[#allocation127_spill] sm:$0xff] %v18457_v29  ;;  %v18460_v8 = vsel %vm20736_vm1, %v9426_v2, %v9430_v27  ;;  %v9442_v59 = vor.u32 %v9438_v41, %v20738_v10  ;;  %v19930_v37 = vshrl.u32 %v18311_v54, 16  ;;  %v20743_v13 = vshll.u32 %v18311_v54, 16 }
 0x546   : > { %20737 = vst [vmem:[#allocation126_spill] sm:$0xff] %v18460_v8  ;;  %v9446_v43 = vrot.slane %v20739_v26, 1  ;;  %20740 = vst [vmem:[#allocation118_spill] sm:$0xff] %v18467_v32  ;;  %v18471_v11 = vsel %vm20741_vm4, %v9434_v55, %v9438_v41  ;;  %v20746_v49 = vshrl.u32 %v18301_v21, 16  ;;  %v20747_v7 = vshrl.u32 %v18079_v15, 16 }
 0x547   : > { %20742 = vst [vmem:[#allocation129_spill] sm:$0xff] %v18471_v11  ;;  %v9454_v14 = vrot.slane %v20743_v13, 1  ;;  %v20748_v0 = vshll.u32 %v18079_v15, 16  ;;  %v20750_v41 = vrot.slane %v17951_v3, 4  ;;  %v20754_v15 = vmov 0   ;;  %v20808_v11 = vld [vmem:[#allocation72_spill] sm:$0xff] }
 0x548   : > { %v18476_v27 = vsel %vm20744_vm7, %v9442_v59, %v9446_v43  ;;  %v9450_v2 = vor.u32 %v9446_v43, %v20746_v49  ;;  %v7949_v10 = vrot.slane %v20747_v7, 4  ;;  %v7955_v49 = vrot.slane %v20754_v15, 5 }
 0x549   : > { %20745 = vst [vmem:[#allocation128_spill] sm:$0xff] %v18476_v27  ;;  %v7952_v26 = vrot.slane %v20748_v0, 5  ;;  %v18486_v8 = vor.u32 %v9454_v14, %v19930_v37  ;;  %v7609_v55 = vsel %vm7564_vm10, %v18183_v25, %v20750_v41  ;;  %v20753_v43 = vmov %v20750_v41  ;;  %v20755_v37 = vld [vmem:[#allocation17_spill] sm:$0xff] }
 0x54a   : > { %v18493_v59 = vsel %vm20751_vm15, %v9450_v2, %v9454_v14  ;;  %13113 = vmatmul.mubr.bf16.gmra.mrb[160].mxu1 %v7609_v55  ;;  %v7611_v13 = vsel %vm7564_vm10, %v20753_v43, %v18467_v32  ;;  %v7612_v0 = vrot.slane %v18039_v31, 4  ;;  %vm20756_vm3 = vsmask.f32 3328  ;;  %v20757_v2 = vld [vmem:[#allocation18_spill] sm:$0xff]  ;;  %v20760_v43 = vld [vmem:[#allocation21_spill] sm:$0xff] }
 0x54b   : > { %20749 = vst [vmem:[#allocation123_spill] sm:$0xff] %v18486_v8  ;;  %20752 = vst [vmem:[#allocation88_spill] sm:$0xff] %v18493_v59  ;;  %13116 = vmatprep.mubr.bf16.mxu1 %v7611_v13  ;;  %v7953_v7 = vor.u32 %v7952_v26, %v7949_v10  ;;  %v7956_v8 = vor.u32 %v7955_v49, %v20755_v37  ;;  %v20758_v41 = vshrl.u32 %v20757_v2, 16  ;;  %v20759_v3 = vshll.u32 %v20757_v2, 16  ;;  %v14413_v49 = vld [vmem:[#allocation8 + $0xc8] sm:$0xff]  }
 0x54c   : > { %v7613_v14 = vsel %vm7564_vm10, %v18467_v32, %v7612_v0  ;;  %v20761_v15 = vshrl.u32 %v20760_v43, 16  ;;  %v20762_v10 = vshll.u32 %v20760_v43, 16  ;;  %vm20763_vm12 = vmmov %vm20756_vm3  ;;  %v20764_v0 = vld [vmem:[#allocation28_spill] sm:$0xff]  ;;  %vm8410_vm6 = vsmask.f32 256 }
 0x54d   : > { %v7957_v27 = vsel %vm20756_vm3, %v7953_v7, %v7956_v8  ;;  %v7958_v55 = vrot.slane %v20758_v41, 4  ;;  %v7959_v25 = vrot.slane %v20759_v3, 5  ;;  %v6768_v32 = vadd.f32 %v18114_v18, %v20764_v0  ;;  %vm20765_vm9 = vmmov %vm20756_vm3  ;;  %v13010_v41 = vpop.f32.mrb[72].mxu1 }
 0x54e   : > { %v7962_v13 = vrot.slane %v20761_v15, 4  ;;  %v7963_v31 = vrot.slane %v20762_v10, 5  ;;  %v7314_v43 = vpop.f32.mrb[73].mxu1  ;;  %v14414_v15 = vld [vmem:[#allocation8 + $0xd0] sm:$0xff]   ;;  %vm20769_vm14 = vmmov %vm20756_vm3  ;;  %vm20919_vm2 = vsmask.f32 4352 }
 0x54f   : > { %v7960_v37 = vor.u32 %v7959_v25, %v7958_v55  ;;  %v18522_v55 = vadd.f32 %v7314_v43, %v6768_v32  ;;  %v20772_v43 = vld [vmem:[#allocation37_spill] sm:$0xff]  ;;  %vm20823_vm11 = vmmov %vm20756_vm3 }
 0x550   : > { %v7964_v26 = vor.u32 %v7963_v31, %v7962_v13  ;;  %vm20937_vm5 = vmmov %vm20756_vm3 }
 0x551   : > { %v7961_v7 = vsel %vm20763_vm12, %v7956_v8, %v7960_v37  ;;  %v13011_v8 = vpop.f32.mrb[74].mxu1  ;;  %vm20945_vm13 = vmmov %vm20919_vm2 }
 0x552   : > { %13117 = vmatmul.mubr.bf16.gmra.mrb[164].mxu1 %v7613_v14  ;;  %v7965_v2 = vsel %vm20765_vm9, %v7960_v37, %v7964_v26  ;;  %v20766_v14 = vld [vmem:[#allocation39_spill] sm:$0xff]  ;;  %v7317_v10 = vpop.f32.mrb[75].mxu1  ;;  %v14415_v37 = vld [vmem:[#allocation8 + $0xd8] sm:$0xff]   ;;  %vm20950_vm8 = vmmov %vm20919_vm2 }
 0x553   : > { %13136 = vmatprep.mubr.bf16.mxu1 %v7957_v27  ;;  %v6778_v3 = vadd.f32 %v20766_v14, %v18114_v18  ;;  %v20767_v27 = vld [vmem:[#allocation31_spill] sm:$0xff]  ;;  %v13014_v41 = vpop.f32.mrb[76].mxu1  ;;  %v20771_v14 = vld [vmem:[#allocation41_spill] sm:$0xff]  ;;  %vm20951_vm1 = vmmov %vm20919_vm2 }
 0x554   : > { %v6771_v25 = vadd.f32 %v18114_v18, %v20767_v27  ;;  %vm20952_vm4 = vmmov %vm20951_vm1 }
 0x555   : > { %v18524_v13 = vadd.f32 %v13011_v8, %v6778_v3  ;;  %v6793_v3 = vadd.f32 %v20771_v14, %v18114_v18  ;;  %v14416_v8 = vld [vmem:[#allocation8 + $0xe0] sm:$0xff]  }
 0x556   : > { %v18526_v31 = vadd.f32 %v7317_v10, %v6771_v25 }
 0x55a   : > { %13137 = vmatmul.mubr.bf16.vlgmr.msra.gmra.mrb[168].mxu1 %v7961_v7  ;;  %v20768_v7 = vld [vmem:[#allocation25_spill] sm:$0xff] }
 0x55b   : > { %13140 = vmatprep.mubr.bf16.mxu1 %v7965_v2  ;;  %13185 = vmatpush3.bf16.msra.mxu1 %v18160_v6  ;;  %v6790_v6 = vadd.f32 %v17358_v63, %v18114_v18  ;;  %v7969_v0 = vsel %vm20769_vm14, %v7964_v26, %v20768_v7  ;;  %v20770_v2 = vld [vmem:[#allocation27_spill] sm:$0xff]  ;;  %v13522_v7 = vpop.f32.mrb[48].mxu0 }
 0x55c   : > { %13186 = vmatprep.subr.bf16.mxu1 %v14413_v49  ;;  %v6783_v32 = vadd.f32 %v18114_v18, %v20770_v2  ;;  %v14417_v2 = vld [vmem:[#allocation8 + $0xe8] sm:$0xff]   ;;  %v14419_v7 = vld [vmem:[#allocation8 + $0xf8] sm:$0xff]  }
 0x55d   : > { %v18537_v27 = vadd.f32 %v13014_v41, %v6790_v6  ;;  %v6805_v6 = vadd.f32 %v17435_v42, %v18114_v18  ;;  %v14418_v41 = vld [vmem:[#allocation8 + $0xf0] sm:$0xff]  }
 0x55f   : > { %13187 = vmatpush3.bf16.msra.mxu1 %v14413_v49  ;;  %v7329_v49 = vpop.f32.mrb[77].mxu1 }
 0x560   : > { %13188 = vmatprep.subr.bf16.mxu1 %v14414_v15  ;;  %v18539_v25 = vadd.f32 %v7329_v49, %v6783_v32  ;;  %v13015_v63 = vpop.f32.mrb[78].mxu1 }
 0x561   : > { %v18541_v26 = vadd.f32 %v13015_v63, %v6793_v3  ;;  %v7332_v10 = vpop.f32.mrb[79].mxu1 }
 0x562   : > { %13141 = vmatmul.mubr.bf16.gmra.mrb[172].mxu1 %v7969_v0  ;;  %v18543_v0 = vpop.f32.mrb[49].mxu0  ;;  %v13018_v32 = vpop.f32.mrb[80].mxu1 }
 0x563   : > { %13144 = vmatprep.mubr.bf16.mxu1 %v20772_v43  ;;  %13189 = vmatpush3.bf16.msra.mxu1 %v14414_v15  ;;  %20773 = vst [vmem:[#allocation90_spill] sm:$0xff] %v18543_v0  ;;  %v18545_v14 = vpop.f32.mrb[50].mxu0  ;;  %v7344_v3 = vpop.f32.mrb[81].mxu1  ;;  %v20776_v43 = vld [vmem:[#allocation20_spill] sm:$0xff] }
 0x564   : > { %13190 = vmatprep.subr.bf16.mxu1 %v14415_v37  ;;  %20774 = vst [vmem:[#allocation91_spill] sm:$0xff] %v18545_v14  ;;  %v18548_v15 = vpop.f32.mrb[51].mxu0  ;;  %v6800_v49 = vadd.f32 %v18114_v18, %v20776_v43  ;;  %v13019_v63 = vpop.f32.mrb[82].mxu1 }
 0x565   : > { %20775 = vst [vmem:[#allocation93_spill] sm:$0xff] %v18548_v15  ;;  %v7346_v10 = vpop.f32.mrb[83].mxu1  ;;  %v18559_v42 = vpop.f32.mrb[52].mxu0  ;;  %v20780_v15 = vld [vmem:[#allocation68_spill] sm:$0xff]  ;;  %v20783_v63 = vld [vmem:[#allocation46_spill] sm:$0xff] }
 0x566   : > { %20777 = vst [vmem:[#allocation26_spill] sm:$0xff] %v18559_v42 }
 0x567   : > { %13191 = vmatpush3.bf16.msra.mxu1 %v14415_v37  ;;  %v18553_v37 = vadd.f32 %v13018_v32, %v6805_v6  ;;  %v20782_v32 = vld [vmem:[#allocation32_spill] sm:$0xff] }
 0x568   : > { %13192 = vmatprep.subr.bf16.mxu1 %v14416_v8  ;;  %v6812_v3 = vadd.f32 %v18114_v18, %v20782_v32 }
 0x56a   : > { %13145 = vmatmul.mubr.bf16.gmra.mrb[176].mxu1 %v17410_v36  ;;  %v18557_v36 = vadd.f32 %v7346_v10, %v6800_v49  ;;  %v18569_v49 = vld [vmem:[#allocation8 + $0x100] sm:$0xff]   ;;  %v6822_v10 = vadd.f32 %v20783_v63, %v18114_v18 }
 0x56b   : > { %13148 = vmatprep.mubr.bf16.mxu1 %v17450_v35  ;;  %13193 = vmatpush3.bf16.msra.mxu1 %v14416_v8  ;;  %v20778_v35 = vld [vmem:[#allocation44_spill] sm:$0xff]  ;;  %v18562_v8 = vpop.f32.mrb[53].mxu0 }
 0x56c   : > { %13194 = vmatprep.subr.bf16.mxu1 %v14417_v2  ;;  %20779 = vst [vmem:[#allocation22_spill] sm:$0xff] %v18562_v8  ;;  %v18565_v6 = vpop.f32.mrb[54].mxu0 }
 0x56d   : > { %20781 = vst [vmem:[#allocation130_spill] sm:$0xff] %v18565_v6  ;;  %v11012_v43 = vpop.f32.mrb[55].mxu0 }
 0x56e   : > { %v18583_v43 = vpop.f32.mrb[56].mxu0 }
 0x56f   : > { %13195 = vmatpush3.bf16.msra.mxu1 %v14417_v2  ;;  %v13022_v2 = vpop.f32.mrb[84].mxu1  ;;  %20785 = vst [vmem:[#allocation23_spill] sm:$0xff] %v18583_v43 }
 0x570   : > { %13196 = vmatprep.subr.bf16.mxu1 %v14418_v41  ;;  %v7358_v42 = vpop.f32.mrb[85].mxu1  ;;  %v11024_v2 = vpop.f32.mrb[57].mxu0 }
 0x571   : > { %v18575_v14 = vadd.f32 %v7358_v42, %v6812_v3  ;;  %v13531_v63 = vpop.f32.mrb[58].mxu0  ;;  %v20786_v42 = vld [vmem:[#allocation47_spill] sm:$0xff] }
 0x572   : > { %13149 = vmatmul.mubr.bf16.gmra.mrb[180].mxu1 %v20778_v35  ;;  %v20784_v35 = vld [vmem:[#allocation34_spill] sm:$0xff]  ;;  %v6834_v3 = vadd.f32 %v20786_v42, %v18114_v18 }
 0x573   : > { %13152 = vmatprep.mubr.bf16.mxu1 %v20780_v15  ;;  %13197 = vmatpush3.bf16.msra.mxu1 %v14418_v41  ;;  %v6815_v8 = vadd.f32 %v18114_v18, %v20784_v35  ;;  %v13023_v15 = vpop.f32.mrb[86].mxu1  ;;  %v18588_v35 = vpop.f32.mrb[59].mxu0 }
 0x574   : > { %13198 = vmatprep.subr.bf16.mxu1 %v14419_v7  ;;  %v18577_v6 = vadd.f32 %v13023_v15, %v6822_v10  ;;  %v7361_v41 = vpop.f32.mrb[87].mxu1  ;;  %20787 = vst [vmem:[#allocation36_spill] sm:$0xff] %v18588_v35  ;;  %v20788_v10 = vld [vmem:[#allocation55_spill] sm:$0xff]  ;;  %v20789_v15 = vld [vmem:[#allocation49_spill] sm:$0xff]  ;;  %v13534_v42 = vpop.f32.mrb[60].mxu0 }
 0x575   : > { %v18579_v32 = vadd.f32 %v7361_v41, %v6815_v8  ;;  %v13026_v8 = vpop.f32.mrb[88].mxu1  ;;  %v6837_v41 = vadd.f32 %v20789_v15, %v18114_v18  ;;  %v18602_v35 = vpop.f32.mrb[61].mxu0  ;;  %v20796_v42 = vld [vmem:[#allocation82_spill] sm:$0xff] }
 0x576   : > { %v18594_v0 = vadd.f32 %v13026_v8, %v6834_v3  ;;  %20790 = vst [vmem:[#allocation19_spill] sm:$0xff] %v18602_v35  ;;  %v6849_v3 = vadd.f32 %v17659_v60, %v18114_v18 }
 0x577   : > { %13199 = vmatpush3.bf16.msra.mxu1 %v14419_v7  ;;  %v6827_v7 = vadd.f32 %v18114_v18, %v20788_v10  ;;  %v18604_v10 = vpop.f32.mrb[62].mxu0 }
 0x578   : > { %13248 = vmatprep.subr.bf16.mxu1 %v18569_v49  ;;  %20791 = vst [vmem:[#allocation99_spill] sm:$0xff] %v18604_v10  ;;  %v18606_v59 = vpop.f32.mrb[63].mxu0 }
 0x579   : > { %20792 = vst [vmem:[#allocation100_spill] sm:$0xff] %v18606_v59 }
 0x57a   : > { %13153 = vmatmul.mubr.bf16.gmra.mrb[184].mxu1 %v17593_v22  ;;  %v7373_v22 = vpop.f32.mrb[89].mxu1 }
 0x57b   : > { %13156 = vmatprep.mubr.bf16.mxu1 %v17632_v56  ;;  %v18596_v43 = vadd.f32 %v7373_v22, %v6827_v7  ;;  %v13027_v56 = vpop.f32.mrb[90].mxu1 }
 0x57c   : > { %v18598_v2 = vadd.f32 %v13027_v56, %v6837_v41  ;;  %v7376_v63 = vpop.f32.mrb[91].mxu1 }
 0x57d   : > { %v13030_v7 = vpop.f32.mrb[92].mxu1  ;;  %v20794_v63 = vld [vmem:[#allocation66_spill] sm:$0xff] }
 0x57e   : > { %v18611_v8 = vadd.f32 %v13030_v7, %v6849_v3  ;;  %v7388_v15 = vpop.f32.mrb[93].mxu1  ;;  %v20798_v3 = vld [vmem:[#allocation64_spill] sm:$0xff] }
 0x57f   : > { %v6856_v7 = vadd.f32 %v18114_v18, %v20798_v3  ;;  %v20802_v3 = vld [vmem:[#allocation87_spill] sm:$0xff] }
 0x582   : > { %13157 = vmatmul.mubr.bf16.gmra.mrb[188].mxu1 %v17701_v24  ;;  %v6844_v24 = vadd.f32 %v18114_v18, %v17692_v48 }
 0x583   : > { %13160 = vmatprep.mubr.bf16.mxu1 %v17771_v20  ;;  %v13031_v20 = vpop.f32.mrb[94].mxu1 }
 0x584   : > { %v7390_v41 = vpop.f32.mrb[95].mxu1 }
 0x585   : > { %v18616_v22 = vadd.f32 %v7390_v41, %v6844_v24  ;;  %v20800_v41 = vld [vmem:[#allocation77_spill] sm:$0xff] }
 0x587   : > { %v18618_v56 = vpop.f32.mrb[64].mxu0 }
 0x588   : > { %20793 = vst [vmem:[#allocation103_spill] sm:$0xff] %v18618_v56  ;;  %v18621_v60 = vpop.f32.mrb[65].mxu0  ;;  %v6859_v56 = vadd.f32 %v18114_v18, %v20800_v41  ;;  %v20805_v41 = vld [vmem:[#allocation57_spill] sm:$0xff] }
 0x589   : > { %20795 = vst [vmem:[#allocation105_spill] sm:$0xff] %v18621_v60 }
 0x58a   : > { %13161 = vmatmul.mubr.bf16.gmra.mrb[192].mxu1 %v17823_v5  ;;  %v18624_v5 = vpop.f32.mrb[66].mxu0 }
 0x58b   : > { %13164 = vmatprep.mubr.bf16.mxu1 %v17880_v33  ;;  %20797 = vst [vmem:[#allocation17_spill] sm:$0xff] %v18624_v5  ;;  %v11056_v48 = vpop.f32.mrb[67].mxu0  ;;  %v13034_v15 = vpop.f32.mrb[96].mxu1  ;;  %v20799_v33 = vld [vmem:[#allocation56_spill] sm:$0xff]  ;;  %v20801_v5 = vld [vmem:[#allocation83_spill] sm:$0xff] }
 0x58c   : > { %v6866_v20 = vadd.f32 %v20799_v33, %v18114_v18  ;;  %v7402_v24 = vpop.f32.mrb[97].mxu1 }
 0x58d   : > { %v18632_v59 = vadd.f32 %v7402_v24, %v6856_v7  ;;  %v6878_v7 = vadd.f32 %v20805_v41, %v18114_v18  ;;  %v20806_v24 = vld [vmem:[#allocation79_spill] sm:$0xff] }
 0x592   : > { %13165 = vmatmul.mubr.bf16.gmra.mrb[196].mxu1 %v20794_v63  ;;  %v13035_v63 = vpop.f32.mrb[98].mxu1 }
 0x593   : > { %13168 = vmatprep.mubr.bf16.mxu1 %v20796_v42  ;;  %v18634_v60 = vadd.f32 %v13035_v63, %v6866_v20  ;;  %v7405_v42 = vpop.f32.mrb[99].mxu1  ;;  %v6871_v20 = vadd.f32 %v18114_v18, %v20806_v24 }
 0x594   : > { %v18636_v10 = vadd.f32 %v7405_v42, %v6859_v56  ;;  %v18640_v48 = vpop.f32.mrb[68].mxu0  ;;  %v20807_v56 = vld [vmem:[#allocation69_spill] sm:$0xff] }
 0x595   : > { %20803 = vst [vmem:[#allocation18_spill] sm:$0xff] %v18640_v48  ;;  %v11068_v15 = vpop.f32.mrb[69].mxu0  ;;  %v6881_v42 = vadd.f32 %v20807_v56, %v18114_v18  ;;  %v7927_v48 = vld [vmem:[#allocation2 + $0xc8] sm:$0x1f] }
 0x596   : > { %v13543_v33 = vpop.f32.mrb[70].mxu0  ;;  %v20809_v15 = vld [vmem:[#allocation94_spill] sm:$0xff]  ;;  %v8047_v17 = vshrl.u32 %v7927_v48, 16  ;;  %v8050_v24 = vshll.u32 %v7927_v48, 16  ;;  %v20818_v48 = vld [vmem:[#allocation80_spill] sm:$0xff] }
 0x597   : > { %v18642_v35 = vpop.f32.mrb[71].mxu0 }
 0x598   : > { %20804 = vst [vmem:[#allocation21_spill] sm:$0xff] %v18642_v35 }
 0x59a   : > { %13169 = vmatmul.mubr.bf16.gmra.mrb[200].mxu1 %v20801_v5 }
 0x59b   : > { %13172 = vmatprep.mubr.bf16.mxu1 %v20802_v3  ;;  %v13038_v63 = vpop.f32.mrb[100].mxu1 }
 0x59c   : > { %v18651_v5 = vadd.f32 %v13038_v63, %v6878_v7  ;;  %v7417_v3 = vpop.f32.mrb[101].mxu1  ;;  %v8052_v7 = vrot.slane %v8050_v24, 5 }
 0x59d   : > { %v18654_v33 = vadd.f32 %v7417_v3, %v6871_v20  ;;  %v13039_v35 = vpop.f32.mrb[102].mxu1  ;;  %v8412_v20 = vshrl.u32 %v8368_v40, 16  ;;  %v20815_v3 = vld [vmem:[#allocation48_spill] sm:$0xff]  ;;  %v20820_v40 = vld [vmem:[#allocation38_spill] sm:$0xff] }
 0x59e   : > { %v18656_v29 = vadd.f32 %v13039_v35, %v6881_v42  ;;  %v7420_v41 = vpop.f32.mrb[103].mxu1  ;;  %v20817_v42 = vld [vmem:[#allocation33_spill] sm:$0xff]  ;;  %v20819_v24 = vshll.u32 %v20815_v3, 16 }
 0x5a0   : > { %20810 = vst [vmem:[#allocation28_spill] sm:$0xff] %v18656_v29 }
 0x5a2   : > { %13173 = vmatmul.mubr.bf16.gmra.mrb[204].mxu1 %v20808_v11  ;;  %v13546_v12 = vpop.f32.mrb[72].mxu0  ;;  %v8049_v11 = vrot.slane %v8047_v17, 4  ;;  %v8414_v17 = vrot.slane %v8412_v20, 7 }
 0x5a3   : > { %13176 = vmatprep.mubr.bf16.mxu1 %v20809_v15  ;;  %v18658_v53 = vpop.f32.mrb[73].mxu0  ;;  %v20816_v15 = vshrl.u32 %v20815_v3, 16  ;;  %v6893_v12 = vadd.f32 %v20818_v48, %v18114_v18  ;;  %v20824_v18 = vshrl.u32 %v18194_v62, 16 }
 0x5a4   : > { %20811 = vst [vmem:[#allocation39_spill] sm:$0xff] %v18658_v53  ;;  %v18660_v56 = vpop.f32.mrb[74].mxu0  ;;  %v8053_v39 = vor.u32 %v8052_v7, %v8049_v11  ;;  %v20826_v7 = vshrl.u32 %v18212_v16, 16 }
 0x5a5   : > { %20812 = vst [vmem:[#allocation31_spill] sm:$0xff] %v18660_v56  ;;  %v18662_v63 = vpop.f32.mrb[75].mxu0  ;;  %v8418_v35 = vrot.slane %v20816_v15, 7  ;;  %v20822_v15 = vld [vmem:[#allocation101_spill] sm:$0xff]  ;;  %v8426_v48 = vrot.slane %v20824_v18, 7 }
 0x5a6   : > { %20813 = vst [vmem:[#allocation25_spill] sm:$0xff] %v18662_v63  ;;  %v8434_v20 = vrot.slane %v20826_v7, 7 }
 0x5a7   : > { %v8421_v63 = vor.u32 %v20819_v24, %v8418_v35 }
 0x5a8   : > { %v13042_v41 = vpop.f32.mrb[104].mxu1 }
 0x5a9   : > { %v18670_v53 = vadd.f32 %v13042_v41, %v6893_v12  ;;  %v7432_v56 = vpop.f32.mrb[105].mxu1 }
 0x5aa   : > { %13177 = vmatmul.mubr.bf16.gmra.mrb[208].mxu1 %v20814_v51  ;;  %v13043_v54 = vpop.f32.mrb[106].mxu1  ;;  %v8422_v56 = vsel %vm8410_vm6, %v8414_v17, %v8421_v63  ;;  %v20832_v17 = vld [vmem:[#allocation106_spill] sm:$0xff] }
 0x5ab   : > { %13180 = vmatprep.mubr.bf16.mxu1 %v20817_v42  ;;  %v7434_v51 = vpop.f32.mrb[107].mxu1  ;;  %v8054_v42 = vsel %vm20823_vm11, %v20822_v15, %v8053_v39  ;;  %v20829_v39 = vshll.u32 %v18194_v62, 16  ;;  %v20835_v62 = vld [vmem:[#allocation50_spill] sm:$0xff] }
 0x5ac   : > { %v18675_v29 = vadd.f32 %v7434_v51, %v20820_v40  ;;  %v20830_v40 = vshll.u32 %v18212_v16, 16 }
 0x5ad   : > { %v18681_v11 = vpop.f32.mrb[76].mxu0  ;;  %v8429_v24 = vor.u32 %v20829_v39, %v8426_v48 }
 0x5ae   : > { %20821 = vst [vmem:[#allocation27_spill] sm:$0xff] %v18675_v29  ;;  %20825 = vst [vmem:[#allocation41_spill] sm:$0xff] %v18681_v11  ;;  %v18686_v54 = vpop.f32.mrb[77].mxu0  ;;  %v8437_v15 = vor.u32 %v20830_v40, %v8434_v20  ;;  %v20833_v11 = vld [vmem:[#allocation97_spill] sm:$0xff] }
 0x5af   : > { %20827 = vst [vmem:[#allocation37_spill] sm:$0xff] %v18686_v54  ;;  %v18688_v3 = vpop.f32.mrb[78].mxu0 }
 0x5b0   : > { %20828 = vst [vmem:[#allocation20_spill] sm:$0xff] %v18688_v3  ;;  %v11100_v12 = vpop.f32.mrb[79].mxu0  ;;  %v13046_v41 = vpop.f32.mrb[108].mxu1  ;;  %v8438_v16 = vsel %vm8410_vm6, %v8426_v48, %v8437_v15  ;;  %v20842_v15 = vshll.u32 %v18223_v34, 16 }
 0x5b1   : > { %v7446_v51 = vpop.f32.mrb[109].mxu1  ;;  %v8430_v12 = vsel %vm8410_vm6, %v8418_v35, %v8429_v24  ;;  %v20836_v41 = vshrl.u32 %v20835_v62, 16  ;;  %v20840_v24 = vshll.u32 %v20835_v62, 16 }
 0x5b2   : > { %13181 = vmatmul.mubr.bf16.gmra.mrb[212].mxu1 %v8054_v42  ;;  %v20831_v42 = vld [vmem:[#allocation109_spill] sm:$0xff]  ;;  %v13047_v63 = vpop.f32.mrb[110].mxu1 }
 0x5b3   : > { %13200 = vmatprep.mubr.bf16.mxu1 %v8422_v56  ;;  %v18695_v18 = vadd.f32 %v7446_v51, %v20831_v42  ;;  %v18698_v7 = vadd.f32 %v13047_v63, %v20832_v17  ;;  %v7449_v54 = vpop.f32.mrb[111].mxu1  ;;  %v14421_v56 = vld [vmem:[#allocation8 + $0x108] sm:$0xff]   ;;  %v8442_v39 = vrot.slane %v20836_v41, 7  ;;  %v20838_v51 = vshrl.u32 %v18223_v34, 16 }
 0x5b4   : > { %v18701_v3 = vadd.f32 %v7449_v54, %v20833_v11  ;;  %v14422_v11 = vld [vmem:[#allocation8 + $0x110] sm:$0xff]   ;;  %v20841_v41 = vld [vmem:[#allocation110_spill] sm:$0xff] }
 0x5b5   : > { %v18706_v29 = vpop.f32.mrb[80].mxu0  ;;  %v8450_v40 = vrot.slane %v20838_v51, 7  ;;  %v8445_v17 = vor.u32 %v20840_v24, %v8442_v39 }
 0x5b6   : > { %20834 = vst [vmem:[#allocation44_spill] sm:$0xff] %v18701_v3  ;;  %20837 = vst [vmem:[#allocation68_spill] sm:$0xff] %v18706_v29  ;;  %v11112_v42 = vpop.f32.mrb[81].mxu0  ;;  %v14423_v3 = vld [vmem:[#allocation8 + $0x118] sm:$0xff]  }
 0x5b7   : > { %v13555_v63 = vpop.f32.mrb[82].mxu0  ;;  %v8453_v51 = vor.u32 %v20842_v15, %v8450_v40  ;;  %v20843_v42 = vld [vmem:[#allocation107_spill] sm:$0xff]  ;;  %v8446_v62 = vsel %vm8410_vm6, %v8434_v20, %v8445_v17  ;;  %v20851_v17 = vshll.u32 %v18225_v61, 16 }
 0x5b8   : > { %v18712_v54 = vpop.f32.mrb[83].mxu0  ;;  %v13050_v35 = vpop.f32.mrb[112].mxu1  ;;  %v20844_v63 = vld [vmem:[#allocation98_spill] sm:$0xff] }
 0x5b9   : > { %20839 = vst [vmem:[#allocation32_spill] sm:$0xff] %v18712_v54  ;;  %v7461_v48 = vpop.f32.mrb[113].mxu1  ;;  %v8454_v34 = vsel %vm8410_vm6, %v8442_v39, %v8453_v51  ;;  %v20853_v51 = vshll.u32 %v18231_v47, 16 }
 0x5ba   : > { %13201 = vmatmul.mubr.bf16.vlgmr.msra.gmra.mrb[216].mxu1 %v8430_v12  ;;  %v18717_v12 = vadd.f32 %v13050_v35, %v20841_v41  ;;  %v20846_v35 = vshrl.u32 %v18225_v61, 16  ;;  %v20855_v61 = vshrl.u32 %v18233_v28, 16 }
 0x5bb   : > { %13204 = vmatprep.mubr.bf16.mxu1 %v8438_v16  ;;  %13249 = vmatpush3.bf16.msra.mxu1 %v18569_v49  ;;  %v18722_v16 = vadd.f32 %v7461_v48, %v20843_v42  ;;  %v13051_v49 = vpop.f32.mrb[114].mxu1  ;;  %v20847_v48 = vshrl.u32 %v18231_v47, 16  ;;  %v20856_v47 = vshrl.u32 %v18239_v9, 16 }
 0x5bc   : > { %13250 = vmatprep.subr.bf16.mxu1 %v14421_v56  ;;  %v18725_v29 = vadd.f32 %v13051_v49, %v20844_v63  ;;  %v7464_v54 = vpop.f32.mrb[115].mxu1  ;;  %v8458_v24 = vrot.slane %v20846_v35, 7 }
 0x5bd   : > { %v13558_v41 = vpop.f32.mrb[84].mxu0  ;;  %v8466_v15 = vrot.slane %v20847_v48, 7  ;;  %v14424_v54 = vld [vmem:[#allocation8 + $0x120] sm:$0xff]  }
 0x5be   : > { %20845 = vst [vmem:[#allocation46_spill] sm:$0xff] %v18725_v29  ;;  %v18733_v42 = vpop.f32.mrb[85].mxu0  ;;  %v8461_v63 = vor.u32 %v20851_v17, %v8458_v24  ;;  %v8474_v17 = vrot.slane %v20855_v61, 7 }
 0x5bf   : > { %13251 = vmatpush3.bf16.msra.mxu1 %v14421_v56  ;;  %20848 = vst [vmem:[#allocation34_spill] sm:$0xff] %v18733_v42  ;;  %v18735_v56 = vpop.f32.mrb[86].mxu0  ;;  %v8469_v41 = vor.u32 %v20853_v51, %v8466_v15  ;;  %v20857_v51 = vshll.u32 %v18233_v28, 16 }
 0x5c0   : > { %13252 = vmatprep.subr.bf16.mxu1 %v14422_v11  ;;  %20849 = vst [vmem:[#allocation47_spill] sm:$0xff] %v18735_v56  ;;  %v18737_v49 = vpop.f32.mrb[87].mxu0  ;;  %v13054_v20 = vpop.f32.mrb[116].mxu1  ;;  %v20854_v56 = vld [vmem:[#allocation111_spill] sm:$0xff] }
 0x5c1   : > { %20850 = vst [vmem:[#allocation55_spill] sm:$0xff] %v18737_v49  ;;  %v7476_v39 = vpop.f32.mrb[117].mxu1  ;;  %v8462_v49 = vsel %vm8410_vm6, %v8450_v40, %v8461_v63 }
 0x5c2   : > { %13205 = vmatmul.mubr.bf16.gmra.mrb[220].mxu1 %v8446_v62  ;;  %v20852_v62 = vld [vmem:[#allocation112_spill] sm:$0xff]  ;;  %v13055_v48 = vpop.f32.mrb[118].mxu1 }
 0x5c3   : > { %13208 = vmatprep.mubr.bf16.mxu1 %v8454_v34  ;;  %13253 = vmatpush3.bf16.msra.mxu1 %v14422_v11  ;;  %v18742_v35 = vadd.f32 %v13054_v20, %v20852_v62  ;;  %v7478_v11 = vpop.f32.mrb[119].mxu1  ;;  %v14425_v34 = vld [vmem:[#allocation8 + $0x128] sm:$0xff]   ;;  %v8470_v20 = vsel %vm8410_vm6, %v8458_v24, %v8469_v41  ;;  %v8482_v62 = vrot.slane %v20856_v47, 7  ;;  %v8477_v48 = vor.u32 %v20857_v51, %v8474_v17  ;;  %v14427_v47 = vld [vmem:[#allocation8 + $0x138] sm:$0xff]  }
 0x5c4   : > { %13254 = vmatprep.subr.bf16.mxu1 %v14423_v3  ;;  %v18747_v42 = vadd.f32 %v7478_v11, %v20854_v56  ;;  %v14426_v56 = vld [vmem:[#allocation8 + $0x130] sm:$0xff]   ;;  %v20860_v51 = vshrl.u32 %v18247_v30, 16 }
 0x5c5   : > { %v18752_v29 = vpop.f32.mrb[88].mxu0  ;;  %v8478_v28 = vsel %vm8410_vm6, %v8466_v15, %v8477_v48 }
 0x5c7   : > { %13255 = vmatpush3.bf16.msra.mxu1 %v14423_v3  ;;  %v18757_v3 = vpop.f32.mrb[89].mxu0 }
 0x5c8   : > { %13256 = vmatprep.subr.bf16.mxu1 %v14424_v54  ;;  %v18759_v39 = vpop.f32.mrb[90].mxu0  ;;  %v13074_v63 = vpop.f32.mrb[120].mxu1 }
 0x5c9   : > { %v11144_v40 = vpop.f32.mrb[91].mxu0  ;;  %v7720_v11 = vpop.f32.mrb[121].mxu1  ;;  %v20859_v63 = vshrl.u32 %v18241_v44, 16 }
 0x5ca   : > { %13209 = vmatmul.mubr.bf16.gmra.mrb[224].mxu1 %v8462_v49  ;;  %v20858_v49 = vshll.u32 %v18239_v9, 16  ;;  %v18766_v41 = vadd.f32 %v7720_v11, %v18522_v55  ;;  %v13075_v61 = vpop.f32.mrb[122].mxu1 }
 0x5cb   : > { %13212 = vmatprep.mubr.bf16.mxu1 %v8470_v20  ;;  %13257 = vmatpush3.bf16.msra.mxu1 %v14424_v54  ;;  %v18769_v54 = vadd.f32 %v13075_v61, %v18524_v13  ;;  %v7723_v20 = vpop.f32.mrb[123].mxu1  ;;  %v8490_v9 = vrot.slane %v20859_v63, 7  ;;  %v18780_v13 = vld [vmem:[#allocation8 + $0x140] sm:$0xff]   ;;  %v20862_v61 = vshll.u32 %v18247_v30, 16 }
 0x5cc   : > { %13258 = vmatprep.subr.bf16.mxu1 %v14425_v34  ;;  %v8485_v24 = vor.u32 %v20858_v49, %v8482_v62  ;;  %v18772_v40 = vadd.f32 %v7723_v20, %v18526_v31  ;;  %v20861_v31 = vshll.u32 %v18241_v44, 16 }
 0x5ce   : > { %v8486_v55 = vsel %vm8410_vm6, %v8474_v17, %v8485_v24  ;;  %v8493_v49 = vor.u32 %v20861_v31, %v8490_v9 }
 0x5cf   : > { %13259 = vmatpush3.bf16.msra.mxu1 %v14425_v34  ;;  %v8498_v34 = vrot.slane %v20860_v51, 7 }
 0x5d0   : > { %13260 = vmatprep.subr.bf16.mxu1 %v14426_v56  ;;  %v13078_v11 = vpop.f32.mrb[124].mxu1  ;;  %v8494_v44 = vsel %vm8410_vm6, %v8482_v62, %v8493_v49  ;;  %v20866_v62 = vshll.u32 %v18255_v19, 16 }
 0x5d1   : > { %v18785_v15 = vadd.f32 %v13078_v11, %v18537_v27  ;;  %v7735_v48 = vpop.f32.mrb[125].mxu1  ;;  %v8501_v20 = vor.u32 %v20862_v61, %v8498_v34  ;;  %v20863_v27 = vshrl.u32 %v18249_v23, 16 }
 0x5d2   : > { %13213 = vmatmul.mubr.bf16.gmra.mrb[228].mxu1 %v8478_v28  ;;  %v18790_v17 = vadd.f32 %v7735_v48, %v18539_v25  ;;  %v13079_v24 = vpop.f32.mrb[126].mxu1 }
 0x5d3   : > { %13216 = vmatprep.mubr.bf16.mxu1 %v8486_v55  ;;  %13261 = vmatpush3.bf16.msra.mxu1 %v14426_v56  ;;  %v18793_v56 = vadd.f32 %v13079_v24, %v18541_v26  ;;  %v7738_v28 = vpop.f32.mrb[127].mxu1  ;;  %v8506_v63 = vrot.slane %v20863_v27, 7  ;;  %v8502_v30 = vsel %vm8410_vm6, %v8490_v9, %v8501_v20  ;;  %v20864_v55 = vshrl.u32 %v18255_v19, 16 }
 0x5d4   : > { %13262 = vmatprep.subr.bf16.mxu1 %v14427_v47  ;;  %v20867_v20 = vshrl.u32 %v18257_v45, 16  ;;  %v20869_v19 = vshll.u32 %v18257_v45, 16  ;;  %v20871_v45 = vshrl.u32 %v18265_v50, 16 }
 0x5d5   : > { %v8514_v25 = vrot.slane %v20864_v55, 7 }
 0x5d6   : > { %v8522_v28 = vrot.slane %v20867_v20, 7 }
 0x5d7   : > { %13263 = vmatpush3.bf16.msra.mxu1 %v14427_v47  ;;  %v20865_v47 = vshll.u32 %v18249_v23, 16  ;;  %v8517_v49 = vor.u32 %v20866_v62, %v8514_v25 }
 0x5d8   : > { %13312 = vmatprep.subr.bf16.mxu1 %v18780_v13  ;;  %v13082_v51 = vpop.f32.mrb[128].mxu1 }
 0x5d9   : > { %v8509_v26 = vor.u32 %v20865_v47, %v8506_v63  ;;  %v18805_v11 = vadd.f32 %v13082_v51, %v18553_v37  ;;  %v7750_v31 = vpop.f32.mrb[129].mxu1  ;;  %v8518_v23 = vsel %vm8410_vm6, %v8506_v63, %v8517_v49  ;;  %v20868_v37 = vshrl.u32 %v18263_v58, 16 }
 0x5da   : > { %13217 = vmatmul.mubr.bf16.gmra.mrb[232].mxu1 %v8494_v44  ;;  %v13083_v48 = vpop.f32.mrb[130].mxu1  ;;  %v8538_v49 = vrot.slane %v20871_v45, 7 }
 0x5db   : > { %13220 = vmatprep.mubr.bf16.mxu1 %v8502_v30  ;;  %v7752_v61 = vpop.f32.mrb[131].mxu1  ;;  %v8510_v9 = vsel %vm8410_vm6, %v8498_v34, %v8509_v26  ;;  %v8530_v44 = vrot.slane %v20868_v37, 7  ;;  %v8525_v30 = vor.u32 %v20869_v19, %v8522_v28  ;;  %v20872_v48 = vshrl.u32 %v18271_v38, 16 }
 0x5dc   : > { %v18810_v24 = vadd.f32 %v7752_v61, %v18557_v36  ;;  %v20870_v36 = vshll.u32 %v18263_v58, 16 }
 0x5dd   : > { %v8526_v62 = vsel %vm8410_vm6, %v8514_v25, %v8525_v30  ;;  %v20874_v25 = vshll.u32 %v18271_v38, 16 }
 0x5de   : > { %v8533_v51 = vor.u32 %v20870_v36, %v8530_v44  ;;  %v20876_v36 = vshrl.u32 %v18279_v46, 16 }
 0x5e0   : > { %v13086_v27 = vpop.f32.mrb[132].mxu1  ;;  %v8534_v58 = vsel %vm8410_vm6, %v8522_v28, %v8533_v51  ;;  %v8562_v38 = vrot.slane %v20876_v36, 7 }
 0x5e1   : > { %v7764_v55 = vpop.f32.mrb[133].mxu1 }
 0x5e2   : > { %13221 = vmatmul.mubr.bf16.gmra.mrb[236].mxu1 %v8510_v9  ;;  %v18823_v34 = vadd.f32 %v7764_v55, %v18575_v14  ;;  %v13087_v47 = vpop.f32.mrb[134].mxu1  ;;  %v8546_v14 = vrot.slane %v20872_v48, 7 }
 0x5e3   : > { %13224 = vmatprep.mubr.bf16.mxu1 %v8518_v23  ;;  %v18826_v26 = vadd.f32 %v13087_v47, %v18577_v6  ;;  %v7767_v63 = vpop.f32.mrb[135].mxu1  ;;  %v20873_v6 = vshll.u32 %v18265_v50, 16  ;;  %v20875_v50 = vshrl.u32 %v18273_v1, 16 }
 0x5e4   : > { %v18829_v31 = vadd.f32 %v7767_v63, %v18579_v32  ;;  %v8549_v23 = vor.u32 %v20874_v25, %v8546_v14 }
 0x5e5   : > { %v8541_v9 = vor.u32 %v20873_v6, %v8538_v49  ;;  %v8554_v55 = vrot.slane %v20875_v50, 7 }
 0x5e7   : > { %v8542_v30 = vsel %vm8410_vm6, %v8530_v44, %v8541_v9  ;;  %v20878_v44 = vshll.u32 %v18279_v46, 16  ;;  %v20881_v46 = vshll.u32 %v18281_v4, 16 }
 0x5e8   : > { %v13090_v61 = vpop.f32.mrb[136].mxu1 }
 0x5e9   : > { %v18840_v20 = vadd.f32 %v13090_v61, %v18594_v0  ;;  %v7779_v32 = vpop.f32.mrb[137].mxu1  ;;  %v8550_v0 = vsel %vm8410_vm6, %v8538_v49, %v8549_v23  ;;  %v20879_v61 = vshrl.u32 %v18281_v4, 16  ;;  %v20883_v4 = vshrl.u32 %v18294_v57, 16 }
 0x5ea   : > { %13225 = vmatmul.mubr.bf16.gmra.mrb[240].mxu1 %v8526_v62  ;;  %v18845_v37 = vadd.f32 %v7779_v32, %v18596_v43  ;;  %v13091_v27 = vpop.f32.mrb[138].mxu1  ;;  %v20877_v43 = vshll.u32 %v18273_v1, 16  ;;  %v8565_v62 = vor.u32 %v20878_v44, %v8562_v38 }
 0x5eb   : > { %13228 = vmatprep.mubr.bf16.mxu1 %v8534_v58  ;;  %v18848_v28 = vadd.f32 %v13091_v27, %v18598_v2  ;;  %v7782_v19 = vpop.f32.mrb[139].mxu1  ;;  %v8570_v6 = vrot.slane %v20879_v61, 7  ;;  %v8586_v36 = vrot.slane %v20883_v4, 7 }
 0x5ec   : > { %v8557_v47 = vor.u32 %v20877_v43, %v8554_v55  ;;  %v8566_v1 = vsel %vm8410_vm6, %v8554_v55, %v8565_v62 }
 0x5ed   : > { %v8573_v25 = vor.u32 %v20881_v46, %v8570_v6 }
 0x5ee   : > { %v8558_v49 = vsel %vm8410_vm6, %v8546_v14, %v8557_v47 }
 0x5f0   : > { %v13094_v51 = vpop.f32.mrb[140].mxu1 }
 0x5f1   : > { %v18859_v2 = vadd.f32 %v13094_v51, %v18611_v8  ;;  %v7794_v63 = vpop.f32.mrb[141].mxu1  ;;  %v20880_v8 = vshrl.u32 %v18287_v52, 16  ;;  %v20884_v51 = vshrl.u32 %v18301_v21, 16 }
 0x5f2   : > { %13229 = vmatmul.mubr.bf16.gmra.mrb[244].mxu1 %v8542_v30  ;;  %v13095_v45 = vpop.f32.mrb[142].mxu1 }
 0x5f3   : > { %13232 = vmatprep.mubr.bf16.mxu1 %v8550_v0  ;;  %v7796_v58 = vpop.f32.mrb[143].mxu1  ;;  %v8578_v9 = vrot.slane %v20880_v8, 7  ;;  %v8574_v0 = vsel %vm8410_vm6, %v8562_v38, %v8573_v25  ;;  %v20886_v38 = vshll.u32 %v18301_v21, 16 }
 0x5f4   : > { %v18864_v48 = vadd.f32 %v7796_v58, %v18616_v22  ;;  %v20882_v22 = vshll.u32 %v18287_v52, 16  ;;  %v20887_v58 = vld [vmem:[#allocation28_spill] sm:$0xff] }
 0x5f6   : > { %v8581_v27 = vor.u32 %v20882_v22, %v8578_v9 }
 0x5f8   : > { %v13098_v32 = vpop.f32.mrb[144].mxu1  ;;  %v8582_v52 = vsel %vm8410_vm6, %v8570_v6, %v8581_v27 }
 0x5f9   : > { %v7808_v23 = vpop.f32.mrb[145].mxu1 }
 0x5fa   : > { %13233 = vmatmul.mubr.bf16.gmra.mrb[248].mxu1 %v8558_v49  ;;  %v18877_v14 = vadd.f32 %v7808_v23, %v18632_v59  ;;  %v13099_v19 = vpop.f32.mrb[146].mxu1  ;;  %v8594_v59 = vrot.slane %v20884_v51, 7 }
 0x5fb   : > { %13236 = vmatprep.mubr.bf16.mxu1 %v8566_v1  ;;  %v18880_v30 = vadd.f32 %v13099_v19, %v18634_v60  ;;  %v7811_v50 = vpop.f32.mrb[147].mxu1  ;;  %v20885_v60 = vshll.u32 %v18294_v57, 16  ;;  %v20888_v1 = vld [vmem:[#allocation51_spill] sm:$0xff] }
 0x5fc   : > { %v18883_v55 = vadd.f32 %v7811_v50, %v18636_v10  ;;  %v8597_v44 = vor.u32 %v20886_v38, %v8594_v59  ;;  %v20889_v57 = vshrl.u32 %v20888_v1, 16  ;;  %v20890_v21 = vshll.u32 %v20888_v1, 16  ;;  %v14491_v50 = vld [vmem:[#allocation2 + $0x18] sm:$0xff]  ;;  %v14430_v38 = vld [vmem:[#allocation8 + $0x150] sm:$0xff]   ;;  %v20893_v1 = vld [vmem:[#allocation46_spill] sm:$0xff] }
 0x5fd   : > { %v8589_v47 = vor.u32 %v20885_v60, %v8586_v36  ;;  %v20892_v60 = vld [vmem:[#allocation44_spill] sm:$0xff] }
 0x5fe   : > { %v8602_v8 = vrot.slane %v20889_v57, 7 }
 0x5ff   : > { %v8590_v6 = vsel %vm8410_vm6, %v8578_v9, %v8589_v47  ;;  %v20891_v9 = vld [vmem:[#allocation27_spill] sm:$0xff] }
 0x600   : > { %v13102_v43 = vpop.f32.mrb[148].mxu1  ;;  %v8605_v46 = vor.u32 %v20890_v21, %v8602_v8  ;;  %v14494_v8 = vld [vmem:[#allocation2 + $0x30] sm:$0xff] }
 0x601   : > { %v18894_v63 = vadd.f32 %v13102_v43, %v18651_v5  ;;  %v7823_v10 = vpop.f32.mrb[149].mxu1  ;;  %v8598_v5 = vsel %vm8410_vm6, %v8586_v36, %v8597_v44  ;;  %v14429_v43 = vld [vmem:[#allocation8 + $0x148] sm:$0xff]  }
 0x602   : > { %13237 = vmatmul.mubr.bf16.gmra.mrb[252].mxu1 %v8574_v0  ;;  %v18899_v62 = vadd.f32 %v7823_v10, %v18654_v33  ;;  %v13103_v45 = vpop.f32.mrb[150].mxu1  ;;  %v8606_v27 = vsel %vm8410_vm6, %v8594_v59, %v8605_v46  ;;  %v14492_v59 = vld [vmem:[#allocation2 + $0x20] sm:$0xff]  ;;  %v14493_v10 = vld [vmem:[#allocation2 + $0x28] sm:$0xff] }
 0x603   : > { %13240 = vmatprep.mubr.bf16.mxu1 %v8582_v52  ;;  %v18902_v49 = vadd.f32 %v13103_v45, %v20887_v58  ;;  %v7826_v61 = vpop.f32.mrb[151].mxu1 }
 0x608   : > { %v13106_v32 = vpop.f32.mrb[152].mxu1 }
 0x609   : > { %v7838_v33 = vpop.f32.mrb[153].mxu1  ;;  %v18911_v25 = vadd.f32 %v13106_v32, %v18670_v53 }
 0x60a   : > { %13241 = vmatmul.mubr.bf16.gmra.mrb[0].mxu1 %v8590_v6  ;;  %v13107_v23 = vpop.f32.mrb[154].mxu1  ;;  %v14431_v6 = vld [vmem:[#allocation8 + $0x158] sm:$0xff]   ;;  %v14433_v33 = vld [vmem:[#allocation8 + $0x168] sm:$0xff]  }
 0x60b   : > { %13244 = vmatprep.mubr.bf16.mxu1 %v8598_v5  ;;  %v7840_v22 = vpop.f32.mrb[155].mxu1  ;;  %v14432_v5 = vld [vmem:[#allocation8 + $0x160] sm:$0xff]  }
 0x60c   : > { %v18915_v19 = vadd.f32 %v7840_v22, %v20891_v9  ;;  %v14496_v22 = vld [vmem:[#allocation2 + $0x40] sm:$0xff]  ;;  %v14434_v9 = vld [vmem:[#allocation8 + $0x170] sm:$0xff]  }
 0x610   : > { %v13110_v0 = vpop.f32.mrb[156].mxu1 }
 0x611   : > { %v7852_v4 = vpop.f32.mrb[157].mxu1 }
 0x612   : > { %13245 = vmatmul.mubr.bf16.gmra.mrb[4].mxu1 %v8606_v27  ;;  %v13111_v36 = vpop.f32.mrb[158].mxu1  ;;  %v18918_v52 = vadd.f32 %v7852_v4, %v18695_v18  ;;  %v14497_v27 = vld [vmem:[#allocation2 + $0x48] sm:$0xff] }
 0x613   : > { %13264 = vmatprep.mubr.bf16.mxu1 %v14491_v50  ;;  %v7855_v51 = vpop.f32.mrb[159].mxu1  ;;  %v18921_v53 = vadd.f32 %v13111_v36, %v18698_v7 }
 0x614   : > { %v18924_v47 = vadd.f32 %v7855_v51, %v20892_v60  ;;  %v14435_v51 = vld [vmem:[#allocation8 + $0x178] sm:$0xff]  }
 0x615   : > { %v14498_v60 = vld [vmem:[#allocation2 + $0x50] sm:$0xff] }
 0x61a   : > { %13265 = vmatmul.mubr.bf16.vlgmr.msra.gmra.mrb[8].mxu1 %v14492_v59  ;;  %v14499_v59 = vld [vmem:[#allocation2 + $0x58] sm:$0xff] }
 0x61b   : > { %13268 = vmatprep.mubr.bf16.mxu1 %v14493_v10  ;;  %13313 = vmatpush3.bf16.msra.mxu1 %v18780_v13  ;;  %v14495_v13 = vld [vmem:[#allocation2 + $0x38] sm:$0xff] }
 0x61c   : > { %13314 = vmatprep.subr.bf16.mxu1 %v14429_v43  ;;  %v18951_v10 = vld [vmem:[#allocation8 + $0x180] sm:$0xff]  }
 0x61d   : > { %v13114_v44 = vpop.f32.mrb[160].mxu1 }
 0x61e   : > { %v7867_v45 = vpop.f32.mrb[161].mxu1  ;;  %v18928_v18 = vadd.f32 %v13114_v44, %v18717_v12 }
 0x61f   : > { %v13115_v58 = vpop.f32.mrb[162].mxu1  ;;  %13315 = vmatpush3.bf16.msra.mxu1 %v14429_v43  ;;  %v18931_v7 = vadd.f32 %v7867_v45, %v18722_v16 }
 0x620   : > { %v7870_v61 = vpop.f32.mrb[163].mxu1  ;;  %13316 = vmatprep.subr.bf16.mxu1 %v14430_v38  ;;  %v18934_v57 = vadd.f32 %v13115_v58, %v20893_v1 }
 0x621   : > { %v14500_v61 = vld [vmem:[#allocation2 + $0x60] sm:$0xff] }
 0x622   : > { %13269 = vmatmul.mubr.bf16.gmra.mrb[12].mxu1 %v14494_v8 }
 0x623   : > { %13272 = vmatprep.mubr.bf16.mxu1 %v14495_v13  ;;  %13317 = vmatpush3.bf16.msra.mxu1 %v14430_v38 }
 0x624   : > { %13318 = vmatprep.subr.bf16.mxu1 %v14431_v6 }
 0x625   : > { %v13118_v12 = vpop.f32.mrb[164].mxu1 }
 0x626   : > { %v7882_v32 = vpop.f32.mrb[165].mxu1  ;;  %v18937_v21 = vadd.f32 %v13118_v12, %v18742_v35  ;;  %v14502_v12 = vld [vmem:[#allocation2 + $0x70] sm:$0xff] }
 0x627   : > { %v13119_v16 = vpop.f32.mrb[166].mxu1  ;;  %13319 = vmatpush3.bf16.msra.mxu1 %v14431_v6  ;;  %v14501_v6 = vld [vmem:[#allocation2 + $0x68] sm:$0xff]  ;;  %v14503_v32 = vld [vmem:[#allocation2 + $0x78] sm:$0xff] }
 0x628   : > { %v7884_v46 = vpop.f32.mrb[167].mxu1  ;;  %13320 = vmatprep.subr.bf16.mxu1 %v14432_v5 }
 0x629   : > { %v18940_v23 = vadd.f32 %v7884_v46, %v18747_v42 }
 0x62a   : > { %13273 = vmatmul.mubr.bf16.gmra.mrb[16].mxu1 %v14496_v22 }
 0x62b   : > { %13276 = vmatprep.mubr.bf16.mxu1 %v14497_v27  ;;  %13321 = vmatpush3.bf16.msra.mxu1 %v14432_v5 }
 0x62c   : > { %13322 = vmatprep.subr.bf16.mxu1 %v14433_v33 }
 0x62d   : > { %v13138_v50 = vpop.f32.mrb[168].mxu1 }
 0x62e   : > { %v8161_v0 = vpop.f32.mrb[169].mxu1 }
 0x62f   : > { %v13139_v4 = vpop.f32.mrb[170].mxu1  ;;  %13323 = vmatpush3.bf16.msra.mxu1 %v14433_v33  ;;  %v18943_v35 = vadd.f32 %v8161_v0, %v18766_v41 }
 0x630   : > { %v8164_v36 = vpop.f32.mrb[171].mxu1  ;;  %13324 = vmatprep.subr.bf16.mxu1 %v14434_v9  ;;  %v18946_v42 = vadd.f32 %v13139_v4, %v18769_v54 }
 0x631   : > { %v18949_v43 = vadd.f32 %v8164_v36, %v18772_v40 }
 0x632   : > { %13277 = vmatmul.mubr.bf16.gmra.mrb[20].mxu1 %v14498_v60  ;;  %v14506_v60 = vld [vmem:[#allocation2 + $0x90] sm:$0xff] }
 0x633   : > { %13280 = vmatprep.mubr.bf16.mxu1 %v14499_v59  ;;  %13325 = vmatpush3.bf16.msra.mxu1 %v14434_v9  ;;  %v14504_v9 = vld [vmem:[#allocation2 + $0x80] sm:$0xff] }
 0x634   : > { %13326 = vmatprep.subr.bf16.mxu1 %v14435_v51 }
 0x635   : > { %v13142_v38 = vpop.f32.mrb[172].mxu1 }
 0x636   : > { %v8176_v41 = vpop.f32.mrb[173].mxu1  ;;  %v18954_v44 = vadd.f32 %v13142_v38, %v18785_v15 }
 0x637   : > { %v13143_v45 = vpop.f32.mrb[174].mxu1  ;;  %13327 = vmatpush3.bf16.msra.mxu1 %v14435_v51  ;;  %v18957_v54 = vadd.f32 %v8176_v41, %v18790_v17 }
 0x638   : > { %v8179_v40 = vpop.f32.mrb[175].mxu1  ;;  %13376 = vmatprep.subr.bf16.mxu1 %v18951_v10  ;;  %v18961_v58 = vadd.f32 %v13143_v45, %v18793_v56 }
 0x63a   : > { %13281 = vmatmul.mubr.bf16.gmra.mrb[24].mxu1 %v14500_v61  ;;  %v14509_v61 = vld [vmem:[#allocation2 + $0xa8] sm:$0xff] }
 0x63b   : > { %13284 = vmatprep.mubr.bf16.mxu1 %v14501_v6 }
 0x63d   : > { %v13146_v1 = vpop.f32.mrb[176].mxu1 }
 0x63e   : > { %v8191_v8 = vpop.f32.mrb[177].mxu1  ;;  %v18964_v15 = vadd.f32 %v13146_v1, %v18805_v11 }
 0x63f   : > { %v13147_v13 = vpop.f32.mrb[178].mxu1 }
 0x640   : > { %v8193_v5 = vpop.f32.mrb[179].mxu1 }
 0x641   : > { %v18967_v17 = vadd.f32 %v8193_v5, %v18810_v24  ;;  %v14505_v24 = vld [vmem:[#allocation2 + $0x88] sm:$0xff] }
 0x642   : > { %13285 = vmatmul.mubr.bf16.gmra.mrb[28].mxu1 %v14502_v12  ;;  %v14510_v12 = vld [vmem:[#allocation2 + $0xb0] sm:$0xff] }
 0x643   : > { %13288 = vmatprep.mubr.bf16.mxu1 %v14503_v32 }
 0x645   : > { %v13150_v56 = vpop.f32.mrb[180].mxu1 }
 0x646   : > { %v8205_v16 = vpop.f32.mrb[181].mxu1 }
 0x647   : > { %v13151_v46 = vpop.f32.mrb[182].mxu1  ;;  %v18970_v33 = vadd.f32 %v8205_v16, %v18823_v34 }
 0x648   : > { %v8208_v22 = vpop.f32.mrb[183].mxu1  ;;  %v18973_v27 = vadd.f32 %v13151_v46, %v18826_v26 }
 0x649   : > { %v18976_v11 = vadd.f32 %v8208_v22, %v18829_v31  ;;  %v14507_v31 = vld [vmem:[#allocation2 + $0x98] sm:$0xff] }
 0x64a   : > { %13289 = vmatmul.mubr.bf16.gmra.mrb[32].mxu1 %v14504_v9  ;;  %v14512_v9 = vld [vmem:[#allocation2 + $0xc0] sm:$0xff] }
 0x64b   : > { %13292 = vmatprep.mubr.bf16.mxu1 %v14505_v24 }
 0x64d   : > { %v13154_v50 = vpop.f32.mrb[184].mxu1 }
 0x64e   : > { %v8220_v0 = vpop.f32.mrb[185].mxu1  ;;  %v18979_v4 = vadd.f32 %v13154_v50, %v18840_v20 }
 0x64f   : > { %v13155_v36 = vpop.f32.mrb[186].mxu1  ;;  %v18982_v34 = vadd.f32 %v8220_v0, %v18845_v37  ;;  %v14508_v37 = vld [vmem:[#allocation2 + $0xa0] sm:$0xff] }
 0x650   : > { %v8223_v51 = vpop.f32.mrb[187].mxu1  ;;  %v18985_v26 = vadd.f32 %v13155_v36, %v18848_v28 }
 0x652   : > { %13293 = vmatmul.mubr.bf16.gmra.mrb[36].mxu1 %v14506_v60  ;;  %v20894_v60 = vld [vmem:[#allocation52_spill] sm:$0xff] }
 0x653   : > { %13296 = vmatprep.mubr.bf16.mxu1 %v14507_v31 }
 0x655   : > { %v13158_v59 = vpop.f32.mrb[188].mxu1 }
 0x656   : > { %v8235_v38 = vpop.f32.mrb[189].mxu1  ;;  %v18988_v41 = vadd.f32 %v13158_v59, %v18859_v2 }
 0x657   : > { %v13159_v45 = vpop.f32.mrb[190].mxu1 }
 0x658   : > { %v8237_v20 = vpop.f32.mrb[191].mxu1 }
 0x659   : > { %v18991_v40 = vadd.f32 %v8237_v20, %v18864_v48  ;;  %v14511_v48 = vld [vmem:[#allocation2 + $0xb8] sm:$0xff]  ;;  %v14437_v20 = vld [vmem:[#allocation8 + $0x188] sm:$0xff]  }
 0x65a   : > { %13297 = vmatmul.mubr.bf16.gmra.mrb[40].mxu1 %v14508_v37 }
 0x65b   : > { %13300 = vmatprep.mubr.bf16.mxu1 %v14509_v61  ;;  %v20896_v61 = vld [vmem:[#allocation60_spill] sm:$0xff] }
 0x65d   : > { %v13162_v28 = vpop.f32.mrb[192].mxu1 }
 0x65e   : > { %v8249_v6 = vpop.f32.mrb[193].mxu1  ;;  %v14438_v28 = vld [vmem:[#allocation8 + $0x190] sm:$0xff]  }
 0x65f   : > { %v13163_v1 = vpop.f32.mrb[194].mxu1  ;;  %v18994_v8 = vadd.f32 %v8249_v6, %v18877_v14 }
 0x660   : > { %v8252_v13 = vpop.f32.mrb[195].mxu1  ;;  %v18997_v5 = vadd.f32 %v13163_v1, %v18880_v30 }
 0x661   : > { %v19000_v2 = vadd.f32 %v8252_v13, %v18883_v55  ;;  %v14513_v55 = vld [vmem:[#allocation2 + $0xc8] sm:$0xff] }
 0x662   : > { %13301 = vmatmul.mubr.bf16.gmra.mrb[44].mxu1 %v14510_v12 }
 0x663   : > { %13304 = vmatprep.mubr.bf16.mxu1 %v14511_v48  ;;  %v14439_v48 = vld [vmem:[#allocation8 + $0x198] sm:$0xff]  }
 0x665   : > { %v13166_v32 = vpop.f32.mrb[196].mxu1 }
 0x666   : > { %v8264_v56 = vpop.f32.mrb[197].mxu1  ;;  %v19003_v16 = vadd.f32 %v13166_v32, %v18894_v63  ;;  %v20897_v32 = vld [vmem:[#allocation62_spill] sm:$0xff] }
 0x667   : > { %v13167_v46 = vpop.f32.mrb[198].mxu1  ;;  %v19006_v14 = vadd.f32 %v8264_v56, %v18899_v62  ;;  %v14514_v62 = vld [vmem:[#allocation2 + $0xd0] sm:$0xff] }
 0x668   : > { %v8267_v22 = vpop.f32.mrb[199].mxu1  ;;  %v19009_v30 = vadd.f32 %v13167_v46, %v18902_v49 }
 0x66a   : > { %13305 = vmatmul.mubr.bf16.gmra.mrb[48].mxu1 %v14512_v9 }
 0x66b   : > { %13308 = vmatprep.mubr.bf16.mxu1 %v14513_v55 }
 0x66d   : > { %v13170_v24 = vpop.f32.mrb[200].mxu1 }
 0x66e   : > { %v19012_v50 = vadd.f32 %v13170_v24, %v18911_v25  ;;  %v8279_v0 = vpop.f32.mrb[201].mxu1  ;;  %v20899_v24 = vld [vmem:[#allocation119_spill] sm:$0xff] }
 0x66f   : > { %v13171_v36 = vpop.f32.mrb[202].mxu1  ;;  %v20900_v0 = vld [vmem:[#allocation120_spill] sm:$0xff] }
 0x670   : > { %v8281_v63 = vpop.f32.mrb[203].mxu1  ;;  %v14442_v36 = vld [vmem:[#allocation8 + $0x1b0] sm:$0xff]  }
 0x671   : > { %v19015_v51 = vadd.f32 %v8281_v63, %v18915_v19  ;;  %v20895_v19 = vld [vmem:[#allocation58_spill] sm:$0xff] }
 0x672   : > { %13309 = vmatmul.mubr.bf16.gmra.mrb[52].mxu1 %v14514_v62 }
 0x673   : > { %13328 = vmatprep.mubr.bf16.mxu1 %v20894_v60 }
 0x675   : > { %v13174_v49 = vpop.f32.mrb[204].mxu1 }
 0x676   : > { %v8293_v31 = vpop.f32.mrb[205].mxu1 }
 0x677   : > { %v19019_v59 = vadd.f32 %v8293_v31, %v18918_v52  ;;  %v13175_v38 = vpop.f32.mrb[206].mxu1 }
 0x678   : > { %v19022_v45 = vadd.f32 %v13175_v38, %v18921_v53  ;;  %v8296_v25 = vpop.f32.mrb[207].mxu1 }
 0x679   : > { %v19025_v37 = vadd.f32 %v8296_v25, %v18924_v47  ;;  %v20901_v25 = vld [vmem:[#allocation115_spill] sm:$0xff] }
 0x67a   : > { %13329 = vmatmul.mubr.bf16.vlgmr.msra.gmra.mrb[56].mxu1 %v20895_v19  ;;  %v19060_v19 = vld [vmem:[#allocation8 + $0x1c0] sm:$0xff]  }
 0x67b   : > { %13332 = vmatprep.mubr.bf16.mxu1 %v20896_v61  ;;  %13377 = vmatpush3.bf16.msra.mxu1 %v18951_v10  ;;  %v20898_v10 = vld [vmem:[#allocation63_spill] sm:$0xff] }
 0x67c   : > { %13378 = vmatprep.subr.bf16.mxu1 %v14437_v20 }
 0x67d   : > { %v13178_v6 = vpop.f32.mrb[208].mxu1 }
 0x67e   : > { %v19031_v52 = vadd.f32 %v13178_v6, %v18928_v18  ;;  %v8308_v1 = vpop.f32.mrb[209].mxu1  ;;  %v14440_v18 = vld [vmem:[#allocation8 + $0x1a0] sm:$0xff]  }
 0x67f   : > { %v19034_v53 = vadd.f32 %v8308_v1, %v18931_v7  ;;  %v13179_v13 = vpop.f32.mrb[210].mxu1  ;;  %13379 = vmatpush3.bf16.msra.mxu1 %v14437_v20  ;;  %v20902_v20 = vld [vmem:[#allocation121_spill] sm:$0xff] }
 0x680   : > { %v19037_v47 = vadd.f32 %v13179_v13, %v18934_v57  ;;  %v8311_v12 = vpop.f32.mrb[211].mxu1  ;;  %13380 = vmatprep.subr.bf16.mxu1 %v14438_v28  ;;  %v14441_v57 = vld [vmem:[#allocation8 + $0x1a8] sm:$0xff]  }
 0x681   : > { %v20903_v13 = vld [vmem:[#allocation122_spill] sm:$0xff]  ;;  %v20904_v12 = vld [vmem:[#allocation116_spill] sm:$0xff] }
 0x682   : > { %13333 = vmatmul.mubr.bf16.gmra.mrb[60].mxu1 %v20897_v32 }
 0x683   : > { %13336 = vmatprep.mubr.bf16.mxu1 %v20898_v10  ;;  %13381 = vmatpush3.bf16.msra.mxu1 %v14438_v28 }
 0x684   : > { %13382 = vmatprep.subr.bf16.mxu1 %v14439_v48 }
 0x685   : > { %v13182_v56 = vpop.f32.mrb[212].mxu1 }
 0x686   : > { %v19042_v46 = vadd.f32 %v13182_v56, %v18937_v21  ;;  %v8323_v7 = vpop.f32.mrb[213].mxu1  ;;  %v20905_v56 = vld [vmem:[#allocation124_spill] sm:$0xff] }
 0x687   : > { %v13183_v22 = vpop.f32.mrb[214].mxu1  ;;  %13383 = vmatpush3.bf16.msra.mxu1 %v14439_v48 }
 0x688   : > { %v8325_v9 = vpop.f32.mrb[215].mxu1  ;;  %13384 = vmatprep.subr.bf16.mxu1 %v14440_v18 }
 0x689   : > { %v19045_v55 = vadd.f32 %v8325_v9, %v18940_v23  ;;  %v14443_v23 = vld [vmem:[#allocation8 + $0x1b8] sm:$0xff]  }
 0x68a   : > { %13337 = vmatmul.mubr.bf16.gmra.mrb[64].mxu1 %v20899_v24 }
 0x68b   : > { %13340 = vmatprep.mubr.bf16.mxu1 %v20900_v0  ;;  %13385 = vmatpush3.bf16.msra.mxu1 %v14440_v18 }
 0x68c   : > { %13386 = vmatprep.subr.bf16.mxu1 %v14441_v57 }
 0x68d   : > { %v13202_v63 = vpop.f32.mrb[216].mxu1 }
 0x68e   : > { %v8713_v62 = vpop.f32.mrb[217].mxu1 }
 0x68f   : > { %v19050_v21 = vadd.f32 %v8713_v62, %v18943_v35  ;;  %v13203_v60 = vpop.f32.mrb[218].mxu1  ;;  %13387 = vmatpush3.bf16.msra.mxu1 %v14441_v57 }
 0x690   : > { %v19053_v49 = vadd.f32 %v13203_v60, %v18946_v42  ;;  %v8716_v31 = vpop.f32.mrb[219].mxu1  ;;  %13388 = vmatprep.subr.bf16.mxu1 %v14442_v36 }
 0x691   : > { %v19056_v38 = vadd.f32 %v8716_v31, %v18949_v43 }
 0x692   : > { %13341 = vmatmul.mubr.bf16.gmra.mrb[68].mxu1 %v20901_v25  ;;  %v20909_v25 = vld [vmem:[#allocation73_spill] sm:$0xff] }
 0x693   : > { %13344 = vmatprep.mubr.bf16.mxu1 %v20902_v20  ;;  %13389 = vmatpush3.bf16.msra.mxu1 %v14442_v36  ;;  %v20907_v36 = vld [vmem:[#allocation117_spill] sm:$0xff] }
 0x694   : > { %13390 = vmatprep.subr.bf16.mxu1 %v14443_v23 }
 0x695   : > { %v13206_v35 = vpop.f32.mrb[220].mxu1 }
 0x696   : > { %v19063_v61 = vadd.f32 %v13206_v35, %v18954_v44  ;;  %v8728_v42 = vpop.f32.mrb[221].mxu1 }
 0x697   : > { %v19066_v28 = vadd.f32 %v8728_v42, %v18957_v54  ;;  %v13207_v6 = vpop.f32.mrb[222].mxu1  ;;  %13391 = vmatpush3.bf16.msra.mxu1 %v14443_v23 }
 0x698   : > { %v19069_v43 = vadd.f32 %v13207_v6, %v18961_v58  ;;  %v8731_v1 = vpop.f32.mrb[223].mxu1  ;;  %13440 = vmatprep.subr.bf16.mxu1 %v19060_v19  ;;  %v20906_v58 = vld [vmem:[#allocation125_spill] sm:$0xff] }
 0x69a   : > { %13345 = vmatmul.mubr.bf16.gmra.mrb[72].mxu1 %v20903_v13  ;;  %v20912_v13 = vld [vmem:[#allocation127_spill] sm:$0xff] }
 0x69b   : > { %13348 = vmatprep.mubr.bf16.mxu1 %v20904_v12 }
 0x69d   : > { %v13210_v48 = vpop.f32.mrb[224].mxu1 }
 0x69e   : > { %v19075_v44 = vadd.f32 %v13210_v48, %v18964_v15  ;;  %v8743_v32 = vpop.f32.mrb[225].mxu1 }
 0x69f   : > { %v13211_v10 = vpop.f32.mrb[226].mxu1 }
 0x6a0   : > { %v8745_v54 = vpop.f32.mrb[227].mxu1 }
 0x6a1   : > { %v19078_v18 = vadd.f32 %v8745_v54, %v18967_v17  ;;  %v20908_v17 = vld [vmem:[#allocation71_spill] sm:$0xff] }
 0x6a2   : > { %13349 = vmatmul.mubr.bf16.gmra.mrb[76].mxu1 %v20905_v56  ;;  %v20913_v56 = vld [vmem:[#allocation126_spill] sm:$0xff] }
 0x6a3   : > { %13352 = vmatprep.mubr.bf16.mxu1 %v20906_v58  ;;  %v9777_v58 = vld [vmem:[#allocation2 + $0x20] sm:$0xf8] }
 0x6a5   : > { %v13214_v7 = vpop.f32.mrb[228].mxu1 }
 0x6a6   : > { %v8757_v22 = vpop.f32.mrb[229].mxu1 }
 0x6a7   : > { %v19083_v9 = vadd.f32 %v8757_v22, %v18970_v33  ;;  %v13215_v57 = vpop.f32.mrb[230].mxu1 }
 0x6a8   : > { %v19086_v24 = vadd.f32 %v13215_v57, %v18973_v27  ;;  %v8760_v15 = vpop.f32.mrb[231].mxu1 }
 0x6a9   : > { %v19089_v0 = vadd.f32 %v8760_v15, %v18976_v11  ;;  %v20910_v11 = vld [vmem:[#allocation76_spill] sm:$0xff]  ;;  %v9820_v15 = vshrl.u32 %v9777_v58, 16 }
 0x6aa   : > { %13353 = vmatmul.mubr.bf16.gmra.mrb[80].mxu1 %v20907_v36  ;;  %v9823_v36 = vshll.u32 %v9777_v58, 16 }
 0x6ab   : > { %13356 = vmatprep.mubr.bf16.mxu1 %v20908_v17 }
 0x6ad   : > { %v13218_v63 = vpop.f32.mrb[232].mxu1 }
 0x6ae   : > { %v19094_v62 = vadd.f32 %v13218_v63, %v18979_v4  ;;  %v8772_v60 = vpop.f32.mrb[233].mxu1 }
 0x6af   : > { %v19097_v33 = vadd.f32 %v8772_v60, %v18982_v34  ;;  %v13219_v31 = vpop.f32.mrb[234].mxu1  ;;  %v20911_v34 = vld [vmem:[#allocation78_spill] sm:$0xff] }
 0x6b0   : > { %v19100_v27 = vadd.f32 %v13219_v31, %v18985_v26  ;;  %v8775_v23 = vpop.f32.mrb[235].mxu1  ;;  %v20915_v31 = vld [vmem:[#allocation128_spill] sm:$0xff] }
 0x6b1   : > { %v9822_v23 = vrot.slane %v9820_v15, 3  ;;  %v20921_v15 = vld [vmem:[#allocation42_spill] sm:$0xff] }
 0x6b2   : > { %13357 = vmatmul.mubr.bf16.gmra.mrb[84].mxu1 %v20909_v25  ;;  %v9825_v25 = vrot.slane %v9823_v36, 4  ;;  %v14446_v36 = vld [vmem:[#allocation8 + $0x1d0] sm:$0xff]  }
 0x6b3   : > { %13360 = vmatprep.mubr.bf16.mxu1 %v20910_v11  ;;  %v20916_v11 = vld [vmem:[#allocation88_spill] sm:$0xff] }
 0x6b5   : > { %v13222_v20 = vpop.f32.mrb[236].mxu1 }
 0x6b6   : > { %v19105_v35 = vadd.f32 %v13222_v20, %v18988_v41  ;;  %v8787_v42 = vpop.f32.mrb[237].mxu1 }
 0x6b7   : > { %v13223_v4 = vpop.f32.mrb[238].mxu1 }
 0x6b8   : > { %v8789_v6 = vpop.f32.mrb[239].mxu1 }
 0x6b9   : > { %v19108_v1 = vadd.f32 %v8789_v6, %v18991_v40  ;;  %v20914_v40 = vld [vmem:[#allocation129_spill] sm:$0xff] }
 0x6ba   : > { %13361 = vmatmul.mubr.bf16.gmra.mrb[88].mxu1 %v20911_v34 }
 0x6bb   : > { %13364 = vmatprep.mubr.bf16.mxu1 %v20912_v13  ;;  %v20917_v13 = vld [vmem:[#allocation123_spill] sm:$0xff] }
 0x6bd   : > { %v13226_v26 = vpop.f32.mrb[240].mxu1 }
 0x6be   : > { %v8801_v12 = vpop.f32.mrb[241].mxu1 }
 0x6bf   : > { %v19113_v48 = vadd.f32 %v8801_v12, %v18994_v8  ;;  %v13227_v32 = vpop.f32.mrb[242].mxu1  ;;  %v9250_v8 = vld [vmem:[#allocation2 + $0xd8] sm:$0x1]  ;;  %v20918_v12 = vld [vmem:[#allocation24_spill] sm:$0xff] }
 0x6c0   : > { %v19116_v10 = vadd.f32 %v13227_v32, %v18997_v5  ;;  %v8804_v41 = vpop.f32.mrb[243].mxu1  ;;  %v9460_v60 = vshll.u32 %v9250_v8, 16  ;;  %v20920_v8 = vld [vmem:[#allocation40_spill] sm:$0xff] }
 0x6c1   : > { %v19119_v54 = vadd.f32 %v8804_v41, %v19000_v2 }
 0x6c2   : > { %13365 = vmatmul.mubr.bf16.gmra.mrb[92].mxu1 %v20913_v56  ;;  %v9462_v20 = vrot.slane %v9460_v60, 1 }
 0x6c3   : > { %13368 = vmatprep.mubr.bf16.mxu1 %v20914_v40 }
 0x6c4   : > { %v9463_v26 = vsel %vm20722_vm0, %v20917_v13, %v9462_v20  ;;  %v14450_v13 = vld [vmem:[#allocation8 + $0x1f0] sm:$0xff]  }
 0x6c5   : > { %v13230_v7 = vpop.f32.mrb[244].mxu1 }
 0x6c6   : > { %v19124_v22 = vadd.f32 %v13230_v7, %v19003_v16  ;;  %v8816_v57 = vpop.f32.mrb[245].mxu1 }
 0x6c7   : > { %v19127_v5 = vadd.f32 %v8816_v57, %v19006_v14  ;;  %v13231_v17 = vpop.f32.mrb[246].mxu1  ;;  %v9826_v14 = vor.u32 %v9825_v25, %v9822_v23  ;;  %v14447_v23 = vld [vmem:[#allocation8 + $0x1d8] sm:$0xff]   ;;  %v20922_v25 = vld [vmem:[#allocation29_spill] sm:$0xff] }
 0x6c8   : > { %v19130_v2 = vadd.f32 %v13231_v17, %v19009_v30  ;;  %v8819_v63 = vpop.f32.mrb[247].mxu1 }
 0x6c9   : > { %v9835_v32 = vsel %vm20919_vm2, %v9826_v14, %v20918_v12 }
 0x6ca   : > { %13369 = vmatmul.mubr.bf16.gmra.mrb[96].mxu1 %v20915_v31 }
 0x6cb   : > { %13372 = vmatprep.mubr.bf16.mxu1 %v20916_v11 }
 0x6cd   : > { %v13234_v16 = vpop.f32.mrb[248].mxu1 }
 0x6ce   : > { %v19135_v42 = vadd.f32 %v13234_v16, %v19012_v50  ;;  %v8831_v4 = vpop.f32.mrb[249].mxu1 }
 0x6cf   : > { %v13235_v6 = vpop.f32.mrb[250].mxu1 }
 0x6d0   : > { %v8833_v34 = vpop.f32.mrb[251].mxu1  ;;  %v20924_v6 = vld [vmem:[#allocation45_spill] sm:$0xff] }
 0x6d1   : > { %v19138_v30 = vadd.f32 %v8833_v34, %v19015_v51  ;;  %v14445_v51 = vld [vmem:[#allocation8 + $0x1c8] sm:$0xff]  }
 0x6d2   : > { %13373 = vmatmul.mubr.bf16.gmra.mrb[100].mxu1 %v9463_v26  ;;  %v20925_v34 = vld [vmem:[#allocation54_spill] sm:$0xff] }
 0x6d3   : > { %13392 = vmatprep.mubr.bf16.mxu1 %v9835_v32 }
 0x6d5   : > { %v13238_v41 = vpop.f32.mrb[252].mxu1 }
 0x6d6   : > { %v8845_v56 = vpop.f32.mrb[253].mxu1 }
 0x6d7   : > { %v19145_v50 = vadd.f32 %v8845_v56, %v19019_v59  ;;  %v13239_v40 = vpop.f32.mrb[254].mxu1 }
 0x6d8   : > { %v19148_v58 = vadd.f32 %v13239_v40, %v19022_v45  ;;  %v8848_v7 = vpop.f32.mrb[255].mxu1 }
 0x6d9   : > { %v19151_v57 = vadd.f32 %v8848_v7, %v19025_v37  ;;  %v20926_v7 = vld [vmem:[#allocation61_spill] sm:$0xff] }
 0x6da   : > { %13393 = vmatmul.mubr.bf16.vlgmr.msra.gmra.mrb[104].mxu1 %v20920_v8 }
 0x6db   : > { %13396 = vmatprep.mubr.bf16.mxu1 %v20921_v15  ;;  %13441 = vmatpush3.bf16.msra.mxu1 %v19060_v19  ;;  %v20923_v19 = vld [vmem:[#allocation43_spill] sm:$0xff] }
 0x6dc   : > { %13442 = vmatprep.subr.bf16.mxu1 %v14445_v51 }
 0x6dd   : > { %v13242_v17 = vpop.f32.mrb[0].mxu1 }
 0x6de   : > { %v19157_v59 = vadd.f32 %v13242_v17, %v19031_v52  ;;  %v8860_v63 = vpop.f32.mrb[1].mxu1  ;;  %v14448_v52 = vld [vmem:[#allocation8 + $0x1e0] sm:$0xff]  }
 0x6df   : > { %v19160_v45 = vadd.f32 %v8860_v63, %v19034_v53  ;;  %v13243_v60 = vpop.f32.mrb[2].mxu1  ;;  %13443 = vmatpush3.bf16.msra.mxu1 %v14445_v51  ;;  %v20927_v51 = vld [vmem:[#allocation53_spill] sm:$0xff]  ;;  %v20928_v63 = vld [vmem:[#allocation74_spill] sm:$0xff] }
 0x6e0   : > { %v19163_v37 = vadd.f32 %v13243_v60, %v19037_v47  ;;  %v8863_v31 = vpop.f32.mrb[3].mxu1  ;;  %13444 = vmatprep.subr.bf16.mxu1 %v14446_v36  ;;  %v14449_v47 = vld [vmem:[#allocation8 + $0x1e8] sm:$0xff]   ;;  %v20929_v60 = vld [vmem:[#allocation65_spill] sm:$0xff] }
 0x6e2   : > { %13397 = vmatmul.mubr.bf16.gmra.mrb[108].mxu1 %v20922_v25 }
 0x6e3   : > { %13400 = vmatprep.mubr.bf16.mxu1 %v20923_v19  ;;  %13445 = vmatpush3.bf16.msra.mxu1 %v14446_v36 }
 0x6e4   : > { %13446 = vmatprep.subr.bf16.mxu1 %v14447_v23 }
 0x6e5   : > { %v13246_v11 = vpop.f32.mrb[4].mxu1 }
 0x6e6   : > { %v19168_v16 = vadd.f32 %v13246_v11, %v19042_v46  ;;  %v8875_v53 = vpop.f32.mrb[5].mxu1  ;;  %v20931_v11 = vld [vmem:[#allocation75_spill] sm:$0xff] }
 0x6e7   : > { %v13247_v20 = vpop.f32.mrb[6].mxu1  ;;  %13447 = vmatpush3.bf16.msra.mxu1 %v14447_v23 }
 0x6e8   : > { %v8877_v4 = vpop.f32.mrb[7].mxu1  ;;  %13448 = vmatprep.subr.bf16.mxu1 %v14448_v52 }
 0x6e9   : > { %v19171_v14 = vadd.f32 %v8877_v4, %v19045_v55  ;;  %v14451_v55 = vld [vmem:[#allocation8 + $0x1f8] sm:$0xff]  }
 0x6ea   : > { %13401 = vmatmul.mubr.bf16.gmra.mrb[112].mxu1 %v20924_v6 }
 0x6eb   : > { %13404 = vmatprep.mubr.bf16.mxu1 %v20925_v34  ;;  %13449 = vmatpush3.bf16.msra.mxu1 %v14448_v52  ;;  %v20930_v52 = vld [vmem:[#allocation59_spill] sm:$0xff]  ;;  %v20932_v34 = vld [vmem:[#allocation81_spill] sm:$0xff] }
 0x6ec   : > { %13450 = vmatprep.subr.bf16.mxu1 %v14449_v47 }
 0x6ed   : > { %v13266_v26 = vpop.f32.mrb[8].mxu1 }
 0x6ee   : > { %v9019_v12 = vpop.f32.mrb[9].mxu1 }
 0x6ef   : > { %v19176_v46 = vadd.f32 %v9019_v12, %v19050_v21  ;;  %v13267_v32 = vpop.f32.mrb[10].mxu1  ;;  %13451 = vmatpush3.bf16.msra.mxu1 %v14449_v47 }
 0x6f0   : > { %v19179_v41 = vadd.f32 %v13267_v32, %v19053_v49  ;;  %v9022_v56 = vpop.f32.mrb[11].mxu1  ;;  %13452 = vmatprep.subr.bf16.mxu1 %v14450_v13 }
 0x6f1   : > { %v19182_v40 = vadd.f32 %v9022_v56, %v19056_v38 }
 0x6f2   : > { %13405 = vmatmul.mubr.bf16.gmra.mrb[116].mxu1 %v20926_v7  ;;  %v20935_v7 = vld [vmem:[#allocation85_spill] sm:$0xff] }
 0x6f3   : > { %13408 = vmatprep.mubr.bf16.mxu1 %v20927_v51  ;;  %13453 = vmatpush3.bf16.msra.mxu1 %v14450_v13 }
 0x6f4   : > { %13454 = vmatprep.subr.bf16.mxu1 %v14451_v55 }
 0x6f5   : > { %v13270_v8 = vpop.f32.mrb[12].mxu1 }
 0x6f6   : > { %v19187_v21 = vadd.f32 %v13270_v8, %v19063_v61  ;;  %v9034_v15 = vpop.f32.mrb[13].mxu1 }
 0x6f7   : > { %v19190_v49 = vadd.f32 %v9034_v15, %v19066_v28  ;;  %v13271_v36 = vpop.f32.mrb[14].mxu1  ;;  %13455 = vmatpush3.bf16.msra.mxu1 %v14451_v55  ;;  %v20934_v55 = vld [vmem:[#allocation70_spill] sm:$0xff] }
 0x6f8   : > { %v19193_v17 = vadd.f32 %v13271_v36, %v19069_v43  ;;  %v9037_v38 = vpop.f32.mrb[15].mxu1 }
 0x6fa   : > { %13409 = vmatmul.mubr.bf16.gmra.mrb[120].mxu1 %v20928_v63 }
 0x6fb   : > { %13412 = vmatprep.mubr.bf16.mxu1 %v20929_v60 }
 0x6fd   : > { %v13274_v31 = vpop.f32.mrb[16].mxu1 }
 0x6fe   : > { %v19198_v23 = vadd.f32 %v13274_v31, %v19075_v44  ;;  %v9049_v61 = vpop.f32.mrb[17].mxu1 }
 0x6ff   : > { %v13275_v25 = vpop.f32.mrb[18].mxu1  ;;  %v20936_v61 = vld [vmem:[#allocation35_spill] sm:$0xff] }
 0x700   : > { %v9051_v19 = vpop.f32.mrb[19].mxu1 }
 0x701   : > { %v19201_v28 = vadd.f32 %v9051_v19, %v19078_v18  ;;  %v20933_v18 = vld [vmem:[#allocation84_spill] sm:$0xff]  ;;  %v20938_v19 = vld [vmem:[#allocation86_spill] sm:$0xff] }
 0x702   : > { %13413 = vmatmul.mubr.bf16.gmra.mrb[124].mxu1 %v20930_v52  ;;  %v20939_v52 = vld [vmem:[#allocation67_spill] sm:$0xff] }
 0x703   : > { %13416 = vmatprep.mubr.bf16.mxu1 %v20931_v11  ;;  %v20940_v11 = vshrl.u32 %v20939_v52, 16 }
 0x705   : > { %v13278_v43 = vpop.f32.mrb[20].mxu1 }
 0x706   : > { %v9063_v53 = vpop.f32.mrb[21].mxu1  ;;  %v10010_v43 = vrot.slane %v20940_v11, 3 }
 0x707   : > { %v19206_v20 = vadd.f32 %v9063_v53, %v19083_v9  ;;  %v13279_v4 = vpop.f32.mrb[22].mxu1  ;;  %v20941_v53 = vshll.u32 %v20939_v52, 16 }
 0x708   : > { %v19209_v47 = vadd.f32 %v13279_v4, %v19086_v24  ;;  %v9066_v44 = vpop.f32.mrb[23].mxu1 }
 0x709   : > { %v19212_v6 = vadd.f32 %v9066_v44, %v19089_v0  ;;  %v10761_v0 = vld [vmem:[#allocation2 + $0xe0] sm:$0x1f]  ;;  %v10013_v4 = vrot.slane %v20941_v53, 4  ;;  %v20949_v53 = vld [vmem:[#allocation95_spill] sm:$0xff] }
 0x70a   : > { %13417 = vmatmul.mubr.bf16.gmra.mrb[128].mxu1 %v20932_v34  ;;  %v10880_v51 = vshrl.u32 %v10761_v0, 16  ;;  %v10883_v8 = vshll.u32 %v10761_v0, 16  ;;  %v20943_v0 = vld [vmem:[#allocation108_spill] sm:$0xff] }
 0x70b   : > { %13420 = vmatprep.mubr.bf16.mxu1 %v20933_v18  ;;  %v10014_v18 = vor.u32 %v10013_v4, %v10010_v43 }
 0x70c   : > { %v10882_v36 = vrot.slane %v10880_v51, 4 }
 0x70d   : > { %v13282_v13 = vpop.f32.mrb[24].mxu1  ;;  %v10024_v4 = vsel %vm20950_vm8, %v10014_v18, %v20949_v53 }
 0x70e   : > { %v19217_v26 = vadd.f32 %v13282_v13, %v19094_v62  ;;  %v9078_v12 = vpop.f32.mrb[25].mxu1  ;;  %v10885_v62 = vrot.slane %v10883_v8, 5  ;;  %v20946_v8 = vld [vmem:[#allocation30_spill] sm:$0xff] }
 0x70f   : > { %v19220_v9 = vadd.f32 %v9078_v12, %v19097_v33  ;;  %v13283_v32 = vpop.f32.mrb[26].mxu1 }
 0x710   : > { %v19223_v24 = vadd.f32 %v13283_v32, %v19100_v27  ;;  %v9081_v56 = vpop.f32.mrb[27].mxu1  ;;  %v10886_v60 = vor.u32 %v10885_v62, %v10882_v36 }
 0x711   : > { %v19247_v56 = vld [vmem:[#allocation2 + $0xe0] sm:$0xf] }
 0x712   : > { %13421 = vmatmul.mubr.bf16.gmra.mrb[132].mxu1 %v20934_v55  ;;  %v10887_v25 = vsel %vm20937_vm5, %v20936_v61, %v10886_v60 }
 0x713   : > { %13424 = vmatprep.mubr.bf16.mxu1 %v20935_v7  ;;  %13565 = vmatmul.mubr.bf16.gmra.mrb[92].mxu0 %v10887_v25  ;;  %v20944_v7 = vld [vmem:[#allocation89_spill] sm:$0xff] }
 0x714   : > { %v10015_v51 = vsel %vm20945_vm13, %v20944_v7, %v10014_v18 }
 0x715   : > { %v13286_v15 = vpop.f32.mrb[28].mxu1 }
 0x716   : > { %v19228_v38 = vadd.f32 %v13286_v15, %v19105_v35  ;;  %v9093_v33 = vpop.f32.mrb[29].mxu1  ;;  %v20942_v35 = vld [vmem:[#allocation92_spill] sm:$0xff]  ;;  %v20947_v15 = vshrl.u32 %v20946_v8, 16 }
 0x717   : > { %v13287_v63 = vpop.f32.mrb[30].mxu1  ;;  %v10038_v33 = vshll.u32 %v19247_v56, 16 }
 0x718   : > { %v9095_v31 = vpop.f32.mrb[31].mxu1  ;;  %v10028_v36 = vrot.slane %v20947_v15, 3 }
 0x719   : > { %v19231_v27 = vadd.f32 %v9095_v31, %v19108_v1  ;;  %v10040_v52 = vrot.slane %v10038_v33, 4 }
 0x71a   : > { %13425 = vmatmul.mubr.bf16.gmra.mrb[136].mxu1 %v20938_v19 }
 0x71b   : > { %13428 = vmatprep.mubr.bf16.mxu1 %v20942_v35 }
 0x71d   : > { %v13290_v44 = vpop.f32.mrb[32].mxu1 }
 0x71e   : > { %v9107_v34 = vpop.f32.mrb[33].mxu1 }
 0x71f   : > { %v19242_v1 = vadd.f32 %v9107_v34, %v19113_v48  ;;  %v13291_v13 = vpop.f32.mrb[34].mxu1  ;;  %v20948_v48 = vshll.u32 %v20946_v8, 16 }
 0x720   : > { %v19245_v12 = vadd.f32 %v13291_v13, %v19116_v10  ;;  %v9110_v32 = vpop.f32.mrb[35].mxu1  ;;  %v10035_v10 = vshrl.u32 %v19247_v56, 16  ;;  %v14515_v13 = vld [vmem:[#allocation2 + $0x20] sm:$0xf0] }
 0x721   : > { %v19250_v55 = vadd.f32 %v9110_v32, %v19119_v54  ;;  %v10031_v62 = vrot.slane %v20948_v48, 4  ;;  %v10399_v32 = vrot.slane %v14515_v13, 4 }
 0x722   : > { %13429 = vmatmul.mubr.bf16.gmra.mrb[140].mxu1 %v20943_v0  ;;  %v10037_v19 = vrot.slane %v10035_v10, 3  ;;  %v14516_v0 = vld [vmem:[#allocation2 + $0x28] sm:$0xff]  ;;  %v14518_v10 = vld [vmem:[#allocation2 + $0x38] sm:$0xff] }
 0x723   : > { %13432 = vmatprep.mubr.bf16.mxu1 %v10015_v51  ;;  %v10032_v31 = vor.u32 %v10031_v62, %v10028_v36  ;;  %v14517_v36 = vld [vmem:[#allocation2 + $0x30] sm:$0xff]  ;;  %v10404_v33 = vrot.slane %v14518_v10, 4  ;;  %v14523_v10 = vld [vmem:[#allocation2 + $0x60] sm:$0xff] }
 0x724   : > { %v10041_v35 = vor.u32 %v10040_v52, %v10037_v19  ;;  %v10402_v48 = vrot.slane %v14517_v36, 4 }
 0x725   : > { %v13294_v63 = vpop.f32.mrb[36].mxu1 }
 0x726   : > { %v19262_v54 = vadd.f32 %v13294_v63, %v19124_v22  ;;  %v9122_v60 = vpop.f32.mrb[37].mxu1  ;;  %v10033_v22 = vsel %vm20951_vm1, %v20949_v53, %v10032_v31  ;;  %v10042_v7 = vsel %vm20952_vm4, %v10032_v31, %v10041_v35  ;;  %v10405_v52 = vsel %vm7564_vm10, %v10402_v48, %v10404_v33  ;;  %v14520_v35 = vld [vmem:[#allocation2 + $0x48] sm:$0xff] }
 0x727   : > { %v19265_v61 = vadd.f32 %v9122_v60, %v19127_v5  ;;  %v13295_v25 = vpop.f32.mrb[38].mxu1 }
 0x728   : > { %v19268_v11 = vadd.f32 %v13295_v25, %v19130_v2  ;;  %v9125_v43 = vpop.f32.mrb[39].mxu1  ;;  %v10400_v2 = vrot.slane %v14516_v0, 4 }
 0x729   : > { %v14519_v43 = vld [vmem:[#allocation2 + $0x40] sm:$0xff] }
 0x72a   : > { %13433 = vmatmul.mubr.bf16.gmra.mrb[144].mxu1 %v10024_v4  ;;  %v10401_v15 = vsel %vm7564_vm10, %v10399_v32, %v10400_v2  ;;  %v10406_v53 = vrot.slane %v14519_v43, 4 }
 0x72b   : > { %13436 = vmatprep.mubr.bf16.mxu1 %v10033_v22 }
 0x72c   : > { %v10407_v32 = vsel %vm7564_vm10, %v10404_v33, %v10406_v53  ;;  %v10414_v33 = vrot.slane %v14523_v10, 4  ;;  %v20953_v10 = vld [vmem:[#allocation102_spill] sm:$0xff] }
 0x72d   : > { %v13298_v44 = vpop.f32.mrb[40].mxu1 }
 0x72e   : > { %v19275_v5 = vadd.f32 %v13298_v44, %v19135_v42  ;;  %v9137_v34 = vpop.f32.mrb[41].mxu1 }
 0x72f   : > { %v13299_v51 = vpop.f32.mrb[42].mxu1 }
 0x730   : > { %v9139_v8 = vpop.f32.mrb[43].mxu1 }
 0x731   : > { %v19279_v18 = vadd.f32 %v9139_v8, %v19138_v30  ;;  %v10403_v30 = vsel %vm7564_vm10, %v10400_v2, %v10402_v48  ;;  %v14521_v2 = vld [vmem:[#allocation2 + $0x50] sm:$0xff] }
 0x732   : > { %13437 = vmatmul.mubr.bf16.gmra.mrb[148].mxu1 %v10042_v7 }
 0x733   : > { %13456 = vmatprep.mubr.bf16.mxu1 %v10401_v15 }
 0x735   : > { %v13302_v42 = vpop.f32.mrb[44].mxu1 }
 0x736   : > { %v9151_v62 = vpop.f32.mrb[45].mxu1 }
 0x737   : > { %v19283_v63 = vadd.f32 %v9151_v62, %v19145_v50  ;;  %v13303_v60 = vpop.f32.mrb[46].mxu1 }
 0x738   : > { %v19286_v31 = vadd.f32 %v13303_v60, %v19148_v58  ;;  %v9154_v25 = vpop.f32.mrb[47].mxu1  ;;  %v10408_v58 = vrot.slane %v14520_v35, 4 }
 0x739   : > { %v19290_v19 = vadd.f32 %v9154_v25, %v19151_v57 }
 0x73a   : > { %13457 = vmatmul.mubr.bf16.vlgmr.msra.gmra.mrb[152].mxu1 %v10403_v30  ;;  %v10409_v0 = vsel %vm7564_vm10, %v10406_v53, %v10408_v58 }
 0x73b   : > { %13460 = vmatprep.mubr.bf16.mxu1 %v10405_v52 }
 0x73d   : > { %v13306_v4 = vpop.f32.mrb[48].mxu1 }
 0x73e   : > { %v19294_v50 = vadd.f32 %v13306_v4, %v19157_v59  ;;  %v9166_v22 = vpop.f32.mrb[49].mxu1  ;;  %v10410_v59 = vrot.slane %v14521_v2, 4 }
 0x73f   : > { %v19297_v44 = vadd.f32 %v9166_v22, %v19160_v45  ;;  %v13307_v34 = vpop.f32.mrb[50].mxu1  ;;  %v14522_v45 = vld [vmem:[#allocation2 + $0x58] sm:$0xff] }
 0x740   : > { %v19300_v57 = vadd.f32 %v13307_v34, %v19163_v37  ;;  %v9169_v13 = vpop.f32.mrb[51].mxu1  ;;  %v10412_v15 = vrot.slane %v14522_v45, 4  ;;  %v10411_v37 = vsel %vm7564_vm10, %v10408_v58, %v10410_v59  ;;  %v14525_v58 = vld [vmem:[#allocation2 + $0x70] sm:$0xff] }
 0x741   : > { %v10418_v34 = vrot.slane %v14525_v58, 4  ;;  %v20954_v58 = vld [vmem:[#allocation114_spill] sm:$0xff] }
 0x742   : > { %13461 = vmatmul.mubr.bf16.gmra.mrb[156].mxu1 %v10407_v32  ;;  %v10413_v62 = vsel %vm7564_vm10, %v10410_v59, %v10412_v15 }
 0x743   : > { %13464 = vmatprep.mubr.bf16.mxu1 %v10409_v0  ;;  %v14526_v0 = vld [vmem:[#allocation2 + $0x78] sm:$0xff] }
 0x745   : > { %v13310_v7 = vpop.f32.mrb[52].mxu1 }
 0x746   : > { %v19305_v51 = vadd.f32 %v13310_v7, %v19168_v16  ;;  %v9181_v8 = vpop.f32.mrb[53].mxu1  ;;  %v14524_v16 = vld [vmem:[#allocation2 + $0x68] sm:$0xff] }
 0x747   : > { %v13311_v36 = vpop.f32.mrb[54].mxu1  ;;  %v10416_v30 = vrot.slane %v14524_v16, 4 }
 0x748   : > { %v9183_v48 = vpop.f32.mrb[55].mxu1 }
 0x749   : > { %v19309_v42 = vadd.f32 %v9183_v48, %v19171_v14  ;;  %v10415_v14 = vsel %vm7564_vm10, %v10412_v15, %v10414_v33  ;;  %v10417_v35 = vsel %vm7564_vm10, %v10414_v33, %v10416_v30  ;;  %v10419_v8 = vsel %vm7564_vm10, %v10416_v30, %v10418_v34  ;;  %v14527_v48 = vld [vmem:[#allocation2 + $0x88] sm:$0xff] }
 0x74a   : > { %13465 = vmatmul.mubr.bf16.gmra.mrb[160].mxu1 %v10411_v37  ;;  %v10424_v37 = vrot.slane %v14527_v48, 4 }
 0x74b   : > { %13468 = vmatprep.mubr.bf16.mxu1 %v10413_v62 }
 0x74d   : > { %v13330_v60 = vpop.f32.mrb[56].mxu1 }
 0x74e   : > { %v9570_v25 = vpop.f32.mrb[57].mxu1  ;;  %v10425_v60 = vsel %vm7564_vm10, %v20953_v10, %v10424_v37 }
 0x74f   : > { %v19313_v52 = vadd.f32 %v9570_v25, %v19176_v46  ;;  %v13331_v43 = vpop.f32.mrb[58].mxu1 }
 0x750   : > { %v19316_v53 = vadd.f32 %v13331_v43, %v19179_v41  ;;  %v9573_v4 = vpop.f32.mrb[59].mxu1  ;;  %v10420_v41 = vrot.slane %v14526_v0, 4 }
 0x751   : > { %v19320_v22 = vadd.f32 %v9573_v4, %v19182_v40 }
 0x752   : > { %13469 = vmatmul.mubr.bf16.gmra.mrb[164].mxu1 %v10415_v14  ;;  %v10421_v45 = vsel %vm7564_vm10, %v10418_v34, %v10420_v41 }
 0x753   : > { %13472 = vmatprep.mubr.bf16.mxu1 %v10417_v35 }
 0x755   : > { %v13334_v13 = vpop.f32.mrb[60].mxu1 }
 0x756   : > { %v19324_v46 = vadd.f32 %v13334_v13, %v19187_v21  ;;  %v9585_v32 = vpop.f32.mrb[61].mxu1 }
 0x757   : > { %v19327_v2 = vadd.f32 %v9585_v32, %v19190_v49  ;;  %v13335_v59 = vpop.f32.mrb[62].mxu1 }
 0x758   : > { %v19330_v40 = vadd.f32 %v13335_v59, %v19193_v17  ;;  %v9588_v7 = vpop.f32.mrb[63].mxu1  ;;  %v10423_v17 = vsel %vm7564_vm10, %v10420_v41, %v20953_v10  ;;  %v14529_v41 = vld [vmem:[#allocation2 + $0xa8] sm:$0xff] }
 0x75a   : > { %13473 = vmatmul.mubr.bf16.gmra.mrb[168].mxu1 %v10419_v8 }
 0x75b   : > { %13476 = vmatprep.mubr.bf16.mxu1 %v10421_v45  ;;  %v20955_v45 = vld [vmem:[#allocation113_spill] sm:$0xff] }
 0x75d   : > { %v13338_v15 = vpop.f32.mrb[64].mxu1 }
 0x75e   : > { %v19335_v21 = vadd.f32 %v13338_v15, %v19198_v23  ;;  %v9600_v36 = vpop.f32.mrb[65].mxu1  ;;  %v14528_v23 = vld [vmem:[#allocation2 + $0x98] sm:$0xff] }
 0x75f   : > { %v13339_v49 = vpop.f32.mrb[66].mxu1  ;;  %v10428_v30 = vrot.slane %v14528_v23, 4 }
 0x760   : > { %v9602_v62 = vpop.f32.mrb[67].mxu1 }
 0x761   : > { %v19340_v33 = vadd.f32 %v9602_v62, %v19201_v28  ;;  %v10427_v28 = vsel %vm7564_vm10, %v10424_v37, %v20954_v58  ;;  %v10429_v13 = vsel %vm7564_vm10, %v20954_v58, %v10428_v30  ;;  %v10431_v15 = vsel %vm7564_vm10, %v10428_v30, %v20955_v45 }
 0x762   : > { %13477 = vmatmul.mubr.bf16.gmra.mrb[172].mxu1 %v10423_v17 }
 0x763   : > { %13480 = vmatprep.mubr.bf16.mxu1 %v10425_v60 }
 0x765   : > { %v13342_v25 = vpop.f32.mrb[68].mxu1 }
 0x766   : > { %v9614_v16 = vpop.f32.mrb[69].mxu1 }
 0x767   : > { %v19345_v43 = vadd.f32 %v9614_v16, %v19206_v20  ;;  %v13343_v4 = vpop.f32.mrb[70].mxu1 }
 0x768   : > { %v19348_v14 = vadd.f32 %v13343_v4, %v19209_v47  ;;  %v9617_v35 = vpop.f32.mrb[71].mxu1  ;;  %v10432_v47 = vrot.slane %v14529_v41, 4  ;;  %v14532_v41 = vld [vmem:[#allocation2 + $0xd0] sm:$0xff] }
 0x769   : > { %v19353_v34 = vadd.f32 %v9617_v35, %v19212_v6 }
 0x76a   : > { %13481 = vmatmul.mubr.bf16.gmra.mrb[176].mxu1 %v10427_v28  ;;  %v10433_v36 = vsel %vm7564_vm10, %v20955_v45, %v10432_v47 }
 0x76b   : > { %13484 = vmatprep.mubr.bf16.mxu1 %v10429_v13  ;;  %v20957_v13 = vld [vmem:[#allocation118_spill] sm:$0xff] }
 0x76d   : > { %v13346_v32 = vpop.f32.mrb[72].mxu1 }
 0x76e   : > { %v19358_v20 = vadd.f32 %v13346_v32, %v19217_v26  ;;  %v9629_v0 = vpop.f32.mrb[73].mxu1 }
 0x76f   : > { %v19361_v59 = vadd.f32 %v9629_v0, %v19220_v9  ;;  %v13347_v7 = vpop.f32.mrb[74].mxu1  ;;  %v14530_v9 = vld [vmem:[#allocation2 + $0xb8] sm:$0xff] }
 0x770   : > { %v19364_v8 = vadd.f32 %v13347_v7, %v19223_v24  ;;  %v9632_v6 = vpop.f32.mrb[75].mxu1  ;;  %v10436_v49 = vrot.slane %v14530_v9, 4  ;;  %v20956_v24 = vld [vmem:[#allocation104_spill] sm:$0xff] }
 0x771   : > { %v10435_v17 = vsel %vm7564_vm10, %v10432_v47, %v20956_v24  ;;  %v10442_v47 = vrot.slane %v14532_v41, 4  ;;  %v14533_v6 = vld [vmem:[#allocation2] sm:$0xff] }
 0x772   : > { %13485 = vmatmul.mubr.bf16.gmra.mrb[180].mxu1 %v10431_v15  ;;  %v10437_v25 = vsel %vm7564_vm10, %v20956_v24, %v10436_v49  ;;  %v10444_v45 = vrot.slane %v14533_v6, 4 }
 0x773   : > { %13488 = vmatprep.mubr.bf16.mxu1 %v10433_v36 }
 0x774   : > { %v10445_v9 = vsel %vm7564_vm10, %v10442_v47, %v10444_v45 }
 0x775   : > { %v13350_v26 = vpop.f32.mrb[76].mxu1 }
 0x776   : > { %v19371_v48 = vadd.f32 %v13350_v26, %v19228_v38  ;;  %v9644_v37 = vpop.f32.mrb[77].mxu1  ;;  %v14531_v38 = vld [vmem:[#allocation2 + $0xc8] sm:$0xff] }
 0x777   : > { %v13351_v62 = vpop.f32.mrb[78].mxu1  ;;  %v10440_v30 = vrot.slane %v14531_v38, 4 }
 0x778   : > { %v9646_v10 = vpop.f32.mrb[79].mxu1 }
 0x779   : > { %v19376_v60 = vadd.f32 %v9646_v10, %v19231_v27  ;;  %v10439_v27 = vsel %vm7564_vm10, %v10436_v49, %v20957_v13  ;;  %v10441_v0 = vsel %vm7564_vm10, %v20957_v13, %v10440_v30  ;;  %v10443_v37 = vsel %vm7564_vm10, %v10440_v30, %v10442_v47 }
 0x77a   : > { %13489 = vmatmul.mubr.bf16.gmra.mrb[184].mxu1 %v10435_v17  ;;  %v10446_v49 = vrot.slane %v19247_v56, 4 }
 0x77b   : > { %13492 = vmatprep.mubr.bf16.mxu1 %v10437_v25 }
 0x77d   : > { %v13354_v16 = vpop.f32.mrb[80].mxu1 }
 0x77e   : > { %v9658_v23 = vpop.f32.mrb[81].mxu1 }
 0x77f   : > { %v19381_v4 = vadd.f32 %v9658_v23, %v19242_v1  ;;  %v13355_v35 = vpop.f32.mrb[82].mxu1 }
 0x780   : > { %v19384_v58 = vadd.f32 %v13355_v35, %v19245_v12  ;;  %v9661_v28 = vpop.f32.mrb[83].mxu1 }
 0x781   : > { %v19389_v32 = vadd.f32 %v9661_v28, %v19250_v55 }
 0x782   : > { %13493 = vmatmul.mubr.bf16.gmra.mrb[188].mxu1 %v10439_v27 }
 0x783   : > { %13496 = vmatprep.mubr.bf16.mxu1 %v10441_v0 }
 0x785   : > { %v13358_v1 = vpop.f32.mrb[84].mxu1 }
 0x786   : > { %v19394_v7 = vadd.f32 %v13358_v1, %v19262_v54  ;;  %v9673_v12 = vpop.f32.mrb[85].mxu1 }
 0x787   : > { %v19397_v15 = vadd.f32 %v9673_v12, %v19265_v61  ;;  %v13359_v36 = vpop.f32.mrb[86].mxu1  ;;  %v10447_v61 = vsel %vm7564_vm10, %v10444_v45, %v10446_v49 }
 0x788   : > { %v19400_v55 = vadd.f32 %v13359_v36, %v19268_v11  ;;  %v9676_v26 = vpop.f32.mrb[87].mxu1 }
 0x78a   : > { %13497 = vmatmul.mubr.bf16.gmra.mrb[192].mxu1 %v10443_v37 }
 0x78b   : > { %13500 = vmatprep.mubr.bf16.mxu1 %v10445_v9 }
 0x78d   : > { %v13362_v54 = vpop.f32.mrb[88].mxu1 }
 0x78e   : > { %v19406_v62 = vadd.f32 %v13362_v54, %v19275_v5  ;;  %v9688_v10 = vpop.f32.mrb[89].mxu1 }
 0x78f   : > { %v13363_v24 = vpop.f32.mrb[90].mxu1 }
 0x790   : > { %v9690_v17 = vpop.f32.mrb[91].mxu1 }
 0x791   : > { %v19410_v11 = vadd.f32 %v9690_v17, %v19279_v18 }
 0x792   : > { %13501 = vmatmul.mubr.bf16.gmra.mrb[196].mxu1 %v10447_v61 }
 0x795   : > { %v13366_v25 = vpop.f32.mrb[92].mxu1 }
 0x796   : > { %v9702_v16 = vpop.f32.mrb[93].mxu1 }
 0x797   : > { %v19413_v23 = vadd.f32 %v9702_v16, %v19283_v63  ;;  %v13367_v56 = vpop.f32.mrb[94].mxu1 }
 0x798   : > { %v19416_v38 = vadd.f32 %v13367_v56, %v19286_v31  ;;  %v9705_v5 = vpop.f32.mrb[95].mxu1 }
 0x799   : > { %v19419_v30 = vadd.f32 %v9705_v5, %v19290_v19 }
 0x79d   : > { %v13370_v35 = vpop.f32.mrb[96].mxu1 }
 0x79e   : > { %v19422_v28 = vadd.f32 %v13370_v35, %v19294_v50  ;;  %v9717_v18 = vpop.f32.mrb[97].mxu1 }
 0x79f   : > { %v19425_v13 = vadd.f32 %v9717_v18, %v19297_v44  ;;  %v13371_v27 = vpop.f32.mrb[98].mxu1 }
 0x7a0   : > { %v19428_v63 = vadd.f32 %v13371_v27, %v19300_v57  ;;  %v9720_v0 = vpop.f32.mrb[99].mxu1 }
 0x7a5   : > { %v13374_v41 = vpop.f32.mrb[100].mxu1 }
 0x7a6   : > { %v19431_v31 = vadd.f32 %v13374_v41, %v19305_v51  ;;  %v9732_v47 = vpop.f32.mrb[101].mxu1 }
 0x7a7   : > { %v13375_v19 = vpop.f32.mrb[102].mxu1 }
 0x7a8   : > { %v9734_v1 = vpop.f32.mrb[103].mxu1 }
 0x7a9   : > { %v19434_v12 = vadd.f32 %v9734_v1, %v19309_v42 }
 0x7ad   : > { %v13394_v50 = vpop.f32.mrb[104].mxu1 }
 0x7ae   : > { %v10149_v6 = vpop.f32.mrb[105].mxu1 }
 0x7af   : > { %v19437_v44 = vadd.f32 %v10149_v6, %v19313_v52  ;;  %v13395_v45 = vpop.f32.mrb[106].mxu1 }
 0x7b0   : > { %v19440_v57 = vadd.f32 %v13395_v45, %v19316_v53  ;;  %v10152_v36 = vpop.f32.mrb[107].mxu1 }
 0x7b1   : > { %v19443_v26 = vadd.f32 %v10152_v36, %v19320_v22 }
 0x7b5   : > { %v13398_v51 = vpop.f32.mrb[108].mxu1 }
 0x7b6   : > { %v19446_v37 = vadd.f32 %v13398_v51, %v19324_v46  ;;  %v10164_v9 = vpop.f32.mrb[109].mxu1 }
 0x7b7   : > { %v19449_v42 = vadd.f32 %v10164_v9, %v19327_v2  ;;  %v13399_v49 = vpop.f32.mrb[110].mxu1 }
 0x7b8   : > { %v19452_v52 = vadd.f32 %v13399_v49, %v19330_v40  ;;  %v10167_v54 = vpop.f32.mrb[111].mxu1 }
 0x7bd   : > { %v13402_v10 = vpop.f32.mrb[112].mxu1 }
 0x7be   : > { %v19455_v53 = vadd.f32 %v13402_v10, %v19335_v21  ;;  %v10179_v61 = vpop.f32.mrb[113].mxu1 }
 0x7bf   : > { %v13403_v22 = vpop.f32.mrb[114].mxu1 }
 0x7c0   : > { %v10181_v24 = vpop.f32.mrb[115].mxu1 }
 0x7c1   : > { %v19458_v17 = vadd.f32 %v10181_v24, %v19340_v33 }
 0x7c5   : > { %v13406_v46 = vpop.f32.mrb[116].mxu1 }
 0x7c6   : > { %v10193_v25 = vpop.f32.mrb[117].mxu1 }
 0x7c7   : > { %v19461_v2 = vadd.f32 %v10193_v25, %v19345_v43  ;;  %v13407_v16 = vpop.f32.mrb[118].mxu1 }
 0x7c8   : > { %v19464_v40 = vadd.f32 %v13407_v16, %v19348_v14  ;;  %v10196_v56 = vpop.f32.mrb[119].mxu1 }
 0x7c9   : > { %v19467_v5 = vadd.f32 %v10196_v56, %v19353_v34 }
 0x7cd   : > { %v13410_v21 = vpop.f32.mrb[120].mxu1 }
 0x7ce   : > { %v19470_v35 = vadd.f32 %v13410_v21, %v19358_v20  ;;  %v10208_v18 = vpop.f32.mrb[121].mxu1 }
 0x7cf   : > { %v19473_v33 = vadd.f32 %v10208_v18, %v19361_v59  ;;  %v13411_v27 = vpop.f32.mrb[122].mxu1 }
 0x7d0   : > { %v19476_v43 = vadd.f32 %v13411_v27, %v19364_v8  ;;  %v10211_v0 = vpop.f32.mrb[123].mxu1 }
 0x7d5   : > { %v13414_v41 = vpop.f32.mrb[124].mxu1 }
 0x7d6   : > { %v19479_v14 = vadd.f32 %v13414_v41, %v19371_v48  ;;  %v10223_v47 = vpop.f32.mrb[125].mxu1 }
 0x7d7   : > { %v13415_v34 = vpop.f32.mrb[126].mxu1 }
 0x7d8   : > { %v10225_v19 = vpop.f32.mrb[127].mxu1 }
 0x7d9   : > { %v19482_v1 = vadd.f32 %v10225_v19, %v19376_v60 }
 0x7dd   : > { %v13418_v20 = vpop.f32.mrb[128].mxu1 }
 0x7de   : > { %v10237_v50 = vpop.f32.mrb[129].mxu1 }
 0x7df   : > { %v19485_v59 = vadd.f32 %v10237_v50, %v19381_v4  ;;  %v13419_v6 = vpop.f32.mrb[130].mxu1 }
 0x7e0   : > { %v19488_v8 = vadd.f32 %v13419_v6, %v19384_v58  ;;  %v10240_v45 = vpop.f32.mrb[131].mxu1 }
 0x7e1   : > { %v19491_v36 = vadd.f32 %v10240_v45, %v19389_v32 }
 0x7e5   : > { %v13422_v48 = vpop.f32.mrb[132].mxu1 }
 0x7e6   : > { %v19494_v51 = vadd.f32 %v13422_v48, %v19394_v7  ;;  %v10252_v9 = vpop.f32.mrb[133].mxu1  ;;  %v19502_v58 = vpop.f32.mrb[92].mxu0 }
 0x7e7   : > { %v19497_v60 = vadd.f32 %v10252_v9, %v19397_v15  ;;  %v13423_v49 = vpop.f32.mrb[134].mxu1  ;;  %v11156_v22 = vpop.f32.mrb[93].mxu0 }
 0x7e8   : > { %v19500_v4 = vadd.f32 %v13423_v49, %v19400_v55  ;;  %v10255_v54 = vpop.f32.mrb[135].mxu1  ;;  %v13567_v7 = vpop.f32.mrb[94].mxu0 }
 0x7e9   : > { %v19507_v25 = vpop.f32.mrb[95].mxu0  ;;  %v20958_v54 = vld [vmem:[#allocation90_spill] sm:$0xff]  ;;  %v20960_v7 = vld [vmem:[#allocation93_spill] sm:$0xff] }
 0x7ed   : > { %v13426_v10 = vpop.f32.mrb[136].mxu1 }
 0x7ee   : > { %v19505_v61 = vadd.f32 %v13426_v10, %v19406_v62  ;;  %v10267_v32 = vpop.f32.mrb[137].mxu1 }
 0x7ef   : > { %v13427_v24 = vpop.f32.mrb[138].mxu1 }
 0x7f0   : > { %v10269_v46 = vpop.f32.mrb[139].mxu1 }
 0x7f1   : > { %v19510_v15 = vadd.f32 %v10269_v46, %v19410_v11 }
 0x7f5   : > { %v13430_v16 = vpop.f32.mrb[140].mxu1 }
 0x7f6   : > { %v10281_v55 = vpop.f32.mrb[141].mxu1 }
 0x7f7   : > { %v19513_v56 = vadd.f32 %v10281_v55, %v19413_v23  ;;  %v13431_v21 = vpop.f32.mrb[142].mxu1 }
 0x7f8   : > { %v19516_v18 = vadd.f32 %v13431_v21, %v19416_v38  ;;  %v10284_v62 = vpop.f32.mrb[143].mxu1 }
 0x7f9   : > { %v19519_v27 = vadd.f32 %v10284_v62, %v19419_v30 }
 0x7fd   : > { %v13434_v0 = vpop.f32.mrb[144].mxu1 }
 0x7fe   : > { %v19522_v41 = vadd.f32 %v13434_v0, %v19422_v28  ;;  %v10296_v47 = vpop.f32.mrb[145].mxu1 }
 0x7ff   : > { %v19525_v11 = vadd.f32 %v10296_v47, %v19425_v13  ;;  %v13435_v34 = vpop.f32.mrb[146].mxu1 }
 0x800   : > { %v19528_v23 = vadd.f32 %v13435_v34, %v19428_v63  ;;  %v10299_v19 = vpop.f32.mrb[147].mxu1  ;;  %v19540_v63 = vld [vmem:[%s19727_s4] ss:$0 sm:$0xff] }
 0x801   : > { %v20961_v19 = vld [vmem:[#allocation26_spill] sm:$0xff] }
 0x805   : > { %v13438_v38 = vpop.f32.mrb[148].mxu1 }
 0x806   : > { %v19531_v20 = vadd.f32 %v13438_v38, %v19431_v31  ;;  %v10311_v30 = vpop.f32.mrb[149].mxu1 }
 0x807   : > { %v13439_v50 = vpop.f32.mrb[150].mxu1 }
 0x808   : > { %v10313_v6 = vpop.f32.mrb[151].mxu1 }
 0x809   : > { %v19534_v28 = vadd.f32 %v10313_v6, %v19434_v12  ;;  %v20959_v12 = vld [vmem:[#allocation91_spill] sm:$0xff] }
 0x80d   : > { %v13458_v45 = vpop.f32.mrb[152].mxu1 }
 0x80e   : > { %v10554_v48 = vpop.f32.mrb[153].mxu1 }
 0x80f   : > { %v10729_v13 = vadd.f32 %v10554_v48, %v19437_v44  ;;  %v13459_v9 = vpop.f32.mrb[154].mxu1  ;;  %v20963_v48 = vld [vmem:[#allocation130_spill] sm:$0xff] }
 0x810   : > { %v10731_v49 = vadd.f32 %v13459_v9, %v19440_v57  ;;  %v10557_v31 = vpop.f32.mrb[155].mxu1 }
 0x811   : > { %v11169_v10 = vadd.f32 %v20958_v54, %v10729_v13  ;;  %v10730_v32 = vadd.f32 %v10557_v31, %v19443_v26 }
 0x812   : > { %v11171_v22 = vadd.f32 %v20959_v12, %v10731_v49 }
 0x813   : > { %v11208_v24 = vadd.f32 %v19540_v63, %v11169_v10  ;;  %v11170_v44 = vadd.f32 %v20960_v7, %v10730_v32 }
 0x814   : > { %v11210_v46 = vadd.f32 %v19540_v63, %v11171_v22  ;;  %v20964_v22 = vld [vmem:[#allocation23_spill] sm:$0xff] }
 0x815   : > { %v11240_v16 = vmax.f32 %v11208_v24, 0.0  ;;  %v11209_v55 = vadd.f32 %v19540_v63, %v11170_v44  ;;  %v13462_v21 = vpop.f32.mrb[156].mxu1 }
 0x816   : > { %v11242_v62 = vmax.f32 %v11210_v46, 0.0  ;;  %v10733_v57 = vadd.f32 %v13462_v21, %v19446_v37  ;;  %v10569_v0 = vpop.f32.mrb[157].mxu1  ;;  %v20962_v37 = vld [vmem:[#allocation22_spill] sm:$0xff] }
 0x817   : > { %11272 = vst [vmem:[%s19552_s15] sm:$0xff] %v11240_v16  ;;  %v11241_v26 = vmax.f32 %v11209_v55, 0.0  ;;  %v10732_v47 = vadd.f32 %v10569_v0, %v19449_v42  ;;  %v13463_v34 = vpop.f32.mrb[158].mxu1  ;;  %v20965_v16 = vld [vmem:[#allocation36_spill] sm:$0xff] }
 0x818   : > { %11274 = vst [vmem:[%s19552_s15 + $0x10] sm:$0xff] %v11242_v62  ;;  %v11173_v38 = vadd.f32 %v20961_v19, %v10733_v57  ;;  %v10734_v30 = vadd.f32 %v13463_v34, %v19452_v52  ;;  %v10572_v50 = vpop.f32.mrb[159].mxu1 }
 0x819   : > { %11273 = vst [vmem:[%s19552_s15 + $0x8] sm:$0xff] %v11241_v26  ;;  %v11172_v6 = vadd.f32 %v20962_v37, %v10732_v47  ;;  %v20967_v50 = vld [vmem:[#allocation99_spill] sm:$0xff] }
 0x81a   : > { %v11212_v45 = vadd.f32 %v19540_v63, %v11173_v38  ;;  %v11174_v13 = vadd.f32 %v20963_v48, %v10734_v30 }
 0x81b   : > { %v11211_v9 = vadd.f32 %v19540_v63, %v11172_v6 }
 0x81c   : > { %v11244_v49 = vmax.f32 %v11212_v45, 0.0  ;;  %v11213_v42 = vadd.f32 %v19540_v63, %v11174_v13  ;;  %v20968_v45 = vld [vmem:[#allocation100_spill] sm:$0xff] }
 0x81d   : > { %v11243_v31 = vmax.f32 %v11211_v9, 0.0  ;;  %v13466_v54 = vpop.f32.mrb[160].mxu1 }
 0x81e   : > { %11276 = vst [vmem:[%s19552_s15 + $0x20] sm:$0xff] %v11244_v49  ;;  %v11245_v10 = vmax.f32 %v11213_v42, 0.0  ;;  %v10736_v52 = vadd.f32 %v13466_v54, %v19455_v53  ;;  %v10584_v32 = vpop.f32.mrb[161].mxu1 }
 0x81f   : > { %11275 = vst [vmem:[%s19552_s15 + $0x18] sm:$0xff] %v11243_v31  ;;  %v13467_v12 = vpop.f32.mrb[162].mxu1 }
 0x820   : > { %11277 = vst [vmem:[%s19552_s15 + $0x28] sm:$0xff] %v11245_v10  ;;  %v11176_v24 = vadd.f32 %v20964_v22, %v10736_v52  ;;  %v10586_v7 = vpop.f32.mrb[163].mxu1  ;;  %v20969_v52 = vld [vmem:[#allocation103_spill] sm:$0xff] }
 0x821   : > { %v10735_v44 = vadd.f32 %v10586_v7, %v19458_v17  ;;  %v20966_v17 = vld [vmem:[#allocation19_spill] sm:$0xff] }
 0x822   : > { %v11215_v46 = vadd.f32 %v19540_v63, %v11176_v24  ;;  %v20970_v24 = vld [vmem:[#allocation105_spill] sm:$0xff] }
 0x823   : > { %v11175_v55 = vadd.f32 %v20965_v16, %v10735_v44  ;;  %v20971_v44 = vld [vmem:[#allocation17_spill] sm:$0xff] }
 0x824   : > { %v11247_v21 = vmax.f32 %v11215_v46, 0.0 }
 0x825   : > { %v11214_v62 = vadd.f32 %v19540_v63, %v11175_v55  ;;  %v13470_v57 = vpop.f32.mrb[164].mxu1 }
 0x826   : > { %11279 = vst [vmem:[%s19552_s15 + $0x38] sm:$0xff] %v11247_v21  ;;  %v10598_v53 = vpop.f32.mrb[165].mxu1 }
 0x827   : > { %v11246_v0 = vmax.f32 %v11214_v62, 0.0  ;;  %v10737_v26 = vadd.f32 %v10598_v53, %v19461_v2  ;;  %v13471_v47 = vpop.f32.mrb[166].mxu1 }
 0x828   : > { %v10739_v34 = vadd.f32 %v13471_v47, %v19464_v40  ;;  %v10601_v19 = vpop.f32.mrb[167].mxu1 }
 0x829   : > { %11278 = vst [vmem:[%s19552_s15 + $0x30] sm:$0xff] %v11246_v0  ;;  %v11177_v38 = vadd.f32 %v20966_v17, %v10737_v26  ;;  %v10738_v30 = vadd.f32 %v10601_v19, %v19467_v5  ;;  %v20972_v26 = vld [vmem:[#allocation18_spill] sm:$0xff] }
 0x82a   : > { %v11179_v37 = vadd.f32 %v20967_v50, %v10739_v34 }
 0x82b   : > { %v11216_v6 = vadd.f32 %v19540_v63, %v11177_v38  ;;  %v11178_v48 = vadd.f32 %v20968_v45, %v10738_v30  ;;  %v20973_v38 = vld [vmem:[#allocation21_spill] sm:$0xff] }
 0x82c   : > { %v11218_v2 = vadd.f32 %v19540_v63, %v11179_v37 }
 0x82d   : > { %v11248_v13 = vmax.f32 %v11216_v6, 0.0  ;;  %v11217_v9 = vadd.f32 %v19540_v63, %v11178_v48  ;;  %v13474_v40 = vpop.f32.mrb[168].mxu1 }
 0x82e   : > { %v11250_v49 = vmax.f32 %v11218_v2, 0.0  ;;  %v10741_v42 = vadd.f32 %v13474_v40, %v19470_v35  ;;  %v10613_v31 = vpop.f32.mrb[169].mxu1 }
 0x82f   : > { %11280 = vst [vmem:[%s19552_s15 + $0x40] sm:$0xff] %v11248_v13  ;;  %v11249_v54 = vmax.f32 %v11217_v9, 0.0  ;;  %v10740_v5 = vadd.f32 %v10613_v31, %v19473_v33  ;;  %v13475_v10 = vpop.f32.mrb[170].mxu1 }
 0x830   : > { %11282 = vst [vmem:[%s19552_s15 + $0x50] sm:$0xff] %v11250_v49  ;;  %v11181_v32 = vadd.f32 %v20969_v52, %v10741_v42  ;;  %v10742_v12 = vadd.f32 %v13475_v10, %v19476_v43  ;;  %v10616_v22 = vpop.f32.mrb[171].mxu1  ;;  %v20975_v42 = vld [vmem:[#allocation31_spill] sm:$0xff] }
 0x831   : > { %11281 = vst [vmem:[%s19552_s15 + $0x48] sm:$0xff] %v11249_v54  ;;  %v11180_v7 = vadd.f32 %v20970_v24, %v10740_v5  ;;  %v20976_v5 = vld [vmem:[#allocation25_spill] sm:$0xff] }
 0x832   : > { %v11220_v35 = vadd.f32 %v19540_v63, %v11181_v32  ;;  %v11182_v46 = vadd.f32 %v20971_v44, %v10742_v12  ;;  %v20977_v44 = vld [vmem:[#allocation41_spill] sm:$0xff] }
 0x833   : > { %v11219_v16 = vadd.f32 %v19540_v63, %v11180_v7 }
 0x834   : > { %v11252_v55 = vmax.f32 %v11220_v35, 0.0  ;;  %v11221_v33 = vadd.f32 %v19540_v63, %v11182_v46 }
 0x835   : > { %v11251_v21 = vmax.f32 %v11219_v16, 0.0  ;;  %v13478_v62 = vpop.f32.mrb[172].mxu1 }
 0x836   : > { %11284 = vst [vmem:[%s19552_s15 + $0x60] sm:$0xff] %v11252_v55  ;;  %v11253_v57 = vmax.f32 %v11221_v33, 0.0  ;;  %v10744_v43 = vadd.f32 %v13478_v62, %v19479_v14  ;;  %v10628_v53 = vpop.f32.mrb[173].mxu1  ;;  %v20978_v33 = vld [vmem:[#allocation37_spill] sm:$0xff]  ;;  %v20979_v62 = vld [vmem:[#allocation20_spill] sm:$0xff] }
 0x837   : > { %11283 = vst [vmem:[%s19552_s15 + $0x58] sm:$0xff] %v11251_v21  ;;  %v13479_v0 = vpop.f32.mrb[174].mxu1 }
 0x838   : > { %11285 = vst [vmem:[%s19552_s15 + $0x68] sm:$0xff] %v11253_v57  ;;  %v11184_v47 = vadd.f32 %v20972_v26, %v10744_v43  ;;  %v10630_v34 = vpop.f32.mrb[175].mxu1 }
 0x839   : > { %v10743_v19 = vadd.f32 %v10630_v34, %v19482_v1  ;;  %v20974_v1 = vld [vmem:[#allocation39_spill] sm:$0xff] }
 0x83a   : > { %v11223_v17 = vadd.f32 %v19540_v63, %v11184_v47 }
 0x83b   : > { %v11183_v30 = vadd.f32 %v20973_v38, %v10743_v19 }
 0x83c   : > { %v11255_v50 = vmax.f32 %v11223_v17, 0.0  ;;  %v20980_v17 = vld [vmem:[#allocation68_spill] sm:$0xff] }
 0x83d   : > { %v11222_v37 = vadd.f32 %v19540_v63, %v11183_v30  ;;  %v13482_v6 = vpop.f32.mrb[176].mxu1 }
 0x83e   : > { %11287 = vst [vmem:[%s19552_s15 + $0x78] sm:$0xff] %v11255_v50  ;;  %v10642_v14 = vpop.f32.mrb[177].mxu1  ;;  %v20981_v6 = vld [vmem:[#allocation32_spill] sm:$0xff] }
 0x83f   : > { %v11254_v45 = vmax.f32 %v11222_v37, 0.0  ;;  %v10745_v48 = vadd.f32 %v10642_v14, %v19485_v59  ;;  %v13483_v2 = vpop.f32.mrb[178].mxu1 }
 0x840   : > { %v10747_v13 = vadd.f32 %v13483_v2, %v19488_v8  ;;  %v10645_v9 = vpop.f32.mrb[179].mxu1 }
 0x841   : > { %11286 = vst [vmem:[%s19552_s15 + $0x70] sm:$0xff] %v11254_v45  ;;  %v11185_v40 = vadd.f32 %v20974_v1, %v10745_v48  ;;  %v10746_v49 = vadd.f32 %v10645_v9, %v19491_v36 }
 0x842   : > { %v11187_v31 = vadd.f32 %v20975_v42, %v10747_v13 }
 0x843   : > { %v11224_v54 = vadd.f32 %v19540_v63, %v11185_v40  ;;  %v11186_v10 = vadd.f32 %v20976_v5, %v10746_v49 }
 0x844   : > { %v11226_v59 = vadd.f32 %v19540_v63, %v11187_v31 }
 0x845   : > { %v11256_v52 = vmax.f32 %v11224_v54, 0.0  ;;  %v11225_v32 = vadd.f32 %v19540_v63, %v11186_v10  ;;  %v13486_v8 = vpop.f32.mrb[180].mxu1  ;;  %v20983_v54 = vld [vmem:[#allocation47_spill] sm:$0xff] }
 0x846   : > { %v11258_v12 = vmax.f32 %v11226_v59, 0.0  ;;  %v10749_v22 = vadd.f32 %v13486_v8, %v19494_v51  ;;  %v10657_v24 = vpop.f32.mrb[181].mxu1  ;;  %v20984_v59 = vld [vmem:[#allocation55_spill] sm:$0xff] }
 0x847   : > { %11288 = vst [vmem:[%s19552_s15 + $0x80] sm:$0xff] %v11256_v52  ;;  %v11257_v7 = vmax.f32 %v11225_v32, 0.0  ;;  %v10748_v36 = vadd.f32 %v10657_v24, %v19497_v60  ;;  %v13487_v35 = vpop.f32.mrb[182].mxu1 }
 0x848   : > { %11290 = vst [vmem:[%s19552_s15 + $0x90] sm:$0xff] %v11258_v12  ;;  %v11189_v46 = vadd.f32 %v20977_v44, %v10749_v22  ;;  %v10750_v16 = vadd.f32 %v13487_v35, %v19500_v4  ;;  %v10660_v55 = vpop.f32.mrb[183].mxu1 }
 0x849   : > { %11289 = vst [vmem:[%s19552_s15 + $0x88] sm:$0xff] %v11257_v7  ;;  %v11188_v21 = vadd.f32 %v20978_v33, %v10748_v36 }
 0x84a   : > { %v11228_v51 = vadd.f32 %v19540_v63, %v11189_v46  ;;  %v11190_v57 = vadd.f32 %v20979_v62, %v10750_v16 }
 0x84b   : > { %v11227_v43 = vadd.f32 %v19540_v63, %v11188_v21 }
 0x84c   : > { %v11260_v53 = vmax.f32 %v11228_v51, 0.0  ;;  %v11229_v60 = vadd.f32 %v19540_v63, %v11190_v57 }
 0x84d   : > { %v11259_v0 = vmax.f32 %v11227_v43, 0.0  ;;  %v13490_v26 = vpop.f32.mrb[184].mxu1 }
 0x84e   : > { %11292 = vst [vmem:[%s19552_s15 + $0xa0] sm:$0xff] %v11260_v53  ;;  %v11261_v47 = vmax.f32 %v11229_v60, 0.0  ;;  %v10752_v4 = vadd.f32 %v13490_v26, %v19505_v61  ;;  %v10672_v34 = vpop.f32.mrb[185].mxu1 }
 0x84f   : > { %11291 = vst [vmem:[%s19552_s15 + $0x98] sm:$0xff] %v11259_v0  ;;  %v13491_v19 = vpop.f32.mrb[186].mxu1 }
 0x850   : > { %11293 = vst [vmem:[%s19552_s15 + $0xa8] sm:$0xff] %v11261_v47  ;;  %v11192_v38 = vadd.f32 %v20980_v17, %v10752_v4  ;;  %v10674_v30 = vpop.f32.mrb[187].mxu1 }
 0x851   : > { %v10751_v50 = vadd.f32 %v10674_v30, %v19510_v15  ;;  %v20982_v15 = vld [vmem:[#allocation34_spill] sm:$0xff] }
 0x852   : > { %v11231_v37 = vadd.f32 %v19540_v63, %v11192_v38 }
 0x853   : > { %v11191_v14 = vadd.f32 %v20981_v6, %v10751_v50 }
 0x854   : > { %v11263_v45 = vmax.f32 %v11231_v37, 0.0 }
 0x855   : > { %v11230_v48 = vadd.f32 %v19540_v63, %v11191_v14  ;;  %v13494_v2 = vpop.f32.mrb[188].mxu1 }
 0x856   : > { %11295 = vst [vmem:[%s19552_s15 + $0xb8] sm:$0xff] %v11263_v45  ;;  %v10686_v61 = vpop.f32.mrb[189].mxu1 }
 0x857   : > { %v11262_v13 = vmax.f32 %v11230_v48, 0.0  ;;  %v10753_v9 = vadd.f32 %v10686_v61, %v19513_v56  ;;  %v13495_v1 = vpop.f32.mrb[190].mxu1 }
 0x858   : > { %v10755_v40 = vadd.f32 %v13495_v1, %v19516_v18  ;;  %v10689_v49 = vpop.f32.mrb[191].mxu1 }
 0x859   : > { %11294 = vst [vmem:[%s19552_s15 + $0xb0] sm:$0xff] %v11262_v13  ;;  %v11193_v42 = vadd.f32 %v20982_v15, %v10753_v9  ;;  %v10754_v31 = vadd.f32 %v10689_v49, %v19519_v27 }
 0x85a   : > { %v11195_v5 = vadd.f32 %v20983_v54, %v10755_v40 }
 0x85b   : > { %v11232_v10 = vadd.f32 %v19540_v63, %v11193_v42  ;;  %v11194_v52 = vadd.f32 %v20984_v59, %v10754_v31 }
 0x85c   : > { %v11234_v56 = vadd.f32 %v19540_v63, %v11195_v5 }
 0x85d   : > { %v11264_v32 = vmax.f32 %v11232_v10, 0.0  ;;  %v11233_v8 = vadd.f32 %v19540_v63, %v11194_v52  ;;  %v13498_v18 = vpop.f32.mrb[192].mxu1 }
 0x85e   : > { %v11266_v12 = vmax.f32 %v11234_v56, 0.0  ;;  %v10757_v22 = vadd.f32 %v13498_v18, %v19522_v41  ;;  %v10701_v24 = vpop.f32.mrb[193].mxu1 }
 0x85f   : > { %11296 = vst [vmem:[%s19552_s15 + $0xc0] sm:$0xff] %v11264_v32  ;;  %v11265_v7 = vmax.f32 %v11233_v8, 0.0  ;;  %v10756_v27 = vadd.f32 %v10701_v24, %v19525_v11  ;;  %v13499_v36 = vpop.f32.mrb[194].mxu1 }
 0x860   : > { %11298 = vst [vmem:[%s19552_s15 + $0xd0] sm:$0xff] %v11266_v12  ;;  %v11197_v35 = vadd.f32 %v18752_v29, %v10757_v22  ;;  %v10758_v44 = vadd.f32 %v13499_v36, %v19528_v23  ;;  %v10704_v46 = vpop.f32.mrb[195].mxu1 }
 0x861   : > { %11297 = vst [vmem:[%s19552_s15 + $0xc8] sm:$0xff] %v11265_v7  ;;  %v11196_v16 = vadd.f32 %v18757_v3, %v10756_v27 }
 0x862   : > { %v11236_v41 = vadd.f32 %v19540_v63, %v11197_v35  ;;  %v11198_v55 = vadd.f32 %v18759_v39, %v10758_v44 }
 0x863   : > { %v11235_v33 = vadd.f32 %v19540_v63, %v11196_v16 }
 0x864   : > { %v11268_v21 = vmax.f32 %v11236_v41, 0.0  ;;  %v11237_v11 = vadd.f32 %v19540_v63, %v11198_v55 }
 0x865   : > { %v11267_v29 = vmax.f32 %v11235_v33, 0.0  ;;  %v13502_v51 = vpop.f32.mrb[196].mxu1 }
 0x866   : > { %11300 = vst [vmem:[%s19552_s15 + $0xe0] sm:$0xff] %v11268_v21  ;;  %v11269_v23 = vmax.f32 %v11237_v11, 0.0  ;;  %v10760_v62 = vadd.f32 %v13502_v51, %v19531_v20  ;;  %v10716_v57 = vpop.f32.mrb[197].mxu1 }
 0x867   : > { %11299 = vst [vmem:[%s19552_s15 + $0xd8] sm:$0xff] %v11267_v29  ;;  %v13503_v3 = vpop.f32.mrb[198].mxu1 }
 0x868   : > { %11301 = vst [vmem:[%s19552_s15 + $0xe8] sm:$0xff] %v11269_v23  ;;  %v11200_v39 = vadd.f32 %v19502_v58, %v10760_v62  ;;  %v10718_v43 = vpop.f32.mrb[199].mxu1 }
 0x869   : > { %v10759_v53 = vadd.f32 %v10718_v43, %v19534_v28 }
 0x86a   : > { %v11239_v60 = vadd.f32 %v19540_v63, %v11200_v39 }
 0x86b   : > { %v11199_v0 = vadd.f32 %v19507_v25, %v10759_v53 }
 0x86c   : > { %v11271_v26 = vmax.f32 %v11239_v60, 0.0 }
 0x86d   : > { %v11238_v20 = vadd.f32 %v19540_v63, %v11199_v0 }
 0x86e   : > { %11303 = vst [vmem:[%s19552_s15 + $0xf8] sm:$0xff] %v11271_v26 }
 0x86f   : > { %v11270_v58 = vmax.f32 %v11238_v20, 0.0 }
 0x871   : > { %11302 = vst [vmem:[%s19552_s15 + $0xf0] sm:$0xff] %v11270_v58 }
 0x872   : > { %14661 = shalt.err (!%p14658_p4)
}
 0x873   : > { %s14662_s12 = scalar_lea.hbm %s19676_s30, 4096  ;;  %s14666_s13 = scalar_lea.hbm %s19730_s7, 8192 }
 0x874   : > { %p14663_p9 = scmp.ne.s32.totalorder %s19676_s30, %s14662_s12  ;;  %p14667_p8 = scmp.lt.u32.totalorder %s19676_s30, %s19730_s7 }
 0x875   : > { %p14668_p13 = scmp.lt.u32.totalorder %s14666_s13, %s14662_s12  ;;  %p14670_p10 = scmp.lt.u32.totalorder %s14662_s12, %s19676_s30 }
 0x876   : > { %p14664_p0 = pnand %p14663_p9, %p14928_p5 }
 0x877   : > { %p14669_p6 = por %p14668_p13, %p14667_p8 }
 0x878   : > { %p14665_p11 = pneg %p14664_p0 }
 0x879   : > { %p14671_p3 = por %p14670_p10, %p14669_p6 }
 0x87b   : > { %p14672_p7 = pnand %p14671_p3, %p14665_p11 }
 0x87d   : > { %14675 = shalt.err (!%p14672_p7)
}
 0x87e   : > { %s14732_s10 = smov 128   ;;  %s14733_s20 = smov 8  }
 0x87f   : > { %14081 = dma.vmem_to_hbm [thread:$0]  (%p14928_p5), %s19678_s29, 4096, %s19676_s30, %s11305_s9, %s14732_s10, %s14732_s10, %s14733_s20  }
 0x880 PF: > { %s20985_s23 = sld [smem:[#allocation16_spill]]  ;;  %s11333_s28 = sand.u32 1, %s14710_s24  }
 0x881   : > { %p20987_p1 = scmp.ge.s32.totalorder %s14722_s27, 2  ;;  %s11334_s11 = scalar_lea.sflag [#allocation5], %s11333_s28 }
 0x886   : > { %p20986_p12 = scmp.ne.s32.totalorder %s20985_s23, 0 }
 0x888   : > { %p14098_p2 = pnand %p20987_p1, %p20986_p12 }
 0x88a   : > { %14705 = dma.done.wait (!%p14098_p2), %s11334_s11, 4096  }
 0x88b   : > { %14707 = vsyncadd (!%p14098_p2), %s11334_s11, 4294963200  ;;  %p22_p4 = scmp.ge.s32.totalorder %s14914_s22, 4   ;;  %s20988_s24 = smov %s14714_s25 }
 0x88c   : > { %s20989_s25 = smov %s14718_s26  ;;  %s20990_s26 = smov %s14924_s18 }
 0x88d   : > { %s20991_s27 = smov %s14914_s22  ;;  %24 = sbr.rel (!%p22_p4) target bundleno = 7 (0x7), region = 121 }
 0x894   :  { %11339 = vsyncpa [#allocation4], 1 }
 0x895   :  { %11341 = vsyncpa [#allocation4 + $0x1], 1 }
 0x896   :  { %11342 = vsyncpa [#allocation7], 1 }
 0x897   :  { %11343 = vsyncpa [#allocation10], 1 }
 0x898   :  { %11344 = vsyncpa [#allocation5], 1 }
 0x899   :  { %11346 = vsyncpa [#allocation5 + $0x1], 1 }

</bundles_post_ra>
